<compile_context>
chip_gen: v7x
topology: tpu7x:2x2x1
jax: 0.10.0
libtpu: 0.0.40
codegen_flags: <defaults>
</compile_context>

<pallas_src>
import functools

import jax
import jax.numpy as jnp
from jax.experimental import pallas as pl
from jax.experimental.pallas import tpu as pltpu

CONDITION_SIZE = 10
IN_FEATURES = 784 + CONDITION_SIZE   # 794
IN_PADDED = 896                      # next multiple of 128 (lane-aligned K for fc1)
H3 = 1024
H2 = 512
H1 = 256
OUT = 1

NEG_SLOPE = 0.01  # nn.LeakyReLU() default


def _leaky_relu(v):
    # Valid for 0 < slope < 1: max(v, slope*v) == leaky_relu(v).  2 VPU ops, not 3.
    return jnp.maximum(v, NEG_SLOPE * v)


def _round_up(n, m):
    return ((n + m - 1) // m) * m


def discriminator_kernel(x_ref,
                         w1_ref, b1_ref,
                         w2_ref, b2_ref,
                         w3_ref, b3_ref,
                         w4_ref, b4_ref,
                         o_ref):
    # Feature-major / batch-minor: activations are [features, batch_tile], so the
    # batch rides the lane (minor) dimension end-to-end and the final
    # [1, batch_tile] store is an unmasked, lane-dense row.

    # fc1: [1024, 896]bf16 @ [896, T]bf16 -> f32 accumulate on the MXU.
    h = jnp.dot(w1_ref[...], x_ref[...], preferred_element_type=jnp.float32)
    h = _leaky_relu(h + b1_ref[...])

    # fc2: [512, 1024] @ [1024, T]
    h = jnp.dot(w2_ref[...], h.astype(jnp.bfloat16),
                preferred_element_type=jnp.float32)
    h = _leaky_relu(h + b2_ref[...])

    # fc3: [256, 512] @ [512, T]
    h = jnp.dot(w3_ref[...], h.astype(jnp.bfloat16),
                preferred_element_type=jnp.float32)
    h = _leaky_relu(h + b3_ref[...])

    # fc4 (256 -> 1): keep it off the MXU; VPU multiply + XLU sublane reduction.
    logits = jnp.sum(h * w4_ref[...], axis=0, keepdims=True) + b4_ref[...]   # [1, T]

    # sigmoid = 1 / (1 + exp(-x)): exp on the EUP, approx reciprocal rides the
    # otherwise-idle EUP slot in the serial epilogue.
    o_ref[...] = pl.reciprocal(1.0 + jnp.exp(-logits), approx=True).astype(o_ref.dtype)


def prepare_params(params):
    """One-time prep: PyTorch-layout f32 params -> padded / bf16 device arrays.

    Hoisted out of the per-call path so weight padding + casting isn't redone on
    every forward call.
    """
    (w1, b1), (w2, b2), (w3, b3), (w4, b4) = params
    w1p = jnp.zeros((H3, IN_PADDED), jnp.bfloat16)
    w1p = w1p.at[:, :IN_FEATURES].set(w1.astype(jnp.bfloat16))   # pad K: 794 -> 896
    w2p = w2.astype(jnp.bfloat16)                                # [512, 1024]
    w3p = w3.astype(jnp.bfloat16)                                # [256, 512]
    w4c = w4.astype(jnp.float32).reshape(OUT, H1).T              # [256, 1]; fc4 stays f32 on VPU
    b1c = b1.astype(jnp.float32).reshape(H3, 1)
    b2c = b2.astype(jnp.float32).reshape(H2, 1)
    b3c = b3.astype(jnp.float32).reshape(H1, 1)
    b4c = b4.astype(jnp.float32).reshape(OUT, 1)
    return (w1p, b1c, w2p, b2c, w3p, b3c, w4c, b4c)


@functools.partial(jax.jit, static_argnames=("batch_tile",))
def discriminator_forward(x, prepared, *, batch_tile=256):
    """x: [B, 794] f32.  prepared: output of prepare_params().  Returns [B, 1] f32."""
    B, F = x.shape
    assert F == IN_FEATURES
    w1p, b1c, w2p, b2c, w3p, b3c, w4c, b4c = prepared

    # Tile is a multiple of 128 (lane width / v5e MXU) but no larger than the padded
    # batch, so tiny batches don't pay for a full 256-wide tile.
    tile = min(batch_tile, max(128, _round_up(B, 128)))
    num_tiles = pl.cdiv(B, tile)
    B_pad = num_tiles * tile

    # Per-call input prep (all zero-padded, so results are exact): transpose to
    # feature-major, pad features 794 -> 896 and batch B -> B_pad.
    x_p = jnp.zeros((IN_PADDED, B_pad), jnp.bfloat16)
    x_p = x_p.at[:IN_FEATURES, :B].set(x.T.astype(jnp.bfloat16))

    def full_spec(arr):
        nd = arr.ndim
        return pl.BlockSpec(arr.shape, lambda i, _nd=nd: (0,) * _nd)

    params_bytes = sum(int(a.size) * a.dtype.itemsize
                       for a in (w1p, b1c, w2p, b2c, w3p, b3c, w4c, b4c))
    cost = pl.CostEstimate(
        flops=2 * B_pad * (IN_PADDED * H3 + H3 * H2 + H2 * H1 + H1 * OUT),
        transcendentals=2 * B_pad,   # exp + reciprocal per batch element
        bytes_accessed=int(x_p.size) * 2 + params_bytes + B_pad * 4,
    )

    out = pl.pallas_call(
        discriminator_kernel,
        out_shape=jax.ShapeDtypeStruct((1, B_pad), jnp.float32),
        grid_spec=pltpu.PrefetchScalarGridSpec(
            num_scalar_prefetch=0,
            grid=(num_tiles,),
            in_specs=[
                pl.BlockSpec((IN_PADDED, tile), lambda i: (0, i)),
                # Grid-invariant weights/biases: constant index_map -> fetched once,
                # no re-DMA across batch tiles.  (~3 MiB of bf16 weights fits the
                # 32 MiB scoped VMEM with plenty of headroom at these tile sizes.)
                full_spec(w1p), full_spec(b1c),
                full_spec(w2p), full_spec(b2c),
                full_spec(w3p), full_spec(b3c),
                full_spec(w4c), full_spec(b4c),
            ],
            # Lane-dense output row: no masked width-1 stores / strided writeback.
            out_specs=pl.BlockSpec((1, tile), lambda i: (0, i)),
        ),
        compiler_params=pltpu.CompilerParams(
            dimension_semantics=("parallel",),   # batch tiles shard across TCs (v7x)
            vmem_limit_bytes=32 * 1024 * 1024,   # safe on v5e/v6e (128 MiB) and v7x (64 MiB)
        ),
        cost_estimate=cost,
    )(x_p, w1p, b1c, w2p, b2c, w3p, b3c, w4c, b4c)

    return out[0, :B].reshape(B, 1)


def init_params(key):
    """Deterministic init mirroring nn.Linear's U(-1/sqrt(in), 1/sqrt(in)).

    Weights are kept in PyTorch's native [out_features, in_features] layout.
    """
    dims = [(IN_FEATURES, H3), (H3, H2), (H2, H1), (H1, OUT)]
    params = []
    for i, (fin, fout) in enumerate(dims):
        kw, kb = jax.random.split(jax.random.fold_in(key, i))
        bound = 1.0 / jnp.sqrt(float(fin))
        w = jax.random.uniform(kw, (fout, fin), jnp.float32, -bound, bound)
        b = jax.random.uniform(kb, (fout,), jnp.float32, -bound, bound)
        params.append((w, b))
    return params


def reference_forward(x, params):
    """Pure-JAX reference at the same (bf16-operand / f32-accumulate) precision."""
    (w1, b1), (w2, b2), (w3, b3), (w4, b4) = params

    def linear_bf16(a, w, b):
        return jnp.dot(a.astype(jnp.bfloat16), w.T.astype(jnp.bfloat16),
                       preferred_element_type=jnp.float32) + b

    h = x
    for w, b in ((w1, b1), (w2, b2), (w3, b3)):
        h = linear_bf16(h, w, b)
        h = jnp.where(h > 0, h, NEG_SLOPE * h)
    logits = jnp.sum(h * w4.reshape(1, H1), axis=-1, keepdims=True) + b4
    return jax.nn.sigmoid(logits)


if __name__ == "__main__":
    key = jax.random.PRNGKey(0)
    kx, kp = jax.random.split(key)
    params = init_params(kp)
    prepared = prepare_params(params)   # one-time weight pad/cast (cached)

    # Batch of 512 with batch_tile=256 -> 2 "parallel" grid steps (both v7x TCs).
    B = 512
    x = jax.random.normal(kx, (B, IN_FEATURES), jnp.float32)
    y = jax.block_until_ready(discriminator_forward(x, prepared, batch_tile=256))
    y_ref = reference_forward(x, params)
    assert y.shape == (B, 1)
    assert jnp.allclose(y, y_ref, atol=5e-3), (
        f"max abs err {jnp.max(jnp.abs(y - y_ref))}")

    # Also exercise a tiny, non-tile-multiple batch (wrapper zero-pads + slices).
    x_small = jax.random.normal(jax.random.fold_in(kx, 1), (8, IN_FEATURES), jnp.float32)
    y_small = jax.block_until_ready(discriminator_forward(x_small, prepared, batch_tile=256))
    y_small_ref = reference_forward(x_small, params)
    assert y_small.shape == (8, 1)
    assert jnp.allclose(y_small, y_small_ref, atol=5e-3), (
        f"max abs err {jnp.max(jnp.abs(y_small - y_small_ref))}")

    print("KERNEL_OK")
</pallas_src>

<mosaic_0001>
module attributes {stable_mosaic.version = 11 : i64} {
  func.func @discriminator_kernel(%arg0: i32, %arg1: memref<896x256xbf16, #tpu.memory_space<vmem>>, %arg2: memref<1024x896xbf16, #tpu.memory_space<vmem>>, %arg3: memref<1024x1xf32, #tpu.memory_space<vmem>>, %arg4: memref<512x1024xbf16, #tpu.memory_space<vmem>>, %arg5: memref<512x1xf32, #tpu.memory_space<vmem>>, %arg6: memref<256x512xbf16, #tpu.memory_space<vmem>>, %arg7: memref<256x1xf32, #tpu.memory_space<vmem>>, %arg8: memref<256x1xf32, #tpu.memory_space<vmem>>, %arg9: memref<1x1xf32, #tpu.memory_space<vmem>>, %arg10: memref<1x256xf32, #tpu.memory_space<vmem>>) attributes {dimension_semantics = [#tpu.dimension_semantics<parallel>], iteration_bounds = array<i64: 2>, scalar_prefetch = 0 : i64, scratch_operands = 0 : i64, tpu.core_type = #tpu.core_type<tc>, window_params = [{transform_indices = @transform_0, window_bounds = array<i64: 896, 256>}, {pipeline_mode = #tpu.pipeline_mode<synchronous>, transform_indices = @transform_1, window_bounds = array<i64: 1024, 896>}, {pipeline_mode = #tpu.pipeline_mode<synchronous>, transform_indices = @transform_2, window_bounds = array<i64: 1024, 1>}, {pipeline_mode = #tpu.pipeline_mode<synchronous>, transform_indices = @transform_3, window_bounds = array<i64: 512, 1024>}, {pipeline_mode = #tpu.pipeline_mode<synchronous>, transform_indices = @transform_4, window_bounds = array<i64: 512, 1>}, {pipeline_mode = #tpu.pipeline_mode<synchronous>, transform_indices = @transform_5, window_bounds = array<i64: 256, 512>}, {pipeline_mode = #tpu.pipeline_mode<synchronous>, transform_indices = @transform_6, window_bounds = array<i64: 256, 1>}, {pipeline_mode = #tpu.pipeline_mode<synchronous>, transform_indices = @transform_7, window_bounds = array<i64: 256, 1>}, {pipeline_mode = #tpu.pipeline_mode<synchronous>, transform_indices = @transform_8, window_bounds = array<i64: 1, 1>}, {transform_indices = @transform_9, window_bounds = array<i64: 1, 256>}]} {
    %c0 = arith.constant 0 : index
    %c0_0 = arith.constant 0 : index
    %0 = vector.load %arg2[%c0, %c0_0] : memref<1024x896xbf16, #tpu.memory_space<vmem>>, vector<1024x896xbf16>
    %c0_1 = arith.constant 0 : index
    %c0_2 = arith.constant 0 : index
    %1 = vector.load %arg1[%c0_1, %c0_2] : memref<896x256xbf16, #tpu.memory_space<vmem>>, vector<896x256xbf16>
    %cst = arith.constant dense<0.000000e+00> : vector<1024x256xf32>
    %2 = tpu.matmul %0, %1, %cst {dimension_numbers = #tpu.dot_dimension_numbers<[1], [0], [0], [1], [0, 0, 1, 1], [], []>} : vector<1024x896xbf16>, vector<896x256xbf16>, vector<1024x256xf32> -> vector<1024x256xf32>
    %c0_3 = arith.constant 0 : index
    %c0_4 = arith.constant 0 : index
    %3 = vector.load %arg3[%c0_3, %c0_4] : memref<1024x1xf32, #tpu.memory_space<vmem>>, vector<1024x1xf32>
    %4 = vector.broadcast %3 : vector<1024x1xf32> to vector<1024x256xf32>
    %5 = arith.addf %2, %4 : vector<1024x256xf32>
    %cst_5 = arith.constant 0.00999999977 : f32
    %6 = vector.broadcast %cst_5 : f32 to vector<1024x256xf32>
    %7 = arith.mulf %6, %5 : vector<1024x256xf32>
    %8 = arith.maximumf %5, %7 : vector<1024x256xf32>
    %c0_6 = arith.constant 0 : index
    %c0_7 = arith.constant 0 : index
    %9 = vector.load %arg4[%c0_6, %c0_7] : memref<512x1024xbf16, #tpu.memory_space<vmem>>, vector<512x1024xbf16>
    %10 = arith.truncf %8 : vector<1024x256xf32> to vector<1024x256xbf16>
    %cst_8 = arith.constant dense<0.000000e+00> : vector<512x256xf32>
    %11 = tpu.matmul %9, %10, %cst_8 {dimension_numbers = #tpu.dot_dimension_numbers<[1], [0], [0], [1], [0, 0, 1, 1], [], []>} : vector<512x1024xbf16>, vector<1024x256xbf16>, vector<512x256xf32> -> vector<512x256xf32>
    %c0_9 = arith.constant 0 : index
    %c0_10 = arith.constant 0 : index
    %12 = vector.load %arg5[%c0_9, %c0_10] : memref<512x1xf32, #tpu.memory_space<vmem>>, vector<512x1xf32>
    %13 = vector.broadcast %12 : vector<512x1xf32> to vector<512x256xf32>
    %14 = arith.addf %11, %13 : vector<512x256xf32>
    %cst_11 = arith.constant 0.00999999977 : f32
    %15 = vector.broadcast %cst_11 : f32 to vector<512x256xf32>
    %16 = arith.mulf %15, %14 : vector<512x256xf32>
    %17 = arith.maximumf %14, %16 : vector<512x256xf32>
    %c0_12 = arith.constant 0 : index
    %c0_13 = arith.constant 0 : index
    %18 = vector.load %arg6[%c0_12, %c0_13] : memref<256x512xbf16, #tpu.memory_space<vmem>>, vector<256x512xbf16>
    %19 = arith.truncf %17 : vector<512x256xf32> to vector<512x256xbf16>
    %cst_14 = arith.constant dense<0.000000e+00> : vector<256x256xf32>
    %20 = tpu.matmul %18, %19, %cst_14 {dimension_numbers = #tpu.dot_dimension_numbers<[1], [0], [0], [1], [0, 0, 1, 1], [], []>} : vector<256x512xbf16>, vector<512x256xbf16>, vector<256x256xf32> -> vector<256x256xf32>
    %c0_15 = arith.constant 0 : index
    %c0_16 = arith.constant 0 : index
    %21 = vector.load %arg7[%c0_15, %c0_16] : memref<256x1xf32, #tpu.memory_space<vmem>>, vector<256x1xf32>
    %22 = vector.broadcast %21 : vector<256x1xf32> to vector<256x256xf32>
    %23 = arith.addf %20, %22 : vector<256x256xf32>
    %cst_17 = arith.constant 0.00999999977 : f32
    %24 = vector.broadcast %cst_17 : f32 to vector<256x256xf32>
    %25 = arith.mulf %24, %23 : vector<256x256xf32>
    %26 = arith.maximumf %23, %25 : vector<256x256xf32>
    %c0_18 = arith.constant 0 : index
    %c0_19 = arith.constant 0 : index
    %27 = vector.load %arg8[%c0_18, %c0_19] : memref<256x1xf32, #tpu.memory_space<vmem>>, vector<256x1xf32>
    %28 = vector.broadcast %27 : vector<256x1xf32> to vector<256x256xf32>
    %29 = arith.mulf %26, %28 : vector<256x256xf32>
    %cst_20 = arith.constant dense<0.000000e+00> : vector<256xf32>
    %30 = vector.multi_reduction <add>, %29, %cst_20 [0] : vector<256x256xf32> to vector<256xf32>
    %31 = vector.shape_cast %30 : vector<256xf32> to vector<1x256xf32>
    %c0_21 = arith.constant 0 : index
    %c0_22 = arith.constant 0 : index
    %32 = vector.load %arg9[%c0_21, %c0_22] : memref<1x1xf32, #tpu.memory_space<vmem>>, vector<1x1xf32>
    %33 = vector.broadcast %32 : vector<1x1xf32> to vector<1x256xf32>
    %34 = arith.addf %31, %33 : vector<1x256xf32>
    %cst_23 = arith.constant 0.000000e+00 : f32
    %35 = vector.broadcast %cst_23 : f32 to vector<1x256xf32>
    %36 = arith.subf %35, %34 : vector<1x256xf32>
    %37 = math.exp %36 : vector<1x256xf32>
    %cst_24 = arith.constant 1.000000e+00 : f32
    %38 = vector.broadcast %cst_24 : f32 to vector<1x256xf32>
    %39 = arith.addf %38, %37 : vector<1x256xf32>
    %40 = tpu.reciprocal %39 {approx = true} : vector<1x256xf32> -> vector<1x256xf32>
    %c0_25 = arith.constant 0 : index
    %c0_26 = arith.constant 0 : index
    %41 = vector.load %arg10[%c0_25, %c0_26] : memref<1x256xf32, #tpu.memory_space<vmem>>, vector<1x256xf32>
    tpu.vector_store %arg10[%c0_25, %c0_26], %40 {strides = array<i32>} : memref<1x256xf32, #tpu.memory_space<vmem>>, vector<1x256xf32>,
    return
  }
  func.func @transform_0(%arg0: i32) -> (i32, i32) {
    %c0_i32 = arith.constant 0 : i32
    %c0_i32_0 = arith.constant 0 : i32
    return %c0_i32, %arg0 : i32, i32
  }
  func.func @transform_1(%arg0: i32) -> (i32, i32) {
    %c0_i32 = arith.constant 0 : i32
    %c0_i32_0 = arith.constant 0 : i32
    %c0_i32_1 = arith.constant 0 : i32
    return %c0_i32, %c0_i32_0 : i32, i32
  }
  func.func @transform_2(%arg0: i32) -> (i32, i32) {
    %c0_i32 = arith.constant 0 : i32
    %c0_i32_0 = arith.constant 0 : i32
    %c0_i32_1 = arith.constant 0 : i32
    return %c0_i32, %c0_i32_0 : i32, i32
  }
  func.func @transform_3(%arg0: i32) -> (i32, i32) {
    %c0_i32 = arith.constant 0 : i32
    %c0_i32_0 = arith.constant 0 : i32
    %c0_i32_1 = arith.constant 0 : i32
    return %c0_i32, %c0_i32_0 : i32, i32
  }
  func.func @transform_4(%arg0: i32) -> (i32, i32) {
    %c0_i32 = arith.constant 0 : i32
    %c0_i32_0 = arith.constant 0 : i32
    %c0_i32_1 = arith.constant 0 : i32
    return %c0_i32, %c0_i32_0 : i32, i32
  }
  func.func @transform_5(%arg0: i32) -> (i32, i32) {
    %c0_i32 = arith.constant 0 : i32
    %c0_i32_0 = arith.constant 0 : i32
    %c0_i32_1 = arith.constant 0 : i32
    return %c0_i32, %c0_i32_0 : i32, i32
  }
  func.func @transform_6(%arg0: i32) -> (i32, i32) {
    %c0_i32 = arith.constant 0 : i32
    %c0_i32_0 = arith.constant 0 : i32
    %c0_i32_1 = arith.constant 0 : i32
    return %c0_i32, %c0_i32_0 : i32, i32
  }
  func.func @transform_7(%arg0: i32) -> (i32, i32) {
    %c0_i32 = arith.constant 0 : i32
    %c0_i32_0 = arith.constant 0 : i32
    %c0_i32_1 = arith.constant 0 : i32
    return %c0_i32, %c0_i32_0 : i32, i32
  }
  func.func @transform_8(%arg0: i32) -> (i32, i32) {
    %c0_i32 = arith.constant 0 : i32
    %c0_i32_0 = arith.constant 0 : i32
    %c0_i32_1 = arith.constant 0 : i32
    return %c0_i32, %c0_i32_0 : i32, i32
  }
  func.func @transform_9(%arg0: i32) -> (i32, i32) {
    %c0_i32 = arith.constant 0 : i32
    %c0_i32_0 = arith.constant 0 : i32
    return %c0_i32, %arg0 : i32, i32
  }
}

</mosaic_0001>

<bundles_post_ra>
// kernel: discriminator_forward.1
= control target key start
LH: loop header
LB: loop body
LE: loop exit
PB: predicated region body
PF: predicated region fallthrough
CT: control target
= control target key end

     0   :  { %s22580_s0 = inlined_call_operand.vmem [shape: bf16[896,512], index: 0, kind: input, shape index: {}]   ;;  %s22581_s1 = inlined_call_operand.vmem [shape: bf16[1024,896], index: 1, kind: input, shape index: {}]   ;;  %s22582_s2 = inlined_call_operand.vmem [shape: f32[1024,1], index: 2, kind: input, shape index: {}]   ;;  %s22583_s3 = inlined_call_operand.vmem [shape: bf16[512,1024], index: 3, kind: input, shape index: {}]   ;;  %s22584_s4 = inlined_call_operand.vmem [shape: f32[512,1], index: 4, kind: input, shape index: {}]   ;;  %s22585_s5 = inlined_call_operand.vmem [shape: bf16[256,512], index: 5, kind: input, shape index: {}]   ;;  %s22586_s6 = inlined_call_operand.vmem [shape: f32[256,1], index: 6, kind: input, shape index: {}]   ;;  %s22587_s7 = inlined_call_operand.vmem [shape: f32[256,1], index: 7, kind: input, shape index: {}]   ;;  %s22588_s8 = inlined_call_operand.<no memory space> [shape: f32[1,1], index: 8, kind: input, shape index: {}]   ;;  %s22589_s9 = inlined_call_operand.hbm [shape: f32[1,512], index: 9, kind: output, shape index: {}]  }
   0x1   :  { %v14_v0 = vstv %s22588_s8 }
   0x2   :  { %15 = vst [vmem:[#allocation2] sm:$0x1] %v14_v0 }
   0x3   :  { %16 = vsyncpa [#allocation5], 0 }
   0x4   :  { %18 = vsyncpa [#allocation5 + $0x1], 0  ;;  %s17251_s11 = smov 0   ;;  %s17253_s12 = smov 0  }
   0x5   :  { %s17255_s13 = smov 0   ;;  %s17257_s14 = smov 0  }
   0x6 LB: > { %s13599_s8 = sadd.s32 4294967295, %s17193_s14   ;;  %s13600_s15 = sadd.s32 4294967294, %s17193_s14   ;;  %s17193_s14 = sphi %s17257_s14, %s23343_s14   ;;  %s17189_s13 = sphi %s17255_s13, %s23342_s13   ;;  %s17185_s12 = sphi %s17253_s12, %s23341_s12   ;;  %s17181_s11 = sphi %s17251_s11, %s23340_s11  }
   0x7   : > { %s17274_s16 = sadd.s32 1, %s17193_s14   ;;  %s31_s17 = sadd.s32 1, %s17189_s13 }
   0x8   : > { %s28_s18 = ssub.s32 %s17193_s14, %s17274_s16  ;;  %p38_p0 = scmp.ne.s32.totalorder %s17189_s13, %s17185_s12 }
   0x9   : > { %p29_p1 = scmp.eq.s32.totalorder %s28_s18, 0  ;;  %p39_p2 = scmp.eq.s32.totalorder %s17193_s14, 0 }
   0xa   : > { %p236_p3 = scmp.eq.s32.totalorder %s13599_s8, 1  ;;  %p241_p4 = scmp.ne.s32.totalorder %s17185_s12, %s17181_s11 }
   0xb   : > { %s17287_s19 = scalar_select %p29_p1, %s17189_s13, %s31_s17  }
   0xc   : > { %p40_p5 = por %p39_p2, %p38_p0  ;;  %p17289_p6 = por %p236_p3, %p38_p0 }
   0xd   : > { %p242_p7 = scmp.eq.s32.totalorder %s13600_s15, 1  ;;  %p13602_p9 = scmp.ge.s32.totalorder %s17193_s14, 2 }
   0xf   : > { %p17293_p8 = por %p242_p7, %p241_p4  ;;  %282 = sbr.rel (%p13602_p9) target bundleno = 82 (0x52), region = 48 }
  0x16   : > { %285 = sbr.rel (!%p40_p5) target bundleno = 82 (0x52), region = 52  ;;  %s287_s22 = sand.u32 (%p40_p5), 1, %s17189_s13  }
  0x17   : > { %s14492_s23 = sshll.u32 (%p40_p5), %s17193_s14, 3  ;;  %s16174_s24 = smul.u32 (%p40_p5), 896, %s287_s22 }
  0x18   : > { %s17305_s27 = scalar_lea.vmem (%p40_p5), %s22580_s0, %s14492_s23 }
  0x19   : > { %v542_v1 = vld [vmem:[%s17305_s27] sm:$0xff] (%p40_p5)  ;;  %v544_v2 = vld [vmem:[%s17305_s27 + $0x10] sm:$0xff] (%p40_p5)  ;;  %s17313_s28 = scalar_lea.vmem (%p40_p5), [#allocation3], %s16174_s24 }
  0x1a   : > { %v546_v3 = vld [vmem:[%s17305_s27 + $0x20] sm:$0xff] (%p40_p5)  ;;  %v548_v4 = vld [vmem:[%s17305_s27 + $0x30] sm:$0xff] (%p40_p5)  ;;  %543 = vst [vmem:[%s17313_s28] sm:$0xff] (%p40_p5), %v542_v1  ;;  %545 = vst [vmem:[%s17313_s28 + $0x8] sm:$0xff] (%p40_p5), %v544_v2 }
  0x1b   : > { %v550_v5 = vld [vmem:[%s17305_s27 + $0x40] sm:$0xff] (%p40_p5)  ;;  %v552_v6 = vld [vmem:[%s17305_s27 + $0x50] sm:$0xff] (%p40_p5)  ;;  %547 = vst [vmem:[%s17313_s28 + $0x10] sm:$0xff] (%p40_p5), %v546_v3  ;;  %549 = vst [vmem:[%s17313_s28 + $0x18] sm:$0xff] (%p40_p5), %v548_v4 }
  0x1c   : > { %551 = vst [vmem:[%s17313_s28 + $0x20] sm:$0xff] (%p40_p5), %v550_v5  ;;  %553 = vst [vmem:[%s17313_s28 + $0x28] sm:$0xff] (%p40_p5), %v552_v6  ;;  %v554_v7 = vld [vmem:[%s17305_s27 + $0x60] sm:$0xff] (%p40_p5)  ;;  %v556_v8 = vld [vmem:[%s17305_s27 + $0x70] sm:$0xff] (%p40_p5) }
  0x1d   : > { %v558_v9 = vld [vmem:[%s17305_s27 + $0x80] sm:$0xff]  ;;  %555 = vst [vmem:[%s17313_s28 + $0x30] sm:$0xff] %v554_v7  ;;  %557 = vst [vmem:[%s17313_s28 + $0x38] sm:$0xff] %v556_v8  ;;  %v560_v10 = vld [vmem:[%s17305_s27 + $0x90] sm:$0xff] }
  0x1e   : > { %559 = vst [vmem:[%s17313_s28 + $0x40] sm:$0xff] %v558_v9  ;;  %v562_v11 = vld [vmem:[%s17305_s27 + $0xa0] sm:$0xff]  ;;  %v564_v12 = vld [vmem:[%s17305_s27 + $0xb0] sm:$0xff]  ;;  %561 = vst [vmem:[%s17313_s28 + $0x48] sm:$0xff] %v560_v10 }
  0x1f   : > { %563 = vst [vmem:[%s17313_s28 + $0x50] sm:$0xff] %v562_v11  ;;  %565 = vst [vmem:[%s17313_s28 + $0x58] sm:$0xff] %v564_v12  ;;  %v566_v13 = vld [vmem:[%s17305_s27 + $0xc0] sm:$0xff]  ;;  %v568_v14 = vld [vmem:[%s17305_s27 + $0xd0] sm:$0xff] }
  0x20   : > { %v570_v15 = vld [vmem:[%s17305_s27 + $0xe0] sm:$0xff]  ;;  %567 = vst [vmem:[%s17313_s28 + $0x60] sm:$0xff] %v566_v13  ;;  %569 = vst [vmem:[%s17313_s28 + $0x68] sm:$0xff] %v568_v14  ;;  %v572_v16 = vld [vmem:[%s17305_s27 + $0xf0] sm:$0xff] }
  0x21   : > { %571 = vst [vmem:[%s17313_s28 + $0x70] sm:$0xff] %v570_v15  ;;  %v574_v17 = vld [vmem:[%s17305_s27 + $0x100] sm:$0xff]  ;;  %v576_v18 = vld [vmem:[%s17305_s27 + $0x110] sm:$0xff]  ;;  %573 = vst [vmem:[%s17313_s28 + $0x78] sm:$0xff] %v572_v16 }
  0x22   : > { %575 = vst [vmem:[%s17313_s28 + $0x80] sm:$0xff] %v574_v17  ;;  %577 = vst [vmem:[%s17313_s28 + $0x88] sm:$0xff] %v576_v18  ;;  %v578_v19 = vld [vmem:[%s17305_s27 + $0x120] sm:$0xff]  ;;  %v580_v20 = vld [vmem:[%s17305_s27 + $0x130] sm:$0xff] }
  0x23   : > { %v582_v21 = vld [vmem:[%s17305_s27 + $0x140] sm:$0xff]  ;;  %579 = vst [vmem:[%s17313_s28 + $0x90] sm:$0xff] %v578_v19  ;;  %581 = vst [vmem:[%s17313_s28 + $0x98] sm:$0xff] %v580_v20  ;;  %v584_v22 = vld [vmem:[%s17305_s27 + $0x150] sm:$0xff] }
  0x24   : > { %583 = vst [vmem:[%s17313_s28 + $0xa0] sm:$0xff] %v582_v21  ;;  %v586_v23 = vld [vmem:[%s17305_s27 + $0x160] sm:$0xff]  ;;  %v588_v24 = vld [vmem:[%s17305_s27 + $0x170] sm:$0xff]  ;;  %585 = vst [vmem:[%s17313_s28 + $0xa8] sm:$0xff] %v584_v22 }
  0x25   : > { %587 = vst [vmem:[%s17313_s28 + $0xb0] sm:$0xff] %v586_v23  ;;  %589 = vst [vmem:[%s17313_s28 + $0xb8] sm:$0xff] %v588_v24  ;;  %v590_v25 = vld [vmem:[%s17305_s27 + $0x180] sm:$0xff]  ;;  %v592_v26 = vld [vmem:[%s17305_s27 + $0x190] sm:$0xff] }
  0x26   : > { %v594_v27 = vld [vmem:[%s17305_s27 + $0x1a0] sm:$0xff]  ;;  %591 = vst [vmem:[%s17313_s28 + $0xc0] sm:$0xff] %v590_v25  ;;  %593 = vst [vmem:[%s17313_s28 + $0xc8] sm:$0xff] %v592_v26  ;;  %v596_v28 = vld [vmem:[%s17305_s27 + $0x1b0] sm:$0xff] }
  0x27   : > { %595 = vst [vmem:[%s17313_s28 + $0xd0] sm:$0xff] %v594_v27  ;;  %v598_v29 = vld [vmem:[%s17305_s27 + $0x1c0] sm:$0xff]  ;;  %v600_v30 = vld [vmem:[%s17305_s27 + $0x1d0] sm:$0xff]  ;;  %597 = vst [vmem:[%s17313_s28 + $0xd8] sm:$0xff] %v596_v28 }
  0x28   : > { %599 = vst [vmem:[%s17313_s28 + $0xe0] sm:$0xff] %v598_v29  ;;  %601 = vst [vmem:[%s17313_s28 + $0xe8] sm:$0xff] %v600_v30  ;;  %v602_v31 = vld [vmem:[%s17305_s27 + $0x1e0] sm:$0xff]  ;;  %v604_v32 = vld [vmem:[%s17305_s27 + $0x1f0] sm:$0xff] }
  0x29   : > { %v606_v33 = vld [vmem:[%s17305_s27 + $0x200] sm:$0xff]  ;;  %603 = vst [vmem:[%s17313_s28 + $0xf0] sm:$0xff] %v602_v31  ;;  %605 = vst [vmem:[%s17313_s28 + $0xf8] sm:$0xff] %v604_v32  ;;  %v608_v34 = vld [vmem:[%s17305_s27 + $0x210] sm:$0xff] }
  0x2a   : > { %607 = vst [vmem:[%s17313_s28 + $0x100] sm:$0xff] %v606_v33  ;;  %v610_v35 = vld [vmem:[%s17305_s27 + $0x220] sm:$0xff]  ;;  %v612_v36 = vld [vmem:[%s17305_s27 + $0x230] sm:$0xff]  ;;  %609 = vst [vmem:[%s17313_s28 + $0x108] sm:$0xff] %v608_v34 }
  0x2b   : > { %611 = vst [vmem:[%s17313_s28 + $0x110] sm:$0xff] %v610_v35  ;;  %613 = vst [vmem:[%s17313_s28 + $0x118] sm:$0xff] %v612_v36  ;;  %v614_v37 = vld [vmem:[%s17305_s27 + $0x240] sm:$0xff]  ;;  %v616_v38 = vld [vmem:[%s17305_s27 + $0x250] sm:$0xff] }
  0x2c   : > { %v618_v39 = vld [vmem:[%s17305_s27 + $0x260] sm:$0xff]  ;;  %615 = vst [vmem:[%s17313_s28 + $0x120] sm:$0xff] %v614_v37  ;;  %617 = vst [vmem:[%s17313_s28 + $0x128] sm:$0xff] %v616_v38  ;;  %v620_v40 = vld [vmem:[%s17305_s27 + $0x270] sm:$0xff] }
  0x2d   : > { %619 = vst [vmem:[%s17313_s28 + $0x130] sm:$0xff] %v618_v39  ;;  %v622_v41 = vld [vmem:[%s17305_s27 + $0x280] sm:$0xff]  ;;  %v624_v42 = vld [vmem:[%s17305_s27 + $0x290] sm:$0xff]  ;;  %621 = vst [vmem:[%s17313_s28 + $0x138] sm:$0xff] %v620_v40 }
  0x2e   : > { %623 = vst [vmem:[%s17313_s28 + $0x140] sm:$0xff] %v622_v41  ;;  %625 = vst [vmem:[%s17313_s28 + $0x148] sm:$0xff] %v624_v42  ;;  %v626_v43 = vld [vmem:[%s17305_s27 + $0x2a0] sm:$0xff]  ;;  %v628_v44 = vld [vmem:[%s17305_s27 + $0x2b0] sm:$0xff] }
  0x2f   : > { %v630_v45 = vld [vmem:[%s17305_s27 + $0x2c0] sm:$0xff]  ;;  %627 = vst [vmem:[%s17313_s28 + $0x150] sm:$0xff] %v626_v43  ;;  %629 = vst [vmem:[%s17313_s28 + $0x158] sm:$0xff] %v628_v44  ;;  %v632_v46 = vld [vmem:[%s17305_s27 + $0x2d0] sm:$0xff] }
  0x30   : > { %631 = vst [vmem:[%s17313_s28 + $0x160] sm:$0xff] %v630_v45  ;;  %v634_v47 = vld [vmem:[%s17305_s27 + $0x2e0] sm:$0xff]  ;;  %v636_v48 = vld [vmem:[%s17305_s27 + $0x2f0] sm:$0xff]  ;;  %633 = vst [vmem:[%s17313_s28 + $0x168] sm:$0xff] %v632_v46 }
  0x31   : > { %635 = vst [vmem:[%s17313_s28 + $0x170] sm:$0xff] %v634_v47  ;;  %637 = vst [vmem:[%s17313_s28 + $0x178] sm:$0xff] %v636_v48  ;;  %v638_v49 = vld [vmem:[%s17305_s27 + $0x300] sm:$0xff]  ;;  %v640_v50 = vld [vmem:[%s17305_s27 + $0x310] sm:$0xff] }
  0x32   : > { %v642_v51 = vld [vmem:[%s17305_s27 + $0x320] sm:$0xff]  ;;  %639 = vst [vmem:[%s17313_s28 + $0x180] sm:$0xff] %v638_v49  ;;  %641 = vst [vmem:[%s17313_s28 + $0x188] sm:$0xff] %v640_v50  ;;  %v644_v52 = vld [vmem:[%s17305_s27 + $0x330] sm:$0xff] }
  0x33   : > { %643 = vst [vmem:[%s17313_s28 + $0x190] sm:$0xff] %v642_v51  ;;  %v646_v53 = vld [vmem:[%s17305_s27 + $0x340] sm:$0xff]  ;;  %v648_v54 = vld [vmem:[%s17305_s27 + $0x350] sm:$0xff]  ;;  %645 = vst [vmem:[%s17313_s28 + $0x198] sm:$0xff] %v644_v52 }
  0x34   : > { %647 = vst [vmem:[%s17313_s28 + $0x1a0] sm:$0xff] %v646_v53  ;;  %649 = vst [vmem:[%s17313_s28 + $0x1a8] sm:$0xff] %v648_v54  ;;  %v650_v55 = vld [vmem:[%s17305_s27 + $0x360] sm:$0xff]  ;;  %v652_v56 = vld [vmem:[%s17305_s27 + $0x370] sm:$0xff] }
  0x35   : > { %v654_v57 = vld [vmem:[%s17305_s27 + $0x380] sm:$0xff]  ;;  %651 = vst [vmem:[%s17313_s28 + $0x1b0] sm:$0xff] %v650_v55  ;;  %653 = vst [vmem:[%s17313_s28 + $0x1b8] sm:$0xff] %v652_v56  ;;  %v656_v58 = vld [vmem:[%s17305_s27 + $0x390] sm:$0xff] }
  0x36   : > { %655 = vst [vmem:[%s17313_s28 + $0x1c0] sm:$0xff] %v654_v57  ;;  %v658_v59 = vld [vmem:[%s17305_s27 + $0x3a0] sm:$0xff]  ;;  %v660_v60 = vld [vmem:[%s17305_s27 + $0x3b0] sm:$0xff]  ;;  %657 = vst [vmem:[%s17313_s28 + $0x1c8] sm:$0xff] %v656_v58 }
  0x37   : > { %659 = vst [vmem:[%s17313_s28 + $0x1d0] sm:$0xff] %v658_v59  ;;  %661 = vst [vmem:[%s17313_s28 + $0x1d8] sm:$0xff] %v660_v60  ;;  %v662_v61 = vld [vmem:[%s17305_s27 + $0x3c0] sm:$0xff]  ;;  %v664_v62 = vld [vmem:[%s17305_s27 + $0x3d0] sm:$0xff] }
  0x38   : > { %v666_v63 = vld [vmem:[%s17305_s27 + $0x3e0] sm:$0xff]  ;;  %663 = vst [vmem:[%s17313_s28 + $0x1e0] sm:$0xff] %v662_v61  ;;  %665 = vst [vmem:[%s17313_s28 + $0x1e8] sm:$0xff] %v664_v62  ;;  %v668_v0 = vld [vmem:[%s17305_s27 + $0x3f0] sm:$0xff] }
  0x39   : > { %667 = vst [vmem:[%s17313_s28 + $0x1f0] sm:$0xff] %v666_v63  ;;  %v670_v1 = vld [vmem:[%s17305_s27 + $0x400] sm:$0xff]  ;;  %v672_v2 = vld [vmem:[%s17305_s27 + $0x410] sm:$0xff]  ;;  %669 = vst [vmem:[%s17313_s28 + $0x1f8] sm:$0xff] %v668_v0 }
  0x3a   : > { %671 = vst [vmem:[%s17313_s28 + $0x200] sm:$0xff] %v670_v1  ;;  %673 = vst [vmem:[%s17313_s28 + $0x208] sm:$0xff] %v672_v2  ;;  %v674_v3 = vld [vmem:[%s17305_s27 + $0x420] sm:$0xff]  ;;  %v676_v4 = vld [vmem:[%s17305_s27 + $0x430] sm:$0xff] }
  0x3b   : > { %v678_v5 = vld [vmem:[%s17305_s27 + $0x440] sm:$0xff]  ;;  %675 = vst [vmem:[%s17313_s28 + $0x210] sm:$0xff] %v674_v3  ;;  %677 = vst [vmem:[%s17313_s28 + $0x218] sm:$0xff] %v676_v4  ;;  %v680_v6 = vld [vmem:[%s17305_s27 + $0x450] sm:$0xff] }
  0x3c   : > { %679 = vst [vmem:[%s17313_s28 + $0x220] sm:$0xff] %v678_v5  ;;  %v682_v7 = vld [vmem:[%s17305_s27 + $0x460] sm:$0xff]  ;;  %v684_v8 = vld [vmem:[%s17305_s27 + $0x470] sm:$0xff]  ;;  %681 = vst [vmem:[%s17313_s28 + $0x228] sm:$0xff] %v680_v6 }
  0x3d   : > { %683 = vst [vmem:[%s17313_s28 + $0x230] sm:$0xff] %v682_v7  ;;  %685 = vst [vmem:[%s17313_s28 + $0x238] sm:$0xff] %v684_v8  ;;  %v686_v9 = vld [vmem:[%s17305_s27 + $0x480] sm:$0xff]  ;;  %v688_v10 = vld [vmem:[%s17305_s27 + $0x490] sm:$0xff] }
  0x3e   : > { %v690_v11 = vld [vmem:[%s17305_s27 + $0x4a0] sm:$0xff]  ;;  %687 = vst [vmem:[%s17313_s28 + $0x240] sm:$0xff] %v686_v9  ;;  %689 = vst [vmem:[%s17313_s28 + $0x248] sm:$0xff] %v688_v10  ;;  %v692_v12 = vld [vmem:[%s17305_s27 + $0x4b0] sm:$0xff] }
  0x3f   : > { %691 = vst [vmem:[%s17313_s28 + $0x250] sm:$0xff] %v690_v11  ;;  %v694_v13 = vld [vmem:[%s17305_s27 + $0x4c0] sm:$0xff]  ;;  %v696_v14 = vld [vmem:[%s17305_s27 + $0x4d0] sm:$0xff]  ;;  %693 = vst [vmem:[%s17313_s28 + $0x258] sm:$0xff] %v692_v12 }
  0x40   : > { %695 = vst [vmem:[%s17313_s28 + $0x260] sm:$0xff] %v694_v13  ;;  %697 = vst [vmem:[%s17313_s28 + $0x268] sm:$0xff] %v696_v14  ;;  %v698_v15 = vld [vmem:[%s17305_s27 + $0x4e0] sm:$0xff]  ;;  %v700_v16 = vld [vmem:[%s17305_s27 + $0x4f0] sm:$0xff] }
  0x41   : > { %v702_v17 = vld [vmem:[%s17305_s27 + $0x500] sm:$0xff]  ;;  %699 = vst [vmem:[%s17313_s28 + $0x270] sm:$0xff] %v698_v15  ;;  %701 = vst [vmem:[%s17313_s28 + $0x278] sm:$0xff] %v700_v16  ;;  %v704_v18 = vld [vmem:[%s17305_s27 + $0x510] sm:$0xff] }
  0x42   : > { %703 = vst [vmem:[%s17313_s28 + $0x280] sm:$0xff] %v702_v17  ;;  %v706_v19 = vld [vmem:[%s17305_s27 + $0x520] sm:$0xff]  ;;  %v708_v20 = vld [vmem:[%s17305_s27 + $0x530] sm:$0xff]  ;;  %705 = vst [vmem:[%s17313_s28 + $0x288] sm:$0xff] %v704_v18 }
  0x43   : > { %707 = vst [vmem:[%s17313_s28 + $0x290] sm:$0xff] %v706_v19  ;;  %709 = vst [vmem:[%s17313_s28 + $0x298] sm:$0xff] %v708_v20  ;;  %v710_v21 = vld [vmem:[%s17305_s27 + $0x540] sm:$0xff]  ;;  %v712_v22 = vld [vmem:[%s17305_s27 + $0x550] sm:$0xff] }
  0x44   : > { %v714_v23 = vld [vmem:[%s17305_s27 + $0x560] sm:$0xff]  ;;  %711 = vst [vmem:[%s17313_s28 + $0x2a0] sm:$0xff] %v710_v21  ;;  %713 = vst [vmem:[%s17313_s28 + $0x2a8] sm:$0xff] %v712_v22  ;;  %v716_v24 = vld [vmem:[%s17305_s27 + $0x570] sm:$0xff] }
  0x45   : > { %715 = vst [vmem:[%s17313_s28 + $0x2b0] sm:$0xff] %v714_v23  ;;  %v718_v25 = vld [vmem:[%s17305_s27 + $0x580] sm:$0xff]  ;;  %v720_v26 = vld [vmem:[%s17305_s27 + $0x590] sm:$0xff]  ;;  %717 = vst [vmem:[%s17313_s28 + $0x2b8] sm:$0xff] %v716_v24 }
  0x46   : > { %719 = vst [vmem:[%s17313_s28 + $0x2c0] sm:$0xff] %v718_v25  ;;  %721 = vst [vmem:[%s17313_s28 + $0x2c8] sm:$0xff] %v720_v26  ;;  %v722_v27 = vld [vmem:[%s17305_s27 + $0x5a0] sm:$0xff]  ;;  %v724_v28 = vld [vmem:[%s17305_s27 + $0x5b0] sm:$0xff] }
  0x47   : > { %v726_v29 = vld [vmem:[%s17305_s27 + $0x5c0] sm:$0xff]  ;;  %723 = vst [vmem:[%s17313_s28 + $0x2d0] sm:$0xff] %v722_v27  ;;  %725 = vst [vmem:[%s17313_s28 + $0x2d8] sm:$0xff] %v724_v28  ;;  %v728_v30 = vld [vmem:[%s17305_s27 + $0x5d0] sm:$0xff] }
  0x48   : > { %727 = vst [vmem:[%s17313_s28 + $0x2e0] sm:$0xff] %v726_v29  ;;  %v730_v31 = vld [vmem:[%s17305_s27 + $0x5e0] sm:$0xff]  ;;  %v732_v32 = vld [vmem:[%s17305_s27 + $0x5f0] sm:$0xff]  ;;  %729 = vst [vmem:[%s17313_s28 + $0x2e8] sm:$0xff] %v728_v30 }
  0x49   : > { %731 = vst [vmem:[%s17313_s28 + $0x2f0] sm:$0xff] %v730_v31  ;;  %733 = vst [vmem:[%s17313_s28 + $0x2f8] sm:$0xff] %v732_v32  ;;  %v734_v33 = vld [vmem:[%s17305_s27 + $0x600] sm:$0xff]  ;;  %v736_v34 = vld [vmem:[%s17305_s27 + $0x610] sm:$0xff] }
  0x4a   : > { %v738_v35 = vld [vmem:[%s17305_s27 + $0x620] sm:$0xff]  ;;  %735 = vst [vmem:[%s17313_s28 + $0x300] sm:$0xff] %v734_v33  ;;  %737 = vst [vmem:[%s17313_s28 + $0x308] sm:$0xff] %v736_v34  ;;  %v740_v36 = vld [vmem:[%s17305_s27 + $0x630] sm:$0xff] }
  0x4b   : > { %739 = vst [vmem:[%s17313_s28 + $0x310] sm:$0xff] %v738_v35  ;;  %v742_v37 = vld [vmem:[%s17305_s27 + $0x640] sm:$0xff]  ;;  %v744_v38 = vld [vmem:[%s17305_s27 + $0x650] sm:$0xff]  ;;  %741 = vst [vmem:[%s17313_s28 + $0x318] sm:$0xff] %v740_v36 }
  0x4c   : > { %743 = vst [vmem:[%s17313_s28 + $0x320] sm:$0xff] %v742_v37  ;;  %745 = vst [vmem:[%s17313_s28 + $0x328] sm:$0xff] %v744_v38  ;;  %v746_v39 = vld [vmem:[%s17305_s27 + $0x660] sm:$0xff]  ;;  %v748_v40 = vld [vmem:[%s17305_s27 + $0x670] sm:$0xff] }
  0x4d   : > { %v750_v41 = vld [vmem:[%s17305_s27 + $0x680] sm:$0xff]  ;;  %747 = vst [vmem:[%s17313_s28 + $0x330] sm:$0xff] %v746_v39  ;;  %749 = vst [vmem:[%s17313_s28 + $0x338] sm:$0xff] %v748_v40  ;;  %v752_v42 = vld [vmem:[%s17305_s27 + $0x690] sm:$0xff] }
  0x4e   : > { %751 = vst [vmem:[%s17313_s28 + $0x340] sm:$0xff] %v750_v41  ;;  %v754_v43 = vld [vmem:[%s17305_s27 + $0x6a0] sm:$0xff]  ;;  %v756_v44 = vld [vmem:[%s17305_s27 + $0x6b0] sm:$0xff]  ;;  %753 = vst [vmem:[%s17313_s28 + $0x348] sm:$0xff] %v752_v42 }
  0x4f   : > { %755 = vst [vmem:[%s17313_s28 + $0x350] sm:$0xff] %v754_v43  ;;  %757 = vst [vmem:[%s17313_s28 + $0x358] sm:$0xff] %v756_v44  ;;  %v758_v45 = vld [vmem:[%s17305_s27 + $0x6c0] sm:$0xff]  ;;  %v760_v46 = vld [vmem:[%s17305_s27 + $0x6d0] sm:$0xff] }
  0x50   : > { %v762_v47 = vld [vmem:[%s17305_s27 + $0x6e0] sm:$0xff]  ;;  %759 = vst [vmem:[%s17313_s28 + $0x360] sm:$0xff] %v758_v45  ;;  %761 = vst [vmem:[%s17313_s28 + $0x368] sm:$0xff] %v760_v46  ;;  %v764_v48 = vld [vmem:[%s17305_s27 + $0x6f0] sm:$0xff] }
  0x51   : > { %763 = vst [vmem:[%s17313_s28 + $0x370] sm:$0xff] %v762_v47  ;;  %765 = vst [vmem:[%s17313_s28 + $0x378] sm:$0xff] %v764_v48 }
  0x52 PF: > { %p13605_p10 = scmp.ge.s32.totalorder %s17193_s14, 1  ;;  %p770_p11 = scmp.lt.s32.totalorder %s17193_s14, 3 }
  0x54   : > { %p771_p12 = pnand %p13605_p10, %p770_p11 }
  0x56   : > { %774 = sbr.rel (%p771_p12) target bundleno = 3687 (0xe67), region = 90 }
  0x5d   : > { %s17536_s29 = sand.u32 1, %s17185_s12   ;;  %v16269_v49 = vld [vmem:[%s22581_s1 + $0x4] ss:$28 sps:$4 sm:$0xff]   ;;  %v16270_v19 = vld [vmem:[%s22581_s1 + $0x3c] ss:$28 sps:$4 sm:$0xff]   ;;  %s14493_s27 = sshll.u32 %s13599_s8, 5 }
  0x5e   : > { %s16175_s30 = smul.u32 896, %s17536_s29  ;;  %5103 = vmatprep.mubr.bf16.mxu0 %v16269_v49  ;;  %v16267_v18 = vld [vmem:[%s22581_s1] ss:$28 sps:$4 sm:$0xff]   ;;  %v16272_v20 = vld [vmem:[%s22581_s1 + $0x38] ss:$28 sps:$4 sm:$0xff]   ;;  %s13606_s26 = sshll.u32 %s17536_s29, 1 }
  0x5f   : > { %v16273_v21 = vld [vmem:[%s22581_s1 + $0x74] ss:$28 sps:$4 sm:$0xff]   ;;  %v16276_v23 = vld [vmem:[%s22581_s1 + $0xac] ss:$28 sps:$4 sm:$0xff]   ;;  %v16279_v25 = vld [vmem:[%s22581_s1 + $0xe4] ss:$28 sps:$4 sm:$0xff]  }
  0x60   : > { %s17542_s17 = scalar_lea.vmem [#allocation3], %s16175_s30  ;;  %v16275_v22 = vld [vmem:[%s22581_s1 + $0x70] ss:$28 sps:$4 sm:$0xff]   ;;  %v16278_v24 = vld [vmem:[%s22581_s1 + $0xa8] ss:$28 sps:$4 sm:$0xff]   ;;  %s811_s28 = scalar_lea.vmem [#allocation4], %s13606_s26 }
  0x61   : > { %v16219_v50 = vld [vmem:[%s17542_s17 + $0x4] ss:$8 sps:$4 sm:$0xff]   ;;  %v16221_v51 = vld [vmem:[%s17542_s17] ss:$8 sps:$4 sm:$0xff]   ;;  %v16222_v52 = vld [vmem:[%s17542_s17 + $0x14] ss:$8 sps:$4 sm:$0xff]  }
  0x62   : > { %5071 = vmatprep.subr.bf16.mxu0 %v16219_v50  ;;  %v16224_v53 = vld [vmem:[%s17542_s17 + $0x10] ss:$8 sps:$4 sm:$0xff]   ;;  %v16225_v54 = vld [vmem:[%s17542_s17 + $0x24] ss:$8 sps:$4 sm:$0xff]   ;;  %v16227_v55 = vld [vmem:[%s17542_s17 + $0x20] ss:$8 sps:$4 sm:$0xff]  }
  0x63   : > { %5072 = vmatpush1.bf16.msra.mxu0 %v16221_v51  ;;  %v16228_v56 = vld [vmem:[%s17542_s17 + $0x34] ss:$8 sps:$4 sm:$0xff]   ;;  %v16230_v57 = vld [vmem:[%s17542_s17 + $0x30] ss:$8 sps:$4 sm:$0xff]   ;;  %v16231_v58 = vld [vmem:[%s17542_s17 + $0x44] ss:$8 sps:$4 sm:$0xff]  }
  0x64   : > { %5073 = vmatprep.subr.bf16.mxu0 %v16222_v52  ;;  %v16233_v59 = vld [vmem:[%s17542_s17 + $0x40] ss:$8 sps:$4 sm:$0xff]   ;;  %v16234_v60 = vld [vmem:[%s17542_s17 + $0x54] ss:$8 sps:$4 sm:$0xff]   ;;  %v16236_v61 = vld [vmem:[%s17542_s17 + $0x50] ss:$8 sps:$4 sm:$0xff]  }
  0x65   : > { %v16237_v62 = vld [vmem:[%s17542_s17 + $0x64] ss:$8 sps:$4 sm:$0xff]   ;;  %v16239_v63 = vld [vmem:[%s17542_s17 + $0x60] ss:$8 sps:$4 sm:$0xff]   ;;  %v16240_v0 = vld [vmem:[%s17542_s17 + $0x74] ss:$8 sps:$4 sm:$0xff]  }
  0x66   : > { %v16242_v1 = vld [vmem:[%s17542_s17 + $0x70] ss:$8 sps:$4 sm:$0xff]   ;;  %v16243_v2 = vld [vmem:[%s17542_s17 + $0x84] ss:$8 sps:$4 sm:$0xff]   ;;  %v16245_v3 = vld [vmem:[%s17542_s17 + $0x80] ss:$8 sps:$4 sm:$0xff]  }
  0x67   : > { %5074 = vmatpush1.bf16.msra.mxu0 %v16224_v53  ;;  %v16246_v4 = vld [vmem:[%s17542_s17 + $0x94] ss:$8 sps:$4 sm:$0xff]   ;;  %v16248_v5 = vld [vmem:[%s17542_s17 + $0x90] ss:$8 sps:$4 sm:$0xff]   ;;  %v16249_v6 = vld [vmem:[%s17542_s17 + $0xa4] ss:$8 sps:$4 sm:$0xff]  }
  0x68   : > { %5075 = vmatprep.subr.bf16.mxu0 %v16225_v54  ;;  %v16251_v7 = vld [vmem:[%s17542_s17 + $0xa0] ss:$8 sps:$4 sm:$0xff]   ;;  %v16252_v8 = vld [vmem:[%s17542_s17 + $0xb4] ss:$8 sps:$4 sm:$0xff]   ;;  %v16254_v9 = vld [vmem:[%s17542_s17 + $0xb0] ss:$8 sps:$4 sm:$0xff]  }
  0x69   : > { %v16255_v10 = vld [vmem:[%s17542_s17 + $0xc4] ss:$8 sps:$4 sm:$0xff]   ;;  %v16257_v11 = vld [vmem:[%s17542_s17 + $0xc0] ss:$8 sps:$4 sm:$0xff]   ;;  %v16258_v12 = vld [vmem:[%s17542_s17 + $0xd4] ss:$8 sps:$4 sm:$0xff]  }
  0x6a   : > { %v16260_v13 = vld [vmem:[%s17542_s17 + $0xd0] ss:$8 sps:$4 sm:$0xff]   ;;  %v16261_v14 = vld [vmem:[%s17542_s17 + $0xe4] ss:$8 sps:$4 sm:$0xff]   ;;  %v16263_v15 = vld [vmem:[%s17542_s17 + $0xe0] ss:$8 sps:$4 sm:$0xff]  }
  0x6b   : > { %5076 = vmatpush1.bf16.msra.mxu0 %v16227_v55  ;;  %v16264_v16 = vld [vmem:[%s17542_s17 + $0xf4] ss:$8 sps:$4 sm:$0xff]   ;;  %v16266_v17 = vld [vmem:[%s17542_s17 + $0xf0] ss:$8 sps:$4 sm:$0xff]   ;;  %v16288_v31 = vld [vmem:[%s22581_s1 + $0x18c] ss:$28 sps:$4 sm:$0xff]  }
  0x6c   : > { %5077 = vmatprep.subr.bf16.mxu0 %v16228_v56  ;;  %v16281_v26 = vld [vmem:[%s22581_s1 + $0xe0] ss:$28 sps:$4 sm:$0xff]   ;;  %v16284_v28 = vld [vmem:[%s22581_s1 + $0x118] ss:$28 sps:$4 sm:$0xff]   ;;  %v16287_v30 = vld [vmem:[%s22581_s1 + $0x150] ss:$28 sps:$4 sm:$0xff]  }
  0x6d   : > { %v16282_v27 = vld [vmem:[%s22581_s1 + $0x11c] ss:$28 sps:$4 sm:$0xff]   ;;  %v16285_v29 = vld [vmem:[%s22581_s1 + $0x154] ss:$28 sps:$4 sm:$0xff]   ;;  %v16290_v32 = vld [vmem:[%s22581_s1 + $0x188] ss:$28 sps:$4 sm:$0xff]  }
  0x6e   : > { %v16291_v33 = vld [vmem:[%s22581_s1 + $0x1c4] ss:$28 sps:$4 sm:$0xff]   ;;  %v16294_v35 = vld [vmem:[%s22581_s1 + $0x1fc] ss:$28 sps:$4 sm:$0xff]   ;;  %v16297_v37 = vld [vmem:[%s22581_s1 + $0x234] ss:$28 sps:$4 sm:$0xff]  }
  0x6f   : > { %5078 = vmatpush1.bf16.msra.mxu0 %v16230_v57  ;;  %v16293_v34 = vld [vmem:[%s22581_s1 + $0x1c0] ss:$28 sps:$4 sm:$0xff]   ;;  %v16296_v36 = vld [vmem:[%s22581_s1 + $0x1f8] ss:$28 sps:$4 sm:$0xff]   ;;  %v16299_v38 = vld [vmem:[%s22581_s1 + $0x230] ss:$28 sps:$4 sm:$0xff]  }
  0x70   : > { %5079 = vmatprep.subr.bf16.mxu0 %v16231_v58  ;;  %v16300_v39 = vld [vmem:[%s22581_s1 + $0x26c] ss:$28 sps:$4 sm:$0xff]   ;;  %v16303_v41 = vld [vmem:[%s22581_s1 + $0x2a4] ss:$28 sps:$4 sm:$0xff]   ;;  %v16306_v43 = vld [vmem:[%s22581_s1 + $0x2dc] ss:$28 sps:$4 sm:$0xff]  }
  0x71   : > { %v16302_v40 = vld [vmem:[%s22581_s1 + $0x268] ss:$28 sps:$4 sm:$0xff]   ;;  %v16305_v42 = vld [vmem:[%s22581_s1 + $0x2a0] ss:$28 sps:$4 sm:$0xff]   ;;  %v16308_v44 = vld [vmem:[%s22581_s1 + $0x2d8] ss:$28 sps:$4 sm:$0xff]  }
  0x72   : > { %v16309_v45 = vld [vmem:[%s22581_s1 + $0x314] ss:$28 sps:$4 sm:$0xff]   ;;  %v16312_v47 = vld [vmem:[%s22581_s1 + $0x34c] ss:$28 sps:$4 sm:$0xff]   ;;  %v16315_v49 = vld [vmem:[%s22581_s1 + $0x384] ss:$28 sps:$4 sm:$0xff]  }
  0x73   : > { %5080 = vmatpush1.bf16.msra.mxu0 %v16233_v59  ;;  %v16311_v46 = vld [vmem:[%s22581_s1 + $0x310] ss:$28 sps:$4 sm:$0xff]   ;;  %v16314_v48 = vld [vmem:[%s22581_s1 + $0x348] ss:$28 sps:$4 sm:$0xff]   ;;  %v16317_v50 = vld [vmem:[%s22581_s1 + $0x380] ss:$28 sps:$4 sm:$0xff]  }
  0x74   : > { %5081 = vmatprep.subr.bf16.mxu0 %v16234_v60  ;;  %v16318_v51 = vld [vmem:[%s22581_s1 + $0x3bc] ss:$28 sps:$4 sm:$0xff]   ;;  %v16321_v53 = vld [vmem:[%s22581_s1 + $0x3f4] ss:$28 sps:$4 sm:$0xff]   ;;  %v16324_v55 = vld [vmem:[%s22581_s1 + $0x42c] ss:$28 sps:$4 sm:$0xff]  }
  0x75   : > { %v16320_v52 = vld [vmem:[%s22581_s1 + $0x3b8] ss:$28 sps:$4 sm:$0xff]   ;;  %v16323_v54 = vld [vmem:[%s22581_s1 + $0x3f0] ss:$28 sps:$4 sm:$0xff]   ;;  %v16326_v56 = vld [vmem:[%s22581_s1 + $0x428] ss:$28 sps:$4 sm:$0xff]  }
  0x76   : > { %v16327_v57 = vld [vmem:[%s22581_s1 + $0x464] ss:$28 sps:$4 sm:$0xff]   ;;  %s13535_s30 = sshll.u32 %s811_s28, 4  ;;  %s13521_s18 = scalar_lea.sflag [#allocation5], %s17536_s29  ;;  %s22538_s30 = int_to_ptr.vmem [resolvable:$true] %s13535_s30 }
  0x77   : > { %5082 = vmatpush1.bf16.msra.mxu0 %v16236_v61  ;;  %v16375_v58 = vld [vmem:[%s17542_s17 + $0x100] ss:$8 sps:$4 sm:$0xff]   ;;  %v16377_v59 = vld [vmem:[%s17542_s17 + $0x104] ss:$8 sps:$4 sm:$0xff]   ;;  %v16330_v61 = vld [vmem:[%s22581_s1 + $0x49c] ss:$28 sps:$4 sm:$0xff]  }
  0x78   : > { %5083 = vmatprep.subr.bf16.mxu0 %v16237_v62  ;;  %v16329_v60 = vld [vmem:[%s22581_s1 + $0x460] ss:$28 sps:$4 sm:$0xff]   ;;  %v16332_v62 = vld [vmem:[%s22581_s1 + $0x498] ss:$28 sps:$4 sm:$0xff]   ;;  %s17131_s22 = scalar_lea.vmem %s22538_s30, 32  ;;  %s17197_s8 = smov [#allocation4]  }
  0x79   : > { %p17132_p13 = scmp.ne.s32.totalorder %s22538_s30, %s17131_s22  ;;  %s17135_s23 = sshll.u32 %s17197_s8, 4  ;;  %s17136_s23 = int_to_ptr.vmem [resolvable:$false] %s17135_s23 }
  0x7a   : > { %s17137_s24 = scalar_lea.vmem %s17136_s23, 64  ;;  %p17138_p2 = scmp.lt.s32.totalorder %s22538_s30, %s17136_s23 }
  0x7b   : > { %5084 = vmatpush1.bf16.msra.mxu0 %v16239_v63  ;;  %v16333_v63 = vld [vmem:[%s22581_s1 + $0x4d4] ss:$28 sps:$4 sm:$0xff]   ;;  %p17133_p0 = pnand %p17132_p13, %p17289_p6  ;;  %p17139_p3 = scmp.lt.s32.totalorder %s17137_s24, %s17131_s22 }
  0x7c   : > { %5085 = vmatprep.subr.bf16.mxu0 %v16240_v0  ;;  %v16335_v0 = vld [vmem:[%s22581_s1 + $0x4d0] ss:$28 sps:$4 sm:$0xff]  }
  0x7d   : > { %p17134_p1 = pneg %p17133_p0  ;;  %p17140_p4 = por %p17139_p3, %p17138_p2 }
  0x7f   : > { %5086 = vmatpush1.bf16.msra.mxu0 %v16242_v1  ;;  %v16336_v1 = vld [vmem:[%s22581_s1 + $0x50c] ss:$28 sps:$4 sm:$0xff]   ;;  %p17141_p5 = pnand %p17140_p4, %p17134_p1 }
  0x80   : > { %5087 = vmatprep.subr.bf16.mxu0 %v16243_v2  ;;  %v16338_v2 = vld [vmem:[%s22581_s1 + $0x508] ss:$28 sps:$4 sm:$0xff]  }
  0x83   : > { %5088 = vmatpush1.bf16.msra.mxu0 %v16245_v3  ;;  %v16339_v3 = vld [vmem:[%s22581_s1 + $0x544] ss:$28 sps:$4 sm:$0xff]  }
  0x84   : > { %5089 = vmatprep.subr.bf16.mxu0 %v16246_v4  ;;  %v16390_v4 = vld [vmem:[%s17542_s17 + $0x110] ss:$8 sps:$4 sm:$0xff]  }
  0x87   : > { %5090 = vmatpush1.bf16.msra.mxu0 %v16248_v5  ;;  %v16392_v5 = vld [vmem:[%s17542_s17 + $0x114] ss:$8 sps:$4 sm:$0xff]  }
  0x88   : > { %5091 = vmatprep.subr.bf16.mxu0 %v16249_v6  ;;  %v16341_v6 = vld [vmem:[%s22581_s1 + $0x540] ss:$28 sps:$4 sm:$0xff]  }
  0x8b   : > { %5092 = vmatpush1.bf16.msra.mxu0 %v16251_v7  ;;  %v16342_v7 = vld [vmem:[%s22581_s1 + $0x57c] ss:$28 sps:$4 sm:$0xff]  }
  0x8c   : > { %5093 = vmatprep.subr.bf16.mxu0 %v16252_v8  ;;  %v16344_v8 = vld [vmem:[%s22581_s1 + $0x578] ss:$28 sps:$4 sm:$0xff]  }
  0x8f   : > { %5094 = vmatpush1.bf16.msra.mxu0 %v16254_v9  ;;  %v16345_v9 = vld [vmem:[%s22581_s1 + $0x5b4] ss:$28 sps:$4 sm:$0xff]  }
  0x90   : > { %5095 = vmatprep.subr.bf16.mxu0 %v16255_v10  ;;  %v16347_v10 = vld [vmem:[%s22581_s1 + $0x5b0] ss:$28 sps:$4 sm:$0xff]  }
  0x93   : > { %5096 = vmatpush1.bf16.msra.mxu0 %v16257_v11  ;;  %v16348_v11 = vld [vmem:[%s22581_s1 + $0x5ec] ss:$28 sps:$4 sm:$0xff]  }
  0x94   : > { %5097 = vmatprep.subr.bf16.mxu0 %v16258_v12  ;;  %v16350_v12 = vld [vmem:[%s22581_s1 + $0x5e8] ss:$28 sps:$4 sm:$0xff]  }
  0x97   : > { %5098 = vmatpush1.bf16.msra.mxu0 %v16260_v13  ;;  %v16351_v13 = vld [vmem:[%s22581_s1 + $0x624] ss:$28 sps:$4 sm:$0xff]  }
  0x98   : > { %5099 = vmatprep.subr.bf16.mxu0 %v16261_v14  ;;  %v16405_v14 = vld [vmem:[%s17542_s17 + $0x120] ss:$8 sps:$4 sm:$0xff]  }
  0x9b   : > { %5100 = vmatpush1.bf16.msra.mxu0 %v16263_v15  ;;  %v16407_v15 = vld [vmem:[%s17542_s17 + $0x124] ss:$8 sps:$4 sm:$0xff]  }
  0x9c   : > { %5101 = vmatprep.subr.bf16.mxu0 %v16264_v16  ;;  %v16353_v16 = vld [vmem:[%s22581_s1 + $0x620] ss:$28 sps:$4 sm:$0xff]  }
  0x9f   : > { %5102 = vmatpush1.bf16.msra.mxu0 %v16266_v17  ;;  %v16354_v17 = vld [vmem:[%s22581_s1 + $0x65c] ss:$28 sps:$4 sm:$0xff]  }
  0xa0   : > { %5744 = vmatprep.subr.bf16.mxu0 %v16377_v59  ;;  %v16411_v59 = vld [vmem:[%s22581_s1 + $0x9dc] ss:$28 sps:$4 sm:$0xff]  }
  0xa2   : > { %5104 = vmatmul.mubr.bf16.vlgmr.msra.gmra.mrb[0].mxu0 %v16267_v18  ;;  %v16356_v18 = vld [vmem:[%s22581_s1 + $0x658] ss:$28 sps:$4 sm:$0xff]  }
  0xa3   : > { %5113 = vmatprep.mubr.bf16.mxu0 %v16270_v19  ;;  %5745 = vmatpush1.bf16.msra.mxu0 %v16375_v58  ;;  %v16357_v19 = vld [vmem:[%s22581_s1 + $0x694] ss:$28 sps:$4 sm:$0xff]   ;;  %v16410_v58 = vld [vmem:[%s22581_s1 + $0x9a0] ss:$28 sps:$4 sm:$0xff]  }
  0xa4   : > { %5746 = vmatprep.subr.bf16.mxu0 %v16392_v5  ;;  %v16486_v5 = vld [vmem:[%s17542_s17 + $0x1b0] ss:$8 sps:$4 sm:$0xff]  }
  0xa7   : > { %5747 = vmatpush1.bf16.msra.mxu0 %v16390_v4  ;;  %v16488_v4 = vld [vmem:[%s17542_s17 + $0x1b4] ss:$8 sps:$4 sm:$0xff]  }
  0xa8   : > { %5748 = vmatprep.subr.bf16.mxu0 %v16407_v15  ;;  %v16501_v15 = vld [vmem:[%s17542_s17 + $0x1e0] ss:$8 sps:$4 sm:$0xff]  }
  0xaa   : > { %5114 = vmatmul.mubr.bf16.gmra.mrb[4].mxu0 %v16272_v20  ;;  %v16359_v20 = vld [vmem:[%s22581_s1 + $0x690] ss:$28 sps:$4 sm:$0xff]  }
  0xab   : > { %5123 = vmatprep.mubr.bf16.mxu0 %v16273_v21  ;;  %5749 = vmatpush1.bf16.msra.mxu0 %v16405_v14  ;;  %v16360_v21 = vld [vmem:[%s22581_s1 + $0x6cc] ss:$28 sps:$4 sm:$0xff]  }
  0xac   : > { %v16503_v14 = vld [vmem:[%s17542_s17 + $0x1e4] ss:$8 sps:$4 sm:$0xff]  }
  0xb2   : > { %5124 = vmatmul.mubr.bf16.gmra.mrb[8].mxu0 %v16275_v22  ;;  %v16362_v22 = vld [vmem:[%s22581_s1 + $0x6c8] ss:$28 sps:$4 sm:$0xff]  }
  0xb3   : > { %5133 = vmatprep.mubr.bf16.mxu0 %v16276_v23  ;;  %v16363_v23 = vld [vmem:[%s22581_s1 + $0x704] ss:$28 sps:$4 sm:$0xff]  }
  0xba   : > { %5134 = vmatmul.mubr.bf16.gmra.mrb[12].mxu0 %v16278_v24  ;;  %v16420_v24 = vld [vmem:[%s17542_s17 + $0x130] ss:$8 sps:$4 sm:$0xff]  }
  0xbb   : > { %5143 = vmatprep.mubr.bf16.mxu0 %v16279_v25  ;;  %v16422_v25 = vld [vmem:[%s17542_s17 + $0x134] ss:$8 sps:$4 sm:$0xff]  }
  0xbc   : > { %5750 = vmatprep.subr.bf16.mxu0 %v16422_v25  ;;  %v16438_v25 = vld [vmem:[%s22581_s1 + $0xb64] ss:$28 sps:$4 sm:$0xff]  }
  0xbd   : > { %5751 = vmatpush1.bf16.msra.mxu0 %v16420_v24  ;;  %v16434_v24 = vld [vmem:[%s22581_s1 + $0xb28] ss:$28 sps:$4 sm:$0xff]  }
  0xc2   : > { %5144 = vmatmul.mubr.bf16.gmra.mrb[16].mxu0 %v16281_v26  ;;  %v16365_v26 = vld [vmem:[%s22581_s1 + $0x700] ss:$28 sps:$4 sm:$0xff]  }
  0xc3   : > { %5153 = vmatprep.mubr.bf16.mxu0 %v16282_v27  ;;  %v16366_v27 = vld [vmem:[%s22581_s1 + $0x73c] ss:$28 sps:$4 sm:$0xff]  }
  0xca   : > { %5154 = vmatmul.mubr.bf16.gmra.mrb[20].mxu0 %v16284_v28  ;;  %v16368_v28 = vld [vmem:[%s22581_s1 + $0x738] ss:$28 sps:$4 sm:$0xff]  }
  0xcb   : > { %5163 = vmatprep.mubr.bf16.mxu0 %v16285_v29  ;;  %v16369_v29 = vld [vmem:[%s22581_s1 + $0x774] ss:$28 sps:$4 sm:$0xff]  }
  0xd2   : > { %5164 = vmatmul.mubr.bf16.gmra.mrb[24].mxu0 %v16287_v30  ;;  %v16371_v30 = vld [vmem:[%s22581_s1 + $0x770] ss:$28 sps:$4 sm:$0xff]  }
  0xd3   : > { %5173 = vmatprep.mubr.bf16.mxu0 %v16288_v31  ;;  %v16372_v31 = vld [vmem:[%s22581_s1 + $0x7ac] ss:$28 sps:$4 sm:$0xff]  }
  0xda   : > { %5174 = vmatmul.mubr.bf16.gmra.mrb[28].mxu0 %v16290_v32  ;;  %v16374_v32 = vld [vmem:[%s22581_s1 + $0x7a8] ss:$28 sps:$4 sm:$0xff]  }
  0xdb   : > { %5183 = vmatprep.mubr.bf16.mxu0 %v16291_v33  ;;  %v16378_v33 = vld [vmem:[%s22581_s1 + $0x7e4] ss:$28 sps:$4 sm:$0xff]  }
  0xe2   : > { %5184 = vmatmul.mubr.bf16.gmra.mrb[32].mxu0 %v16293_v34  ;;  %v16435_v34 = vld [vmem:[%s17542_s17 + $0x140] ss:$8 sps:$4 sm:$0xff]  }
  0xe3   : > { %5193 = vmatprep.mubr.bf16.mxu0 %v16294_v35  ;;  %v16437_v35 = vld [vmem:[%s17542_s17 + $0x144] ss:$8 sps:$4 sm:$0xff]  }
  0xe4   : > { %5752 = vmatprep.subr.bf16.mxu0 %v16437_v35  ;;  %v16456_v35 = vld [vmem:[%s22581_s1 + $0xc7c] ss:$28 sps:$4 sm:$0xff]  }
  0xe5   : > { %5753 = vmatpush1.bf16.msra.mxu0 %v16435_v34  ;;  %v16455_v34 = vld [vmem:[%s22581_s1 + $0xc40] ss:$28 sps:$4 sm:$0xff]  }
  0xea   : > { %5194 = vmatmul.mubr.bf16.gmra.mrb[36].mxu0 %v16296_v36  ;;  %v16380_v36 = vld [vmem:[%s22581_s1 + $0x7e0] ss:$28 sps:$4 sm:$0xff]  }
  0xeb   : > { %5203 = vmatprep.mubr.bf16.mxu0 %v16297_v37  ;;  %v16381_v37 = vld [vmem:[%s22581_s1 + $0x81c] ss:$28 sps:$4 sm:$0xff]  }
  0xf2   : > { %5204 = vmatmul.mubr.bf16.gmra.mrb[40].mxu0 %v16299_v38  ;;  %v16383_v38 = vld [vmem:[%s22581_s1 + $0x818] ss:$28 sps:$4 sm:$0xff]  }
  0xf3   : > { %5213 = vmatprep.mubr.bf16.mxu0 %v16300_v39  ;;  %v16384_v39 = vld [vmem:[%s22581_s1 + $0x854] ss:$28 sps:$4 sm:$0xff]  }
  0xfa   : > { %5214 = vmatmul.mubr.bf16.gmra.mrb[44].mxu0 %v16302_v40  ;;  %v16386_v40 = vld [vmem:[%s22581_s1 + $0x850] ss:$28 sps:$4 sm:$0xff]  }
  0xfb   : > { %5223 = vmatprep.mubr.bf16.mxu0 %v16303_v41  ;;  %v16387_v41 = vld [vmem:[%s22581_s1 + $0x88c] ss:$28 sps:$4 sm:$0xff]  }
 0x102   : > { %5224 = vmatmul.mubr.bf16.gmra.mrb[48].mxu0 %v16305_v42  ;;  %v16389_v42 = vld [vmem:[%s22581_s1 + $0x888] ss:$28 sps:$4 sm:$0xff]  }
 0x103   : > { %5233 = vmatprep.mubr.bf16.mxu0 %v16306_v43  ;;  %v16393_v43 = vld [vmem:[%s22581_s1 + $0x8c4] ss:$28 sps:$4 sm:$0xff]  }
 0x10a   : > { %5234 = vmatmul.mubr.bf16.gmra.mrb[52].mxu0 %v16308_v44  ;;  %v16450_v44 = vld [vmem:[%s17542_s17 + $0x150] ss:$8 sps:$4 sm:$0xff]  }
 0x10b   : > { %5243 = vmatprep.mubr.bf16.mxu0 %v16309_v45  ;;  %v16452_v45 = vld [vmem:[%s17542_s17 + $0x154] ss:$8 sps:$4 sm:$0xff]  }
 0x10c   : > { %5754 = vmatprep.subr.bf16.mxu0 %v16452_v45  ;;  %v16489_v45 = vld [vmem:[%s22581_s1 + $0xd94] ss:$28 sps:$4 sm:$0xff]  }
 0x10d   : > { %5755 = vmatpush1.bf16.msra.mxu0 %v16450_v44  ;;  %v16482_v44 = vld [vmem:[%s22581_s1 + $0xd58] ss:$28 sps:$4 sm:$0xff]  }
 0x112   : > { %5244 = vmatmul.mubr.bf16.gmra.mrb[56].mxu0 %v16311_v46  ;;  %v16395_v46 = vld [vmem:[%s22581_s1 + $0x8c0] ss:$28 sps:$4 sm:$0xff]  }
 0x113   : > { %5253 = vmatprep.mubr.bf16.mxu0 %v16312_v47  ;;  %v16396_v47 = vld [vmem:[%s22581_s1 + $0x8fc] ss:$28 sps:$4 sm:$0xff]  }
 0x11a   : > { %5254 = vmatmul.mubr.bf16.gmra.mrb[60].mxu0 %v16314_v48  ;;  %v16398_v48 = vld [vmem:[%s22581_s1 + $0x8f8] ss:$28 sps:$4 sm:$0xff]  }
 0x11b   : > { %5263 = vmatprep.mubr.bf16.mxu0 %v16315_v49  ;;  %v16399_v49 = vld [vmem:[%s22581_s1 + $0x934] ss:$28 sps:$4 sm:$0xff]  }
 0x122   : > { %5264 = vmatmul.mubr.bf16.gmra.mrb[64].mxu0 %v16317_v50  ;;  %v16401_v50 = vld [vmem:[%s22581_s1 + $0x930] ss:$28 sps:$4 sm:$0xff]  }
 0x123   : > { %5273 = vmatprep.mubr.bf16.mxu0 %v16318_v51  ;;  %v16402_v51 = vld [vmem:[%s22581_s1 + $0x96c] ss:$28 sps:$4 sm:$0xff]  }
 0x12a   : > { %5274 = vmatmul.mubr.bf16.gmra.mrb[68].mxu0 %v16320_v52  ;;  %v16404_v52 = vld [vmem:[%s22581_s1 + $0x968] ss:$28 sps:$4 sm:$0xff]  }
 0x12b   : > { %5283 = vmatprep.mubr.bf16.mxu0 %v16321_v53  ;;  %v16408_v53 = vld [vmem:[%s22581_s1 + $0x9a4] ss:$28 sps:$4 sm:$0xff]  }
 0x132   : > { %5284 = vmatmul.mubr.bf16.gmra.mrb[72].mxu0 %v16323_v54  ;;  %v16467_v54 = vld [vmem:[%s17542_s17 + $0x164] ss:$8 sps:$4 sm:$0xff]  }
 0x133   : > { %5293 = vmatprep.mubr.bf16.mxu0 %v16324_v55  ;;  %v16465_v55 = vld [vmem:[%s17542_s17 + $0x160] ss:$8 sps:$4 sm:$0xff]   ;;  %5756 = vmatprep.subr.bf16.mxu0 %v16467_v54  ;;  %v16515_v54 = vld [vmem:[%s22581_s1 + $0x78] ss:$28 sps:$4 sm:$0xff]  }
 0x134   : > { %5757 = vmatpush1.bf16.msra.mxu0 %v16465_v55  ;;  %v16516_v55 = vld [vmem:[%s22581_s1 + $0xb4] ss:$28 sps:$4 sm:$0xff]  }
 0x13a   : > { %5294 = vmatmul.mubr.bf16.gmra.mrb[76].mxu0 %v16326_v56  ;;  %v16470_v56 = vld [vmem:[%s17542_s17 + $0x174] ss:$8 sps:$4 sm:$0xff]  }
 0x13b   : > { %5303 = vmatprep.mubr.bf16.mxu0 %v16327_v57  ;;  %v16468_v57 = vld [vmem:[%s17542_s17 + $0x170] ss:$8 sps:$4 sm:$0xff]   ;;  %5758 = vmatprep.subr.bf16.mxu0 %v16470_v56 }
 0x13c   : > { %5759 = vmatpush1.bf16.msra.mxu0 %v16468_v57  ;;  %v16518_v56 = vld [vmem:[%s22581_s1 + $0xb0] ss:$28 sps:$4 sm:$0xff]  }
 0x13d   : > { %v16519_v57 = vld [vmem:[%s22581_s1 + $0xec] ss:$28 sps:$4 sm:$0xff]  }
 0x142   : > { %5304 = vmatmul.mubr.bf16.gmra.mrb[80].mxu0 %v16329_v60  ;;  %v16476_v60 = vld [vmem:[%s17542_s17 + $0x184] ss:$8 sps:$4 sm:$0xff]  }
 0x143   : > { %5313 = vmatprep.mubr.bf16.mxu0 %v16330_v61  ;;  %v16474_v61 = vld [vmem:[%s17542_s17 + $0x180] ss:$8 sps:$4 sm:$0xff]   ;;  %5760 = vmatprep.subr.bf16.mxu0 %v16476_v60 }
 0x144   : > { %5761 = vmatpush1.bf16.msra.mxu0 %v16474_v61  ;;  %v16524_v60 = vld [vmem:[%s22581_s1 + $0x120] ss:$28 sps:$4 sm:$0xff]  }
 0x145   : > { %v16525_v61 = vld [vmem:[%s22581_s1 + $0x15c] ss:$28 sps:$4 sm:$0xff]  }
 0x14a   : > { %5314 = vmatmul.mubr.bf16.gmra.mrb[84].mxu0 %v16332_v62  ;;  %v16479_v62 = vld [vmem:[%s17542_s17 + $0x194] ss:$8 sps:$4 sm:$0xff]  }
 0x14b   : > { %5323 = vmatprep.mubr.bf16.mxu0 %v16333_v63  ;;  %v16477_v63 = vld [vmem:[%s17542_s17 + $0x190] ss:$8 sps:$4 sm:$0xff]   ;;  %5762 = vmatprep.subr.bf16.mxu0 %v16479_v62 }
 0x14c   : > { %5763 = vmatpush1.bf16.msra.mxu0 %v16477_v63  ;;  %v16527_v62 = vld [vmem:[%s22581_s1 + $0x158] ss:$28 sps:$4 sm:$0xff]  }
 0x14d   : > { %v16528_v63 = vld [vmem:[%s22581_s1 + $0x194] ss:$28 sps:$4 sm:$0xff]  }
 0x152   : > { %5324 = vmatmul.mubr.bf16.gmra.mrb[88].mxu0 %v16335_v0  ;;  %v16413_v0 = vld [vmem:[%s22581_s1 + $0x9d8] ss:$28 sps:$4 sm:$0xff]  }
 0x153   : > { %5333 = vmatprep.mubr.bf16.mxu0 %v16336_v1  ;;  %v16414_v1 = vld [vmem:[%s22581_s1 + $0xa14] ss:$28 sps:$4 sm:$0xff]  }
 0x15a   : > { %5334 = vmatmul.mubr.bf16.gmra.mrb[92].mxu0 %v16338_v2  ;;  %v16485_v2 = vld [vmem:[%s17542_s17 + $0x1a4] ss:$8 sps:$4 sm:$0xff]  }
 0x15b   : > { %5343 = vmatprep.mubr.bf16.mxu0 %v16339_v3  ;;  %v16483_v3 = vld [vmem:[%s17542_s17 + $0x1a0] ss:$8 sps:$4 sm:$0xff]   ;;  %5764 = vmatprep.subr.bf16.mxu0 %v16485_v2 }
 0x15c   : > { %5765 = vmatpush1.bf16.msra.mxu0 %v16483_v3  ;;  %v16533_v2 = vld [vmem:[%s22581_s1 + $0x1c8] ss:$28 sps:$4 sm:$0xff]  }
 0x15d   : > { %5766 = vmatprep.subr.bf16.mxu0 %v16488_v4  ;;  %v16534_v3 = vld [vmem:[%s22581_s1 + $0x204] ss:$28 sps:$4 sm:$0xff]  }
 0x15e   : > { %v16536_v4 = vld [vmem:[%s22581_s1 + $0x200] ss:$28 sps:$4 sm:$0xff]  }
 0x160   : > { %5767 = vmatpush1.bf16.msra.mxu0 %v16486_v5  ;;  %v16537_v5 = vld [vmem:[%s22581_s1 + $0x23c] ss:$28 sps:$4 sm:$0xff]  }
 0x162   : > { %5344 = vmatmul.mubr.bf16.gmra.mrb[96].mxu0 %v16341_v6  ;;  %v16416_v6 = vld [vmem:[%s22581_s1 + $0xa10] ss:$28 sps:$4 sm:$0xff]  }
 0x163   : > { %5353 = vmatprep.mubr.bf16.mxu0 %v16342_v7  ;;  %v16417_v7 = vld [vmem:[%s22581_s1 + $0xa4c] ss:$28 sps:$4 sm:$0xff]  }
 0x16a   : > { %5354 = vmatmul.mubr.bf16.gmra.mrb[100].mxu0 %v16344_v8  ;;  %v16494_v8 = vld [vmem:[%s17542_s17 + $0x1c4] ss:$8 sps:$4 sm:$0xff]  }
 0x16b   : > { %5363 = vmatprep.mubr.bf16.mxu0 %v16345_v9  ;;  %v16492_v9 = vld [vmem:[%s17542_s17 + $0x1c0] ss:$8 sps:$4 sm:$0xff]   ;;  %5768 = vmatprep.subr.bf16.mxu0 %v16494_v8 }
 0x16c   : > { %5769 = vmatpush1.bf16.msra.mxu0 %v16492_v9  ;;  %v16542_v8 = vld [vmem:[%s22581_s1 + $0x270] ss:$28 sps:$4 sm:$0xff]  }
 0x16d   : > { %v16543_v9 = vld [vmem:[%s22581_s1 + $0x2ac] ss:$28 sps:$4 sm:$0xff]  }
 0x172   : > { %5364 = vmatmul.mubr.bf16.gmra.mrb[104].mxu0 %v16347_v10  ;;  %v16497_v10 = vld [vmem:[%s17542_s17 + $0x1d4] ss:$8 sps:$4 sm:$0xff]  }
 0x173   : > { %5373 = vmatprep.mubr.bf16.mxu0 %v16348_v11  ;;  %v16495_v11 = vld [vmem:[%s17542_s17 + $0x1d0] ss:$8 sps:$4 sm:$0xff]   ;;  %5770 = vmatprep.subr.bf16.mxu0 %v16497_v10  ;;  %v16545_v10 = vld [vmem:[%s22581_s1 + $0x2a8] ss:$28 sps:$4 sm:$0xff]  }
 0x174   : > { %5771 = vmatpush1.bf16.msra.mxu0 %v16495_v11  ;;  %v16546_v11 = vld [vmem:[%s22581_s1 + $0x2e4] ss:$28 sps:$4 sm:$0xff]  }
 0x175   : > { %5772 = vmatprep.subr.bf16.mxu0 %v16503_v14  ;;  %v16551_v14 = vld [vmem:[%s22581_s1 + $0x318] ss:$28 sps:$4 sm:$0xff]  }
 0x178   : > { %5773 = vmatpush1.bf16.msra.mxu0 %v16501_v15  ;;  %v16552_v15 = vld [vmem:[%s22581_s1 + $0x354] ss:$28 sps:$4 sm:$0xff]  }
 0x17a   : > { %5374 = vmatmul.mubr.bf16.gmra.mrb[108].mxu0 %v16350_v12  ;;  %v16419_v12 = vld [vmem:[%s22581_s1 + $0xa48] ss:$28 sps:$4 sm:$0xff]  }
 0x17b   : > { %5383 = vmatprep.mubr.bf16.mxu0 %v16351_v13  ;;  %v16423_v13 = vld [vmem:[%s22581_s1 + $0xa84] ss:$28 sps:$4 sm:$0xff]  }
 0x182   : > { %5384 = vmatmul.mubr.bf16.gmra.mrb[112].mxu0 %v16353_v16  ;;  %v16506_v16 = vld [vmem:[%s17542_s17 + $0x1f4] ss:$8 sps:$4 sm:$0xff]  }
 0x183   : > { %5393 = vmatprep.mubr.bf16.mxu0 %v16354_v17  ;;  %v16504_v17 = vld [vmem:[%s17542_s17 + $0x1f0] ss:$8 sps:$4 sm:$0xff]   ;;  %5774 = vmatprep.subr.bf16.mxu0 %v16506_v16 }
 0x184   : > { %5775 = vmatpush1.bf16.msra.mxu0 %v16504_v17  ;;  %v16554_v16 = vld [vmem:[%s22581_s1 + $0x350] ss:$28 sps:$4 sm:$0xff]  }
 0x185   : > { %v16555_v17 = vld [vmem:[%s22581_s1 + $0x38c] ss:$28 sps:$4 sm:$0xff]  }
 0x18a   : > { %5394 = vmatmul.mubr.bf16.gmra.mrb[116].mxu0 %v16356_v18  ;;  %v16425_v18 = vld [vmem:[%s22581_s1 + $0xa80] ss:$28 sps:$4 sm:$0xff]  }
 0x18b   : > { %5403 = vmatprep.mubr.bf16.mxu0 %v16357_v19  ;;  %v16426_v19 = vld [vmem:[%s22581_s1 + $0xabc] ss:$28 sps:$4 sm:$0xff]  }
 0x192   : > { %5404 = vmatmul.mubr.bf16.gmra.mrb[120].mxu0 %v16359_v20  ;;  %v16428_v20 = vld [vmem:[%s22581_s1 + $0xab8] ss:$28 sps:$4 sm:$0xff]  }
 0x193   : > { %5413 = vmatprep.mubr.bf16.mxu0 %v16360_v21  ;;  %v16429_v21 = vld [vmem:[%s22581_s1 + $0xaf4] ss:$28 sps:$4 sm:$0xff]  }
 0x19a   : > { %5414 = vmatmul.mubr.bf16.gmra.mrb[124].mxu0 %v16362_v22  ;;  %v16431_v22 = vld [vmem:[%s22581_s1 + $0xaf0] ss:$28 sps:$4 sm:$0xff]  }
 0x19b   : > { %5423 = vmatprep.mubr.bf16.mxu0 %v16363_v23  ;;  %v16432_v23 = vld [vmem:[%s22581_s1 + $0xb2c] ss:$28 sps:$4 sm:$0xff]  }
 0x1a2   : > { %5424 = vmatmul.mubr.bf16.gmra.mrb[128].mxu0 %v16365_v26  ;;  %v16440_v26 = vld [vmem:[%s22581_s1 + $0xb60] ss:$28 sps:$4 sm:$0xff]  }
 0x1a3   : > { %5433 = vmatprep.mubr.bf16.mxu0 %v16366_v27  ;;  %v16441_v27 = vld [vmem:[%s22581_s1 + $0xb9c] ss:$28 sps:$4 sm:$0xff]  }
 0x1aa   : > { %5434 = vmatmul.mubr.bf16.gmra.mrb[132].mxu0 %v16368_v28  ;;  %v16443_v28 = vld [vmem:[%s22581_s1 + $0xb98] ss:$28 sps:$4 sm:$0xff]  }
 0x1ab   : > { %5443 = vmatprep.mubr.bf16.mxu0 %v16369_v29  ;;  %v16444_v29 = vld [vmem:[%s22581_s1 + $0xbd4] ss:$28 sps:$4 sm:$0xff]  }
 0x1b2   : > { %5444 = vmatmul.mubr.bf16.gmra.mrb[136].mxu0 %v16371_v30  ;;  %v16446_v30 = vld [vmem:[%s22581_s1 + $0xbd0] ss:$28 sps:$4 sm:$0xff]  }
 0x1b3   : > { %5453 = vmatprep.mubr.bf16.mxu0 %v16372_v31  ;;  %v16447_v31 = vld [vmem:[%s22581_s1 + $0xc0c] ss:$28 sps:$4 sm:$0xff]  }
 0x1ba   : > { %5454 = vmatmul.mubr.bf16.gmra.mrb[140].mxu0 %v16374_v32  ;;  %v16449_v32 = vld [vmem:[%s22581_s1 + $0xc08] ss:$28 sps:$4 sm:$0xff]  }
 0x1bb   : > { %5463 = vmatprep.mubr.bf16.mxu0 %v16378_v33  ;;  %v16453_v33 = vld [vmem:[%s22581_s1 + $0xc44] ss:$28 sps:$4 sm:$0xff]  }
 0x1c2   : > { %5464 = vmatmul.mubr.bf16.gmra.mrb[144].mxu0 %v16380_v36  ;;  %v16458_v36 = vld [vmem:[%s22581_s1 + $0xc78] ss:$28 sps:$4 sm:$0xff]  }
 0x1c3   : > { %5473 = vmatprep.mubr.bf16.mxu0 %v16381_v37  ;;  %v16459_v37 = vld [vmem:[%s22581_s1 + $0xcb4] ss:$28 sps:$4 sm:$0xff]  }
 0x1ca   : > { %5474 = vmatmul.mubr.bf16.gmra.mrb[148].mxu0 %v16383_v38  ;;  %v16461_v38 = vld [vmem:[%s22581_s1 + $0xcb0] ss:$28 sps:$4 sm:$0xff]  }
 0x1cb   : > { %5483 = vmatprep.mubr.bf16.mxu0 %v16384_v39  ;;  %v16462_v39 = vld [vmem:[%s22581_s1 + $0xcec] ss:$28 sps:$4 sm:$0xff]  }
 0x1d2   : > { %5484 = vmatmul.mubr.bf16.gmra.mrb[152].mxu0 %v16386_v40  ;;  %v16464_v40 = vld [vmem:[%s22581_s1 + $0xce8] ss:$28 sps:$4 sm:$0xff]  }
 0x1d3   : > { %5493 = vmatprep.mubr.bf16.mxu0 %v16387_v41  ;;  %v16471_v41 = vld [vmem:[%s22581_s1 + $0xd24] ss:$28 sps:$4 sm:$0xff]  }
 0x1da   : > { %5494 = vmatmul.mubr.bf16.gmra.mrb[156].mxu0 %v16389_v42  ;;  %v16473_v42 = vld [vmem:[%s22581_s1 + $0xd20] ss:$28 sps:$4 sm:$0xff]  }
 0x1db   : > { %5503 = vmatprep.mubr.bf16.mxu0 %v16393_v43  ;;  %v16480_v43 = vld [vmem:[%s22581_s1 + $0xd5c] ss:$28 sps:$4 sm:$0xff]  }
 0x1e2   : > { %5504 = vmatmul.mubr.bf16.gmra.mrb[160].mxu0 %v16395_v46  ;;  %v16491_v46 = vld [vmem:[%s22581_s1 + $0xd90] ss:$28 sps:$4 sm:$0xff]  }
 0x1e3   : > { %5513 = vmatprep.mubr.bf16.mxu0 %v16396_v47  ;;  %v16498_v47 = vld [vmem:[%s22581_s1 + $0xdcc] ss:$28 sps:$4 sm:$0xff]  }
 0x1ea   : > { %5514 = vmatmul.mubr.bf16.gmra.mrb[164].mxu0 %v16398_v48  ;;  %v16500_v48 = vld [vmem:[%s22581_s1 + $0xdc8] ss:$28 sps:$4 sm:$0xff]  }
 0x1eb   : > { %5523 = vmatprep.mubr.bf16.mxu0 %v16399_v49  ;;  %v16509_v49 = vld [vmem:[%s22581_s1 + $0xc] ss:$28 sps:$4 sm:$0xff]  }
 0x1f2   : > { %5524 = vmatmul.mubr.bf16.gmra.mrb[168].mxu0 %v16401_v50  ;;  %v16507_v50 = vld [vmem:[%s22581_s1 + $0x8] ss:$28 sps:$4 sm:$0xff]  }
 0x1f3   : > { %5533 = vmatprep.mubr.bf16.mxu0 %v16402_v51  ;;  %v16510_v51 = vld [vmem:[%s22581_s1 + $0x44] ss:$28 sps:$4 sm:$0xff]  }
 0x1fa   : > { %5534 = vmatmul.mubr.bf16.gmra.mrb[172].mxu0 %v16404_v52  ;;  %v16512_v52 = vld [vmem:[%s22581_s1 + $0x40] ss:$28 sps:$4 sm:$0xff]  }
 0x1fb   : > { %5543 = vmatprep.mubr.bf16.mxu0 %v16408_v53  ;;  %v16513_v53 = vld [vmem:[%s22581_s1 + $0x7c] ss:$28 sps:$4 sm:$0xff]  }
 0x202   : > { %5544 = vmatmul.mubr.bf16.gmra.mrb[176].mxu0 %v16410_v58  ;;  %v16521_v58 = vld [vmem:[%s22581_s1 + $0xe8] ss:$28 sps:$4 sm:$0xff]  }
 0x203   : > { %5553 = vmatprep.mubr.bf16.mxu0 %v16411_v59  ;;  %v16522_v59 = vld [vmem:[%s22581_s1 + $0x124] ss:$28 sps:$4 sm:$0xff]  }
 0x20a   : > { %5554 = vmatmul.mubr.bf16.gmra.mrb[180].mxu0 %v16413_v0  ;;  %v16530_v0 = vld [vmem:[%s22581_s1 + $0x190] ss:$28 sps:$4 sm:$0xff]  }
 0x20b   : > { %5563 = vmatprep.mubr.bf16.mxu0 %v16414_v1  ;;  %v16531_v1 = vld [vmem:[%s22581_s1 + $0x1cc] ss:$28 sps:$4 sm:$0xff]  }
 0x212   : > { %5564 = vmatmul.mubr.bf16.gmra.mrb[184].mxu0 %v16416_v6  ;;  %v16539_v6 = vld [vmem:[%s22581_s1 + $0x238] ss:$28 sps:$4 sm:$0xff]  }
 0x213   : > { %5573 = vmatprep.mubr.bf16.mxu0 %v16417_v7  ;;  %v16540_v7 = vld [vmem:[%s22581_s1 + $0x274] ss:$28 sps:$4 sm:$0xff]  }
 0x21a   : > { %5574 = vmatmul.mubr.bf16.gmra.mrb[188].mxu0 %v16419_v12  ;;  %v16548_v12 = vld [vmem:[%s22581_s1 + $0x2e0] ss:$28 sps:$4 sm:$0xff]  }
 0x21b   : > { %5583 = vmatprep.mubr.bf16.mxu0 %v16423_v13  ;;  %v16549_v13 = vld [vmem:[%s22581_s1 + $0x31c] ss:$28 sps:$4 sm:$0xff]  }
 0x222   : > { %5584 = vmatmul.mubr.bf16.gmra.mrb[192].mxu0 %v16425_v18  ;;  %v16557_v18 = vld [vmem:[%s22581_s1 + $0x388] ss:$28 sps:$4 sm:$0xff]  }
 0x223   : > { %5593 = vmatprep.mubr.bf16.mxu0 %v16426_v19  ;;  %v16558_v19 = vld [vmem:[%s22581_s1 + $0x3c4] ss:$28 sps:$4 sm:$0xff]  }
 0x22a   : > { %5594 = vmatmul.mubr.bf16.gmra.mrb[196].mxu0 %v16428_v20  ;;  %v16560_v20 = vld [vmem:[%s22581_s1 + $0x3c0] ss:$28 sps:$4 sm:$0xff]  }
 0x22b   : > { %5603 = vmatprep.mubr.bf16.mxu0 %v16429_v21  ;;  %v16561_v21 = vld [vmem:[%s22581_s1 + $0x3fc] ss:$28 sps:$4 sm:$0xff]  }
 0x232   : > { %5604 = vmatmul.mubr.bf16.gmra.mrb[200].mxu0 %v16431_v22  ;;  %v16563_v22 = vld [vmem:[%s22581_s1 + $0x3f8] ss:$28 sps:$4 sm:$0xff]  }
 0x233   : > { %5613 = vmatprep.mubr.bf16.mxu0 %v16432_v23  ;;  %v16564_v23 = vld [vmem:[%s22581_s1 + $0x434] ss:$28 sps:$4 sm:$0xff]  }
 0x23a   : > { %5614 = vmatmul.mubr.bf16.gmra.mrb[204].mxu0 %v16434_v24  ;;  %v16566_v24 = vld [vmem:[%s22581_s1 + $0x430] ss:$28 sps:$4 sm:$0xff]  }
 0x23b   : > { %5623 = vmatprep.mubr.bf16.mxu0 %v16438_v25  ;;  %v16567_v25 = vld [vmem:[%s22581_s1 + $0x46c] ss:$28 sps:$4 sm:$0xff]  }
 0x242   : > { %5624 = vmatmul.mubr.bf16.gmra.mrb[208].mxu0 %v16440_v26  ;;  %v16615_v26 = vld [vmem:[%s17542_s17 + $0x200] ss:$8 sps:$4 sm:$0xff]  }
 0x243   : > { %5633 = vmatprep.mubr.bf16.mxu0 %v16441_v27  ;;  %v16617_v27 = vld [vmem:[%s17542_s17 + $0x204] ss:$8 sps:$4 sm:$0xff]  }
 0x244   : > { %6417 = vmatprep.subr.bf16.mxu0 %v16617_v27  ;;  %v16651_v27 = vld [vmem:[%s22581_s1 + $0x9e4] ss:$28 sps:$4 sm:$0xff]  }
 0x24a   : > { %5634 = vmatmul.mubr.bf16.gmra.mrb[212].mxu0 %v16443_v28  ;;  %v16569_v28 = vld [vmem:[%s22581_s1 + $0x468] ss:$28 sps:$4 sm:$0xff]  }
 0x24b   : > { %5643 = vmatprep.mubr.bf16.mxu0 %v16444_v29  ;;  %v16570_v29 = vld [vmem:[%s22581_s1 + $0x4a4] ss:$28 sps:$4 sm:$0xff]  }
 0x252   : > { %5644 = vmatmul.mubr.bf16.gmra.mrb[216].mxu0 %v16446_v30  ;;  %v16572_v30 = vld [vmem:[%s22581_s1 + $0x4a0] ss:$28 sps:$4 sm:$0xff]  }
 0x253   : > { %5653 = vmatprep.mubr.bf16.mxu0 %v16447_v31  ;;  %v16573_v31 = vld [vmem:[%s22581_s1 + $0x4dc] ss:$28 sps:$4 sm:$0xff]  }
 0x25a   : > { %5654 = vmatmul.mubr.bf16.gmra.mrb[220].mxu0 %v16449_v32  ;;  %v16575_v32 = vld [vmem:[%s22581_s1 + $0x4d8] ss:$28 sps:$4 sm:$0xff]  }
 0x25b   : > { %5663 = vmatprep.mubr.bf16.mxu0 %v16453_v33  ;;  %v16576_v33 = vld [vmem:[%s22581_s1 + $0x514] ss:$28 sps:$4 sm:$0xff]  }
 0x262   : > { %5664 = vmatmul.mubr.bf16.gmra.mrb[224].mxu0 %v16455_v34  ;;  %v16578_v34 = vld [vmem:[%s22581_s1 + $0x510] ss:$28 sps:$4 sm:$0xff]  }
 0x263   : > { %5673 = vmatprep.mubr.bf16.mxu0 %v16456_v35  ;;  %v16579_v35 = vld [vmem:[%s22581_s1 + $0x54c] ss:$28 sps:$4 sm:$0xff]  }
 0x26a   : > { %5674 = vmatmul.mubr.bf16.gmra.mrb[228].mxu0 %v16458_v36  ;;  %v16630_v36 = vld [vmem:[%s17542_s17 + $0x210] ss:$8 sps:$4 sm:$0xff]  }
 0x26b   : > { %5683 = vmatprep.mubr.bf16.mxu0 %v16459_v37  ;;  %v16632_v37 = vld [vmem:[%s17542_s17 + $0x214] ss:$8 sps:$4 sm:$0xff]  }
 0x272   : > { %5684 = vmatmul.mubr.bf16.gmra.mrb[232].mxu0 %v16461_v38  ;;  %v16581_v38 = vld [vmem:[%s22581_s1 + $0x548] ss:$28 sps:$4 sm:$0xff]  }
 0x273   : > { %5693 = vmatprep.mubr.bf16.mxu0 %v16462_v39  ;;  %v16582_v39 = vld [vmem:[%s22581_s1 + $0x584] ss:$28 sps:$4 sm:$0xff]  }
 0x27a   : > { %5694 = vmatmul.mubr.bf16.gmra.mrb[236].mxu0 %v16464_v40  ;;  %v16584_v40 = vld [vmem:[%s22581_s1 + $0x580] ss:$28 sps:$4 sm:$0xff]  }
 0x27b   : > { %5703 = vmatprep.mubr.bf16.mxu0 %v16471_v41  ;;  %v16585_v41 = vld [vmem:[%s22581_s1 + $0x5bc] ss:$28 sps:$4 sm:$0xff]  }
 0x282   : > { %5704 = vmatmul.mubr.bf16.gmra.mrb[240].mxu0 %v16473_v42  ;;  %v16587_v42 = vld [vmem:[%s22581_s1 + $0x5b8] ss:$28 sps:$4 sm:$0xff]  }
 0x283   : > { %5713 = vmatprep.mubr.bf16.mxu0 %v16480_v43  ;;  %v16588_v43 = vld [vmem:[%s22581_s1 + $0x5f4] ss:$28 sps:$4 sm:$0xff]  }
 0x28a   : > { %5714 = vmatmul.mubr.bf16.gmra.mrb[244].mxu0 %v16482_v44  ;;  %v16590_v44 = vld [vmem:[%s22581_s1 + $0x5f0] ss:$28 sps:$4 sm:$0xff]  }
 0x28b   : > { %5723 = vmatprep.mubr.bf16.mxu0 %v16489_v45  ;;  %v16591_v45 = vld [vmem:[%s22581_s1 + $0x62c] ss:$28 sps:$4 sm:$0xff]  }
 0x292   : > { %5724 = vmatmul.mubr.bf16.gmra.mrb[248].mxu0 %v16491_v46  ;;  %v16645_v46 = vld [vmem:[%s17542_s17 + $0x220] ss:$8 sps:$4 sm:$0xff]  }
 0x293   : > { %5733 = vmatprep.mubr.bf16.mxu0 %v16498_v47  ;;  %v16647_v47 = vld [vmem:[%s17542_s17 + $0x224] ss:$8 sps:$4 sm:$0xff]  }
 0x29a   : > { %5734 = vmatmul.mubr.bf16.gmra.mrb[252].mxu0 %v16500_v48  ;;  %v16593_v48 = vld [vmem:[%s22581_s1 + $0x628] ss:$28 sps:$4 sm:$0xff]  }
 0x29b   : > { %5776 = vmatprep.mubr.bf16.mxu0 %v16509_v49  ;;  %v16594_v49 = vld [vmem:[%s22581_s1 + $0x664] ss:$28 sps:$4 sm:$0xff]  }
 0x2a2   : > { %5777 = vmatmul.mubr.bf16.vlgmr.msra.gmra.mrb[0].mxu0 %v16507_v50  ;;  %v16596_v50 = vld [vmem:[%s22581_s1 + $0x660] ss:$28 sps:$4 sm:$0xff]  }
 0x2a3   : > { %5786 = vmatprep.mubr.bf16.mxu0 %v16510_v51  ;;  %6418 = vmatpush1.bf16.msra.mxu0 %v16615_v26  ;;  %v16597_v51 = vld [vmem:[%s22581_s1 + $0x69c] ss:$28 sps:$4 sm:$0xff]   ;;  %v16650_v26 = vld [vmem:[%s22581_s1 + $0x9a8] ss:$28 sps:$4 sm:$0xff]  }
 0x2a4   : > { %6419 = vmatprep.subr.bf16.mxu0 %v16632_v37  ;;  %v16726_v37 = vld [vmem:[%s17542_s17 + $0x2b0] ss:$8 sps:$4 sm:$0xff]  }
 0x2a7   : > { %6420 = vmatpush1.bf16.msra.mxu0 %v16630_v36  ;;  %v16728_v36 = vld [vmem:[%s17542_s17 + $0x2b4] ss:$8 sps:$4 sm:$0xff]  }
 0x2a8   : > { %6421 = vmatprep.subr.bf16.mxu0 %v16647_v47  ;;  %v16741_v47 = vld [vmem:[%s17542_s17 + $0x2e0] ss:$8 sps:$4 sm:$0xff]  }
 0x2aa   : > { %5787 = vmatmul.mubr.bf16.gmra.mrb[4].mxu0 %v16512_v52  ;;  %v16599_v52 = vld [vmem:[%s22581_s1 + $0x698] ss:$28 sps:$4 sm:$0xff]  }
 0x2ab   : > { %5796 = vmatprep.mubr.bf16.mxu0 %v16513_v53  ;;  %6422 = vmatpush1.bf16.msra.mxu0 %v16645_v46  ;;  %v16600_v53 = vld [vmem:[%s22581_s1 + $0x6d4] ss:$28 sps:$4 sm:$0xff]  }
 0x2ac   : > { %v16743_v46 = vld [vmem:[%s17542_s17 + $0x2e4] ss:$8 sps:$4 sm:$0xff]  }
 0x2b2   : > { %5797 = vmatmul.mubr.bf16.gmra.mrb[8].mxu0 %v16515_v54  ;;  %v16602_v54 = vld [vmem:[%s22581_s1 + $0x6d0] ss:$28 sps:$4 sm:$0xff]  }
 0x2b3   : > { %5806 = vmatprep.mubr.bf16.mxu0 %v16516_v55  ;;  %v16603_v55 = vld [vmem:[%s22581_s1 + $0x70c] ss:$28 sps:$4 sm:$0xff]  }
 0x2ba   : > { %5807 = vmatmul.mubr.bf16.gmra.mrb[12].mxu0 %v16518_v56  ;;  %v16660_v56 = vld [vmem:[%s17542_s17 + $0x230] ss:$8 sps:$4 sm:$0xff]  }
 0x2bb   : > { %5816 = vmatprep.mubr.bf16.mxu0 %v16519_v57  ;;  %v16662_v57 = vld [vmem:[%s17542_s17 + $0x234] ss:$8 sps:$4 sm:$0xff]  }
 0x2bc   : > { %6423 = vmatprep.subr.bf16.mxu0 %v16662_v57  ;;  %v16678_v57 = vld [vmem:[%s22581_s1 + $0xb6c] ss:$28 sps:$4 sm:$0xff]  }
 0x2bd   : > { %6424 = vmatpush1.bf16.msra.mxu0 %v16660_v56  ;;  %v16674_v56 = vld [vmem:[%s22581_s1 + $0xb30] ss:$28 sps:$4 sm:$0xff]  }
 0x2c2   : > { %5817 = vmatmul.mubr.bf16.gmra.mrb[16].mxu0 %v16521_v58  ;;  %v16605_v58 = vld [vmem:[%s22581_s1 + $0x708] ss:$28 sps:$4 sm:$0xff]  }
 0x2c3   : > { %5826 = vmatprep.mubr.bf16.mxu0 %v16522_v59  ;;  %v16606_v59 = vld [vmem:[%s22581_s1 + $0x744] ss:$28 sps:$4 sm:$0xff]  }
 0x2ca   : > { %5827 = vmatmul.mubr.bf16.gmra.mrb[20].mxu0 %v16524_v60  ;;  %v16608_v60 = vld [vmem:[%s22581_s1 + $0x740] ss:$28 sps:$4 sm:$0xff]  }
 0x2cb   : > { %5836 = vmatprep.mubr.bf16.mxu0 %v16525_v61  ;;  %v16609_v61 = vld [vmem:[%s22581_s1 + $0x77c] ss:$28 sps:$4 sm:$0xff]  }
 0x2d2   : > { %5837 = vmatmul.mubr.bf16.gmra.mrb[24].mxu0 %v16527_v62  ;;  %v16611_v62 = vld [vmem:[%s22581_s1 + $0x778] ss:$28 sps:$4 sm:$0xff]  }
 0x2d3   : > { %5846 = vmatprep.mubr.bf16.mxu0 %v16528_v63  ;;  %v16612_v63 = vld [vmem:[%s22581_s1 + $0x7b4] ss:$28 sps:$4 sm:$0xff]  }
 0x2da   : > { %5847 = vmatmul.mubr.bf16.gmra.mrb[28].mxu0 %v16530_v0  ;;  %v16614_v0 = vld [vmem:[%s22581_s1 + $0x7b0] ss:$28 sps:$4 sm:$0xff]  }
 0x2db   : > { %5856 = vmatprep.mubr.bf16.mxu0 %v16531_v1  ;;  %v16618_v1 = vld [vmem:[%s22581_s1 + $0x7ec] ss:$28 sps:$4 sm:$0xff]  }
 0x2e2   : > { %5857 = vmatmul.mubr.bf16.gmra.mrb[32].mxu0 %v16533_v2  ;;  %v16675_v2 = vld [vmem:[%s17542_s17 + $0x240] ss:$8 sps:$4 sm:$0xff]  }
 0x2e3   : > { %5866 = vmatprep.mubr.bf16.mxu0 %v16534_v3  ;;  %v16677_v3 = vld [vmem:[%s17542_s17 + $0x244] ss:$8 sps:$4 sm:$0xff]  }
 0x2e4   : > { %6425 = vmatprep.subr.bf16.mxu0 %v16677_v3  ;;  %v16696_v3 = vld [vmem:[%s22581_s1 + $0xc84] ss:$28 sps:$4 sm:$0xff]  }
 0x2e5   : > { %6426 = vmatpush1.bf16.msra.mxu0 %v16675_v2  ;;  %v16695_v2 = vld [vmem:[%s22581_s1 + $0xc48] ss:$28 sps:$4 sm:$0xff]  }
 0x2ea   : > { %5867 = vmatmul.mubr.bf16.gmra.mrb[36].mxu0 %v16536_v4  ;;  %v16620_v4 = vld [vmem:[%s22581_s1 + $0x7e8] ss:$28 sps:$4 sm:$0xff]  }
 0x2eb   : > { %5876 = vmatprep.mubr.bf16.mxu0 %v16537_v5  ;;  %v16621_v5 = vld [vmem:[%s22581_s1 + $0x824] ss:$28 sps:$4 sm:$0xff]  }
 0x2f2   : > { %5877 = vmatmul.mubr.bf16.gmra.mrb[40].mxu0 %v16539_v6  ;;  %v16623_v6 = vld [vmem:[%s22581_s1 + $0x820] ss:$28 sps:$4 sm:$0xff]  }
 0x2f3   : > { %5886 = vmatprep.mubr.bf16.mxu0 %v16540_v7  ;;  %v16624_v7 = vld [vmem:[%s22581_s1 + $0x85c] ss:$28 sps:$4 sm:$0xff]  }
 0x2fa   : > { %5887 = vmatmul.mubr.bf16.gmra.mrb[44].mxu0 %v16542_v8  ;;  %v16626_v8 = vld [vmem:[%s22581_s1 + $0x858] ss:$28 sps:$4 sm:$0xff]  }
 0x2fb   : > { %5896 = vmatprep.mubr.bf16.mxu0 %v16543_v9  ;;  %v16627_v9 = vld [vmem:[%s22581_s1 + $0x894] ss:$28 sps:$4 sm:$0xff]  }
 0x302   : > { %5897 = vmatmul.mubr.bf16.gmra.mrb[48].mxu0 %v16545_v10  ;;  %v16629_v10 = vld [vmem:[%s22581_s1 + $0x890] ss:$28 sps:$4 sm:$0xff]  }
 0x303   : > { %5906 = vmatprep.mubr.bf16.mxu0 %v16546_v11  ;;  %v16633_v11 = vld [vmem:[%s22581_s1 + $0x8cc] ss:$28 sps:$4 sm:$0xff]  }
 0x30a   : > { %5907 = vmatmul.mubr.bf16.gmra.mrb[52].mxu0 %v16548_v12  ;;  %v16690_v12 = vld [vmem:[%s17542_s17 + $0x250] ss:$8 sps:$4 sm:$0xff]  }
 0x30b   : > { %5916 = vmatprep.mubr.bf16.mxu0 %v16549_v13  ;;  %v16692_v13 = vld [vmem:[%s17542_s17 + $0x254] ss:$8 sps:$4 sm:$0xff]  }
 0x30c   : > { %6427 = vmatprep.subr.bf16.mxu0 %v16692_v13  ;;  %v1440_v13 = vld [vmem:[%s22582_s2 + $0x8] sm:$0xff] }
 0x30d   : > { %6428 = vmatpush1.bf16.msra.mxu0 %v16690_v12  ;;  %v18387_v12 = vld [vmem:[%s17542_s17 + $0x314] ss:$8 sps:$4 sm:$0xff]  }
 0x312   : > { %5917 = vmatmul.mubr.bf16.gmra.mrb[56].mxu0 %v16551_v14  ;;  %v16635_v14 = vld [vmem:[%s22581_s1 + $0x8c8] ss:$28 sps:$4 sm:$0xff]  }
 0x313   : > { %5926 = vmatprep.mubr.bf16.mxu0 %v16552_v15  ;;  %v16636_v15 = vld [vmem:[%s22581_s1 + $0x904] ss:$28 sps:$4 sm:$0xff]  }
 0x31a   : > { %5927 = vmatmul.mubr.bf16.gmra.mrb[60].mxu0 %v16554_v16  ;;  %v16638_v16 = vld [vmem:[%s22581_s1 + $0x900] ss:$28 sps:$4 sm:$0xff]  }
 0x31b   : > { %5936 = vmatprep.mubr.bf16.mxu0 %v16555_v17  ;;  %v16639_v17 = vld [vmem:[%s22581_s1 + $0x93c] ss:$28 sps:$4 sm:$0xff]  }
 0x322   : > { %5937 = vmatmul.mubr.bf16.gmra.mrb[64].mxu0 %v16557_v18  ;;  %v16641_v18 = vld [vmem:[%s22581_s1 + $0x938] ss:$28 sps:$4 sm:$0xff]  }
 0x323   : > { %5946 = vmatprep.mubr.bf16.mxu0 %v16558_v19  ;;  %v16642_v19 = vld [vmem:[%s22581_s1 + $0x974] ss:$28 sps:$4 sm:$0xff]  }
 0x32a   : > { %5947 = vmatmul.mubr.bf16.gmra.mrb[68].mxu0 %v16560_v20  ;;  %v16644_v20 = vld [vmem:[%s22581_s1 + $0x970] ss:$28 sps:$4 sm:$0xff]  }
 0x32b   : > { %5956 = vmatprep.mubr.bf16.mxu0 %v16561_v21  ;;  %v16648_v21 = vld [vmem:[%s22581_s1 + $0x9ac] ss:$28 sps:$4 sm:$0xff]  }
 0x332   : > { %5957 = vmatmul.mubr.bf16.gmra.mrb[72].mxu0 %v16563_v22  ;;  %v16707_v22 = vld [vmem:[%s17542_s17 + $0x264] ss:$8 sps:$4 sm:$0xff]  }
 0x333   : > { %5966 = vmatprep.mubr.bf16.mxu0 %v16564_v23  ;;  %v16705_v23 = vld [vmem:[%s17542_s17 + $0x260] ss:$8 sps:$4 sm:$0xff]   ;;  %6429 = vmatprep.subr.bf16.mxu0 %v16707_v22  ;;  %v18424_v22 = vld [vmem:[%s17542_s17 + $0x330] ss:$8 sps:$4 sm:$0xff]  }
 0x334   : > { %6430 = vmatpush1.bf16.msra.mxu0 %v16705_v23  ;;  %v16713_v23 = vld [vmem:[%s22581_s1 + $0xd28] ss:$28 sps:$4 sm:$0xff]  }
 0x33a   : > { %5967 = vmatmul.mubr.bf16.gmra.mrb[76].mxu0 %v16566_v24  ;;  %v16710_v24 = vld [vmem:[%s17542_s17 + $0x274] ss:$8 sps:$4 sm:$0xff]  }
 0x33b   : > { %5976 = vmatprep.mubr.bf16.mxu0 %v16567_v25  ;;  %v16708_v25 = vld [vmem:[%s17542_s17 + $0x270] ss:$8 sps:$4 sm:$0xff]   ;;  %6431 = vmatprep.subr.bf16.mxu0 %v16710_v24  ;;  %v16720_v24 = vld [vmem:[%s22581_s1 + $0xd64] ss:$28 sps:$4 sm:$0xff]  }
 0x33c   : > { %6432 = vmatpush1.bf16.msra.mxu0 %v16708_v25  ;;  %v18435_v25 = vld [vmem:[%s17542_s17 + $0x344] ss:$8 sps:$4 sm:$0xff]  }
 0x342   : > { %5977 = vmatmul.mubr.bf16.gmra.mrb[80].mxu0 %v16569_v28  ;;  %v16716_v28 = vld [vmem:[%s17542_s17 + $0x284] ss:$8 sps:$4 sm:$0xff]  }
 0x343   : > { %5986 = vmatprep.mubr.bf16.mxu0 %v16570_v29  ;;  %v16714_v29 = vld [vmem:[%s17542_s17 + $0x280] ss:$8 sps:$4 sm:$0xff]   ;;  %6433 = vmatprep.subr.bf16.mxu0 %v16716_v28  ;;  %v18444_v28 = vld [vmem:[%s17542_s17 + $0x354] ss:$8 sps:$4 sm:$0xff]  }
 0x344   : > { %6434 = vmatpush1.bf16.msra.mxu0 %v16714_v29  ;;  %v1449_v29 = vld [vmem:[%s22582_s2 + $0x50] sm:$0xff] }
 0x34a   : > { %5987 = vmatmul.mubr.bf16.gmra.mrb[84].mxu0 %v16572_v30  ;;  %v16719_v30 = vld [vmem:[%s17542_s17 + $0x294] ss:$8 sps:$4 sm:$0xff]  }
 0x34b   : > { %5996 = vmatprep.mubr.bf16.mxu0 %v16573_v31  ;;  %v16717_v31 = vld [vmem:[%s17542_s17 + $0x290] ss:$8 sps:$4 sm:$0xff]   ;;  %6435 = vmatprep.subr.bf16.mxu0 %v16719_v30 }
 0x34c   : > { %6436 = vmatpush1.bf16.msra.mxu0 %v16717_v31  ;;  %v18452_v30 = vld [vmem:[%s17542_s17 + $0x350] ss:$8 sps:$4 sm:$0xff]  }
 0x34d   : > { %v16722_v31 = vld [vmem:[%s22581_s1 + $0xd60] ss:$28 sps:$4 sm:$0xff]  }
 0x352   : > { %5997 = vmatmul.mubr.bf16.gmra.mrb[88].mxu0 %v16575_v32  ;;  %v16653_v32 = vld [vmem:[%s22581_s1 + $0x9e0] ss:$28 sps:$4 sm:$0xff]  }
 0x353   : > { %6006 = vmatprep.mubr.bf16.mxu0 %v16576_v33  ;;  %v16654_v33 = vld [vmem:[%s22581_s1 + $0xa1c] ss:$28 sps:$4 sm:$0xff]  }
 0x35a   : > { %6007 = vmatmul.mubr.bf16.gmra.mrb[92].mxu0 %v16578_v34  ;;  %v16725_v34 = vld [vmem:[%s17542_s17 + $0x2a4] ss:$8 sps:$4 sm:$0xff]  }
 0x35b   : > { %6016 = vmatprep.mubr.bf16.mxu0 %v16579_v35  ;;  %v16723_v35 = vld [vmem:[%s17542_s17 + $0x2a0] ss:$8 sps:$4 sm:$0xff]   ;;  %6437 = vmatprep.subr.bf16.mxu0 %v16725_v34 }
 0x35c   : > { %6438 = vmatpush1.bf16.msra.mxu0 %v16723_v35  ;;  %v1451_v34 = vld [vmem:[%s22582_s2 + $0x60] sm:$0xff] }
 0x35d   : > { %6439 = vmatprep.subr.bf16.mxu0 %v16728_v36  ;;  %v18469_v35 = vld [vmem:[%s17542_s17 + $0x360] ss:$8 sps:$4 sm:$0xff]   ;;  %v18472_v36 = vld [vmem:[%s17542_s17 + $0x374] ss:$8 sps:$4 sm:$0xff]  }
 0x360   : > { %6440 = vmatpush1.bf16.msra.mxu0 %v16726_v37  ;;  %v1441_v37 = vld [vmem:[%s22582_s2 + $0x10] sm:$0xff] }
 0x362   : > { %6017 = vmatmul.mubr.bf16.gmra.mrb[96].mxu0 %v16581_v38  ;;  %v16656_v38 = vld [vmem:[%s22581_s1 + $0xa18] ss:$28 sps:$4 sm:$0xff]  }
 0x363   : > { %6026 = vmatprep.mubr.bf16.mxu0 %v16582_v39  ;;  %v16657_v39 = vld [vmem:[%s22581_s1 + $0xa54] ss:$28 sps:$4 sm:$0xff]  }
 0x36a   : > { %6027 = vmatmul.mubr.bf16.gmra.mrb[100].mxu0 %v16584_v40  ;;  %v16734_v40 = vld [vmem:[%s17542_s17 + $0x2c4] ss:$8 sps:$4 sm:$0xff]  }
 0x36b   : > { %6036 = vmatprep.mubr.bf16.mxu0 %v16585_v41  ;;  %v16732_v41 = vld [vmem:[%s17542_s17 + $0x2c0] ss:$8 sps:$4 sm:$0xff]   ;;  %6441 = vmatprep.subr.bf16.mxu0 %v16734_v40  ;;  %v16731_v40 = vld [vmem:[%s22581_s1 + $0xd98] ss:$28 sps:$4 sm:$0xff]  }
 0x36c   : > { %6442 = vmatpush1.bf16.msra.mxu0 %v16732_v41  ;;  %v16738_v41 = vld [vmem:[%s22581_s1 + $0xdd4] ss:$28 sps:$4 sm:$0xff]  }
 0x372   : > { %6037 = vmatmul.mubr.bf16.gmra.mrb[104].mxu0 %v16587_v42  ;;  %v16737_v42 = vld [vmem:[%s17542_s17 + $0x2d4] ss:$8 sps:$4 sm:$0xff]  }
 0x373   : > { %6046 = vmatprep.mubr.bf16.mxu0 %v16588_v43  ;;  %v16735_v43 = vld [vmem:[%s17542_s17 + $0x2d0] ss:$8 sps:$4 sm:$0xff]   ;;  %6443 = vmatprep.subr.bf16.mxu0 %v16737_v42  ;;  %v16816_v42 = vld [vmem:[%s22581_s1 + $0x328] ss:$28 sps:$4 sm:$0xff]  }
 0x374   : > { %6444 = vmatpush1.bf16.msra.mxu0 %v16735_v43  ;;  %v1455_v43 = vld [vmem:[%s22582_s2 + $0x80] sm:$0xff] }
 0x375   : > { %6445 = vmatprep.subr.bf16.mxu0 %v16743_v46  ;;  %v1457_v46 = vld [vmem:[%s22582_s2 + $0x90] sm:$0xff] }
 0x378   : > { %6446 = vmatpush1.bf16.msra.mxu0 %v16741_v47  ;;  %v16740_v47 = vld [vmem:[%s22581_s1 + $0xdd0] ss:$28 sps:$4 sm:$0xff]  }
 0x37a   : > { %6047 = vmatmul.mubr.bf16.gmra.mrb[108].mxu0 %v16590_v44  ;;  %v16659_v44 = vld [vmem:[%s22581_s1 + $0xa50] ss:$28 sps:$4 sm:$0xff]  }
 0x37b   : > { %6056 = vmatprep.mubr.bf16.mxu0 %v16591_v45  ;;  %v16663_v45 = vld [vmem:[%s22581_s1 + $0xa8c] ss:$28 sps:$4 sm:$0xff]  }
 0x382   : > { %6057 = vmatmul.mubr.bf16.gmra.mrb[112].mxu0 %v16593_v48  ;;  %v16746_v48 = vld [vmem:[%s17542_s17 + $0x2f4] ss:$8 sps:$4 sm:$0xff]  }
 0x383   : > { %6066 = vmatprep.mubr.bf16.mxu0 %v16594_v49  ;;  %v16744_v49 = vld [vmem:[%s17542_s17 + $0x2f0] ss:$8 sps:$4 sm:$0xff]   ;;  %6447 = vmatprep.subr.bf16.mxu0 %v16746_v48 }
 0x384   : > { %6448 = vmatpush1.bf16.msra.mxu0 %v16744_v49  ;;  %v16749_v48 = vld [vmem:[%s22581_s1 + $0x14] ss:$28 sps:$4 sm:$0xff]   ;;  %v16820_v49 = vld [vmem:[%s22581_s1 + $0x360] ss:$28 sps:$4 sm:$0xff]  }
 0x38a   : > { %6067 = vmatmul.mubr.bf16.gmra.mrb[116].mxu0 %v16596_v50  ;;  %v16665_v50 = vld [vmem:[%s22581_s1 + $0xa88] ss:$28 sps:$4 sm:$0xff]  }
 0x38b   : > { %6076 = vmatprep.mubr.bf16.mxu0 %v16597_v51  ;;  %v16666_v51 = vld [vmem:[%s22581_s1 + $0xac4] ss:$28 sps:$4 sm:$0xff]  }
 0x392   : > { %6077 = vmatmul.mubr.bf16.gmra.mrb[120].mxu0 %v16599_v52  ;;  %v16668_v52 = vld [vmem:[%s22581_s1 + $0xac0] ss:$28 sps:$4 sm:$0xff]  }
 0x393   : > { %6086 = vmatprep.mubr.bf16.mxu0 %v16600_v53  ;;  %v16669_v53 = vld [vmem:[%s22581_s1 + $0xafc] ss:$28 sps:$4 sm:$0xff]  }
 0x39a   : > { %6087 = vmatmul.mubr.bf16.gmra.mrb[124].mxu0 %v16602_v54  ;;  %v16671_v54 = vld [vmem:[%s22581_s1 + $0xaf8] ss:$28 sps:$4 sm:$0xff]  }
 0x39b   : > { %6096 = vmatprep.mubr.bf16.mxu0 %v16603_v55  ;;  %v16672_v55 = vld [vmem:[%s22581_s1 + $0xb34] ss:$28 sps:$4 sm:$0xff]  }
 0x3a2   : > { %6097 = vmatmul.mubr.bf16.gmra.mrb[128].mxu0 %v16605_v58  ;;  %v16680_v58 = vld [vmem:[%s22581_s1 + $0xb68] ss:$28 sps:$4 sm:$0xff]  }
 0x3a3   : > { %6106 = vmatprep.mubr.bf16.mxu0 %v16606_v59  ;;  %v16681_v59 = vld [vmem:[%s22581_s1 + $0xba4] ss:$28 sps:$4 sm:$0xff]  }
 0x3aa   : > { %6107 = vmatmul.mubr.bf16.gmra.mrb[132].mxu0 %v16608_v60  ;;  %v16683_v60 = vld [vmem:[%s22581_s1 + $0xba0] ss:$28 sps:$4 sm:$0xff]  }
 0x3ab   : > { %6116 = vmatprep.mubr.bf16.mxu0 %v16609_v61  ;;  %v16684_v61 = vld [vmem:[%s22581_s1 + $0xbdc] ss:$28 sps:$4 sm:$0xff]  }
 0x3b2   : > { %6117 = vmatmul.mubr.bf16.gmra.mrb[136].mxu0 %v16611_v62  ;;  %v16686_v62 = vld [vmem:[%s22581_s1 + $0xbd8] ss:$28 sps:$4 sm:$0xff]  }
 0x3b3   : > { %6126 = vmatprep.mubr.bf16.mxu0 %v16612_v63  ;;  %v16687_v63 = vld [vmem:[%s22581_s1 + $0xc14] ss:$28 sps:$4 sm:$0xff]  }
 0x3ba   : > { %6127 = vmatmul.mubr.bf16.gmra.mrb[140].mxu0 %v16614_v0  ;;  %v16689_v0 = vld [vmem:[%s22581_s1 + $0xc10] ss:$28 sps:$4 sm:$0xff]  }
 0x3bb   : > { %6136 = vmatprep.mubr.bf16.mxu0 %v16618_v1  ;;  %v16693_v1 = vld [vmem:[%s22581_s1 + $0xc4c] ss:$28 sps:$4 sm:$0xff]  }
 0x3c2   : > { %6137 = vmatmul.mubr.bf16.gmra.mrb[144].mxu0 %v16620_v4  ;;  %v16698_v4 = vld [vmem:[%s22581_s1 + $0xc80] ss:$28 sps:$4 sm:$0xff]  }
 0x3c3   : > { %6146 = vmatprep.mubr.bf16.mxu0 %v16621_v5  ;;  %v16699_v5 = vld [vmem:[%s22581_s1 + $0xcbc] ss:$28 sps:$4 sm:$0xff]  }
 0x3ca   : > { %6147 = vmatmul.mubr.bf16.gmra.mrb[148].mxu0 %v16623_v6  ;;  %v16701_v6 = vld [vmem:[%s22581_s1 + $0xcb8] ss:$28 sps:$4 sm:$0xff]  }
 0x3cb   : > { %6156 = vmatprep.mubr.bf16.mxu0 %v16624_v7  ;;  %v16702_v7 = vld [vmem:[%s22581_s1 + $0xcf4] ss:$28 sps:$4 sm:$0xff]  }
 0x3d2   : > { %6157 = vmatmul.mubr.bf16.gmra.mrb[152].mxu0 %v16626_v8  ;;  %v16780_v8 = vld [vmem:[%s17542_s17 + $0x304] ss:$8 sps:$4 sm:$0xff]  }
 0x3d3   : > { %6166 = vmatprep.mubr.bf16.mxu0 %v16627_v9  ;;  %v1439_v9 = vld [vmem:[%s22582_s2] sm:$0xff]  ;;  %14494 = vmatprep.subr.bf16.mxu1 %v16780_v8 }
 0x3d4   : > { %7090 = vmatprep.subr.bf16.mxu0 %v16780_v8  ;;  %v1458_v8 = vld [vmem:[%s22582_s2 + $0x98] sm:$0xff] }
 0x3da   : > { %6167 = vmatmul.mubr.bf16.gmra.mrb[156].mxu0 %v16629_v10  ;;  %v18383_v10 = vld [vmem:[%s17542_s17 + $0x300] ss:$8 sps:$4 sm:$0xff]  }
 0x3db   : > { %6176 = vmatprep.mubr.bf16.mxu0 %v16633_v11  ;;  %v22590_v11 = vmov 0   ;;  %14502 = vmatpush1.bf16.msra.mxu1 %v18383_v10 }
 0x3dc   : > { %16217 = vset.pattern.permute.xlu0 %v22590_v11  ;;  %16218 = vset.pattern.permute.xlu1 %v22590_v11 }
 0x3dd   : > { %1569 = vperm.xlu0 %16217, %v1439_v9   ;;  %14495 = vmatprep.subr.bf16.mxu1 %v18387_v12  ;;  %v1460_v9 = vld [vmem:[%s22582_s2 + $0xa8] sm:$0xff] }
 0x3de   : > { %7262 = vmatprep.mubr.bf16.mxu1 %v22590_v11  ;;  %1579 = vperm.xlu1 %16218, %v1441_v37   ;;  %v1474_v37 = vld [vmem:[%s22582_s2 + $0x118] sm:$0xff] }
 0x3e1   : > { %1574 = vperm.xlu0 %16217, %v1440_v13   ;;  %v16759_v13 = vld [vmem:[%s22581_s1 + $0xf4] ss:$28 sps:$4 sm:$0xff]  }
 0x3e2   : > { %6177 = vmatmul.mubr.bf16.gmra.mrb[160].mxu0 %v16635_v14  ;;  %v18394_v14 = vld [vmem:[%s17542_s17 + $0x310] ss:$8 sps:$4 sm:$0xff]  }
 0x3e3   : > { %6186 = vmatprep.mubr.bf16.mxu0 %v16636_v15  ;;  %v16704_v15 = vld [vmem:[%s22581_s1 + $0xcf0] ss:$28 sps:$4 sm:$0xff]   ;;  %14503 = vmatpush1.bf16.msra.mxu1 %v18394_v14 }
 0x3ea   : > { %6187 = vmatmul.mubr.bf16.gmra.mrb[164].mxu0 %v16638_v16  ;;  %v16711_v16 = vld [vmem:[%s22581_s1 + $0xd2c] ss:$28 sps:$4 sm:$0xff]  }
 0x3eb   : > { %6196 = vmatprep.mubr.bf16.mxu0 %v16639_v17  ;;  %v18407_v17 = vld [vmem:[%s17542_s17 + $0x324] ss:$8 sps:$4 sm:$0xff]  }
 0x3ec   : > { %14496 = vmatprep.subr.bf16.mxu1 %v18407_v17 }
 0x3f2   : > { %6197 = vmatmul.mubr.bf16.gmra.mrb[168].mxu0 %v16641_v18  ;;  %v1443_v18 = vld [vmem:[%s22582_s2 + $0x20] sm:$0xff] }
 0x3f3   : > { %6206 = vmatprep.mubr.bf16.mxu0 %v16642_v19  ;;  %v18413_v19 = vld [vmem:[%s17542_s17 + $0x320] ss:$8 sps:$4 sm:$0xff]   ;;  %1589 = vperm.xlu0 %16217, %v1443_v18   ;;  %v1477_v18 = vld [vmem:[%s22582_s2 + $0x130] sm:$0xff] }
 0x3f4   : > { %14504 = vmatpush1.bf16.msra.mxu1 %v18413_v19 }
 0x3fa   : > { %6207 = vmatmul.mubr.bf16.gmra.mrb[172].mxu0 %v16644_v20  ;;  %v18416_v20 = vld [vmem:[%s17542_s17 + $0x334] ss:$8 sps:$4 sm:$0xff]  }
 0x3fb   : > { %6216 = vmatprep.mubr.bf16.mxu0 %v16648_v21  ;;  %v1445_v21 = vld [vmem:[%s22582_s2 + $0x30] sm:$0xff]  ;;  %14497 = vmatprep.subr.bf16.mxu1 %v18416_v20 }
 0x3fc   : > { %1599 = vperm.xlu0 %16217, %v1445_v21   ;;  %14505 = vmatpush1.bf16.msra.mxu1 %v18424_v22  ;;  %v16840_v21 = vld [vmem:[%s22581_s1 + $0x478] ss:$28 sps:$4 sm:$0xff]  }
 0x3fd   : > { %14498 = vmatprep.subr.bf16.mxu1 %v18435_v25 }
 0x402   : > { %6217 = vmatmul.mubr.bf16.gmra.mrb[176].mxu0 %v16650_v26  ;;  %v1447_v26 = vld [vmem:[%s22582_s2 + $0x40] sm:$0xff] }
 0x403   : > { %6226 = vmatprep.mubr.bf16.mxu0 %v16651_v27  ;;  %v18441_v27 = vld [vmem:[%s17542_s17 + $0x340] ss:$8 sps:$4 sm:$0xff]   ;;  %1609 = vperm.xlu0 %16217, %v1447_v26  }
 0x404   : > { %14506 = vmatpush1.bf16.msra.mxu1 %v18441_v27  ;;  %v16764_v26 = vld [vmem:[%s22581_s1 + $0x128] ss:$28 sps:$4 sm:$0xff]  }
 0x405   : > { %14499 = vmatprep.subr.bf16.mxu1 %v18444_v28 }
 0x407   : > { %1619 = vperm.xlu0 %16217, %v1449_v29   ;;  %v1483_v29 = vld [vmem:[%s22582_s2 + $0x160] sm:$0xff] }
 0x408   : > { %14507 = vmatpush1.bf16.msra.mxu1 %v18452_v30 }
 0x40a   : > { %6227 = vmatmul.mubr.bf16.gmra.mrb[180].mxu0 %v16653_v32  ;;  %v16729_v32 = vld [vmem:[%s22581_s1 + $0xd9c] ss:$28 sps:$4 sm:$0xff]  }
 0x40b   : > { %6236 = vmatprep.mubr.bf16.mxu0 %v16654_v33  ;;  %v18463_v33 = vld [vmem:[%s17542_s17 + $0x364] ss:$8 sps:$4 sm:$0xff]   ;;  %1629 = vperm.xlu0 %16217, %v1451_v34   ;;  %v16768_v34 = vld [vmem:[%s22581_s1 + $0x19c] ss:$28 sps:$4 sm:$0xff]  }
 0x40c   : > { %14500 = vmatprep.subr.bf16.mxu1 %v18463_v33 }
 0x40d   : > { %14508 = vmatpush1.bf16.msra.mxu1 %v18469_v35 }
 0x40e   : > { %14501 = vmatprep.subr.bf16.mxu1 %v18472_v36 }
 0x412   : > { %6237 = vmatmul.mubr.bf16.gmra.mrb[184].mxu0 %v16656_v38  ;;  %v1453_v38 = vld [vmem:[%s22582_s2 + $0x70] sm:$0xff] }
 0x413   : > { %6246 = vmatprep.mubr.bf16.mxu0 %v16657_v39  ;;  %v18483_v39 = vld [vmem:[%s17542_s17 + $0x370] ss:$8 sps:$4 sm:$0xff]   ;;  %1639 = vperm.xlu0 %16217, %v1453_v38   ;;  %v1476_v38 = vld [vmem:[%s22582_s2 + $0x128] sm:$0xff]  ;;  %s22536_s17 = scalar_lea.hbm %s22589_s9, %s14493_s27 }
 0x414   : > { %14509 = vmatpush1.bf16.msra.mxu1 %v18483_v39 }
 0x417   : > { %7263 = vmatmul.mubr.bf16.vlgmr.msra.gmra.mrb[0].mxu1 %v16816_v42  ;;  %1649 = vperm.xlu0 %16217, %v1455_v43   ;;  %v16852_v42 = vld [vmem:[%s22581_s1 + $0x520] ss:$28 sps:$4 sm:$0xff]  }
 0x418   : > { %7272 = vmatprep.mubr.bf16.mxu1 %v22590_v11  ;;  %v1491_v43 = vld [vmem:[%s22582_s2 + $0x1a0] sm:$0xff] }
 0x41a   : > { %6247 = vmatmul.mubr.bf16.gmra.mrb[188].mxu0 %v16659_v44  ;;  %v1442_v44 = vld [vmem:[%s22582_s2 + $0x18] sm:$0xff] }
 0x41b   : > { %6256 = vmatprep.mubr.bf16.mxu0 %v16663_v45  ;;  %1584 = vperm.xlu1 %16218, %v1442_v44   ;;  %v1444_v45 = vld [vmem:[%s22582_s2 + $0x28] sm:$0xff]  ;;  %v1478_v44 = vld [vmem:[%s22582_s2 + $0x138] sm:$0xff] }
 0x41c   : > { %1659 = vperm.xlu0 %16217, %v1457_v46   ;;  %v1493_v46 = vld [vmem:[%s22582_s2 + $0x1b0] sm:$0xff] }
 0x41f   : > { %1594 = vperm.xlu1 %16218, %v1444_v45   ;;  %7273 = vmatmul.mubr.bf16.gmra.mrb[4].mxu1 %v16820_v49  ;;  %v1480_v45 = vld [vmem:[%s22582_s2 + $0x148] sm:$0xff]  ;;  %v16856_v49 = vld [vmem:[%s22581_s1 + $0x558] ss:$28 sps:$4 sm:$0xff]  }
 0x420   : > { %7282 = vmatprep.mubr.bf16.mxu1 %v22590_v11 }
 0x422   : > { %6257 = vmatmul.mubr.bf16.gmra.mrb[192].mxu0 %v16665_v50  ;;  %v1459_v50 = vld [vmem:[%s22582_s2 + $0xa0] sm:$0xff] }
 0x423   : > { %6266 = vmatprep.mubr.bf16.mxu0 %v16666_v51  ;;  %v1446_v51 = vld [vmem:[%s22582_s2 + $0x38] sm:$0xff]  ;;  %1669 = vperm.xlu0 %16217, %v1459_v50   ;;  %v1495_v50 = vld [vmem:[%s22582_s2 + $0x1c0] sm:$0xff] }
 0x424   : > { %1604 = vperm.xlu1 %16218, %v1446_v51   ;;  %v1482_v51 = vld [vmem:[%s22582_s2 + $0x158] sm:$0xff] }
 0x42a   : > { %6267 = vmatmul.mubr.bf16.gmra.mrb[196].mxu0 %v16668_v52  ;;  %v1448_v52 = vld [vmem:[%s22582_s2 + $0x48] sm:$0xff] }
 0x42b   : > { %6276 = vmatprep.mubr.bf16.mxu0 %v16669_v53  ;;  %v1461_v53 = vld [vmem:[%s22582_s2 + $0xb0] sm:$0xff]  ;;  %1614 = vperm.xlu1 %16218, %v1448_v52   ;;  %v1484_v52 = vld [vmem:[%s22582_s2 + $0x168] sm:$0xff] }
 0x42c   : > { %1679 = vperm.xlu0 %16217, %v1461_v53   ;;  %v1497_v53 = vld [vmem:[%s22582_s2 + $0x1d0] sm:$0xff] }
 0x432   : > { %6277 = vmatmul.mubr.bf16.gmra.mrb[200].mxu0 %v16671_v54  ;;  %v16747_v54 = vld [vmem:[%s22581_s1 + $0x10] ss:$28 sps:$4 sm:$0xff]  }
 0x433   : > { %6286 = vmatprep.mubr.bf16.mxu0 %v16672_v55  ;;  %v16750_v55 = vld [vmem:[%s22581_s1 + $0x4c] ss:$28 sps:$4 sm:$0xff]  }
 0x43a   : > { %6287 = vmatmul.mubr.bf16.gmra.mrb[204].mxu0 %v16674_v56  ;;  %v16824_v56 = vld [vmem:[%s22581_s1 + $0x398] ss:$28 sps:$4 sm:$0xff]  }
 0x43b   : > { %6296 = vmatprep.mubr.bf16.mxu0 %v16678_v57  ;;  %v1463_v57 = vld [vmem:[%s22582_s2 + $0xc0] sm:$0xff]  ;;  %7283 = vmatmul.mubr.bf16.gmra.mrb[8].mxu1 %v16824_v56  ;;  %v16860_v56 = vld [vmem:[%s22581_s1 + $0x590] ss:$28 sps:$4 sm:$0xff]  }
 0x43c   : > { %1689 = vperm.xlu0 %16217, %v1463_v57   ;;  %7292 = vmatprep.mubr.bf16.mxu1 %v22590_v11  ;;  %v1499_v57 = vld [vmem:[%s22582_s2 + $0x1e0] sm:$0xff] }
 0x442   : > { %6297 = vmatmul.mubr.bf16.gmra.mrb[208].mxu0 %v16680_v58  ;;  %v1450_v58 = vld [vmem:[%s22582_s2 + $0x58] sm:$0xff] }
 0x443   : > { %6306 = vmatprep.mubr.bf16.mxu0 %v16681_v59  ;;  %1624 = vperm.xlu1 %16218, %v1450_v58   ;;  %v1452_v59 = vld [vmem:[%s22582_s2 + $0x68] sm:$0xff]  ;;  %v1486_v58 = vld [vmem:[%s22582_s2 + $0x178] sm:$0xff] }
 0x447   : > { %1634 = vperm.xlu1 %16218, %v1452_v59   ;;  %v1488_v59 = vld [vmem:[%s22582_s2 + $0x188] sm:$0xff] }
 0x44a   : > { %6307 = vmatmul.mubr.bf16.gmra.mrb[212].mxu0 %v16683_v60  ;;  %v1465_v60 = vld [vmem:[%s22582_s2 + $0xd0] sm:$0xff] }
 0x44b   : > { %6316 = vmatprep.mubr.bf16.mxu0 %v16684_v61  ;;  %v16752_v61 = vld [vmem:[%s22581_s1 + $0x48] ss:$28 sps:$4 sm:$0xff]   ;;  %1699 = vperm.xlu0 %16217, %v1465_v60   ;;  %v1501_v60 = vld [vmem:[%s22582_s2 + $0x1f0] sm:$0xff] }
 0x452   : > { %6317 = vmatmul.mubr.bf16.gmra.mrb[216].mxu0 %v16686_v62  ;;  %v16753_v62 = vld [vmem:[%s22581_s1 + $0x84] ss:$28 sps:$4 sm:$0xff]  }
 0x453   : > { %6326 = vmatprep.mubr.bf16.mxu0 %v16687_v63  ;;  %v16828_v63 = vld [vmem:[%s22581_s1 + $0x3d0] ss:$28 sps:$4 sm:$0xff]  }
 0x454   : > { %7293 = vmatmul.mubr.bf16.gmra.mrb[12].mxu1 %v16828_v63  ;;  %v16864_v63 = vld [vmem:[%s22581_s1 + $0x5c8] ss:$28 sps:$4 sm:$0xff]  }
 0x455   : > { %7302 = vmatprep.mubr.bf16.mxu1 %v22590_v11 }
 0x45a   : > { %6327 = vmatmul.mubr.bf16.gmra.mrb[220].mxu0 %v16689_v0  ;;  %v1467_v0 = vld [vmem:[%s22582_s2 + $0xe0] sm:$0xff] }
 0x45b   : > { %6336 = vmatprep.mubr.bf16.mxu0 %v16693_v1  ;;  %v1454_v1 = vld [vmem:[%s22582_s2 + $0x78] sm:$0xff]  ;;  %1709 = vperm.xlu0 %16217, %v1467_v0   ;;  %v1503_v0 = vld [vmem:[%s22582_s2 + $0x200] sm:$0xff] }
 0x45c   : > { %1644 = vperm.xlu1 %16218, %v1454_v1   ;;  %v1490_v1 = vld [vmem:[%s22582_s2 + $0x198] sm:$0xff] }
 0x462   : > { %6337 = vmatmul.mubr.bf16.gmra.mrb[224].mxu0 %v16695_v2  ;;  %v1456_v2 = vld [vmem:[%s22582_s2 + $0x88] sm:$0xff] }
 0x463   : > { %6346 = vmatprep.mubr.bf16.mxu0 %v16696_v3  ;;  %v1469_v3 = vld [vmem:[%s22582_s2 + $0xf0] sm:$0xff]  ;;  %1654 = vperm.xlu1 %16218, %v1456_v2   ;;  %v18781_v2 = vpop.permute.xlu0 %1569 }
 0x464   : > { %1719 = vperm.xlu0 %16217, %v1469_v3   ;;  %22737 = vst [vmem:[#allocation7_spill] sm:$0xff] %v18781_v2  ;;  %v1492_v3 = vld [vmem:[%s22582_s2 + $0x1a8] sm:$0xff] }
 0x467   : > { %1664 = vperm.xlu1 %16218, %v1458_v8   ;;  %v16868_v8 = vld [vmem:[%s22581_s1 + $0x600] ss:$28 sps:$4 sm:$0xff]  }
 0x46a   : > { %6347 = vmatmul.mubr.bf16.gmra.mrb[228].mxu0 %v16698_v4  ;;  %v16755_v4 = vld [vmem:[%s22581_s1 + $0x80] ss:$28 sps:$4 sm:$0xff]  }
 0x46b   : > { %6356 = vmatprep.mubr.bf16.mxu0 %v16699_v5  ;;  %v16756_v5 = vld [vmem:[%s22581_s1 + $0xbc] ss:$28 sps:$4 sm:$0xff]   ;;  %1674 = vperm.xlu1 %16218, %v1460_v9   ;;  %v1507_v9 = vld [vmem:[%s22582_s2 + $0x220] sm:$0xff] }
 0x472   : > { %6357 = vmatmul.mubr.bf16.gmra.mrb[232].mxu0 %v16701_v6  ;;  %v16832_v6 = vld [vmem:[%s22581_s1 + $0x408] ss:$28 sps:$4 sm:$0xff]  }
 0x473   : > { %6366 = vmatprep.mubr.bf16.mxu0 %v16702_v7  ;;  %v1471_v7 = vld [vmem:[%s22582_s2 + $0x100] sm:$0xff]  ;;  %7303 = vmatmul.mubr.bf16.gmra.mrb[16].mxu1 %v16832_v6  ;;  %v16794_v6 = vld [vmem:[%s22581_s1 + $0x2b4] ss:$28 sps:$4 sm:$0xff]  }
 0x474   : > { %1729 = vperm.xlu0 %16217, %v1471_v7   ;;  %7312 = vmatprep.mubr.bf16.mxu1 %v22590_v11  ;;  %v18796_v7 = vpop.permute.xlu0 %1574 }
 0x475   : > { %22738 = vst [vmem:[#allocation8_spill] sm:$0xff] %v18796_v7 }
 0x47a   : > { %6367 = vmatmul.mubr.bf16.gmra.mrb[236].mxu0 %v16704_v15  ;;  %v1475_v15 = vld [vmem:[%s22582_s2 + $0x120] sm:$0xff] }
 0x47b   : > { %6376 = vmatprep.mubr.bf16.mxu0 %v16711_v16  ;;  %v1462_v16 = vld [vmem:[%s22582_s2 + $0xb8] sm:$0xff] }
 0x47c   : > { %1684 = vperm.xlu1 %16218, %v1462_v16   ;;  %v16803_v16 = vld [vmem:[%s22581_s1 + $0x2ec] ss:$28 sps:$4 sm:$0xff]  }
 0x482   : > { %6377 = vmatmul.mubr.bf16.gmra.mrb[240].mxu0 %v16713_v23  ;;  %v1466_v23 = vld [vmem:[%s22582_s2 + $0xd8] sm:$0xff] }
 0x483   : > { %6386 = vmatprep.mubr.bf16.mxu0 %v16720_v24  ;;  %v1468_v24 = vld [vmem:[%s22582_s2 + $0xe8] sm:$0xff] }
 0x48a   : > { %6387 = vmatmul.mubr.bf16.gmra.mrb[244].mxu0 %v16722_v31  ;;  %v1472_v31 = vld [vmem:[%s22582_s2 + $0x108] sm:$0xff] }
 0x48b   : > { %6396 = vmatprep.mubr.bf16.mxu0 %v16729_v32  ;;  %v1485_v32 = vld [vmem:[%s22582_s2 + $0x170] sm:$0xff] }
 0x492   : > { %6397 = vmatmul.mubr.bf16.gmra.mrb[248].mxu0 %v16731_v40  ;;  %v16770_v40 = vld [vmem:[%s22581_s1 + $0x198] ss:$28 sps:$4 sm:$0xff]  }
 0x493   : > { %6406 = vmatprep.mubr.bf16.mxu0 %v16738_v41  ;;  %v16771_v41 = vld [vmem:[%s22581_s1 + $0x1d4] ss:$28 sps:$4 sm:$0xff]  }
 0x49a   : > { %6407 = vmatmul.mubr.bf16.gmra.mrb[252].mxu0 %v16740_v47  ;;  %v16773_v47 = vld [vmem:[%s22581_s1 + $0x1d0] ss:$28 sps:$4 sm:$0xff]  }
 0x49b   : > { %6449 = vmatprep.mubr.bf16.mxu0 %v16749_v48  ;;  %v16774_v48 = vld [vmem:[%s22581_s1 + $0x20c] ss:$28 sps:$4 sm:$0xff]  }
 0x4a2   : > { %6450 = vmatmul.mubr.bf16.vlgmr.msra.gmra.mrb[0].mxu0 %v16747_v54  ;;  %v16776_v54 = vld [vmem:[%s22581_s1 + $0x208] ss:$28 sps:$4 sm:$0xff]  }
 0x4a3   : > { %6459 = vmatprep.mubr.bf16.mxu0 %v16750_v55  ;;  %7091 = vmatpush1.bf16.msra.mxu0 %v18383_v10  ;;  %v1473_v10 = vld [vmem:[%s22582_s2 + $0x110] sm:$0xff]  ;;  %v16777_v55 = vld [vmem:[%s22581_s1 + $0x244] ss:$28 sps:$4 sm:$0xff]  }
 0x4a4   : > { %7092 = vmatprep.subr.bf16.mxu0 %v18387_v12  ;;  %v16758_v12 = vld [vmem:[%s22581_s1 + $0xb8] ss:$28 sps:$4 sm:$0xff]   ;;  %1739 = vperm.xlu0 %16217, %v1473_v10  }
 0x4a5   : > { %v1494_v10 = vld [vmem:[%s22582_s2 + $0x1b8] sm:$0xff] }
 0x4a7   : > { %7093 = vmatpush1.bf16.msra.mxu0 %v18394_v14  ;;  %v16836_v14 = vld [vmem:[%s22581_s1 + $0x440] ss:$28 sps:$4 sm:$0xff]  }
 0x4a8   : > { %7094 = vmatprep.subr.bf16.mxu0 %v18407_v17  ;;  %7313 = vmatmul.mubr.bf16.gmra.mrb[20].mxu1 %v16836_v14  ;;  %v1464_v17 = vld [vmem:[%s22582_s2 + $0xc8] sm:$0xff]  ;;  %v1509_v14 = vld [vmem:[%s22582_s2 + $0x230] sm:$0xff] }
 0x4a9   : > { %1749 = vperm.xlu0 %16217, %v1475_v15   ;;  %7322 = vmatprep.mubr.bf16.mxu1 %v22590_v11  ;;  %v16797_v15 = vld [vmem:[%s22581_s1 + $0x2b0] ss:$28 sps:$4 sm:$0xff]  }
 0x4aa   : > { %6460 = vmatmul.mubr.bf16.gmra.mrb[4].mxu0 %v16752_v61  ;;  %1694 = vperm.xlu1 %16218, %v1464_v17   ;;  %v16779_v61 = vld [vmem:[%s22581_s1 + $0x240] ss:$28 sps:$4 sm:$0xff]  }
 0x4ab   : > { %6469 = vmatprep.mubr.bf16.mxu0 %v16753_v62  ;;  %7095 = vmatpush1.bf16.msra.mxu0 %v18413_v19  ;;  %v16761_v19 = vld [vmem:[%s22581_s1 + $0xf0] ss:$28 sps:$4 sm:$0xff]   ;;  %v16785_v62 = vld [vmem:[%s22581_s1 + $0x27c] ss:$28 sps:$4 sm:$0xff]  }
 0x4ac   : > { %7096 = vmatprep.subr.bf16.mxu0 %v18416_v20  ;;  %v16762_v20 = vld [vmem:[%s22581_s1 + $0x12c] ss:$28 sps:$4 sm:$0xff]  }
 0x4ad   : > { %1759 = vperm.xlu0 %16217, %v1477_v18   ;;  %v16872_v18 = vld [vmem:[%s22581_s1 + $0x638] ss:$28 sps:$4 sm:$0xff]  }
 0x4ae   : > { %1704 = vperm.xlu1 %16218, %v1466_v23   ;;  %v1513_v23 = vld [vmem:[%s22582_s2 + $0x250] sm:$0xff] }
 0x4af   : > { %7097 = vmatpush1.bf16.msra.mxu0 %v18424_v22  ;;  %v1479_v22 = vld [vmem:[%s22582_s2 + $0x140] sm:$0xff] }
 0x4b0   : > { %7098 = vmatprep.subr.bf16.mxu0 %v18435_v25  ;;  %7323 = vmatmul.mubr.bf16.gmra.mrb[24].mxu1 %v16840_v21  ;;  %v1481_v25 = vld [vmem:[%s22582_s2 + $0x150] sm:$0xff] }
 0x4b1   : > { %1769 = vperm.xlu0 %16217, %v1479_v22   ;;  %7332 = vmatprep.mubr.bf16.mxu1 %v22590_v11  ;;  %v1500_v22 = vld [vmem:[%s22582_s2 + $0x1e8] sm:$0xff] }
 0x4b2   : > { %6470 = vmatmul.mubr.bf16.gmra.mrb[8].mxu0 %v16755_v4  ;;  %1714 = vperm.xlu1 %16218, %v1468_v24   ;;  %v1505_v4 = vld [vmem:[%s22582_s2 + $0x210] sm:$0xff]  ;;  %v16806_v24 = vld [vmem:[%s22581_s1 + $0x2e8] ss:$28 sps:$4 sm:$0xff]  }
 0x4b3   : > { %6479 = vmatprep.mubr.bf16.mxu0 %v16756_v5  ;;  %7099 = vmatpush1.bf16.msra.mxu0 %v18441_v27  ;;  %v16765_v27 = vld [vmem:[%s22581_s1 + $0x164] ss:$28 sps:$4 sm:$0xff]   ;;  %v16788_v5 = vld [vmem:[%s22581_s1 + $0x278] ss:$28 sps:$4 sm:$0xff]  }
 0x4b4   : > { %7100 = vmatprep.subr.bf16.mxu0 %v18444_v28  ;;  %v16844_v28 = vld [vmem:[%s22581_s1 + $0x4b0] ss:$28 sps:$4 sm:$0xff]  }
 0x4b5   : > { %1779 = vperm.xlu0 %16217, %v1481_v25   ;;  %v16812_v25 = vld [vmem:[%s22581_s1 + $0x324] ss:$28 sps:$4 sm:$0xff]  }
 0x4b7   : > { %7101 = vmatpush1.bf16.msra.mxu0 %v18452_v30  ;;  %v1470_v30 = vld [vmem:[%s22582_s2 + $0xf8] sm:$0xff] }
 0x4b8   : > { %7102 = vmatprep.subr.bf16.mxu0 %v18463_v33  ;;  %1724 = vperm.xlu1 %16218, %v1470_v30   ;;  %v16767_v33 = vld [vmem:[%s22581_s1 + $0x160] ss:$28 sps:$4 sm:$0xff]  }
 0x4b9   : > { %7333 = vmatmul.mubr.bf16.gmra.mrb[28].mxu1 %v16844_v28  ;;  %1789 = vperm.xlu0 %16217, %v1483_v29   ;;  %v1515_v28 = vld [vmem:[%s22582_s2 + $0x260] sm:$0xff]  ;;  %v1502_v29 = vld [vmem:[%s22582_s2 + $0x1f8] sm:$0xff] }
 0x4ba   : > { %6480 = vmatmul.mubr.bf16.gmra.mrb[12].mxu0 %v16758_v12  ;;  %7342 = vmatprep.mubr.bf16.mxu1 %v22590_v11  ;;  %v18807_v12 = vpop.permute.xlu0 %1589 }
 0x4bb   : > { %6489 = vmatprep.mubr.bf16.mxu0 %v16759_v13  ;;  %7103 = vmatpush1.bf16.msra.mxu0 %v18469_v35  ;;  %v16848_v35 = vld [vmem:[%s22581_s1 + $0x4e8] ss:$28 sps:$4 sm:$0xff]   ;;  %22739 = vst [vmem:[#allocation9_spill] sm:$0xff] %v18807_v12 }
 0x4bc   : > { %7104 = vmatprep.subr.bf16.mxu0 %v18472_v36  ;;  %1734 = vperm.xlu1 %16218, %v1472_v31   ;;  %v1487_v36 = vld [vmem:[%s22582_s2 + $0x180] sm:$0xff]  ;;  %v1496_v13 = vld [vmem:[%s22582_s2 + $0x1c8] sm:$0xff]  ;;  %v18861_v31 = vpop.permute.xlu1 %1579 }
 0x4bd   : > { %1799 = vperm.xlu0 %16217, %v1485_v32   ;;  %22744 = vst [vmem:[#allocation14_spill] sm:$0xff] %v18861_v31  ;;  %v1504_v32 = vld [vmem:[%s22582_s2 + $0x208] sm:$0xff]  ;;  %v8667_v12 = vld [vmem:[%s22584_s4 + $0x40] sm:$0xff] }
 0x4be   : > { %v18822_v17 = vpop.permute.xlu0 %1599 }
 0x4bf   : > { %7105 = vmatpush1.bf16.msra.mxu0 %v18483_v39  ;;  %v1489_v39 = vld [vmem:[%s22582_s2 + $0x190] sm:$0xff]  ;;  %22740 = vst [vmem:[#allocation10_spill] sm:$0xff] %v18822_v17  ;;  %v1560_v17 = vld [vmem:[%s22582_s2 + $0x3c8] sm:$0xff] }
 0x4c0   : > { %1744 = vperm.xlu1 %16218, %v1474_v37   ;;  %v16880_v37 = vld [vmem:[%s22581_s1 + $0x6a8] ss:$28 sps:$4 sm:$0xff]  }
 0x4c1   : > { %7343 = vmatmul.mubr.bf16.gmra.mrb[32].mxu1 %v16848_v35  ;;  %1809 = vperm.xlu0 %16217, %v1487_v36   ;;  %v16817_v35 = vld [vmem:[%s22581_s1 + $0x35c] ss:$28 sps:$4 sm:$0xff]  }
 0x4c2   : > { %6490 = vmatmul.mubr.bf16.gmra.mrb[16].mxu0 %v16761_v19  ;;  %7352 = vmatprep.mubr.bf16.mxu1 %v22590_v11  ;;  %v1511_v19 = vld [vmem:[%s22582_s2 + $0x240] sm:$0xff]  ;;  %v18833_v21 = vpop.permute.xlu0 %1609 }
 0x4c3   : > { %6499 = vmatprep.mubr.bf16.mxu0 %v16762_v20  ;;  %v1498_v20 = vld [vmem:[%s22582_s2 + $0x1d8] sm:$0xff]  ;;  %22741 = vst [vmem:[#allocation11_spill] sm:$0xff] %v18833_v21 }
 0x4c4   : > { %1754 = vperm.xlu1 %16218, %v1476_v38   ;;  %v18881_v38 = vpop.permute.xlu1 %1584 }
 0x4c5   : > { %1819 = vperm.xlu0 %16217, %v1489_v39   ;;  %22746 = vst [vmem:[#allocation16_spill] sm:$0xff] %v18881_v38  ;;  %v1519_v39 = vld [vmem:[%s22582_s2 + $0x280] sm:$0xff] }
 0x4c8   : > { %1764 = vperm.xlu1 %16218, %v1478_v44   ;;  %v16819_v44 = vld [vmem:[%s22581_s1 + $0x358] ss:$28 sps:$4 sm:$0xff]  }
 0x4c9   : > { %7353 = vmatmul.mubr.bf16.gmra.mrb[36].mxu1 %v16852_v42  ;;  %1829 = vperm.xlu0 %16217, %v1491_v43   ;;  %v1508_v42 = vld [vmem:[%s22582_s2 + $0x228] sm:$0xff]  ;;  %v1521_v43 = vld [vmem:[%s22582_s2 + $0x290] sm:$0xff] }
 0x4ca   : > { %6500 = vmatmul.mubr.bf16.gmra.mrb[20].mxu0 %v16764_v26  ;;  %7362 = vmatprep.mubr.bf16.mxu1 %v22590_v11  ;;  %v18848_v26 = vpop.permute.xlu0 %1619 }
 0x4cb   : > { %6509 = vmatprep.mubr.bf16.mxu0 %v16765_v27  ;;  %22742 = vst [vmem:[#allocation12_spill] sm:$0xff] %v18848_v26  ;;  %v16876_v27 = vld [vmem:[%s22581_s1 + $0x670] ss:$28 sps:$4 sm:$0xff]  }
 0x4cc   : > { %1774 = vperm.xlu1 %16218, %v1480_v45   ;;  %v18901_v45 = vpop.permute.xlu1 %1594 }
 0x4cd   : > { %1839 = vperm.xlu0 %16217, %v1493_v46   ;;  %22748 = vst [vmem:[#allocation18_spill] sm:$0xff] %v18901_v45  ;;  %v16821_v46 = vld [vmem:[%s22581_s1 + $0x394] ss:$28 sps:$4 sm:$0xff]  }
 0x4ce   : > { %v18859_v30 = vpop.permute.xlu0 %1629  ;;  %v16936_v45 = vld [vmem:[%s22581_s1 + $0x9b8] ss:$28 sps:$4 sm:$0xff]  }
 0x4cf   : > { %22743 = vst [vmem:[#allocation13_spill] sm:$0xff] %v18859_v30  ;;  %v8663_v30 = vld [vmem:[%s22584_s4 + $0x20] sm:$0xff] }
 0x4d0   : > { %1784 = vperm.xlu1 %16218, %v1482_v51   ;;  %v1510_v51 = vld [vmem:[%s22582_s2 + $0x238] sm:$0xff] }
 0x4d1   : > { %7363 = vmatmul.mubr.bf16.gmra.mrb[40].mxu1 %v16856_v49  ;;  %1849 = vperm.xlu0 %16217, %v1495_v50   ;;  %v18911_v49 = vpop.permute.xlu1 %1604  ;;  %v1523_v50 = vld [vmem:[%s22582_s2 + $0x2a0] sm:$0xff] }
 0x4d2   : > { %6510 = vmatmul.mubr.bf16.gmra.mrb[24].mxu0 %v16767_v33  ;;  %7372 = vmatprep.mubr.bf16.mxu1 %v22590_v11  ;;  %v1517_v33 = vld [vmem:[%s22582_s2 + $0x270] sm:$0xff]  ;;  %v18876_v36 = vpop.permute.xlu0 %1639  ;;  %22750 = vst [vmem:[#allocation20_spill] sm:$0xff] %v18911_v49 }
 0x4d3   : > { %6519 = vmatprep.mubr.bf16.mxu0 %v16768_v34  ;;  %v16815_v34 = vld [vmem:[%s22581_s1 + $0x320] ss:$28 sps:$4 sm:$0xff]   ;;  %22745 = vst [vmem:[#allocation15_spill] sm:$0xff] %v18876_v36  ;;  %v1556_v36 = vld [vmem:[%s22582_s2 + $0x3a8] sm:$0xff] }
 0x4d4   : > { %1794 = vperm.xlu1 %16218, %v1484_v52  }
 0x4d5   : > { %1859 = vperm.xlu0 %16217, %v1497_v53   ;;  %v1512_v53 = vld [vmem:[%s22582_s2 + $0x248] sm:$0xff] }
 0x4d8   : > { %1804 = vperm.xlu1 %16218, %v1486_v58  }
 0x4d9   : > { %7373 = vmatmul.mubr.bf16.gmra.mrb[44].mxu1 %v16860_v56  ;;  %1869 = vperm.xlu0 %16217, %v1499_v57   ;;  %v18931_v56 = vpop.permute.xlu1 %1614  ;;  %v16825_v57 = vld [vmem:[%s22581_s1 + $0x3cc] ss:$28 sps:$4 sm:$0xff]  }
 0x4da   : > { %6520 = vmatmul.mubr.bf16.gmra.mrb[28].mxu0 %v16770_v40  ;;  %7382 = vmatprep.mubr.bf16.mxu1 %v22590_v11  ;;  %v1506_v40 = vld [vmem:[%s22582_s2 + $0x218] sm:$0xff]  ;;  %22752 = vst [vmem:[#allocation22_spill] sm:$0xff] %v18931_v56 }
 0x4db   : > { %6529 = vmatprep.mubr.bf16.mxu0 %v16771_v41  ;;  %v18889_v41 = vpop.permute.xlu0 %1649 }
 0x4dc   : > { %1814 = vperm.xlu1 %16218, %v1488_v59   ;;  %22747 = vst [vmem:[#allocation17_spill] sm:$0xff] %v18889_v41  ;;  %v16888_v59 = vld [vmem:[%s22581_s1 + $0x718] ss:$28 sps:$4 sm:$0xff]  }
 0x4dd   : > { %1879 = vperm.xlu0 %16217, %v1501_v60   ;;  %v18941_v60 = vpop.permute.xlu1 %1624 }
 0x4de   : > { %22754 = vst [vmem:[#allocation24_spill] sm:$0xff] %v18941_v60 }
 0x4e0   : > { %1824 = vperm.xlu1 %16218, %v1490_v1   ;;  %v1529_v1 = vld [vmem:[%s22582_s2 + $0x2d0] sm:$0xff] }
 0x4e1   : > { %7383 = vmatmul.mubr.bf16.gmra.mrb[48].mxu1 %v16864_v63  ;;  %1889 = vperm.xlu0 %16217, %v1503_v0   ;;  %v1516_v0 = vld [vmem:[%s22582_s2 + $0x268] sm:$0xff] }
 0x4e2   : > { %6530 = vmatmul.mubr.bf16.gmra.mrb[32].mxu0 %v16773_v47  ;;  %7392 = vmatprep.mubr.bf16.mxu1 %v22590_v11  ;;  %v18906_v47 = vpop.permute.xlu0 %1659 }
 0x4e3   : > { %6539 = vmatprep.mubr.bf16.mxu0 %v16774_v48  ;;  %22749 = vst [vmem:[#allocation19_spill] sm:$0xff] %v18906_v47  ;;  %v16884_v48 = vld [vmem:[%s22581_s1 + $0x6e0] ss:$28 sps:$4 sm:$0xff]  }
 0x4e4   : > { %1834 = vperm.xlu1 %16218, %v1492_v3   ;;  %v16827_v3 = vld [vmem:[%s22581_s1 + $0x3c8] ss:$28 sps:$4 sm:$0xff]  }
 0x4e5   : > { %1899 = vperm.xlu0 %16217, %v1505_v4   ;;  %v18961_v4 = vpop.permute.xlu1 %1634 }
 0x4e6   : > { %v18919_v52 = vpop.permute.xlu0 %1669  ;;  %22756 = vst [vmem:[#allocation26_spill] sm:$0xff] %v18961_v4  ;;  %v16932_v4 = vld [vmem:[%s22581_s1 + $0x980] ss:$28 sps:$4 sm:$0xff]  }
 0x4e7   : > { %22751 = vst [vmem:[#allocation21_spill] sm:$0xff] %v18919_v52  ;;  %v8659_v52 = vld [vmem:[%s22584_s4] sm:$0xff] }
 0x4e8   : > { %1844 = vperm.xlu1 %16218, %v1494_v10   ;;  %v1531_v10 = vld [vmem:[%s22582_s2 + $0x2e0] sm:$0xff] }
 0x4e9   : > { %7393 = vmatmul.mubr.bf16.gmra.mrb[52].mxu1 %v16868_v8  ;;  %1909 = vperm.xlu0 %16217, %v1507_v9   ;;  %v16892_v8 = vld [vmem:[%s22581_s1 + $0x750] ss:$28 sps:$4 sm:$0xff]   ;;  %v18971_v9 = vpop.permute.xlu1 %1644 }
 0x4ea   : > { %6540 = vmatmul.mubr.bf16.gmra.mrb[36].mxu0 %v16776_v54  ;;  %7402 = vmatprep.mubr.bf16.mxu1 %v22590_v11  ;;  %v1525_v54 = vld [vmem:[%s22582_s2 + $0x2b0] sm:$0xff]  ;;  %v18936_v58 = vpop.permute.xlu0 %1679  ;;  %22758 = vst [vmem:[#allocation28_spill] sm:$0xff] %v18971_v9 }
 0x4eb   : > { %6549 = vmatprep.mubr.bf16.mxu0 %v16777_v55  ;;  %v16823_v55 = vld [vmem:[%s22581_s1 + $0x390] ss:$28 sps:$4 sm:$0xff]   ;;  %22753 = vst [vmem:[#allocation23_spill] sm:$0xff] %v18936_v58 }
 0x4ec   : > { %1854 = vperm.xlu1 %16218, %v1496_v13   ;;  %v1518_v13 = vld [vmem:[%s22582_s2 + $0x278] sm:$0xff]  ;;  %v1552_v58 = vld [vmem:[%s22582_s2 + $0x388] sm:$0xff] }
 0x4ed   : > { %1919 = vperm.xlu0 %16217, %v1509_v14  }
 0x4ee   : > { %v18949_v63 = vpop.permute.xlu0 %1689 }
 0x4ef   : > { %22755 = vst [vmem:[#allocation25_spill] sm:$0xff] %v18949_v63 }
 0x4f0   : > { %1864 = vperm.xlu1 %16218, %v1498_v20   ;;  %v16833_v20 = vld [vmem:[%s22581_s1 + $0x43c] ss:$28 sps:$4 sm:$0xff]  }
 0x4f1   : > { %7403 = vmatmul.mubr.bf16.gmra.mrb[56].mxu1 %v16872_v18  ;;  %1929 = vperm.xlu0 %16217, %v1511_v19   ;;  %v16831_v18 = vld [vmem:[%s22581_s1 + $0x400] ss:$28 sps:$4 sm:$0xff]   ;;  %v18991_v19 = vpop.permute.xlu1 %1654 }
 0x4f2   : > { %6550 = vmatmul.mubr.bf16.gmra.mrb[40].mxu0 %v16779_v61  ;;  %7412 = vmatprep.mubr.bf16.mxu1 %v22590_v11  ;;  %v1527_v61 = vld [vmem:[%s22582_s2 + $0x2c0] sm:$0xff]  ;;  %22759 = vst [vmem:[#allocation29_spill] sm:$0xff] %v18991_v19 }
 0x4f3   : > { %6559 = vmatprep.mubr.bf16.mxu0 %v16785_v62  ;;  %v1514_v62 = vld [vmem:[%s22582_s2 + $0x258] sm:$0xff] }
 0x4f4   : > { %1874 = vperm.xlu1 %16218, %v1500_v22  }
 0x4f5   : > { %1939 = vperm.xlu0 %16217, %v1513_v23   ;;  %v16896_v23 = vld [vmem:[%s22581_s1 + $0x788] ss:$28 sps:$4 sm:$0xff]  }
 0x4f8   : > { %1884 = vperm.xlu1 %16218, %v1502_v29   ;;  %v1524_v29 = vld [vmem:[%s22582_s2 + $0x2a8] sm:$0xff] }
 0x4f9   : > { %7413 = vmatmul.mubr.bf16.gmra.mrb[60].mxu1 %v16876_v27  ;;  %1949 = vperm.xlu0 %16217, %v1515_v28   ;;  %v1522_v27 = vld [vmem:[%s22582_s2 + $0x298] sm:$0xff] }
 0x4fa   : > { %6560 = vmatmul.mubr.bf16.gmra.mrb[44].mxu0 %v16788_v5  ;;  %7422 = vmatprep.mubr.bf16.mxu1 %v22590_v11  ;;  %v16829_v5 = vld [vmem:[%s22581_s1 + $0x404] ss:$28 sps:$4 sm:$0xff]  }
 0x4fb   : > { %6569 = vmatprep.mubr.bf16.mxu0 %v16794_v6  ;;  %v18966_v6 = vpop.permute.xlu0 %1699 }
 0x4fc   : > { %1894 = vperm.xlu1 %16218, %v1504_v32   ;;  %22757 = vst [vmem:[#allocation27_spill] sm:$0xff] %v18966_v6  ;;  %v1537_v32 = vld [vmem:[%s22582_s2 + $0x310] sm:$0xff]  ;;  %v22776_v6 = vmov 0  }
 0x4fd   : > { %1959 = vperm.xlu0 %16217, %v1517_v33   ;;  %v16835_v33 = vld [vmem:[%s22581_s1 + $0x438] ss:$28 sps:$4 sm:$0xff]  }
 0x4ff   : > { %v18979_v14 = vpop.permute.xlu0 %1709 }
 0x500   : > { %1904 = vperm.xlu1 %16218, %v1506_v40  }
 0x501   : > { %7423 = vmatmul.mubr.bf16.gmra.mrb[64].mxu1 %v16880_v37  ;;  %1969 = vperm.xlu0 %16217, %v1519_v39   ;;  %v16900_v39 = vld [vmem:[%s22581_s1 + $0x7c0] ss:$28 sps:$4 sm:$0xff]  }
 0x502   : > { %6570 = vmatmul.mubr.bf16.gmra.mrb[48].mxu0 %v16797_v15  ;;  %7432 = vmatprep.mubr.bf16.mxu1 %v22590_v11  ;;  %v1520_v15 = vld [vmem:[%s22582_s2 + $0x288] sm:$0xff] }
 0x503   : > { %6579 = vmatprep.mubr.bf16.mxu0 %v16803_v16  ;;  %v1533_v16 = vld [vmem:[%s22582_s2 + $0x2f0] sm:$0xff]  ;;  %v18996_v22 = vpop.permute.xlu0 %1719 }
 0x504   : > { %1914 = vperm.xlu1 %16218, %v1508_v42   ;;  %v1539_v42 = vld [vmem:[%s22582_s2 + $0x320] sm:$0xff] }
 0x505   : > { %1979 = vperm.xlu0 %16217, %v1521_v43   ;;  %v1526_v43 = vld [vmem:[%s22582_s2 + $0x2b8] sm:$0xff] }
 0x507   : > { %v19009_v28 = vpop.permute.xlu0 %1729 }
 0x508   : > { %1924 = vperm.xlu1 %16218, %v1510_v51  }
 0x509   : > { %7433 = vmatmul.mubr.bf16.gmra.mrb[68].mxu1 %v16884_v48  ;;  %1989 = vperm.xlu0 %16217, %v1523_v50   ;;  %v1541_v48 = vld [vmem:[%s22582_s2 + $0x330] sm:$0xff] }
 0x50a   : > { %6580 = vmatmul.mubr.bf16.gmra.mrb[52].mxu0 %v16806_v24  ;;  %7442 = vmatprep.mubr.bf16.mxu1 %v22590_v11  ;;  %v19001_v24 = vpop.permute.xlu1 %1664  ;;  %v16839_v50 = vld [vmem:[%s22581_s1 + $0x470] ss:$28 sps:$4 sm:$0xff]  }
 0x50b   : > { %6589 = vmatprep.mubr.bf16.mxu0 %v16812_v25  ;;  %22760 = vst [vmem:[#allocation30_spill] sm:$0xff] %v19001_v24  ;;  %v1535_v25 = vld [vmem:[%s22582_s2 + $0x300] sm:$0xff] }
 0x50c   : > { %1934 = vperm.xlu1 %16218, %v1512_v53   ;;  %v16841_v53 = vld [vmem:[%s22581_s1 + $0x4ac] ss:$28 sps:$4 sm:$0xff]  }
 0x50d   : > { %1999 = vperm.xlu0 %16217, %v1525_v54  }
 0x510   : > { %1944 = vperm.xlu1 %16218, %v1514_v62  }
 0x511   : > { %7443 = vmatmul.mubr.bf16.gmra.mrb[72].mxu1 %v16888_v59  ;;  %2009 = vperm.xlu0 %16217, %v1527_v61   ;;  %v1543_v59 = vld [vmem:[%s22582_s2 + $0x340] sm:$0xff]  ;;  %v1530_v61 = vld [vmem:[%s22582_s2 + $0x2d8] sm:$0xff] }
 0x512   : > { %6590 = vmatmul.mubr.bf16.gmra.mrb[56].mxu0 %v16815_v34  ;;  %7452 = vmatprep.mubr.bf16.mxu1 %v22590_v11  ;;  %v19021_v34 = vpop.permute.xlu1 %1674 }
 0x513   : > { %6599 = vmatprep.mubr.bf16.mxu0 %v16817_v35  ;;  %22761 = vst [vmem:[#allocation31_spill] sm:$0xff] %v19021_v34  ;;  %v16837_v35 = vld [vmem:[%s22581_s1 + $0x474] ss:$28 sps:$4 sm:$0xff]   ;;  %v16928_v34 = vld [vmem:[%s22581_s1 + $0x948] ss:$28 sps:$4 sm:$0xff]  }
 0x514   : > { %1954 = vperm.xlu1 %16218, %v1516_v0   ;;  %v1532_v0 = vld [vmem:[%s22582_s2 + $0x2e8] sm:$0xff] }
 0x515   : > { %2019 = vperm.xlu0 %16217, %v1529_v1   ;;  %v1545_v1 = vld [vmem:[%s22582_s2 + $0x350] sm:$0xff] }
 0x516   : > { %v19031_v40 = vpop.permute.xlu1 %1684 }
 0x517   : > { %22762 = vst [vmem:[#allocation32_spill] sm:$0xff] %v19031_v40 }
 0x518   : > { %1964 = vperm.xlu1 %16218, %v1518_v13   ;;  %v16908_v13 = vld [vmem:[%s22581_s1 + $0x830] ss:$28 sps:$4 sm:$0xff]  }
 0x519   : > { %7453 = vmatmul.mubr.bf16.gmra.mrb[76].mxu1 %v16892_v8  ;;  %2029 = vperm.xlu0 %16217, %v1531_v10   ;;  %v16845_v8 = vld [vmem:[%s22581_s1 + $0x4e4] ss:$28 sps:$4 sm:$0xff]  }
 0x51a   : > { %6600 = vmatmul.mubr.bf16.gmra.mrb[60].mxu0 %v16819_v44  ;;  %7462 = vmatprep.mubr.bf16.mxu1 %v22590_v11 }
 0x51b   : > { %6609 = vmatprep.mubr.bf16.mxu0 %v16821_v46  ;;  %v1528_v46 = vld [vmem:[%s22582_s2 + $0x2c8] sm:$0xff] }
 0x51c   : > { %1974 = vperm.xlu1 %16218, %v1520_v15  }
 0x51d   : > { %2039 = vperm.xlu0 %16217, %v1533_v16   ;;  %v1547_v16 = vld [vmem:[%s22582_s2 + $0x360] sm:$0xff] }
 0x520   : > { %1984 = vperm.xlu1 %16218, %v1522_v27   ;;  %v16847_v27 = vld [vmem:[%s22581_s1 + $0x4e0] ss:$28 sps:$4 sm:$0xff]  }
 0x521   : > { %7463 = vmatmul.mubr.bf16.gmra.mrb[80].mxu1 %v16896_v23  ;;  %2049 = vperm.xlu0 %16217, %v1535_v25   ;;  %v1536_v23 = vld [vmem:[%s22582_s2 + $0x308] sm:$0xff]  ;;  %v1549_v25 = vld [vmem:[%s22582_s2 + $0x370] sm:$0xff] }
 0x522   : > { %6610 = vmatmul.mubr.bf16.gmra.mrb[64].mxu0 %v16823_v55  ;;  %7472 = vmatprep.mubr.bf16.mxu1 %v22590_v11  ;;  %v16904_v55 = vld [vmem:[%s22581_s1 + $0x7f8] ss:$28 sps:$4 sm:$0xff]  }
 0x523   : > { %6619 = vmatprep.mubr.bf16.mxu0 %v16825_v57  ;;  %v19026_v37 = vpop.permute.xlu0 %1739 }
 0x524   : > { %1994 = vperm.xlu1 %16218, %v1524_v29  }
 0x525   : > { %2059 = vperm.xlu0 %16217, %v1537_v32   ;;  %v16849_v32 = vld [vmem:[%s22581_s1 + $0x51c] ss:$28 sps:$4 sm:$0xff]  }
 0x528   : > { %v19039_v44 = vpop.permute.xlu0 %1749  ;;  %2004 = vperm.xlu1 %16218, %v1526_v43   ;;  %v1538_v43 = vld [vmem:[%s22582_s2 + $0x318] sm:$0xff] }
 0x529   : > { %7473 = vmatmul.mubr.bf16.gmra.mrb[84].mxu1 %v16900_v39  ;;  %2069 = vperm.xlu0 %16217, %v1539_v42   ;;  %v19051_v51 = vpop.permute.xlu1 %1694  ;;  %v1551_v42 = vld [vmem:[%s22582_s2 + $0x380] sm:$0xff] }
 0x52a   : > { %6620 = vmatmul.mubr.bf16.gmra.mrb[68].mxu0 %v16827_v3  ;;  %7482 = vmatprep.mubr.bf16.mxu1 %v22590_v11  ;;  %22763 = vst [vmem:[#allocation33_spill] sm:$0xff] %v19051_v51  ;;  %v16843_v3 = vld [vmem:[%s22581_s1 + $0x4a8] ss:$28 sps:$4 sm:$0xff]  }
 0x52b   : > { %6629 = vmatprep.mubr.bf16.mxu0 %v16829_v5 }
 0x52c   : > { %v19056_v54 = vpop.permute.xlu0 %1759  ;;  %2014 = vperm.xlu1 %16218, %v1528_v46  }
 0x52d   : > { %2079 = vperm.xlu0 %16217, %v1541_v48   ;;  %v19061_v57 = vpop.permute.xlu1 %1704  ;;  %v1540_v48 = vld [vmem:[%s22582_s2 + $0x328] sm:$0xff] }
 0x52e   : > { %22764 = vst [vmem:[#allocation34_spill] sm:$0xff] %v19061_v57 }
 0x530   : > { %v19069_v62 = vpop.permute.xlu0 %1769  ;;  %2024 = vperm.xlu1 %16218, %v1530_v61  }
 0x531   : > { %7483 = vmatmul.mubr.bf16.gmra.mrb[88].mxu1 %v16904_v55  ;;  %2089 = vperm.xlu0 %16217, %v1543_v59   ;;  %v19081_v5 = vpop.permute.xlu1 %1714  ;;  %v16853_v59 = vld [vmem:[%s22581_s1 + $0x554] ss:$28 sps:$4 sm:$0xff]  }
 0x532   : > { %6630 = vmatmul.mubr.bf16.gmra.mrb[72].mxu0 %v16831_v18  ;;  %7492 = vmatprep.mubr.bf16.mxu1 %v22590_v11  ;;  %v1534_v18 = vld [vmem:[%s22582_s2 + $0x2f8] sm:$0xff] }
 0x533   : > { %6639 = vmatprep.mubr.bf16.mxu0 %v16833_v20 }
 0x534   : > { %v19086_v10 = vpop.permute.xlu0 %1779  ;;  %2034 = vperm.xlu1 %16218, %v1532_v0   ;;  %v16916_v0 = vld [vmem:[%s22581_s1 + $0x8a0] ss:$28 sps:$4 sm:$0xff]  }
 0x535   : > { %2099 = vperm.xlu0 %16217, %v1545_v1  }
 0x537   : > { %v19091_v15 = vpop.permute.xlu1 %1724 }
 0x538   : > { %v19099_v20 = vpop.permute.xlu0 %1789  ;;  %2044 = vperm.xlu1 %16218, %v1534_v18   ;;  %v1557_v18 = vld [vmem:[%s22582_s2 + $0x3b0] sm:$0xff] }
 0x539   : > { %22765 = vst [vmem:[#allocation35_spill] sm:$0xff] %v19099_v20  ;;  %7493 = vmatmul.mubr.bf16.gmra.mrb[92].mxu1 %v16908_v13  ;;  %2109 = vperm.xlu0 %16217, %v1547_v16   ;;  %v1544_v16 = vld [vmem:[%s22582_s2 + $0x348] sm:$0xff] }
 0x53a   : > { %6640 = vmatmul.mubr.bf16.gmra.mrb[76].mxu0 %v16835_v33  ;;  %7502 = vmatprep.mubr.bf16.mxu1 %v22590_v11 }
 0x53b   : > { %6649 = vmatprep.mubr.bf16.mxu0 %v16837_v35  ;;  %v19111_v29 = vpop.permute.xlu1 %1734  ;;  %v16912_v35 = vld [vmem:[%s22581_s1 + $0x868] ss:$28 sps:$4 sm:$0xff]  }
 0x53c   : > { %v19116_v33 = vpop.permute.xlu0 %1799  ;;  %2054 = vperm.xlu1 %16218, %v1536_v23   ;;  %v16855_v23 = vld [vmem:[%s22581_s1 + $0x550] ss:$28 sps:$4 sm:$0xff]  }
 0x53d   : > { %22766 = vst [vmem:[#allocation36_spill] sm:$0xff] %v19116_v33  ;;  %2119 = vperm.xlu0 %16217, %v1549_v25  }
 0x53f   : > { %v19121_v39 = vpop.permute.xlu1 %1744 }
 0x540   : > { %v19129_v46 = vpop.permute.xlu0 %1809  ;;  %2064 = vperm.xlu1 %16218, %v1538_v43  }
 0x541   : > { %22767 = vst [vmem:[#allocation37_spill] sm:$0xff] %v19129_v46  ;;  %7503 = vmatmul.mubr.bf16.gmra.mrb[96].mxu1 %v16912_v35  ;;  %2129 = vperm.xlu0 %16217, %v1551_v42   ;;  %v16920_v35 = vld [vmem:[%s22581_s1 + $0x8d8] ss:$28 sps:$4 sm:$0xff]   ;;  %v1559_v42 = vld [vmem:[%s22582_s2 + $0x3c0] sm:$0xff] }
 0x542   : > { %6650 = vmatmul.mubr.bf16.gmra.mrb[80].mxu0 %v16839_v50  ;;  %v1553_v50 = vld [vmem:[%s22582_s2 + $0x390] sm:$0xff]  ;;  %7512 = vmatprep.mubr.bf16.mxu1 %v22590_v11 }
 0x543   : > { %6659 = vmatprep.mubr.bf16.mxu0 %v16841_v53  ;;  %v16851_v53 = vld [vmem:[%s22581_s1 + $0x518] ss:$28 sps:$4 sm:$0xff]   ;;  %v19141_v55 = vpop.permute.xlu1 %1754 }
 0x544   : > { %v19146_v61 = vpop.permute.xlu0 %1819  ;;  %2074 = vperm.xlu1 %16218, %v1540_v48  }
 0x545   : > { %22768 = vst [vmem:[#allocation38_spill] sm:$0xff] %v19146_v61  ;;  %2139 = vperm.xlu0 %16217, %v1553_v50   ;;  %v16859_v50 = vld [vmem:[%s22581_s1 + $0x588] ss:$28 sps:$4 sm:$0xff]  }
 0x547   : > { %v19151_v1 = vpop.permute.xlu1 %1764 }
 0x548   : > { %v19159_v13 = vpop.permute.xlu0 %1829 }
 0x549   : > { %22769 = vst [vmem:[#allocation39_spill] sm:$0xff] %v19159_v13  ;;  %7513 = vmatmul.mubr.bf16.gmra.mrb[100].mxu1 %v16916_v0  ;;  %v19198_v0 = vpop.f32.mrb[0].mxu1 }
 0x54a   : > { %6660 = vmatmul.mubr.bf16.gmra.mrb[84].mxu0 %v16843_v3  ;;  %v1555_v3 = vld [vmem:[%s22582_s2 + $0x3a0] sm:$0xff]  ;;  %7522 = vmatprep.mubr.bf16.mxu1 %v22590_v11 }
 0x54b   : > { %6669 = vmatprep.mubr.bf16.mxu0 %v16845_v8  ;;  %v1542_v8 = vld [vmem:[%s22582_s2 + $0x338] sm:$0xff]  ;;  %2149 = vperm.xlu0 %16217, %v1555_v3   ;;  %v19171_v25 = vpop.permute.xlu1 %1774 }
 0x54c   : > { %2084 = vperm.xlu1 %16218, %v1542_v8   ;;  %v19202_v8 = vpop.f32.mrb[1].mxu1 }
 0x54f   : > { %2159 = vperm.xlu0 %16217, %v1557_v18   ;;  %v19186_v48 = vpop.permute.xlu1 %1784  ;;  %v1561_v18 = vld [vmem:[%s22582_s2 + $0x3d0] sm:$0xff] }
 0x550   : > { %2094 = vperm.xlu1 %16218, %v1544_v16  }
 0x551   : > { %7523 = vmatmul.mubr.bf16.gmra.mrb[104].mxu1 %v16920_v35 }
 0x552   : > { %6670 = vmatmul.mubr.bf16.gmra.mrb[88].mxu0 %v16847_v27  ;;  %v16857_v27 = vld [vmem:[%s22581_s1 + $0x58c] ss:$28 sps:$4 sm:$0xff]   ;;  %7532 = vmatprep.mubr.bf16.mxu1 %v22590_v11 }
 0x553   : > { %6679 = vmatprep.mubr.bf16.mxu0 %v16849_v32  ;;  %v19176_v32 = vpop.permute.xlu0 %1839  ;;  %2169 = vperm.xlu0 %16217, %v1559_v42   ;;  %v19204_v16 = vpop.permute.xlu1 %1794  ;;  %v16924_v42 = vld [vmem:[%s22581_s1 + $0x910] ss:$28 sps:$4 sm:$0xff]  }
 0x554   : > { %22770 = vst [vmem:[#allocation40_spill] sm:$0xff] %v19176_v32  ;;  %22773 = vst [vmem:[#allocation43_spill] sm:$0xff] %v19204_v16 }
 0x557   : > { %v19184_v43 = vpop.permute.xlu0 %1849  ;;  %2179 = vperm.xlu0 %16217, %v1561_v18   ;;  %v19224_v57 = vpop.permute.xlu1 %1804  ;;  %v16865_v18 = vld [vmem:[%s22581_s1 + $0x5fc] ss:$28 sps:$4 sm:$0xff]  }
 0x558   : > { %22771 = vst [vmem:[#allocation41_spill] sm:$0xff] %v19184_v43  ;;  %22775 = vst [vmem:[#allocation45_spill] sm:$0xff] %v19224_v57 }
 0x559   : > { %7533 = vmatmul.mubr.bf16.gmra.mrb[108].mxu1 %v16924_v42 }
 0x55a   : > { %6680 = vmatmul.mubr.bf16.gmra.mrb[92].mxu0 %v16851_v53  ;;  %v1546_v53 = vld [vmem:[%s22582_s2 + $0x358] sm:$0xff]  ;;  %7542 = vmatprep.mubr.bf16.mxu1 %v22776_v6 }
 0x55b   : > { %6689 = vmatprep.mubr.bf16.mxu0 %v16853_v59  ;;  %v16861_v59 = vld [vmem:[%s22581_s1 + $0x5c4] ss:$28 sps:$4 sm:$0xff]   ;;  %2104 = vperm.xlu1 %16218, %v1546_v53   ;;  %v19200_v3 = vpop.permute.xlu0 %1859  ;;  %v19242_v63 = vpop.permute.xlu1 %1814 }
 0x55c   : > { %22772 = vst [vmem:[#allocation42_spill] sm:$0xff] %v19200_v3  ;;  %v1563_v53 = vld [vmem:[%s22582_s2 + $0x3e0] sm:$0xff]  ;;  %22778 = vst [vmem:[#allocation47_spill] sm:$0xff] %v19242_v63  ;;  %v8672_v63 = vld [vmem:[%s22584_s4 + $0x68] sm:$0xff] }
 0x55d   : > { %2189 = vperm.xlu0 %16217, %v1563_v53   ;;  %v1565_v53 = vld [vmem:[%s22582_s2 + $0x3f0] sm:$0xff] }
 0x55f   : > { %v19222_v11 = vpop.permute.xlu0 %1869  ;;  %v19262_v47 = vpop.permute.xlu1 %1824 }
 0x560   : > { %22774 = vst [vmem:[#allocation44_spill] sm:$0xff] %v19222_v11  ;;  %22780 = vst [vmem:[#allocation49_spill] sm:$0xff] %v19262_v47 }
 0x561   : > { %2199 = vperm.xlu0 %16217, %v1565_v53   ;;  %7543 = vmatmul.mubr.bf16.gmra.mrb[112].mxu1 %v16928_v34 }
 0x562   : > { %6690 = vmatmul.mubr.bf16.gmra.mrb[96].mxu0 %v16855_v23  ;;  %v19209_v23 = vpop.f32.mrb[2].mxu1  ;;  %7552 = vmatprep.mubr.bf16.mxu1 %v22776_v6 }
 0x563   : > { %6699 = vmatprep.mubr.bf16.mxu0 %v16857_v27  ;;  %v1548_v27 = vld [vmem:[%s22582_s2 + $0x368] sm:$0xff]  ;;  %v19214_v35 = vpop.f32.mrb[3].mxu1  ;;  %v19238_v42 = vpop.permute.xlu0 %1879 }
 0x564   : > { %2114 = vperm.xlu1 %16218, %v1548_v27   ;;  %v19236_v27 = vpop.f32.mrb[4].mxu1  ;;  %22777 = vst [vmem:[#allocation46_spill] sm:$0xff] %v19238_v42  ;;  %v19280_v41 = vpop.permute.xlu1 %1834 }
 0x565   : > { %v19240_v51 = vpop.f32.mrb[5].mxu1  ;;  %8725 = vperm.xlu0 %16217, %v8659_v52   ;;  %22782 = vst [vmem:[#allocation51_spill] sm:$0xff] %v19280_v41  ;;  %v8661_v52 = vld [vmem:[%s22584_s4 + $0x10] sm:$0xff]  ;;  %v8668_v41 = vld [vmem:[%s22584_s4 + $0x48] sm:$0xff] }
 0x566   : > { %v19247_v40 = vpop.f32.mrb[6].mxu1 }
 0x567   : > { %v19260_v24 = vpop.permute.xlu0 %1889 }
 0x568   : > { %22779 = vst [vmem:[#allocation48_spill] sm:$0xff] %v19260_v24  ;;  %v19300_v26 = vpop.permute.xlu1 %1844 }
 0x569   : > { %8735 = vperm.xlu0 %16217, %v8661_v52   ;;  %7553 = vmatmul.mubr.bf16.gmra.mrb[116].mxu1 %v16932_v4  ;;  %22784 = vst [vmem:[#allocation53_spill] sm:$0xff] %v19300_v26 }
 0x56a   : > { %6700 = vmatmul.mubr.bf16.gmra.mrb[100].mxu0 %v16859_v50  ;;  %v16863_v50 = vld [vmem:[%s22581_s1 + $0x5c0] ss:$28 sps:$4 sm:$0xff]   ;;  %7562 = vmatprep.mubr.bf16.mxu1 %v22776_v6 }
 0x56b   : > { %6709 = vmatprep.mubr.bf16.mxu0 %v16861_v59  ;;  %v1550_v59 = vld [vmem:[%s22582_s2 + $0x378] sm:$0xff]  ;;  %v19276_v34 = vpop.permute.xlu0 %1899 }
 0x56c   : > { %2124 = vperm.xlu1 %16218, %v1550_v59   ;;  %v19252_v59 = vpop.f32.mrb[7].mxu1  ;;  %22781 = vst [vmem:[#allocation50_spill] sm:$0xff] %v19276_v34  ;;  %v19318_v21 = vpop.permute.xlu1 %1854 }
 0x56d   : > { %v19274_v53 = vpop.f32.mrb[8].mxu1  ;;  %8745 = vperm.xlu0 %16217, %v8663_v30   ;;  %22786 = vst [vmem:[#allocation55_spill] sm:$0xff] %v19318_v21  ;;  %v8665_v30 = vld [vmem:[%s22584_s4 + $0x30] sm:$0xff]  ;;  %v8664_v21 = vld [vmem:[%s22584_s4 + $0x28] sm:$0xff] }
 0x56e   : > { %v19278_v19 = vpop.f32.mrb[9].mxu1 }
 0x56f   : > { %v19285_v9 = vpop.f32.mrb[10].mxu1  ;;  %v19298_v60 = vpop.permute.xlu0 %1909 }
 0x570   : > { %2134 = vperm.xlu1 %16218, %v1552_v58   ;;  %v1554_v58 = vld [vmem:[%s22582_s2 + $0x398] sm:$0xff]  ;;  %22783 = vst [vmem:[#allocation52_spill] sm:$0xff] %v19298_v60  ;;  %v19338_v31 = vpop.permute.xlu1 %1864  ;;  %v8671_v60 = vld [vmem:[%s22584_s4 + $0x60] sm:$0xff] }
 0x571   : > { %8755 = vperm.xlu0 %16217, %v8665_v30   ;;  %7563 = vmatmul.mubr.bf16.gmra.mrb[120].mxu1 %v16936_v45  ;;  %22788 = vst [vmem:[#allocation57_spill] sm:$0xff] %v19338_v31 }
 0x572   : > { %6710 = vmatmul.mubr.bf16.gmra.mrb[104].mxu0 %v16863_v50  ;;  %v16867_v50 = vld [vmem:[%s22581_s1 + $0x5f8] ss:$28 sps:$4 sm:$0xff]   ;;  %7572 = vmatprep.mubr.bf16.mxu1 %v22776_v6 }
 0x573   : > { %6719 = vmatprep.mubr.bf16.mxu0 %v16865_v18  ;;  %v16869_v18 = vld [vmem:[%s22581_s1 + $0x634] ss:$28 sps:$4 sm:$0xff]   ;;  %v19314_v4 = vpop.permute.xlu0 %1919 }
 0x574   : > { %2144 = vperm.xlu1 %16218, %v1554_v58   ;;  %v19290_v58 = vpop.f32.mrb[11].mxu1  ;;  %22785 = vst [vmem:[#allocation54_spill] sm:$0xff] %v19314_v4  ;;  %v19356_v2 = vpop.permute.xlu1 %1874  ;;  %v1564_v4 = vld [vmem:[%s22582_s2 + $0x3e8] sm:$0xff] }
 0x575   : > { %v19312_v52 = vpop.f32.mrb[12].mxu1  ;;  %8765 = vperm.xlu0 %16217, %v8667_v12   ;;  %22790 = vst [vmem:[#allocation59_spill] sm:$0xff] %v19356_v2  ;;  %v8669_v12 = vld [vmem:[%s22584_s4 + $0x50] sm:$0xff]  ;;  %v8660_v2 = vld [vmem:[%s22584_s4 + $0x8] sm:$0xff] }
 0x576   : > { %v19316_v56 = vpop.f32.mrb[13].mxu1 }
 0x577   : > { %v19323_v49 = vpop.f32.mrb[14].mxu1  ;;  %v19336_v38 = vpop.permute.xlu0 %1929 }
 0x578   : > { %2154 = vperm.xlu1 %16218, %v1556_v36   ;;  %v1558_v36 = vld [vmem:[%s22582_s2 + $0x3b8] sm:$0xff]  ;;  %22787 = vst [vmem:[#allocation56_spill] sm:$0xff] %v19336_v38  ;;  %v19376_v24 = vpop.permute.xlu1 %1884 }
 0x579   : > { %8775 = vperm.xlu0 %16217, %v8669_v12   ;;  %22792 = vst [vmem:[#allocation61_spill] sm:$0xff] %v19376_v24 }
 0x57a   : > { %6720 = vmatmul.mubr.bf16.gmra.mrb[108].mxu0 %v16867_v50  ;;  %v16871_v50 = vld [vmem:[%s22581_s1 + $0x630] ss:$28 sps:$4 sm:$0xff]  }
 0x57b   : > { %6729 = vmatprep.mubr.bf16.mxu0 %v16869_v18  ;;  %v16873_v18 = vld [vmem:[%s22581_s1 + $0x66c] ss:$28 sps:$4 sm:$0xff]   ;;  %v19352_v45 = vpop.permute.xlu0 %1939 }
 0x57c   : > { %2164 = vperm.xlu1 %16218, %v1558_v36   ;;  %v19328_v36 = vpop.f32.mrb[15].mxu1  ;;  %22789 = vst [vmem:[#allocation58_spill] sm:$0xff] %v19352_v45  ;;  %v16940_v45 = vld [vmem:[%s22581_s1 + $0x9f0] ss:$28 sps:$4 sm:$0xff]   ;;  %v19394_v24 = vpop.permute.xlu1 %1894 }
 0x57d   : > { %v19350_v30 = vpop.f32.mrb[16].mxu1  ;;  %7573 = vmatmul.mubr.bf16.gmra.mrb[124].mxu1 %v16940_v45  ;;  %8785 = vperm.xlu0 %16217, %v8671_v60   ;;  %22794 = vst [vmem:[#allocation63_spill] sm:$0xff] %v19394_v24  ;;  %v8673_v60 = vld [vmem:[%s22584_s4 + $0x70] sm:$0xff]  ;;  %v8675_v24 = vld [vmem:[%s22584_s4 + $0x80] sm:$0xff] }
 0x57e   : > { %v19354_v7 = vpop.f32.mrb[17].mxu1  ;;  %7582 = vmatprep.mubr.bf16.mxu1 %v22776_v6 }
 0x57f   : > { %v19361_v38 = vpop.f32.mrb[18].mxu1  ;;  %v19374_v34 = vpop.permute.xlu0 %1949 }
 0x580   : > { %2174 = vperm.xlu1 %16218, %v1560_v17   ;;  %v1562_v17 = vld [vmem:[%s22582_s2 + $0x3d8] sm:$0xff]  ;;  %22791 = vst [vmem:[#allocation60_spill] sm:$0xff] %v19374_v34  ;;  %v19414_v31 = vpop.permute.xlu1 %1904 }
 0x581   : > { %8795 = vperm.xlu0 %16217, %v8673_v60   ;;  %22796 = vst [vmem:[#allocation65_spill] sm:$0xff] %v19414_v31 }
 0x582   : > { %6730 = vmatmul.mubr.bf16.gmra.mrb[112].mxu0 %v16871_v50  ;;  %v16875_v50 = vld [vmem:[%s22581_s1 + $0x668] ss:$28 sps:$4 sm:$0xff]  }
 0x583   : > { %6739 = vmatprep.mubr.bf16.mxu0 %v16873_v18  ;;  %v16877_v18 = vld [vmem:[%s22581_s1 + $0x6a4] ss:$28 sps:$4 sm:$0xff]   ;;  %v19390_v45 = vpop.permute.xlu0 %1959 }
 0x584   : > { %2184 = vperm.xlu1 %16218, %v1562_v17   ;;  %v19366_v17 = vpop.f32.mrb[19].mxu1  ;;  %22793 = vst [vmem:[#allocation62_spill] sm:$0xff] %v19390_v45  ;;  %v16944_v45 = vld [vmem:[%s22581_s1 + $0xa28] ss:$28 sps:$4 sm:$0xff]   ;;  %v19432_v31 = vpop.permute.xlu1 %1914 }
 0x585   : > { %v19388_v12 = vpop.f32.mrb[20].mxu1  ;;  %7583 = vmatmul.mubr.bf16.gmra.mrb[128].mxu1 %v16944_v45  ;;  %8805 = vperm.xlu0 %16217, %v8675_v24   ;;  %22798 = vst [vmem:[#allocation67_spill] sm:$0xff] %v19432_v31  ;;  %v8677_v24 = vld [vmem:[%s22584_s4 + $0x90] sm:$0xff]  ;;  %v8679_v31 = vld [vmem:[%s22584_s4 + $0xa0] sm:$0xff] }
 0x586   : > { %v19392_v34 = vpop.f32.mrb[21].mxu1  ;;  %7592 = vmatprep.mubr.bf16.mxu1 %v22776_v6 }
 0x587   : > { %v19399_v42 = vpop.f32.mrb[22].mxu1  ;;  %v19412_v11 = vpop.permute.xlu0 %1969 }
 0x588   : > { %2194 = vperm.xlu1 %16218, %v1564_v4   ;;  %v1566_v4 = vld [vmem:[%s22582_s2 + $0x3f8] sm:$0xff]  ;;  %22795 = vst [vmem:[#allocation64_spill] sm:$0xff] %v19412_v11  ;;  %v19452_v26 = vpop.permute.xlu1 %1924 }
 0x589   : > { %8815 = vperm.xlu0 %16217, %v8677_v24   ;;  %22800 = vst [vmem:[#allocation69_spill] sm:$0xff] %v19452_v26 }
 0x58a   : > { %6740 = vmatmul.mubr.bf16.gmra.mrb[116].mxu0 %v16875_v50  ;;  %v16879_v50 = vld [vmem:[%s22581_s1 + $0x6a0] ss:$28 sps:$4 sm:$0xff]  }
 0x58b   : > { %6749 = vmatprep.mubr.bf16.mxu0 %v16877_v18  ;;  %v16881_v18 = vld [vmem:[%s22581_s1 + $0x6dc] ss:$28 sps:$4 sm:$0xff]   ;;  %v19428_v45 = vpop.permute.xlu0 %1979 }
 0x58c   : > { %2204 = vperm.xlu1 %16218, %v1566_v4   ;;  %v19404_v4 = vpop.f32.mrb[23].mxu1  ;;  %22797 = vst [vmem:[#allocation66_spill] sm:$0xff] %v19428_v45  ;;  %v16948_v45 = vld [vmem:[%s22581_s1 + $0xa60] ss:$28 sps:$4 sm:$0xff]   ;;  %v19470_v26 = vpop.permute.xlu1 %1934 }
 0x58d   : > { %v19426_v60 = vpop.f32.mrb[24].mxu1  ;;  %7593 = vmatmul.mubr.bf16.gmra.mrb[132].mxu1 %v16948_v45  ;;  %8825 = vperm.xlu0 %16217, %v8679_v31   ;;  %22803 = vst [vmem:[#allocation72_spill] sm:$0xff] %v19470_v26  ;;  %v8681_v31 = vld [vmem:[%s22584_s4 + $0xb0] sm:$0xff]  ;;  %v8683_v26 = vld [vmem:[%s22584_s4 + $0xc0] sm:$0xff] }
 0x58e   : > { %v19430_v11 = vpop.f32.mrb[25].mxu1  ;;  %7602 = vmatprep.mubr.bf16.mxu1 %v22776_v6 }
 0x58f   : > { %v19437_v3 = vpop.f32.mrb[26].mxu1  ;;  %v19450_v43 = vpop.permute.xlu0 %1989 }
 0x590   : > { %8730 = vperm.xlu1 %16218, %v8660_v2   ;;  %v8662_v2 = vld [vmem:[%s22584_s4 + $0x18] sm:$0xff]  ;;  %22799 = vst [vmem:[#allocation68_spill] sm:$0xff] %v19450_v43  ;;  %v19490_v47 = vpop.permute.xlu1 %1944 }
 0x591   : > { %8835 = vperm.xlu0 %16217, %v8681_v31   ;;  %22807 = vst [vmem:[#allocation76_spill] sm:$0xff] %v19490_v47 }
 0x592   : > { %6750 = vmatmul.mubr.bf16.gmra.mrb[120].mxu0 %v16879_v50  ;;  %v16883_v50 = vld [vmem:[%s22581_s1 + $0x6d8] ss:$28 sps:$4 sm:$0xff]  }
 0x593   : > { %6759 = vmatprep.mubr.bf16.mxu0 %v16881_v18  ;;  %v16885_v18 = vld [vmem:[%s22581_s1 + $0x714] ss:$28 sps:$4 sm:$0xff]   ;;  %v19466_v45 = vpop.permute.xlu0 %1999 }
 0x594   : > { %8740 = vperm.xlu1 %16218, %v8662_v2   ;;  %v19442_v2 = vpop.f32.mrb[27].mxu1  ;;  %22801 = vst [vmem:[#allocation70_spill] sm:$0xff] %v19466_v45  ;;  %v16952_v45 = vld [vmem:[%s22581_s1 + $0xa98] ss:$28 sps:$4 sm:$0xff]   ;;  %v19508_v47 = vpop.permute.xlu1 %1954 }
 0x595   : > { %v19464_v24 = vpop.f32.mrb[28].mxu1  ;;  %7603 = vmatmul.mubr.bf16.gmra.mrb[136].mxu1 %v16952_v45  ;;  %8845 = vperm.xlu0 %16217, %v8683_v26   ;;  %22811 = vst [vmem:[#allocation80_spill] sm:$0xff] %v19508_v47  ;;  %v8685_v26 = vld [vmem:[%s22584_s4 + $0xd0] sm:$0xff]  ;;  %v8687_v47 = vld [vmem:[%s22584_s4 + $0xe0] sm:$0xff] }
 0x596   : > { %v19468_v43 = vpop.f32.mrb[29].mxu1  ;;  %7612 = vmatprep.mubr.bf16.mxu1 %v22776_v6 }
 0x597   : > { %22802 = vst [vmem:[#allocation71_spill] sm:$0xff] %v19468_v43  ;;  %v19475_v32 = vpop.f32.mrb[30].mxu1  ;;  %v19488_v13 = vpop.permute.xlu0 %2009 }
 0x598   : > { %8750 = vperm.xlu1 %16218, %v8664_v21   ;;  %v8666_v21 = vld [vmem:[%s22584_s4 + $0x38] sm:$0xff]  ;;  %22804 = vst [vmem:[#allocation73_spill] sm:$0xff] %v19475_v32  ;;  %22806 = vst [vmem:[#allocation75_spill] sm:$0xff] %v19488_v13  ;;  %v19526_v46 = vpop.permute.xlu1 %1964 }
 0x599   : > { %8855 = vperm.xlu0 %16217, %v8685_v26   ;;  %22814 = vst [vmem:[#allocation83_spill] sm:$0xff] %v19526_v46  ;;  %v8674_v26 = vld [vmem:[%s22584_s4 + $0x78] sm:$0xff] }
 0x59a   : > { %6760 = vmatmul.mubr.bf16.gmra.mrb[124].mxu0 %v16883_v50  ;;  %v16887_v50 = vld [vmem:[%s22581_s1 + $0x710] ss:$28 sps:$4 sm:$0xff]  }
 0x59b   : > { %6769 = vmatprep.mubr.bf16.mxu0 %v16885_v18  ;;  %v16889_v18 = vld [vmem:[%s22581_s1 + $0x74c] ss:$28 sps:$4 sm:$0xff]   ;;  %v19504_v45 = vpop.permute.xlu0 %2019 }
 0x59c   : > { %8760 = vperm.xlu1 %16218, %v8666_v21   ;;  %v19480_v21 = vpop.f32.mrb[31].mxu1  ;;  %22809 = vst [vmem:[#allocation78_spill] sm:$0xff] %v19504_v45  ;;  %v16956_v45 = vld [vmem:[%s22581_s1 + $0xad0] ss:$28 sps:$4 sm:$0xff]   ;;  %v19544_v57 = vpop.permute.xlu1 %1974 }
 0x59d   : > { %22805 = vst [vmem:[#allocation74_spill] sm:$0xff] %v19480_v21  ;;  %v19502_v31 = vpop.f32.mrb[32].mxu1  ;;  %7613 = vmatmul.mubr.bf16.gmra.mrb[140].mxu1 %v16956_v45  ;;  %8865 = vperm.xlu0 %16217, %v8687_v47   ;;  %22818 = vst [vmem:[#allocation87_spill] sm:$0xff] %v19544_v57  ;;  %v8689_v47 = vld [vmem:[%s22584_s4 + $0xf0] sm:$0xff]  ;;  %v8691_v57 = vld [vmem:[%s22584_s4 + $0x100] sm:$0xff] }
 0x59e   : > { %22808 = vst [vmem:[#allocation77_spill] sm:$0xff] %v19502_v31  ;;  %v19506_v13 = vpop.f32.mrb[33].mxu1  ;;  %7622 = vmatprep.mubr.bf16.mxu1 %v22776_v6 }
 0x59f   : > { %22810 = vst [vmem:[#allocation79_spill] sm:$0xff] %v19506_v13  ;;  %v19513_v61 = vpop.f32.mrb[34].mxu1 }
 0x5a0   : > { %8770 = vperm.xlu1 %16218, %v8668_v41   ;;  %v8670_v41 = vld [vmem:[%s22584_s4 + $0x58] sm:$0xff]  ;;  %22812 = vst [vmem:[#allocation81_spill] sm:$0xff] %v19513_v61 }
 0x5a1   : > { %8875 = vperm.xlu0 %16217, %v8689_v47  }
 0x5a2   : > { %6770 = vmatmul.mubr.bf16.gmra.mrb[128].mxu0 %v16887_v50  ;;  %v16891_v50 = vld [vmem:[%s22581_s1 + $0x748] ss:$28 sps:$4 sm:$0xff]  }
 0x5a3   : > { %6779 = vmatprep.mubr.bf16.mxu0 %v16889_v18  ;;  %v16893_v18 = vld [vmem:[%s22581_s1 + $0x784] ss:$28 sps:$4 sm:$0xff]  }
 0x5a4   : > { %8780 = vperm.xlu1 %16218, %v8670_v41   ;;  %v19518_v41 = vpop.f32.mrb[35].mxu1 }
 0x5a5   : > { %22813 = vst [vmem:[#allocation82_spill] sm:$0xff] %v19518_v41  ;;  %v19540_v45 = vpop.f32.mrb[36].mxu1  ;;  %v8676_v41 = vld [vmem:[%s22584_s4 + $0x88] sm:$0xff]  ;;  %8885 = vperm.xlu0 %16217, %v8691_v57  }
 0x5a6   : > { %22816 = vst [vmem:[#allocation85_spill] sm:$0xff] %v19540_v45  ;;  %v19542_v46 = vpop.f32.mrb[37].mxu1 }
 0x5a7   : > { %22817 = vst [vmem:[#allocation86_spill] sm:$0xff] %v19542_v46  ;;  %v19549_v33 = vpop.f32.mrb[38].mxu1  ;;  %v19564_v46 = vpop.permute.xlu1 %1984 }
 0x5a8   : > { %8790 = vperm.xlu1 %16218, %v8672_v63   ;;  %v16897_v63 = vld [vmem:[%s22581_s1 + $0x7bc] ss:$28 sps:$4 sm:$0xff]   ;;  %22819 = vst [vmem:[#allocation88_spill] sm:$0xff] %v19549_v33  ;;  %22822 = vst [vmem:[#allocation91_spill] sm:$0xff] %v19564_v46  ;;  %v8693_v46 = vld [vmem:[%s22584_s4 + $0x110] sm:$0xff] }
 0x5a9   : > { %8895 = vperm.xlu0 %16217, %v8693_v46   ;;  %v16903_v46 = vld [vmem:[%s22581_s1 + $0x7f0] ss:$28 sps:$4 sm:$0xff]  }
 0x5aa   : > { %6780 = vmatmul.mubr.bf16.gmra.mrb[132].mxu0 %v16891_v50  ;;  %v16895_v50 = vld [vmem:[%s22581_s1 + $0x780] ss:$28 sps:$4 sm:$0xff]  }
 0x5ab   : > { %6789 = vmatprep.mubr.bf16.mxu0 %v16893_v18  ;;  %v19538_v18 = vpop.permute.xlu0 %2029 }
 0x5ac   : > { %22815 = vst [vmem:[#allocation84_spill] sm:$0xff] %v19538_v18  ;;  %8800 = vperm.xlu1 %16218, %v8674_v26   ;;  %v19554_v18 = vpop.f32.mrb[39].mxu1  ;;  %v16960_v26 = vld [vmem:[%s22581_s1 + $0xb08] ss:$28 sps:$4 sm:$0xff]  }
 0x5ad   : > { %22820 = vst [vmem:[#allocation89_spill] sm:$0xff] %v19554_v18  ;;  %7623 = vmatmul.mubr.bf16.gmra.mrb[144].mxu1 %v16960_v26  ;;  %v19576_v47 = vpop.f32.mrb[40].mxu1  ;;  %v8680_v18 = vld [vmem:[%s22584_s4 + $0xa8] sm:$0xff] }
 0x5ae   : > { %7632 = vmatprep.mubr.bf16.mxu1 %v22776_v6  ;;  %22823 = vst [vmem:[#allocation92_spill] sm:$0xff] %v19576_v47  ;;  %v19578_v26 = vpop.f32.mrb[41].mxu1 }
 0x5af   : > { %v19562_v33 = vpop.permute.xlu0 %2039  ;;  %22824 = vst [vmem:[#allocation93_spill] sm:$0xff] %v19578_v26  ;;  %v19585_v57 = vpop.f32.mrb[42].mxu1 }
 0x5b0   : > { %8810 = vperm.xlu1 %16218, %v8676_v41   ;;  %22821 = vst [vmem:[#allocation90_spill] sm:$0xff] %v19562_v33  ;;  %v8678_v41 = vld [vmem:[%s22584_s4 + $0x98] sm:$0xff]  ;;  %v19580_v33 = vpop.permute.xlu1 %1994  ;;  %22826 = vst [vmem:[#allocation95_spill] sm:$0xff] %v19585_v57  ;;  %v19590_v45 = vpop.f32.mrb[43].mxu1  ;;  %v8695_v57 = vld [vmem:[%s22584_s4 + $0x120] sm:$0xff] }
 0x5b1   : > { %22825 = vst [vmem:[#allocation94_spill] sm:$0xff] %v19580_v33  ;;  %22827 = vst [vmem:[#allocation96_spill] sm:$0xff] %v19590_v45  ;;  %8905 = vperm.xlu0 %16217, %v8695_v57   ;;  %v8684_v45 = vld [vmem:[%s22584_s4 + $0xc8] sm:$0xff] }
 0x5b2   : > { %6790 = vmatmul.mubr.bf16.gmra.mrb[136].mxu0 %v16895_v50  ;;  %v16899_v50 = vld [vmem:[%s22581_s1 + $0x7b8] ss:$28 sps:$4 sm:$0xff]  }
 0x5b3   : > { %6799 = vmatprep.mubr.bf16.mxu0 %v16897_v63  ;;  %v16901_v63 = vld [vmem:[%s22581_s1 + $0x7f4] ss:$28 sps:$4 sm:$0xff]   ;;  %v19595_v33 = vpop.permute.xlu0 %2049 }
 0x5b4   : > { %8820 = vperm.xlu1 %16218, %v8678_v41   ;;  %v16964_v41 = vld [vmem:[%s22581_s1 + $0xb40] ss:$28 sps:$4 sm:$0xff]   ;;  %22828 = vst [vmem:[#allocation97_spill] sm:$0xff] %v19595_v33  ;;  %v19600_v26 = vpop.permute.xlu1 %2004 }
 0x5b5   : > { %7633 = vmatmul.mubr.bf16.gmra.mrb[148].mxu1 %v16964_v41  ;;  %22829 = vst [vmem:[#allocation98_spill] sm:$0xff] %v19600_v26  ;;  %v8697_v26 = vld [vmem:[%s22584_s4 + $0x130] sm:$0xff] }
 0x5b6   : > { %7642 = vmatprep.mubr.bf16.mxu1 %v22776_v6  ;;  %8915 = vperm.xlu0 %16217, %v8697_v26   ;;  %v8686_v26 = vld [vmem:[%s22584_s4 + $0xd8] sm:$0xff] }
 0x5b7   : > { %v19616_v33 = vpop.permute.xlu0 %2059 }
 0x5b8   : > { %8830 = vperm.xlu1 %16218, %v8680_v18   ;;  %v16905_v18 = vld [vmem:[%s22581_s1 + $0x82c] ss:$28 sps:$4 sm:$0xff]   ;;  %22832 = vst [vmem:[#allocation101_spill] sm:$0xff] %v19616_v33  ;;  %v19626_v47 = vpop.permute.xlu1 %2014  ;;  %v16968_v33 = vld [vmem:[%s22581_s1 + $0xb78] ss:$28 sps:$4 sm:$0xff]  }
 0x5b9   : > { %22834 = vst [vmem:[#allocation103_spill] sm:$0xff] %v19626_v47 }
 0x5ba   : > { %6800 = vmatmul.mubr.bf16.gmra.mrb[140].mxu0 %v16899_v50  ;;  %v8682_v50 = vld [vmem:[%s22584_s4 + $0xb8] sm:$0xff] }
 0x5bb   : > { %6809 = vmatprep.mubr.bf16.mxu0 %v16901_v63  ;;  %v19612_v63 = vpop.f32.mrb[44].mxu1 }
 0x5bc   : > { %8840 = vperm.xlu1 %16218, %v8682_v50   ;;  %22830 = vst [vmem:[#allocation99_spill] sm:$0xff] %v19612_v63  ;;  %v19614_v41 = vpop.f32.mrb[45].mxu1  ;;  %v8688_v63 = vld [vmem:[%s22584_s4 + $0xe8] sm:$0xff] }
 0x5bd   : > { %22831 = vst [vmem:[#allocation100_spill] sm:$0xff] %v19614_v41  ;;  %v19621_v57 = vpop.f32.mrb[46].mxu1  ;;  %7643 = vmatmul.mubr.bf16.gmra.mrb[152].mxu1 %v16968_v33  ;;  %v19650_v33 = vpop.permute.xlu1 %2024 }
 0x5be   : > { %22833 = vst [vmem:[#allocation102_spill] sm:$0xff] %v19621_v57  ;;  %v19628_v50 = vpop.f32.mrb[47].mxu1  ;;  %v8699_v57 = vld [vmem:[%s22584_s4 + $0x140] sm:$0xff]  ;;  %7652 = vmatprep.mubr.bf16.mxu1 %v22776_v6  ;;  %22838 = vst [vmem:[#allocation107_spill] sm:$0xff] %v19650_v33 }
 0x5bf   : > { %22835 = vst [vmem:[#allocation104_spill] sm:$0xff] %v19628_v50  ;;  %8925 = vperm.xlu0 %16217, %v8699_v57   ;;  %v19648_v47 = vpop.f32.mrb[48].mxu1  ;;  %v8701_v57 = vld [vmem:[%s22584_s4 + $0x150] sm:$0xff]  ;;  %v8703_v33 = vld [vmem:[%s22584_s4 + $0x160] sm:$0xff] }
 0x5c0   : > { %8850 = vperm.xlu1 %16218, %v8684_v45   ;;  %v16909_v45 = vld [vmem:[%s22581_s1 + $0x864] ss:$28 sps:$4 sm:$0xff]   ;;  %22837 = vst [vmem:[#allocation106_spill] sm:$0xff] %v19648_v47  ;;  %v19652_v50 = vpop.f32.mrb[49].mxu1 }
 0x5c1   : > { %22839 = vst [vmem:[#allocation108_spill] sm:$0xff] %v19652_v50  ;;  %v19657_v41 = vpop.f32.mrb[50].mxu1 }
 0x5c2   : > { %6810 = vmatmul.mubr.bf16.gmra.mrb[144].mxu0 %v16903_v46  ;;  %v16907_v46 = vld [vmem:[%s22581_s1 + $0x828] ss:$28 sps:$4 sm:$0xff]   ;;  %22840 = vst [vmem:[#allocation109_spill] sm:$0xff] %v19657_v41 }
 0x5c3   : > { %6819 = vmatprep.mubr.bf16.mxu0 %v16905_v18  ;;  %v19646_v18 = vpop.permute.xlu0 %2069  ;;  %8935 = vperm.xlu0 %16217, %v8701_v57   ;;  %v19676_v57 = vpop.permute.xlu1 %2034 }
 0x5c4   : > { %22836 = vst [vmem:[#allocation105_spill] sm:$0xff] %v19646_v18  ;;  %8860 = vperm.xlu1 %16218, %v8686_v26   ;;  %v19662_v18 = vpop.f32.mrb[51].mxu1  ;;  %v16972_v26 = vld [vmem:[%s22581_s1 + $0xbb0] ss:$28 sps:$4 sm:$0xff]   ;;  %22843 = vst [vmem:[#allocation112_spill] sm:$0xff] %v19676_v57 }
 0x5c5   : > { %22841 = vst [vmem:[#allocation110_spill] sm:$0xff] %v19662_v18  ;;  %7653 = vmatmul.mubr.bf16.gmra.mrb[156].mxu1 %v16972_v26  ;;  %v19684_v26 = vpop.f32.mrb[52].mxu1  ;;  %v8705_v18 = vld [vmem:[%s22584_s4 + $0x170] sm:$0xff] }
 0x5c6   : > { %7662 = vmatprep.mubr.bf16.mxu1 %v22776_v6  ;;  %22844 = vst [vmem:[#allocation113_spill] sm:$0xff] %v19684_v26 }
 0x5c7   : > { %v19670_v41 = vpop.permute.xlu0 %2079  ;;  %8945 = vperm.xlu0 %16217, %v8703_v33   ;;  %v8692_v33 = vld [vmem:[%s22584_s4 + $0x108] sm:$0xff]  ;;  %v19706_v26 = vpop.permute.xlu1 %2044 }
 0x5c8   : > { %8870 = vperm.xlu1 %16218, %v8688_v63   ;;  %22842 = vst [vmem:[#allocation111_spill] sm:$0xff] %v19670_v41  ;;  %v8690_v63 = vld [vmem:[%s22584_s4 + $0xf8] sm:$0xff]  ;;  %v19686_v41 = vpop.f32.mrb[53].mxu1  ;;  %22849 = vst [vmem:[#allocation118_spill] sm:$0xff] %v19706_v26  ;;  %v8709_v26 = vld [vmem:[%s22584_s4 + $0x190] sm:$0xff] }
 0x5c9   : > { %22845 = vst [vmem:[#allocation114_spill] sm:$0xff] %v19686_v41  ;;  %v19691_v50 = vpop.f32.mrb[54].mxu1 }
 0x5ca   : > { %6820 = vmatmul.mubr.bf16.gmra.mrb[148].mxu0 %v16907_v46  ;;  %v16911_v46 = vld [vmem:[%s22581_s1 + $0x860] ss:$28 sps:$4 sm:$0xff]   ;;  %22846 = vst [vmem:[#allocation115_spill] sm:$0xff] %v19691_v50  ;;  %v19696_v57 = vpop.f32.mrb[55].mxu1 }
 0x5cb   : > { %6829 = vmatprep.mubr.bf16.mxu0 %v16909_v45  ;;  %v16913_v45 = vld [vmem:[%s22581_s1 + $0x89c] ss:$28 sps:$4 sm:$0xff]   ;;  %8955 = vperm.xlu0 %16217, %v8705_v18   ;;  %22847 = vst [vmem:[#allocation116_spill] sm:$0xff] %v19696_v57  ;;  %v19701_v41 = vpop.permute.xlu0 %2089  ;;  %v8707_v50 = vld [vmem:[%s22584_s4 + $0x180] sm:$0xff]  ;;  %v8696_v57 = vld [vmem:[%s22584_s4 + $0x128] sm:$0xff]  ;;  %v19732_v47 = vpop.permute.xlu1 %2054 }
 0x5cc   : > { %8880 = vperm.xlu1 %16218, %v8690_v63   ;;  %v16976_v63 = vld [vmem:[%s22581_s1 + $0xbe8] ss:$28 sps:$4 sm:$0xff]   ;;  %22848 = vst [vmem:[#allocation117_spill] sm:$0xff] %v19701_v41  ;;  %v16915_v18 = vld [vmem:[%s22581_s1 + $0x898] ss:$28 sps:$4 sm:$0xff]   ;;  %22854 = vst [vmem:[#allocation123_spill] sm:$0xff] %v19732_v47 }
 0x5cd   : > { %7663 = vmatmul.mubr.bf16.gmra.mrb[160].mxu1 %v16976_v63 }
 0x5ce   : > { %7672 = vmatprep.mubr.bf16.mxu1 %v22776_v6 }
 0x5cf   : > { %8965 = vperm.xlu0 %16217, %v8707_v50   ;;  %v19722_v63 = vpop.permute.xlu0 %2099 }
 0x5d0   : > { %8890 = vperm.xlu1 %16218, %v8692_v33   ;;  %v19718_v33 = vpop.f32.mrb[56].mxu1  ;;  %22852 = vst [vmem:[#allocation121_spill] sm:$0xff] %v19722_v63  ;;  %v16980_v63 = vld [vmem:[%s22581_s1 + $0xc20] ss:$28 sps:$4 sm:$0xff]  }
 0x5d1   : > { %22850 = vst [vmem:[#allocation119_spill] sm:$0xff] %v19718_v33  ;;  %v19720_v41 = vpop.f32.mrb[57].mxu1  ;;  %v8700_v33 = vld [vmem:[%s22584_s4 + $0x148] sm:$0xff] }
 0x5d2   : > { %6830 = vmatmul.mubr.bf16.gmra.mrb[152].mxu0 %v16911_v46  ;;  %v8694_v46 = vld [vmem:[%s22584_s4 + $0x118] sm:$0xff]  ;;  %22851 = vst [vmem:[#allocation120_spill] sm:$0xff] %v19720_v41  ;;  %v19727_v50 = vpop.f32.mrb[58].mxu1 }
 0x5d3   : > { %6839 = vmatprep.mubr.bf16.mxu0 %v16913_v45  ;;  %v16917_v45 = vld [vmem:[%s22581_s1 + $0x8d4] ss:$28 sps:$4 sm:$0xff]   ;;  %22853 = vst [vmem:[#allocation122_spill] sm:$0xff] %v19727_v50  ;;  %8975 = vperm.xlu0 %16217, %v8709_v26   ;;  %v8711_v50 = vld [vmem:[%s22584_s4 + $0x1a0] sm:$0xff]  ;;  %v8698_v26 = vld [vmem:[%s22584_s4 + $0x138] sm:$0xff] }
 0x5d4   : > { %8900 = vperm.xlu1 %16218, %v8694_v46   ;;  %v19734_v46 = vpop.f32.mrb[59].mxu1 }
 0x5d5   : > { %22855 = vst [vmem:[#allocation124_spill] sm:$0xff] %v19734_v46  ;;  %7673 = vmatmul.mubr.bf16.gmra.mrb[164].mxu1 %v16980_v63  ;;  %v19754_v47 = vpop.f32.mrb[60].mxu1  ;;  %v19756_v63 = vpop.permute.xlu1 %2064 }
 0x5d6   : > { %7682 = vmatprep.mubr.bf16.mxu1 %v22776_v6  ;;  %22857 = vst [vmem:[#allocation126_spill] sm:$0xff] %v19754_v47  ;;  %22858 = vst [vmem:[#allocation127_spill] sm:$0xff] %v19756_v63  ;;  %v19758_v46 = vpop.f32.mrb[61].mxu1  ;;  %v8715_v63 = vld [vmem:[%s22584_s4 + $0x1c0] sm:$0xff] }
 0x5d7   : > { %8985 = vperm.xlu0 %16217, %v8711_v50   ;;  %22859 = vst [vmem:[#allocation128_spill] sm:$0xff] %v19758_v46  ;;  %v8713_v50 = vld [vmem:[%s22584_s4 + $0x1b0] sm:$0xff]  ;;  %v19763_v41 = vpop.f32.mrb[62].mxu1 }
 0x5d8   : > { %8910 = vperm.xlu1 %16218, %v8696_v57   ;;  %v16921_v57 = vld [vmem:[%s22581_s1 + $0x90c] ss:$28 sps:$4 sm:$0xff]   ;;  %22860 = vst [vmem:[#allocation129_spill] sm:$0xff] %v19763_v41 }
 0x5d9   : > { %v19783_v47 = vpop.permute.xlu1 %2074 }
 0x5da   : > { %6840 = vmatmul.mubr.bf16.gmra.mrb[156].mxu0 %v16915_v18  ;;  %v16919_v18 = vld [vmem:[%s22581_s1 + $0x8d0] ss:$28 sps:$4 sm:$0xff]   ;;  %22863 = vst [vmem:[#allocation132_spill] sm:$0xff] %v19783_v47 }
 0x5db   : > { %6849 = vmatprep.mubr.bf16.mxu0 %v16917_v45  ;;  %v19752_v45 = vpop.permute.xlu0 %2109  ;;  %8995 = vperm.xlu0 %16217, %v8713_v50  }
 0x5dc   : > { %22856 = vst [vmem:[#allocation125_spill] sm:$0xff] %v19752_v45  ;;  %8920 = vperm.xlu1 %16218, %v8698_v26   ;;  %v19768_v45 = vpop.f32.mrb[63].mxu1  ;;  %v16984_v26 = vld [vmem:[%s22581_s1 + $0xc58] ss:$28 sps:$4 sm:$0xff]  }
 0x5dd   : > { %22861 = vst [vmem:[#allocation130_spill] sm:$0xff] %v19768_v45  ;;  %7683 = vmatmul.mubr.bf16.gmra.mrb[168].mxu1 %v16984_v26  ;;  %v16923_v45 = vld [vmem:[%s22581_s1 + $0x908] ss:$28 sps:$4 sm:$0xff]  }
 0x5de   : > { %7692 = vmatprep.mubr.bf16.mxu1 %v22776_v6 }
 0x5df   : > { %v19776_v46 = vpop.permute.xlu0 %2119  ;;  %9005 = vperm.xlu0 %16217, %v8715_v63  }
 0x5e0   : > { %8930 = vperm.xlu1 %16218, %v8700_v33   ;;  %22862 = vst [vmem:[#allocation131_spill] sm:$0xff] %v19776_v46  ;;  %v8702_v33 = vld [vmem:[%s22584_s4 + $0x158] sm:$0xff]  ;;  %v16925_v46 = vld [vmem:[%s22581_s1 + $0x944] ss:$28 sps:$4 sm:$0xff]  }
 0x5e2   : > { %6850 = vmatmul.mubr.bf16.gmra.mrb[160].mxu0 %v16919_v18 }
 0x5e3   : > { %6859 = vmatprep.mubr.bf16.mxu0 %v16921_v57 }
 0x5e4   : > { %8940 = vperm.xlu1 %16218, %v8702_v33   ;;  %v8704_v33 = vld [vmem:[%s22584_s4 + $0x168] sm:$0xff] }
 0x5e5   : > { %v6591_v41 = vpop.f32.mrb[56].mxu0 }
 0x5e6   : > { %v14566_v18 = vadd.f32 %v6591_v41, %v18979_v14  ;;  %v6593_v50 = vpop.f32.mrb[57].mxu0  ;;  %v19792_v41 = vpop.f32.mrb[64].mxu1 }
 0x5e7   : > { %v14568_v57 = vadd.f32 %v6593_v50, %v18979_v14  ;;  %v6595_v26 = vpop.f32.mrb[58].mxu0  ;;  %22864 = vst [vmem:[#allocation133_spill] sm:$0xff] %v19792_v41  ;;  %v19795_v31 = vpop.f32.mrb[65].mxu1  ;;  %v8717_v14 = vld [vmem:[%s22584_s4 + $0x1d0] sm:$0xff] }
 0x5e8   : > { %v14570_v61 = vadd.f32 %v6595_v26, %v19081_v5  ;;  %v6597_v13 = vpop.f32.mrb[59].mxu0  ;;  %22865 = vst [vmem:[#allocation134_spill] sm:$0xff] %v19795_v31  ;;  %v14567_v63 = vadd.f32 %v14566_v18, %v19198_v0  ;;  %v19802_v50 = vpop.f32.mrb[66].mxu1  ;;  %9015 = vperm.xlu0 %16217, %v8717_v14   ;;  %8950 = vperm.xlu1 %16218, %v8704_v33   ;;  %v8719_v18 = vld [vmem:[%s22584_s4 + $0x1e0] sm:$0xff] }
 0x5e9   : > { %v14572_v47 = vadd.f32 %v6597_v13, %v19081_v5  ;;  %22866 = vst [vmem:[#allocation135_spill] sm:$0xff] %v19802_v50  ;;  %v14569_v41 = vadd.f32 %v14568_v57, %v19202_v8  ;;  %v19808_v26 = vpop.f32.mrb[67].mxu1  ;;  %v16988_v5 = vld [vmem:[%s22581_s1 + $0xc90] ss:$28 sps:$4 sm:$0xff]   ;;  %v19818_v14 = vpop.permute.xlu0 %2129 }
 0x5ea   : > { %6860 = vmatmul.mubr.bf16.gmra.mrb[164].mxu0 %v16923_v45  ;;  %22867 = vst [vmem:[#allocation136_spill] sm:$0xff] %v19808_v26  ;;  %v14571_v13 = vadd.f32 %v14570_v61, %v19209_v23  ;;  %v7819_v0 = vmul.f32 0.01, %v14567_v63  ;;  %7693 = vmatmul.mubr.bf16.gmra.mrb[172].mxu1 %v16988_v5  ;;  %22868 = vst [vmem:[#allocation137_spill] sm:$0xff] %v19818_v14  ;;  %v19825_v33 = vpop.permute.xlu1 %2084  ;;  %v19834_v16 = vpop.f32.mrb[68].mxu1 }
 0x5eb   : > { %6869 = vmatprep.mubr.bf16.mxu0 %v16925_v46  ;;  %v14573_v50 = vadd.f32 %v14572_v47, %v19214_v35  ;;  %v7820_v8 = vmul.f32 0.01, %v14569_v41  ;;  %7702 = vmatprep.mubr.bf16.mxu1 %v22776_v6  ;;  %v16927_v46 = vld [vmem:[%s22581_s1 + $0x940] ss:$28 sps:$4 sm:$0xff]   ;;  %22869 = vst [vmem:[#allocation138_spill] sm:$0xff] %v19825_v33  ;;  %v19837_v32 = vpop.f32.mrb[69].mxu1 }
 0x5ec   : > { %v7821_v45 = vmul.f32 0.01, %v14571_v13  ;;  %9025 = vperm.xlu0 %16217, %v8719_v18   ;;  %v8706_v35 = vld [vmem:[%s22584_s4 + $0x178] sm:$0xff]  ;;  %v8075_v47 = vmax.f32 %v14567_v63, %v7819_v0  ;;  %v19846_v0 = vpop.f32.mrb[70].mxu1 }
 0x5ed   : > { %v6601_v57 = vpop.f32.mrb[60].mxu0  ;;  %v7822_v26 = vmul.f32 0.01, %v14573_v50  ;;  %8960 = vperm.xlu1 %16218, %v8706_v35   ;;  %v8076_v20 = vmax.f32 %v14569_v41, %v7820_v8  ;;  %v8708_v41 = vld [vmem:[%s22584_s4 + $0x188] sm:$0xff] }
 0x5ee   : > { %v14574_v61 = vadd.f32 %v6601_v57, %v18996_v22  ;;  %v6603_v23 = vpop.f32.mrb[61].mxu0  ;;  %v8077_v5 = vmax.f32 %v14571_v13, %v7821_v45  ;;  %v16929_v57 = vld [vmem:[%s22581_s1 + $0x97c] ss:$28 sps:$4 sm:$0xff]   ;;  %v8721_v13 = vld [vmem:[%s22584_s4 + $0x1f0] sm:$0xff]  ;;  %v19864_v45 = vpop.permute.xlu0 %2139 }
 0x5ef   : > { %v14576_v14 = vadd.f32 %v6603_v23, %v18996_v22  ;;  %v6605_v31 = vpop.f32.mrb[62].mxu0  ;;  %v8078_v21 = vmax.f32 %v14573_v50, %v7822_v26  ;;  %v19854_v26 = vpop.f32.mrb[71].mxu1  ;;  %22872 = vst [vmem:[#allocation141_spill] sm:$0xff] %v19864_v45 }
 0x5f0   : > { %v14578_v18 = vadd.f32 %v6605_v31, %v19091_v15  ;;  %v6607_v33 = vpop.f32.mrb[63].mxu0  ;;  %v19839_v43 = vpack.c.bf16 %v8077_v5, %v8075_v47  ;;  %v14575_v63 = vadd.f32 %v14574_v61, %v19236_v27  ;;  %9035 = vperm.xlu0 %16217, %v8721_v13   ;;  %v19871_v35 = vpop.permute.xlu1 %2094 }
 0x5f1   : > { %v14580_v22 = vadd.f32 %v6607_v33, %v19091_v15  ;;  %v19851_v31 = vpack.c.bf16 %v8078_v21, %v8076_v20  ;;  %v14577_v50 = vadd.f32 %v14576_v14, %v19240_v51  ;;  %v16992_v15 = vld [vmem:[%s22581_s1 + $0xcc8] ss:$28 sps:$4 sm:$0xff]   ;;  %8970 = vperm.xlu1 %16218, %v8708_v41   ;;  %v16931_v33 = vld [vmem:[%s22581_s1 + $0x978] ss:$28 sps:$4 sm:$0xff]   ;;  %22873 = vst [vmem:[#allocation142_spill] sm:$0xff] %v19871_v35  ;;  %v19880_v13 = vpop.f32.mrb[72].mxu1 }
 0x5f2   : > { %22870 = vst [vmem:[#allocation139_spill] sm:$0xff] %v19839_v43  ;;  %6870 = vmatmul.mubr.bf16.gmra.mrb[168].mxu0 %v16927_v46  ;;  %v14579_v27 = vadd.f32 %v14578_v18, %v19247_v40  ;;  %v7823_v8 = vmul.f32 0.01, %v14575_v63  ;;  %v12119_v20 = vld [vmem:[%s22586_s6] sm:$0xff]  ;;  %7703 = vmatmul.mubr.bf16.gmra.mrb[176].mxu1 %v16992_v15  ;;  %v19883_v43 = vpop.f32.mrb[73].mxu1  ;;  %v22941_v35 = vld [vmem:[#allocation49_spill] sm:$0xff] }
 0x5f3   : > { %22871 = vst [vmem:[#allocation140_spill] sm:$0xff] %v19851_v31  ;;  %6879 = vmatprep.mubr.bf16.mxu0 %v16929_v57  ;;  %v14581_v21 = vadd.f32 %v14580_v22, %v19252_v59  ;;  %v7824_v51 = vmul.f32 0.01, %v14577_v50  ;;  %7712 = vmatprep.mubr.bf16.mxu1 %v22776_v6  ;;  %v8710_v59 = vld [vmem:[%s22584_s4 + $0x198] sm:$0xff]  ;;  %v16933_v22 = vld [vmem:[%s22581_s1 + $0x9b4] ss:$28 sps:$4 sm:$0xff]  }
 0x5f4   : > { %v7825_v14 = vmul.f32 0.01, %v14579_v27  ;;  %12153 = vperm.xlu0 %16217, %v12119_v20   ;;  %v8079_v47 = vmax.f32 %v14575_v63, %v7823_v8 }
 0x5f5   : > { %v6611_v61 = vpop.f32.mrb[64].mxu0  ;;  %v7826_v23 = vmul.f32 0.01, %v14581_v21  ;;  %8980 = vperm.xlu1 %16218, %v8710_v59   ;;  %v8080_v41 = vmax.f32 %v14577_v50, %v7824_v51  ;;  %v19894_v50 = vpop.permute.xlu0 %2149  ;;  %v16996_v51 = vld [vmem:[%s22581_s1 + $0xd00] ss:$28 sps:$4 sm:$0xff]  }
 0x5f6   : > { %v14582_v40 = vadd.f32 %v6611_v61, %v19009_v28  ;;  %v6613_v46 = vpop.f32.mrb[65].mxu0  ;;  %v8081_v5 = vmax.f32 %v14579_v27, %v7825_v14  ;;  %v19889_v27 = vpop.f32.mrb[74].mxu1  ;;  %22876 = vst [vmem:[#allocation145_spill] sm:$0xff] %v19894_v50 }
 0x5f7   : > { %v14584_v57 = vadd.f32 %v6613_v46, %v19009_v28  ;;  %v6615_v18 = vpop.f32.mrb[66].mxu0  ;;  %v8082_v15 = vmax.f32 %v14581_v21, %v7826_v23  ;;  %v19896_v21 = vpop.f32.mrb[75].mxu1 }
 0x5f8   : > { %v14586_v20 = vadd.f32 %v6615_v18, %v19111_v29  ;;  %v6617_v61 = vpop.f32.mrb[67].mxu0  ;;  %v19885_v31 = vpack.c.bf16 %v8081_v5, %v8079_v47  ;;  %v14583_v63 = vadd.f32 %v14582_v40, %v19274_v53  ;;  %v12123_v18 = vld [vmem:[%s22586_s6 + $0x20] sm:$0xff] }
 0x5f9   : > { %v14588_v28 = vadd.f32 %v6617_v61, %v19111_v29  ;;  %v19891_v8 = vpack.c.bf16 %v8082_v15, %v8080_v41  ;;  %v14585_v14 = vadd.f32 %v14584_v57, %v19278_v19  ;;  %v12121_v19 = vld [vmem:[%s22586_s6 + $0x10] sm:$0xff]  ;;  %v8712_v57 = vld [vmem:[%s22584_s4 + $0x1a8] sm:$0xff] }
 0x5fa   : > { %22874 = vst [vmem:[#allocation143_spill] sm:$0xff] %v19885_v31  ;;  %6880 = vmatmul.mubr.bf16.gmra.mrb[172].mxu0 %v16931_v33  ;;  %v14587_v23 = vadd.f32 %v14586_v20, %v19285_v9  ;;  %v7827_v53 = vmul.f32 0.01, %v14583_v63  ;;  %7713 = vmatmul.mubr.bf16.gmra.mrb[180].mxu1 %v16996_v51  ;;  %v16935_v9 = vld [vmem:[%s22581_s1 + $0x9b0] ss:$28 sps:$4 sm:$0xff]  }
 0x5fb   : > { %22875 = vst [vmem:[#allocation144_spill] sm:$0xff] %v19891_v8  ;;  %6889 = vmatprep.mubr.bf16.mxu0 %v16933_v22  ;;  %v14589_v29 = vadd.f32 %v14588_v28, %v19290_v58  ;;  %v7828_v40 = vmul.f32 0.01, %v14585_v14  ;;  %12163 = vperm.xlu0 %16217, %v12121_v19   ;;  %v19911_v58 = vpop.permute.xlu1 %2104  ;;  %v16937_v61 = vld [vmem:[%s22581_s1 + $0x9ec] ss:$28 sps:$4 sm:$0xff]   ;;  %v19923_v28 = vpop.f32.mrb[76].mxu1 }
 0x5fc   : > { %v7829_v46 = vmul.f32 0.01, %v14587_v23  ;;  %7722 = vmatprep.mubr.bf16.mxu1 %v22776_v6  ;;  %22877 = vst [vmem:[#allocation146_spill] sm:$0xff] %v19911_v58  ;;  %v8083_v22 = vmax.f32 %v14583_v63, %v7827_v53  ;;  %8990 = vperm.xlu1 %16218, %v8712_v57   ;;  %v19926_v8 = vpop.permute.xlu0 %2159  ;;  %v8714_v63 = vld [vmem:[%s22584_s4 + $0x1b8] sm:$0xff] }
 0x5fd   : > { %v6621_v33 = vpop.f32.mrb[68].mxu0  ;;  %v7830_v59 = vmul.f32 0.01, %v14589_v29  ;;  %v8084_v51 = vmax.f32 %v14585_v14, %v7828_v40  ;;  %22878 = vst [vmem:[#allocation147_spill] sm:$0xff] %v19926_v8 }
 0x5fe   : > { %v14590_v47 = vadd.f32 %v6621_v33, %v19026_v37  ;;  %v6623_v5 = vpop.f32.mrb[69].mxu0  ;;  %v8085_v41 = vmax.f32 %v14587_v23, %v7829_v46  ;;  %v19935_v46 = vpop.f32.mrb[77].mxu1 }
 0x5ff   : > { %v14592_v15 = vadd.f32 %v6623_v5, %v19026_v37  ;;  %v6625_v20 = vpop.f32.mrb[70].mxu0  ;;  %v8086_v19 = vmax.f32 %v14589_v29, %v7830_v59  ;;  %12173 = vperm.xlu0 %16217, %v12123_v18   ;;  %v19940_v40 = vpop.f32.mrb[78].mxu1  ;;  %v17000_v59 = vld [vmem:[%s22581_s1 + $0xd38] ss:$28 sps:$4 sm:$0xff]  }
 0x600   : > { %v14594_v33 = vadd.f32 %v6625_v20, %v19121_v39  ;;  %v6627_v31 = vpop.f32.mrb[71].mxu0  ;;  %v19931_v37 = vpack.c.bf16 %v8085_v41, %v8083_v22  ;;  %v14591_v23 = vadd.f32 %v14590_v47, %v19312_v52  ;;  %9000 = vperm.xlu1 %16218, %v8714_v63   ;;  %v19949_v47 = vpop.permute.xlu1 %2114  ;;  %v8716_v20 = vld [vmem:[%s22584_s4 + $0x1c8] sm:$0xff] }
 0x601   : > { %v14596_v53 = vadd.f32 %v6627_v31, %v19121_v39  ;;  %v19937_v14 = vpack.c.bf16 %v8086_v19, %v8084_v51  ;;  %v14593_v29 = vadd.f32 %v14592_v15, %v19316_v56  ;;  %v19946_v39 = vpop.f32.mrb[79].mxu1  ;;  %22881 = vst [vmem:[#allocation150_spill] sm:$0xff] %v19949_v47  ;;  %v12125_v56 = vld [vmem:[%s22586_s6 + $0x30] sm:$0xff]  ;;  %v19959_v15 = vpop.permute.xlu0 %2169 }
 0x602   : > { %22879 = vst [vmem:[#allocation148_spill] sm:$0xff] %v19931_v37  ;;  %6890 = vmatmul.mubr.bf16.gmra.mrb[176].mxu0 %v16935_v9  ;;  %v14595_v5 = vadd.f32 %v14594_v33, %v19323_v49  ;;  %v7831_v57 = vmul.f32 0.01, %v14591_v23  ;;  %7723 = vmatmul.mubr.bf16.gmra.mrb[184].mxu1 %v17000_v59  ;;  %22882 = vst [vmem:[#allocation151_spill] sm:$0xff] %v19959_v15  ;;  %v19971_v59 = vpop.f32.mrb[80].mxu1 }
 0x603   : > { %22880 = vst [vmem:[#allocation149_spill] sm:$0xff] %v19937_v14  ;;  %6899 = vmatprep.mubr.bf16.mxu0 %v16937_v61  ;;  %v14597_v52 = vadd.f32 %v14596_v53, %v19328_v36  ;;  %v7832_v31 = vmul.f32 0.01, %v14593_v29  ;;  %12183 = vperm.xlu0 %16217, %v12125_v56   ;;  %v16939_v36 = vld [vmem:[%s22581_s1 + $0x9e8] ss:$28 sps:$4 sm:$0xff]  }
 0x604   : > { %v7833_v9 = vmul.f32 0.01, %v14595_v5  ;;  %7732 = vmatprep.mubr.bf16.mxu1 %v22776_v6  ;;  %v12127_v61 = vld [vmem:[%s22586_s6 + $0x40] sm:$0xff]  ;;  %v8087_v51 = vmax.f32 %v14591_v23, %v7831_v57  ;;  %9010 = vperm.xlu1 %16218, %v8716_v20   ;;  %v8718_v23 = vld [vmem:[%s22584_s4 + $0x1d8] sm:$0xff] }
 0x605   : > { %v6631_v18 = vpop.f32.mrb[72].mxu0  ;;  %v7834_v49 = vmul.f32 0.01, %v14597_v52  ;;  %v16941_v53 = vld [vmem:[%s22581_s1 + $0xa24] ss:$28 sps:$4 sm:$0xff]   ;;  %v8088_v56 = vmax.f32 %v14593_v29, %v7832_v31 }
 0x606   : > { %v14598_v22 = vadd.f32 %v6631_v18, %v19039_v44  ;;  %v6633_v41 = vpop.f32.mrb[73].mxu0  ;;  %v8089_v19 = vmax.f32 %v14595_v5, %v7833_v9  ;;  %v19981_v9 = vpop.f32.mrb[81].mxu1 }
 0x607   : > { %v14600_v33 = vadd.f32 %v6633_v41, %v19039_v44  ;;  %v6635_v63 = vpop.f32.mrb[74].mxu0  ;;  %v8090_v18 = vmax.f32 %v14597_v52, %v7834_v49  ;;  %12193 = vperm.xlu0 %16217, %v12127_v61   ;;  %v19986_v52 = vpop.permute.xlu1 %2124  ;;  %v17004_v49 = vld [vmem:[%s22581_s1 + $0xd70] ss:$28 sps:$4 sm:$0xff]  }
 0x608   : > { %v14602_v37 = vadd.f32 %v6635_v63, %v19141_v55  ;;  %v6637_v14 = vpop.f32.mrb[75].mxu0  ;;  %v19977_v5 = vpack.c.bf16 %v8089_v19, %v8087_v51  ;;  %v14599_v44 = vadd.f32 %v14598_v22, %v19350_v30  ;;  %22885 = vst [vmem:[#allocation154_spill] sm:$0xff] %v19986_v52  ;;  %v19988_v31 = vpop.f32.mrb[82].mxu1  ;;  %9020 = vperm.xlu1 %16218, %v8718_v23   ;;  %v12131_v63 = vld [vmem:[%s22586_s6 + $0x60] sm:$0xff] }
 0x609   : > { %v14604_v57 = vadd.f32 %v6637_v14, %v19141_v55  ;;  %v19983_v41 = vpack.c.bf16 %v8090_v18, %v8088_v56  ;;  %v14601_v29 = vadd.f32 %v14600_v33, %v19354_v7  ;;  %v19994_v55 = vpop.f32.mrb[83].mxu1  ;;  %v19997_v7 = vpop.permute.xlu0 %2179  ;;  %v8720_v33 = vld [vmem:[%s22584_s4 + $0x1e8] sm:$0xff] }
 0x60a   : > { %22883 = vst [vmem:[#allocation152_spill] sm:$0xff] %v19977_v5  ;;  %6900 = vmatmul.mubr.bf16.gmra.mrb[180].mxu0 %v16939_v36  ;;  %v14603_v30 = vadd.f32 %v14602_v37, %v19361_v38  ;;  %v7835_v22 = vmul.f32 0.01, %v14599_v44  ;;  %22886 = vst [vmem:[#allocation155_spill] sm:$0xff] %v19997_v7  ;;  %v12129_v36 = vld [vmem:[%s22586_s6 + $0x50] sm:$0xff]  ;;  %7733 = vmatmul.mubr.bf16.gmra.mrb[188].mxu1 %v17004_v49  ;;  %v20017_v49 = vpop.f32.mrb[84].mxu1 }
 0x60b   : > { %22884 = vst [vmem:[#allocation153_spill] sm:$0xff] %v19983_v41  ;;  %6909 = vmatprep.mubr.bf16.mxu0 %v16941_v53  ;;  %v14605_v14 = vadd.f32 %v14604_v57, %v19366_v17  ;;  %v7836_v20 = vmul.f32 0.01, %v14601_v29  ;;  %12203 = vperm.xlu0 %16217, %v12129_v36   ;;  %v16943_v17 = vld [vmem:[%s22581_s1 + $0xa20] ss:$28 sps:$4 sm:$0xff]   ;;  %v20020_v7 = vpop.permute.xlu1 %2134 }
 0x60c   : > { %v7837_v61 = vmul.f32 0.01, %v14603_v30  ;;  %7742 = vmatprep.mubr.bf16.mxu1 %v22776_v6  ;;  %v8091_v53 = vmax.f32 %v14599_v44, %v7835_v22  ;;  %v16945_v57 = vld [vmem:[%s22581_s1 + $0xa5c] ss:$28 sps:$4 sm:$0xff]   ;;  %9030 = vperm.xlu1 %16218, %v8720_v33   ;;  %22887 = vst [vmem:[#allocation156_spill] sm:$0xff] %v20020_v7  ;;  %v22927_v7 = vld [vmem:[#allocation47_spill] sm:$0xff] }
 0x60d   : > { %v6641_v51 = vpop.f32.mrb[76].mxu0  ;;  %v7838_v38 = vmul.f32 0.01, %v14605_v14  ;;  %v8092_v36 = vmax.f32 %v14601_v29, %v7836_v20  ;;  %v8722_v44 = vld [vmem:[%s22584_s4 + $0x1f8] sm:$0xff]  ;;  %v20034_v20 = vpop.permute.xlu0 %2189 }
 0x60e   : > { %v14606_v37 = vadd.f32 %v6641_v51, %v19056_v54  ;;  %v6643_v19 = vpop.f32.mrb[77].mxu0  ;;  %v8093_v56 = vmax.f32 %v14603_v30, %v7837_v61  ;;  %v20029_v61 = vpop.f32.mrb[85].mxu1  ;;  %22890 = vst [vmem:[#allocation159_spill] sm:$0xff] %v20034_v20 }
 0x60f   : > { %v14608_v18 = vadd.f32 %v6643_v19, %v19056_v54  ;;  %v6645_v23 = vpop.f32.mrb[78].mxu0  ;;  %v8094_v51 = vmax.f32 %v14605_v14, %v7838_v38  ;;  %12213 = vperm.xlu0 %16217, %v12131_v63   ;;  %v20036_v38 = vpop.f32.mrb[86].mxu1  ;;  %v17008_v19 = vld [vmem:[%s22581_s1 + $0xda8] ss:$28 sps:$4 sm:$0xff]  }
 0x610   : > { %v14610_v5 = vadd.f32 %v6645_v23, %v19151_v1  ;;  %v6647_v41 = vpop.f32.mrb[79].mxu0  ;;  %v20025_v54 = vpack.c.bf16 %v8093_v56, %v8091_v53  ;;  %v14607_v30 = vadd.f32 %v14606_v37, %v19388_v12  ;;  %9040 = vperm.xlu1 %16218, %v8722_v44   ;;  %v16947_v56 = vld [vmem:[%s22581_s1 + $0xa58] ss:$28 sps:$4 sm:$0xff]   ;;  %v12135_v23 = vld [vmem:[%s22586_s6 + $0x80] sm:$0xff] }
 0x611   : > { %v14612_v22 = vadd.f32 %v6647_v41, %v19151_v1  ;;  %v20031_v29 = vpack.c.bf16 %v8094_v51, %v8092_v36  ;;  %v14609_v14 = vadd.f32 %v14608_v18, %v19392_v34  ;;  %v20042_v1 = vpop.f32.mrb[87].mxu1  ;;  %v12133_v34 = vld [vmem:[%s22586_s6 + $0x70] sm:$0xff]  ;;  %v12120_v18 = vld [vmem:[%s22586_s6 + $0x8] sm:$0xff]  ;;  %v20068_v20 = vpop.permute.xlu0 %2199 }
 0x612   : > { %22888 = vst [vmem:[#allocation157_spill] sm:$0xff] %v20025_v54  ;;  %6910 = vmatmul.mubr.bf16.gmra.mrb[184].mxu0 %v16943_v17  ;;  %v14611_v12 = vadd.f32 %v14610_v5, %v19399_v42  ;;  %v7839_v37 = vmul.f32 0.01, %v14607_v30  ;;  %7743 = vmatmul.mubr.bf16.gmra.mrb[192].mxu1 %v17008_v19  ;;  %v20065_v19 = vpop.f32.mrb[88].mxu1  ;;  %22892 = vst [vmem:[#allocation161_spill] sm:$0xff] %v20068_v20  ;;  %v22905_v20 = vld [vmem:[#allocation43_spill] sm:$0xff] }
 0x613   : > { %22889 = vst [vmem:[#allocation158_spill] sm:$0xff] %v20031_v29  ;;  %6919 = vmatprep.mubr.bf16.mxu0 %v16945_v57  ;;  %v14613_v41 = vadd.f32 %v14612_v22, %v19404_v4  ;;  %v7840_v33 = vmul.f32 0.01, %v14609_v14  ;;  %12223 = vperm.xlu0 %16217, %v12133_v34   ;;  %v20053_v4 = vpop.permute.xlu1 %2144  ;;  %v16949_v22 = vld [vmem:[%s22581_s1 + $0xa94] ss:$28 sps:$4 sm:$0xff]  }
 0x614   : > { %v7841_v17 = vmul.f32 0.01, %v14611_v12  ;;  %7752 = vmatprep.mubr.bf16.mxu1 %v22776_v6  ;;  %22891 = vst [vmem:[#allocation160_spill] sm:$0xff] %v20053_v4  ;;  %v8095_v57 = vmax.f32 %v14607_v30, %v7839_v37  ;;  %12158 = vperm.xlu1 %16218, %v12120_v18   ;;  %v12122_v30 = vld [vmem:[%s22586_s6 + $0x18] sm:$0xff] }
 0x615   : > { %v6651_v63 = vpop.f32.mrb[80].mxu0  ;;  %v7842_v53 = vmul.f32 0.01, %v14613_v41  ;;  %v8096_v34 = vmax.f32 %v14609_v14, %v7840_v33 }
 0x616   : > { %v14614_v42 = vadd.f32 %v6651_v63, %v19069_v62  ;;  %v6653_v5 = vpop.f32.mrb[81].mxu0  ;;  %v8097_v36 = vmax.f32 %v14611_v12, %v7841_v17  ;;  %v20077_v17 = vpop.f32.mrb[89].mxu1 }
 0x617   : > { %v14616_v51 = vadd.f32 %v6653_v5, %v19069_v62  ;;  %v6655_v44 = vpop.f32.mrb[82].mxu0  ;;  %v8098_v63 = vmax.f32 %v14613_v41, %v7842_v53  ;;  %12233 = vperm.xlu0 %16217, %v12135_v23   ;;  %v20082_v33 = vpop.f32.mrb[90].mxu1  ;;  %v17012_v53 = vld [vmem:[%s22581_s1 + $0xde0] ss:$28 sps:$4 sm:$0xff]  }
 0x618   : > { %v14618_v54 = vadd.f32 %v6655_v44, %v19171_v25  ;;  %v6657_v29 = vpop.f32.mrb[83].mxu0  ;;  %v20073_v62 = vpack.c.bf16 %v8097_v36, %v8095_v57  ;;  %v14615_v12 = vadd.f32 %v14614_v42, %v19426_v60  ;;  %12168 = vperm.xlu1 %16218, %v12122_v30   ;;  %v20091_v42 = vpop.permute.xlu1 %2154  ;;  %v16951_v36 = vld [vmem:[%s22581_s1 + $0xa90] ss:$28 sps:$4 sm:$0xff]   ;;  %v12139_v44 = vld [vmem:[%s22586_s6 + $0xa0] sm:$0xff] }
 0x619   : > { %v14620_v37 = vadd.f32 %v6657_v29, %v19171_v25  ;;  %v20079_v14 = vpack.c.bf16 %v8098_v63, %v8096_v34  ;;  %v14617_v41 = vadd.f32 %v14616_v51, %v19430_v11  ;;  %v20088_v25 = vpop.f32.mrb[91].mxu1  ;;  %22895 = vst [vmem:[#allocation164_spill] sm:$0xff] %v20091_v42  ;;  %v12137_v11 = vld [vmem:[%s22586_s6 + $0x90] sm:$0xff]  ;;  %v12124_v51 = vld [vmem:[%s22586_s6 + $0x28] sm:$0xff] }
 0x61a   : > { %22893 = vst [vmem:[#allocation162_spill] sm:$0xff] %v20073_v62  ;;  %6920 = vmatmul.mubr.bf16.gmra.mrb[188].mxu0 %v16947_v56  ;;  %v14619_v5 = vadd.f32 %v14618_v54, %v19437_v3  ;;  %v7843_v18 = vmul.f32 0.01, %v14615_v12  ;;  %7753 = vmatmul.mubr.bf16.gmra.mrb[196].mxu1 %v17012_v53  ;;  %v20112_v53 = vpop.f32.mrb[92].mxu1  ;;  %v22916_v42 = vld [vmem:[#allocation45_spill] sm:$0xff] }
 0x61b   : > { %22894 = vst [vmem:[#allocation163_spill] sm:$0xff] %v20079_v14  ;;  %6929 = vmatprep.mubr.bf16.mxu0 %v16949_v22  ;;  %v14621_v60 = vadd.f32 %v14620_v37, %v19442_v2  ;;  %v7844_v29 = vmul.f32 0.01, %v14617_v41  ;;  %12243 = vperm.xlu0 %16217, %v12137_v11   ;;  %v20100_v2 = vpop.permute.xlu0 %8725  ;;  %v16953_v37 = vld [vmem:[%s22581_s1 + $0xacc] ss:$28 sps:$4 sm:$0xff]  }
 0x61c   : > { %v7845_v56 = vmul.f32 0.01, %v14619_v5  ;;  %22896 = vst [vmem:[#allocation165_spill] sm:$0xff] %v20100_v2  ;;  %v8099_v22 = vmax.f32 %v14615_v12, %v7843_v18  ;;  %12178 = vperm.xlu1 %16218, %v12124_v51   ;;  %v12126_v12 = vld [vmem:[%s22586_s6 + $0x38] sm:$0xff] }
 0x61d   : > { %v6661_v23 = vpop.f32.mrb[84].mxu0  ;;  %v7846_v57 = vmul.f32 0.01, %v14621_v60  ;;  %v8100_v11 = vmax.f32 %v14617_v41, %v7844_v29  ;;  %v22899_v41 = vld [vmem:[#allocation71_spill] sm:$0xff]  ;;  %v20127_v29 = vpop.permute.xlu1 %2164  ;;  %v22901_v51 = vld [vmem:[#allocation73_spill] sm:$0xff] }
 0x61e   : > { %v14622_v3 = vadd.f32 %v6661_v23, %v19086_v10  ;;  %v6663_v54 = vpop.f32.mrb[85].mxu0  ;;  %v8101_v34 = vmax.f32 %v14619_v5, %v7845_v56  ;;  %v20122_v56 = vpop.f32.mrb[93].mxu1  ;;  %22900 = vst [vmem:[#allocation71_spill] sm:$0xff] %v20127_v29 }
 0x61f   : > { %v14624_v63 = vadd.f32 %v6663_v54, %v19086_v10  ;;  %v6665_v30 = vpop.f32.mrb[86].mxu0  ;;  %v8102_v23 = vmax.f32 %v14621_v60, %v7846_v57  ;;  %12253 = vperm.xlu0 %16217, %v12139_v44   ;;  %v20129_v57 = vpop.f32.mrb[94].mxu1 }
 0x620   : > { %v14626_v2 = vadd.f32 %v6665_v30, %v19186_v48  ;;  %v6667_v62 = vpop.f32.mrb[87].mxu0  ;;  %v20118_v5 = vpack.c.bf16 %v8101_v34, %v8099_v22  ;;  %v14623_v10 = vadd.f32 %v14622_v3, %v19464_v24  ;;  %12188 = vperm.xlu1 %16218, %v12126_v12   ;;  %v20132_v24 = vpop.f32.mrb[95].mxu1  ;;  %v12128_v12 = vld [vmem:[%s22586_s6 + $0x48] sm:$0xff] }
 0x621   : > { %v14628_v18 = vadd.f32 %v6667_v62, %v19186_v48  ;;  %v20124_v54 = vpack.c.bf16 %v8102_v23, %v8100_v11  ;;  %v14625_v60 = vadd.f32 %v14624_v63, %v22899_v41  ;;  %v22902_v48 = vld [vmem:[#allocation74_spill] sm:$0xff]  ;;  %v20135_v44 = vpop.permute.xlu0 %8735  ;;  %v22904_v23 = vld [vmem:[#allocation35_spill] sm:$0xff]  ;;  %v20157_v8 = vpop.permute.xlu1 %2174 }
 0x622   : > { %22897 = vst [vmem:[#allocation166_spill] sm:$0xff] %v20118_v5  ;;  %6930 = vmatmul.mubr.bf16.gmra.mrb[192].mxu0 %v16951_v36  ;;  %v14627_v30 = vadd.f32 %v14626_v2, %v22901_v51  ;;  %v7847_v22 = vmul.f32 0.01, %v14623_v10  ;;  %22903 = vst [vmem:[#allocation73_spill] sm:$0xff] %v20135_v44  ;;  %v13146_v36 = vld [vmem:[%s22587_s7 + $0x8] sm:$0xff]  ;;  %v20154_v5 = vpop.f32.mrb[96].mxu1 }
 0x623   : > { %22898 = vst [vmem:[#allocation167_spill] sm:$0xff] %v20124_v54  ;;  %6939 = vmatprep.mubr.bf16.mxu0 %v16953_v37  ;;  %v14629_v62 = vadd.f32 %v14628_v18, %v22902_v48  ;;  %v7848_v3 = vmul.f32 0.01, %v14625_v60  ;;  %13184 = vperm.xlu0 %16217, %v13146_v36   ;;  %v16955_v37 = vld [vmem:[%s22581_s1 + $0xac8] ss:$28 sps:$4 sm:$0xff]   ;;  %v13148_v18 = vld [vmem:[%s22587_s7 + $0x18] sm:$0xff] }
 0x624   : > { %v7849_v34 = vmul.f32 0.01, %v14627_v30  ;;  %v8103_v51 = vmax.f32 %v14623_v10, %v7847_v22  ;;  %12198 = vperm.xlu1 %16218, %v12128_v12   ;;  %22906 = vst [vmem:[#allocation74_spill] sm:$0xff] %v20157_v8  ;;  %v12130_v10 = vld [vmem:[%s22586_s6 + $0x58] sm:$0xff] }
 0x625   : > { %v6671_v63 = vpop.f32.mrb[88].mxu0  ;;  %v7850_v11 = vmul.f32 0.01, %v14629_v62  ;;  %v8104_v54 = vmax.f32 %v14625_v60, %v7848_v3  ;;  %v22908_v22 = vld [vmem:[#allocation77_spill] sm:$0xff] }
 0x626   : > { %v14630_v2 = vadd.f32 %v6671_v63, %v22904_v23  ;;  %v6673_v41 = vpop.f32.mrb[89].mxu0  ;;  %v8105_v48 = vmax.f32 %v14627_v30, %v7849_v34  ;;  %v16957_v63 = vld [vmem:[%s22581_s1 + $0xb04] ss:$28 sps:$4 sm:$0xff]   ;;  %v22912_v12 = vld [vmem:[#allocation81_spill] sm:$0xff] }
 0x627   : > { %v14632_v36 = vadd.f32 %v6673_v41, %v22904_v23  ;;  %v6675_v44 = vpop.f32.mrb[90].mxu0  ;;  %v8106_v14 = vmax.f32 %v14629_v62, %v7850_v11  ;;  %13194 = vperm.xlu0 %16217, %v13148_v18   ;;  %v20166_v41 = vpop.f32.mrb[97].mxu1  ;;  %v22910_v62 = vld [vmem:[#allocation79_spill] sm:$0xff] }
 0x628   : > { %v14634_v15 = vadd.f32 %v6675_v44, %v22905_v20  ;;  %v6677_v29 = vpop.f32.mrb[91].mxu0  ;;  %v20162_v30 = vpack.c.bf16 %v8105_v48, %v8103_v51  ;;  %v14631_v34 = vadd.f32 %v14630_v2, %v22908_v22  ;;  %v20171_v44 = vpop.permute.xlu0 %8745  ;;  %12208 = vperm.xlu1 %16218, %v12130_v10   ;;  %v12132_v10 = vld [vmem:[%s22586_s6 + $0x68] sm:$0xff] }
 0x629   : > { %v14636_v23 = vadd.f32 %v6677_v29, %v22905_v20  ;;  %v20168_v60 = vpack.c.bf16 %v8106_v14, %v8104_v54  ;;  %v14633_v3 = vadd.f32 %v14632_v36, %v22910_v62  ;;  %22911 = vst [vmem:[#allocation77_spill] sm:$0xff] %v20171_v44  ;;  %v20173_v11 = vpop.f32.mrb[98].mxu1  ;;  %v22913_v20 = vld [vmem:[#allocation82_spill] sm:$0xff]  ;;  %v13150_v14 = vld [vmem:[%s22587_s7 + $0x28] sm:$0xff] }
 0x62a   : > { %22907 = vst [vmem:[#allocation35_spill] sm:$0xff] %v20162_v30  ;;  %6940 = vmatmul.mubr.bf16.gmra.mrb[196].mxu0 %v16955_v37  ;;  %v14635_v8 = vadd.f32 %v14634_v15, %v22912_v12  ;;  %v7851_v51 = vmul.f32 0.01, %v14631_v34  ;;  %v20176_v2 = vpop.f32.mrb[99].mxu1  ;;  %v22914_v36 = vld [vmem:[#allocation36_spill] sm:$0xff] }
 0x62b   : > { %22909 = vst [vmem:[#allocation43_spill] sm:$0xff] %v20168_v60  ;;  %6949 = vmatprep.mubr.bf16.mxu0 %v16957_v63  ;;  %v14637_v29 = vadd.f32 %v14636_v23, %v22913_v20  ;;  %v7852_v18 = vmul.f32 0.01, %v14633_v3  ;;  %13204 = vperm.xlu0 %16217, %v13150_v14   ;;  %v16959_v15 = vld [vmem:[%s22581_s1 + $0xb00] ss:$28 sps:$4 sm:$0xff]   ;;  %v20186_v63 = vpop.permute.xlu1 %2184  ;;  %v20198_v30 = vpop.f32.mrb[100].mxu1 }
 0x62c   : > { %v7853_v54 = vmul.f32 0.01, %v14635_v8  ;;  %22915 = vst [vmem:[#allocation79_spill] sm:$0xff] %v20186_v63  ;;  %v13152_v23 = vld [vmem:[%s22587_s7 + $0x38] sm:$0xff]  ;;  %v8107_v12 = vmax.f32 %v14631_v34, %v7851_v51  ;;  %12218 = vperm.xlu1 %16218, %v12132_v10   ;;  %v20201_v45 = vpop.permute.xlu0 %8755  ;;  %v22922_v10 = vld [vmem:[#allocation88_spill] sm:$0xff] }
 0x62d   : > { %v6681_v37 = vpop.f32.mrb[92].mxu0  ;;  %v7854_v48 = vmul.f32 0.01, %v14637_v29  ;;  %v16961_v44 = vld [vmem:[%s22581_s1 + $0xb3c] ss:$28 sps:$4 sm:$0xff]   ;;  %v8108_v60 = vmax.f32 %v14633_v3, %v7852_v18  ;;  %22917 = vst [vmem:[#allocation81_spill] sm:$0xff] %v20201_v45 }
 0x62e   : > { %v14638_v22 = vadd.f32 %v6681_v37, %v22914_v36  ;;  %v6683_v62 = vpop.f32.mrb[93].mxu0  ;;  %v8109_v20 = vmax.f32 %v14635_v8, %v7853_v54  ;;  %v12134_v8 = vld [vmem:[%s22586_s6 + $0x78] sm:$0xff] }
 0x62f   : > { %v14640_v14 = vadd.f32 %v6683_v62, %v22914_v36  ;;  %v6685_v37 = vpop.f32.mrb[94].mxu0  ;;  %v8110_v63 = vmax.f32 %v14637_v29, %v7854_v48  ;;  %v22919_v51 = vld [vmem:[#allocation85_spill] sm:$0xff]  ;;  %13214 = vperm.xlu0 %16217, %v13152_v23   ;;  %v20210_v62 = vpop.f32.mrb[101].mxu1  ;;  %v22921_v29 = vld [vmem:[#allocation86_spill] sm:$0xff] }
 0x630   : > { %v14642_v50 = vadd.f32 %v6685_v37, %v22916_v42  ;;  %v6687_v4 = vpop.f32.mrb[95].mxu0  ;;  %v20206_v34 = vpack.c.bf16 %v8109_v20, %v8107_v12  ;;  %v14639_v54 = vadd.f32 %v14638_v22, %v22919_v51  ;;  %v20215_v48 = vpop.f32.mrb[102].mxu1  ;;  %12228 = vperm.xlu1 %16218, %v12134_v8   ;;  %v22923_v22 = vld [vmem:[#allocation89_spill] sm:$0xff] }
 0x631   : > { %v14644_v36 = vadd.f32 %v6687_v4, %v22916_v42  ;;  %v20212_v3 = vpack.c.bf16 %v8110_v63, %v8108_v60  ;;  %v14641_v18 = vadd.f32 %v14640_v14, %v22921_v29  ;;  %v20218_v12 = vpop.f32.mrb[103].mxu1  ;;  %v20221_v42 = vpop.permute.xlu1 %2194  ;;  %v13154_v60 = vld [vmem:[%s22587_s7 + $0x48] sm:$0xff]  ;;  %v22925_v14 = vld [vmem:[#allocation37_spill] sm:$0xff] }
 0x632   : > { %22918 = vst [vmem:[#allocation82_spill] sm:$0xff] %v20206_v34  ;;  %6950 = vmatmul.mubr.bf16.gmra.mrb[200].mxu0 %v16959_v15  ;;  %v14643_v37 = vadd.f32 %v14642_v50, %v22922_v10  ;;  %v7855_v45 = vmul.f32 0.01, %v14639_v54  ;;  %22924 = vst [vmem:[#allocation45_spill] sm:$0xff] %v20221_v42  ;;  %v20230_v8 = vpop.permute.xlu0 %8765  ;;  %v13156_v29 = vld [vmem:[%s22587_s7 + $0x58] sm:$0xff] }
 0x633   : > { %22920 = vst [vmem:[#allocation36_spill] sm:$0xff] %v20212_v3  ;;  %6959 = vmatprep.mubr.bf16.mxu0 %v16961_v44  ;;  %v14645_v20 = vadd.f32 %v14644_v36, %v22923_v22  ;;  %v7856_v4 = vmul.f32 0.01, %v14641_v18  ;;  %13224 = vperm.xlu0 %16217, %v13154_v60   ;;  %v16963_v44 = vld [vmem:[%s22581_s1 + $0xb38] ss:$28 sps:$4 sm:$0xff]   ;;  %22926 = vst [vmem:[#allocation85_spill] sm:$0xff] %v20230_v8 }
 0x634   : > { %v7857_v63 = vmul.f32 0.01, %v14643_v37  ;;  %v12136_v36 = vld [vmem:[%s22586_s6 + $0x88] sm:$0xff]  ;;  %v8111_v10 = vmax.f32 %v14639_v54, %v7855_v45  ;;  %v16965_v34 = vld [vmem:[%s22581_s1 + $0xb74] ss:$28 sps:$4 sm:$0xff]   ;;  %v20242_v3 = vpop.f32.mrb[104].mxu1 }
 0x635   : > { %v6691_v15 = vpop.f32.mrb[96].mxu0  ;;  %v7858_v23 = vmul.f32 0.01, %v14645_v20  ;;  %12238 = vperm.xlu1 %16218, %v12136_v36   ;;  %v8112_v8 = vmax.f32 %v14641_v18, %v7856_v4  ;;  %v12138_v45 = vld [vmem:[%s22586_s6 + $0x98] sm:$0xff]  ;;  %v20257_v4 = vpop.permute.xlu1 %2204 }
 0x636   : > { %v14646_v50 = vadd.f32 %v6691_v15, %v22925_v14  ;;  %v6693_v51 = vpop.f32.mrb[97].mxu0  ;;  %v8113_v22 = vmax.f32 %v14643_v37, %v7857_v63  ;;  %v22929_v37 = vld [vmem:[#allocation92_spill] sm:$0xff]  ;;  %v22932_v18 = vld [vmem:[#allocation93_spill] sm:$0xff]  ;;  %22933 = vst [vmem:[#allocation37_spill] sm:$0xff] %v20257_v4 }
 0x637   : > { %v14648_v60 = vadd.f32 %v6693_v51, %v22925_v14  ;;  %v6695_v15 = vpop.f32.mrb[98].mxu0  ;;  %v8114_v42 = vmax.f32 %v14645_v20, %v7858_v23  ;;  %13234 = vperm.xlu0 %16217, %v13156_v29   ;;  %v20252_v51 = vpop.f32.mrb[105].mxu1 }
 0x638   : > { %v14650_v52 = vadd.f32 %v6695_v15, %v22927_v7  ;;  %v6697_v47 = vpop.f32.mrb[99].mxu0  ;;  %v20248_v54 = vpack.c.bf16 %v8113_v22, %v8111_v10  ;;  %v14647_v63 = vadd.f32 %v14646_v50, %v22929_v37  ;;  %22930 = vst [vmem:[#allocation88_spill] sm:$0xff] %v20252_v51  ;;  %v20259_v23 = vpop.f32.mrb[106].mxu1  ;;  %v22935_v15 = vld [vmem:[#allocation95_spill] sm:$0xff]  ;;  %v22939_v37 = vld [vmem:[#allocation38_spill] sm:$0xff] }
 0x639   : > { %v14652_v14 = vadd.f32 %v6697_v47, %v22927_v7  ;;  %v20254_v36 = vpack.c.bf16 %v8114_v42, %v8112_v8  ;;  %v14649_v20 = vadd.f32 %v14648_v60, %v22932_v18  ;;  %22934 = vst [vmem:[#allocation47_spill] sm:$0xff] %v20259_v23  ;;  %12248 = vperm.xlu1 %16218, %v12138_v45   ;;  %v20262_v50 = vpop.f32.mrb[107].mxu1  ;;  %v22937_v47 = vld [vmem:[#allocation96_spill] sm:$0xff]  ;;  %v20265_v22 = vpop.permute.xlu0 %8775  ;;  %v13145_v45 = vld [vmem:[%s22587_s7] sm:$0xff] }
 0x63a   : > { %22928 = vst [vmem:[#allocation86_spill] sm:$0xff] %v20248_v54  ;;  %6960 = vmatmul.mubr.bf16.gmra.mrb[204].mxu0 %v16963_v44  ;;  %v14651_v58 = vadd.f32 %v14650_v52, %v22935_v15  ;;  %v7859_v10 = vmul.f32 0.01, %v14647_v63  ;;  %22936 = vst [vmem:[#allocation92_spill] sm:$0xff] %v20262_v50  ;;  %v13158_v42 = vld [vmem:[%s22587_s7 + $0x68] sm:$0xff]  ;;  %v20284_v54 = vpop.f32.mrb[108].mxu1  ;;  %v20287_v51 = vpop.permute.xlu1 %8730 }
 0x63b   : > { %22931 = vst [vmem:[#allocation89_spill] sm:$0xff] %v20254_v36  ;;  %6969 = vmatprep.mubr.bf16.mxu0 %v16965_v34  ;;  %v14653_v7 = vadd.f32 %v14652_v14, %v22937_v47  ;;  %v7860_v29 = vmul.f32 0.01, %v14649_v20  ;;  %22938 = vst [vmem:[#allocation93_spill] sm:$0xff] %v20265_v22  ;;  %13244 = vperm.xlu0 %16217, %v13158_v42   ;;  %v16967_v34 = vld [vmem:[%s22581_s1 + $0xb70] ss:$28 sps:$4 sm:$0xff]  }
 0x63c   : > { %v7861_v44 = vmul.f32 0.01, %v14651_v58  ;;  %v13160_v14 = vld [vmem:[%s22587_s7 + $0x78] sm:$0xff]  ;;  %v8115_v15 = vmax.f32 %v14647_v63, %v7859_v10  ;;  %22940 = vst [vmem:[#allocation95_spill] sm:$0xff] %v20284_v54  ;;  %22942 = vst [vmem:[#allocation96_spill] sm:$0xff] %v20287_v51  ;;  %v22944_v10 = vld [vmem:[#allocation99_spill] sm:$0xff] }
 0x63d   : > { %v6701_v8 = vpop.f32.mrb[100].mxu0  ;;  %v7862_v60 = vmul.f32 0.01, %v14653_v7  ;;  %13179 = vperm.xlu1 %16218, %v13145_v45   ;;  %v8116_v36 = vmax.f32 %v14649_v20, %v7860_v29  ;;  %v22950_v45 = vld [vmem:[#allocation102_spill] sm:$0xff] }
 0x63e   : > { %v14654_v52 = vadd.f32 %v6701_v8, %v22939_v37  ;;  %v6703_v18 = vpop.f32.mrb[101].mxu0  ;;  %v8117_v47 = vmax.f32 %v14651_v58, %v7861_v44  ;;  %v16969_v8 = vld [vmem:[%s22581_s1 + $0xbac] ss:$28 sps:$4 sm:$0xff]   ;;  %v13147_v58 = vld [vmem:[%s22587_s7 + $0x10] sm:$0xff] }
 0x63f   : > { %v14656_v42 = vadd.f32 %v6703_v18, %v22939_v37  ;;  %v6705_v22 = vpop.f32.mrb[102].mxu0  ;;  %v8118_v4 = vmax.f32 %v14653_v7, %v7862_v60  ;;  %13254 = vperm.xlu0 %16217, %v13160_v14   ;;  %v20296_v18 = vpop.f32.mrb[109].mxu1  ;;  %v22947_v7 = vld [vmem:[#allocation100_spill] sm:$0xff] }
 0x640   : > { %v14658_v50 = vadd.f32 %v6705_v22, %v22941_v35  ;;  %v6707_v23 = vpop.f32.mrb[103].mxu0  ;;  %v20292_v63 = vpack.c.bf16 %v8117_v47, %v8115_v15  ;;  %v14655_v44 = vadd.f32 %v14654_v52, %v22944_v10  ;;  %22945 = vst [vmem:[#allocation49_spill] sm:$0xff] %v20296_v18  ;;  %v20301_v22 = vpop.permute.xlu0 %8785 }
 0x641   : > { %v14660_v37 = vadd.f32 %v6707_v23, %v22941_v35  ;;  %v20298_v20 = vpack.c.bf16 %v8118_v4, %v8116_v36  ;;  %v14657_v29 = vadd.f32 %v14656_v42, %v22947_v7  ;;  %22948 = vst [vmem:[#allocation100_spill] sm:$0xff] %v20301_v22  ;;  %v20303_v60 = vpop.f32.mrb[110].mxu1  ;;  %13189 = vperm.xlu1 %16218, %v13147_v58   ;;  %v22952_v35 = vld [vmem:[#allocation104_spill] sm:$0xff]  ;;  %v22953_v42 = vld [vmem:[#allocation39_spill] sm:$0xff] }
 0x642   : > { %22943 = vst [vmem:[#allocation38_spill] sm:$0xff] %v20292_v63  ;;  %6970 = vmatmul.mubr.bf16.gmra.mrb[208].mxu0 %v16967_v34  ;;  %22949 = vst [vmem:[#allocation168_spill] sm:$0xff] %v20303_v60  ;;  %v14659_v51 = vadd.f32 %v14658_v50, %v22950_v45  ;;  %v7863_v15 = vmul.f32 0.01, %v14655_v44  ;;  %v20306_v52 = vpop.f32.mrb[111].mxu1  ;;  %v13162_v36 = vld [vmem:[%s22587_s7 + $0x88] sm:$0xff] }
 0x643   : > { %22946 = vst [vmem:[#allocation99_spill] sm:$0xff] %v20298_v20  ;;  %6979 = vmatprep.mubr.bf16.mxu0 %v16969_v8  ;;  %22951 = vst [vmem:[#allocation102_spill] sm:$0xff] %v20306_v52  ;;  %v14661_v23 = vadd.f32 %v14660_v37, %v22952_v35  ;;  %v7864_v14 = vmul.f32 0.01, %v14657_v29  ;;  %13264 = vperm.xlu0 %16217, %v13162_v36   ;;  %v16971_v50 = vld [vmem:[%s22581_s1 + $0xba8] ss:$28 sps:$4 sm:$0xff]   ;;  %v20316_v8 = vpop.permute.xlu1 %8740 }
 0x644   : > { %v7865_v4 = vmul.f32 0.01, %v14659_v51  ;;  %22954 = vst [vmem:[#allocation104_spill] sm:$0xff] %v20316_v8  ;;  %v13149_v58 = vld [vmem:[%s22587_s7 + $0x20] sm:$0xff]  ;;  %v13163_v37 = vld [vmem:[%s22587_s7 + $0x90] sm:$0xff]  ;;  %v8119_v45 = vmax.f32 %v14655_v44, %v7863_v15  ;;  %v20328_v63 = vpop.f32.mrb[112].mxu1  ;;  %v20331_v54 = vpop.permute.xlu0 %8795 }
 0x645   : > { %v6711_v34 = vpop.f32.mrb[104].mxu0  ;;  %v7866_v47 = vmul.f32 0.01, %v14661_v23  ;;  %v16973_v22 = vld [vmem:[%s22581_s1 + $0xbe4] ss:$28 sps:$4 sm:$0xff]   ;;  %13199 = vperm.xlu1 %16218, %v13149_v58   ;;  %22955 = vst [vmem:[#allocation39_spill] sm:$0xff] %v20328_v63  ;;  %v8120_v8 = vmax.f32 %v14657_v29, %v7864_v14 }
 0x646   : > { %v14662_v10 = vadd.f32 %v6711_v34, %v22953_v42  ;;  %v6713_v7 = vpop.f32.mrb[105].mxu0  ;;  %v8121_v35 = vmax.f32 %v14659_v51, %v7865_v4  ;;  %v22956_v52 = vld [vmem:[#allocation51_spill] sm:$0xff]  ;;  %v13151_v51 = vld [vmem:[%s22587_s7 + $0x30] sm:$0xff]  ;;  %v22959_v15 = vld [vmem:[#allocation106_spill] sm:$0xff] }
 0x647   : > { %v14664_v36 = vadd.f32 %v6713_v7, %v22953_v42  ;;  %v6715_v34 = vpop.f32.mrb[106].mxu0  ;;  %v8122_v20 = vmax.f32 %v14661_v23, %v7866_v47  ;;  %22957 = vst [vmem:[#allocation51_spill] sm:$0xff] %v20331_v54  ;;  %13269 = vperm.xlu0 %16217, %v13163_v37   ;;  %v20340_v7 = vpop.f32.mrb[113].mxu1  ;;  %v22962_v23 = vld [vmem:[#allocation108_spill] sm:$0xff]  ;;  %v22964_v58 = vld [vmem:[#allocation109_spill] sm:$0xff] }
 0x648   : > { %v14666_v60 = vadd.f32 %v6715_v34, %v22956_v52  ;;  %v6717_v18 = vpop.f32.mrb[107].mxu0  ;;  %v20336_v44 = vpack.c.bf16 %v8121_v35, %v8119_v45  ;;  %v14663_v4 = vadd.f32 %v14662_v10, %v22959_v15  ;;  %22960 = vst [vmem:[#allocation106_spill] sm:$0xff] %v20340_v7  ;;  %v20345_v47 = vpop.f32.mrb[114].mxu1  ;;  %v22966_v10 = vld [vmem:[#allocation110_spill] sm:$0xff] }
 0x649   : > { %v14668_v42 = vadd.f32 %v6717_v18, %v22956_v52  ;;  %v20342_v29 = vpack.c.bf16 %v8122_v20, %v8120_v8  ;;  %v14665_v14 = vadd.f32 %v14664_v36, %v22962_v23  ;;  %22963 = vst [vmem:[#allocation108_spill] sm:$0xff] %v20345_v47  ;;  %13209 = vperm.xlu1 %16218, %v13151_v51   ;;  %v20348_v45 = vpop.f32.mrb[115].mxu1  ;;  %v20351_v52 = vpop.permute.xlu1 %8750  ;;  %v13164_v20 = vld [vmem:[%s22587_s7 + $0x98] sm:$0xff]  ;;  %v22968_v36 = vld [vmem:[#allocation40_spill] sm:$0xff]  ;;  %v13165_v23 = vld [vmem:[%s22587_s7 + $0xa0] sm:$0xff] }
 0x64a   : > { %22958 = vst [vmem:[#allocation169_spill] sm:$0xff] %v20336_v44  ;;  %6980 = vmatmul.mubr.bf16.gmra.mrb[212].mxu0 %v16971_v50  ;;  %v14667_v34 = vadd.f32 %v14666_v60, %v22964_v58  ;;  %v7867_v54 = vmul.f32 0.01, %v14663_v4  ;;  %22965 = vst [vmem:[#allocation109_spill] sm:$0xff] %v20348_v45  ;;  %v20360_v51 = vpop.permute.xlu0 %8805  ;;  %v20372_v44 = vpop.f32.mrb[116].mxu1  ;;  %v22971_v45 = vld [vmem:[#allocation53_spill] sm:$0xff] }
 0x64b   : > { %22961 = vst [vmem:[#allocation170_spill] sm:$0xff] %v20342_v29  ;;  %6989 = vmatprep.mubr.bf16.mxu0 %v16973_v22  ;;  %v14669_v35 = vadd.f32 %v14668_v42, %v22966_v10  ;;  %v7868_v18 = vmul.f32 0.01, %v14665_v14  ;;  %22967 = vst [vmem:[#allocation110_spill] sm:$0xff] %v20351_v52  ;;  %13274 = vperm.xlu0 %16217, %v13164_v20   ;;  %v16975_v22 = vld [vmem:[%s22581_s1 + $0xbe0] ss:$28 sps:$4 sm:$0xff]  }
 0x64c   : > { %v7869_v8 = vmul.f32 0.01, %v14667_v34  ;;  %22969 = vst [vmem:[#allocation40_spill] sm:$0xff] %v20360_v51  ;;  %v13153_v42 = vld [vmem:[%s22587_s7 + $0x40] sm:$0xff]  ;;  %v8123_v58 = vmax.f32 %v14663_v4, %v7867_v54  ;;  %v16977_v52 = vld [vmem:[%s22581_s1 + $0xc1c] ss:$28 sps:$4 sm:$0xff]  }
 0x64d   : > { %v6721_v50 = vpop.f32.mrb[108].mxu0  ;;  %v7870_v37 = vmul.f32 0.01, %v14669_v35  ;;  %13219 = vperm.xlu1 %16218, %v13153_v42   ;;  %22970 = vst [vmem:[#allocation171_spill] sm:$0xff] %v20372_v44  ;;  %v8124_v51 = vmax.f32 %v14665_v14, %v7868_v18  ;;  %v13155_v54 = vld [vmem:[%s22587_s7 + $0x50] sm:$0xff]  ;;  %v22976_v14 = vld [vmem:[#allocation114_spill] sm:$0xff]  ;;  %v20387_v18 = vpop.permute.xlu1 %8760 }
 0x64e   : > { %v14670_v60 = vadd.f32 %v6721_v50, %v22968_v36  ;;  %v6723_v15 = vpop.f32.mrb[109].mxu0  ;;  %v8125_v10 = vmax.f32 %v14667_v34, %v7869_v8  ;;  %v22973_v34 = vld [vmem:[#allocation113_spill] sm:$0xff]  ;;  %22977 = vst [vmem:[#allocation114_spill] sm:$0xff] %v20387_v18 }
 0x64f   : > { %v14672_v20 = vadd.f32 %v6723_v15, %v22968_v36  ;;  %v6725_v50 = vpop.f32.mrb[110].mxu0  ;;  %v8126_v29 = vmax.f32 %v14669_v35, %v7870_v37  ;;  %13279 = vperm.xlu0 %16217, %v13165_v23   ;;  %v20382_v15 = vpop.f32.mrb[117].mxu1 }
 0x650   : > { %v14674_v47 = vadd.f32 %v6725_v50, %v22971_v45  ;;  %v6727_v7 = vpop.f32.mrb[111].mxu0  ;;  %v20378_v4 = vpack.c.bf16 %v8125_v10, %v8123_v58  ;;  %v14671_v8 = vadd.f32 %v14670_v60, %v22973_v34  ;;  %22974 = vst [vmem:[#allocation113_spill] sm:$0xff] %v20382_v15  ;;  %v20389_v37 = vpop.f32.mrb[118].mxu1  ;;  %v22979_v50 = vld [vmem:[#allocation115_spill] sm:$0xff]  ;;  %v22983_v34 = vld [vmem:[#allocation41_spill] sm:$0xff] }
 0x651   : > { %v14676_v36 = vadd.f32 %v6727_v7, %v22971_v45  ;;  %v20384_v42 = vpack.c.bf16 %v8126_v29, %v8124_v51  ;;  %v14673_v35 = vadd.f32 %v14672_v20, %v22976_v14  ;;  %22978 = vst [vmem:[#allocation173_spill] sm:$0xff] %v20389_v37  ;;  %13229 = vperm.xlu1 %16218, %v13155_v54   ;;  %v20392_v60 = vpop.f32.mrb[119].mxu1  ;;  %v22981_v7 = vld [vmem:[#allocation116_spill] sm:$0xff]  ;;  %v20395_v10 = vpop.permute.xlu0 %8815  ;;  %v13157_v54 = vld [vmem:[%s22587_s7 + $0x60] sm:$0xff] }
 0x652   : > { %22972 = vst [vmem:[#allocation53_spill] sm:$0xff] %v20378_v4  ;;  %6990 = vmatmul.mubr.bf16.gmra.mrb[216].mxu0 %v16975_v22  ;;  %v14675_v44 = vadd.f32 %v14674_v47, %v22979_v50  ;;  %v7871_v58 = vmul.f32 0.01, %v14671_v8  ;;  %22980 = vst [vmem:[#allocation115_spill] sm:$0xff] %v20392_v60  ;;  %v13166_v29 = vld [vmem:[%s22587_s7 + $0xa8] sm:$0xff]  ;;  %v20414_v18 = vpop.f32.mrb[120].mxu1  ;;  %v20417_v63 = vpop.permute.xlu1 %8770 }
 0x653   : > { %22975 = vst [vmem:[#allocation172_spill] sm:$0xff] %v20384_v42  ;;  %6999 = vmatprep.mubr.bf16.mxu0 %v16977_v52  ;;  %v14677_v45 = vadd.f32 %v14676_v36, %v22981_v7  ;;  %v7872_v23 = vmul.f32 0.01, %v14673_v35  ;;  %22982 = vst [vmem:[#allocation116_spill] sm:$0xff] %v20395_v10  ;;  %13284 = vperm.xlu0 %16217, %v13166_v29   ;;  %v16979_v52 = vld [vmem:[%s22581_s1 + $0xc18] ss:$28 sps:$4 sm:$0xff]  }
 0x654   : > { %v7873_v22 = vmul.f32 0.01, %v14675_v44  ;;  %v13167_v36 = vld [vmem:[%s22587_s7 + $0xb0] sm:$0xff]  ;;  %v8127_v50 = vmax.f32 %v14671_v8, %v7871_v58  ;;  %22984 = vst [vmem:[#allocation41_spill] sm:$0xff] %v20414_v18  ;;  %v22985_v60 = vld [vmem:[#allocation55_spill] sm:$0xff] }
 0x655   : > { %v6731_v51 = vpop.f32.mrb[112].mxu0  ;;  %v7874_v20 = vmul.f32 0.01, %v14677_v45  ;;  %13239 = vperm.xlu1 %16218, %v13157_v54   ;;  %v8128_v4 = vmax.f32 %v14673_v35, %v7872_v23  ;;  %22986 = vst [vmem:[#allocation55_spill] sm:$0xff] %v20417_v63  ;;  %v22988_v58 = vld [vmem:[#allocation119_spill] sm:$0xff]  ;;  %v22994_v54 = vld [vmem:[#allocation122_spill] sm:$0xff] }
 0x656   : > { %v14678_v47 = vadd.f32 %v6731_v51, %v22983_v34  ;;  %v6733_v14 = vpop.f32.mrb[113].mxu0  ;;  %v8129_v7 = vmax.f32 %v14675_v44, %v7873_v22  ;;  %v16981_v51 = vld [vmem:[%s22581_s1 + $0xc54] ss:$28 sps:$4 sm:$0xff]  }
 0x657   : > { %v14680_v29 = vadd.f32 %v6733_v14, %v22983_v34  ;;  %v6735_v10 = vpop.f32.mrb[114].mxu0  ;;  %v8130_v42 = vmax.f32 %v14677_v45, %v7874_v20  ;;  %v13159_v44 = vld [vmem:[%s22587_s7 + $0x70] sm:$0xff]  ;;  %13289 = vperm.xlu0 %16217, %v13167_v36   ;;  %v20426_v14 = vpop.f32.mrb[121].mxu1 }
 0x658   : > { %v14682_v37 = vadd.f32 %v6735_v10, %v22985_v60  ;;  %v6737_v15 = vpop.f32.mrb[115].mxu0  ;;  %v20422_v8 = vpack.c.bf16 %v8129_v7, %v8127_v50  ;;  %v14679_v22 = vadd.f32 %v14678_v47, %v22988_v58  ;;  %22989 = vst [vmem:[#allocation119_spill] sm:$0xff] %v20426_v14  ;;  %v22991_v45 = vld [vmem:[#allocation120_spill] sm:$0xff]  ;;  %v20431_v10 = vpop.permute.xlu0 %8825 }
 0x659   : > { %v14684_v34 = vadd.f32 %v6737_v15, %v22985_v60  ;;  %v20428_v35 = vpack.c.bf16 %v8130_v42, %v8128_v4  ;;  %v14681_v23 = vadd.f32 %v14680_v29, %v22991_v45  ;;  %22992 = vst [vmem:[#allocation120_spill] sm:$0xff] %v20431_v10  ;;  %v20433_v20 = vpop.f32.mrb[122].mxu1  ;;  %13249 = vperm.xlu1 %16218, %v13159_v44   ;;  %v22996_v15 = vld [vmem:[#allocation124_spill] sm:$0xff]  ;;  %v13168_v4 = vld [vmem:[%s22587_s7 + $0xb8] sm:$0xff]  ;;  %v13161_v44 = vld [vmem:[%s22587_s7 + $0x80] sm:$0xff] }
 0x65a   : > { %22987 = vst [vmem:[#allocation174_spill] sm:$0xff] %v20422_v8  ;;  %7000 = vmatmul.mubr.bf16.gmra.mrb[220].mxu0 %v16979_v52  ;;  %22993 = vst [vmem:[#allocation176_spill] sm:$0xff] %v20433_v20  ;;  %v14683_v63 = vadd.f32 %v14682_v37, %v22994_v54  ;;  %v7875_v50 = vmul.f32 0.01, %v14679_v22  ;;  %v20436_v47 = vpop.f32.mrb[123].mxu1  ;;  %v22997_v29 = vld [vmem:[#allocation42_spill] sm:$0xff] }
 0x65b   : > { %22990 = vst [vmem:[#allocation175_spill] sm:$0xff] %v20428_v35  ;;  %7009 = vmatprep.mubr.bf16.mxu0 %v16981_v51  ;;  %22995 = vst [vmem:[#allocation122_spill] sm:$0xff] %v20436_v47  ;;  %v14685_v60 = vadd.f32 %v14684_v34, %v22996_v15  ;;  %v7876_v36 = vmul.f32 0.01, %v14681_v23  ;;  %13294 = vperm.xlu0 %16217, %v13168_v4   ;;  %v16983_v37 = vld [vmem:[%s22581_s1 + $0xc50] ss:$28 sps:$4 sm:$0xff]   ;;  %v20446_v51 = vpop.permute.xlu1 %8780 }
 0x65c   : > { %v7877_v42 = vmul.f32 0.01, %v14683_v63  ;;  %22998 = vst [vmem:[#allocation124_spill] sm:$0xff] %v20446_v51  ;;  %v13169_v34 = vld [vmem:[%s22587_s7 + $0xc0] sm:$0xff]  ;;  %v8131_v54 = vmax.f32 %v14679_v22, %v7875_v50  ;;  %v16985_v10 = vld [vmem:[%s22581_s1 + $0xc8c] ss:$28 sps:$4 sm:$0xff]   ;;  %v20461_v18 = vpop.permute.xlu0 %8835 }
 0x65d   : > { %v6741_v52 = vpop.f32.mrb[116].mxu0  ;;  %v7878_v7 = vmul.f32 0.01, %v14685_v60  ;;  %13259 = vperm.xlu1 %16218, %v13161_v44   ;;  %v20458_v8 = vpop.f32.mrb[124].mxu1  ;;  %v8132_v51 = vmax.f32 %v14681_v23, %v7876_v36  ;;  %v23000_v47 = vld [vmem:[#allocation57_spill] sm:$0xff]  ;;  %v23003_v50 = vld [vmem:[#allocation126_spill] sm:$0xff] }
 0x65e   : > { %v14686_v58 = vadd.f32 %v6741_v52, %v22997_v29  ;;  %v6743_v45 = vpop.f32.mrb[117].mxu0  ;;  %v8133_v15 = vmax.f32 %v14683_v63, %v7877_v42  ;;  %22999 = vst [vmem:[#allocation42_spill] sm:$0xff] %v20458_v8  ;;  %23001 = vst [vmem:[#allocation57_spill] sm:$0xff] %v20461_v18  ;;  %v12140_v63 = vld [vmem:[%s22586_s6 + $0xa8] sm:$0xff]  ;;  %v23008_v44 = vld [vmem:[#allocation129_spill] sm:$0xff] }
 0x65f   : > { %v14688_v4 = vadd.f32 %v6743_v45, %v22997_v29  ;;  %v6745_v52 = vpop.f32.mrb[118].mxu0  ;;  %v8134_v35 = vmax.f32 %v14685_v60, %v7878_v7  ;;  %13299 = vperm.xlu0 %16217, %v13169_v34   ;;  %v20470_v45 = vpop.f32.mrb[125].mxu1  ;;  %v23006_v60 = vld [vmem:[#allocation128_spill] sm:$0xff] }
 0x660   : > { %v14690_v20 = vadd.f32 %v6745_v52, %v23000_v47  ;;  %v6747_v14 = vpop.f32.mrb[119].mxu0  ;;  %v20466_v22 = vpack.c.bf16 %v8133_v15, %v8131_v54  ;;  %v14687_v42 = vadd.f32 %v14686_v58, %v23003_v50  ;;  %23004 = vst [vmem:[#allocation126_spill] sm:$0xff] %v20470_v45  ;;  %v20475_v7 = vpop.f32.mrb[126].mxu1  ;;  %v23010_v58 = vld [vmem:[#allocation130_spill] sm:$0xff] }
 0x661   : > { %v14692_v29 = vadd.f32 %v6747_v14, %v23000_v47  ;;  %v20472_v23 = vpack.c.bf16 %v8134_v35, %v8132_v51  ;;  %v14689_v36 = vadd.f32 %v14688_v4, %v23006_v60  ;;  %23007 = vst [vmem:[#allocation128_spill] sm:$0xff] %v20475_v7  ;;  %12258 = vperm.xlu1 %16218, %v12140_v63   ;;  %v20478_v54 = vpop.f32.mrb[127].mxu1  ;;  %v20481_v47 = vpop.permute.xlu1 %8790  ;;  %v13170_v35 = vld [vmem:[%s22587_s7 + $0xc8] sm:$0xff]  ;;  %v13171_v60 = vld [vmem:[%s22587_s7 + $0xd0] sm:$0xff] }
 0x662   : > { %23002 = vst [vmem:[#allocation177_spill] sm:$0xff] %v20466_v22  ;;  %7010 = vmatmul.mubr.bf16.gmra.mrb[224].mxu0 %v16983_v37  ;;  %v14691_v52 = vadd.f32 %v14690_v20, %v23008_v44  ;;  %v7879_v18 = vmul.f32 0.01, %v14687_v42  ;;  %23009 = vst [vmem:[#allocation129_spill] sm:$0xff] %v20478_v54  ;;  %v23012_v4 = vld [vmem:[#allocation44_spill] sm:$0xff]  ;;  %v20490_v63 = vpop.permute.xlu0 %8845  ;;  %v20502_v22 = vpop.f32.mrb[128].mxu1 }
 0x663   : > { %23005 = vst [vmem:[#allocation178_spill] sm:$0xff] %v20472_v23  ;;  %7019 = vmatprep.mubr.bf16.mxu0 %v16985_v10  ;;  %v14693_v15 = vadd.f32 %v14692_v29, %v23010_v58  ;;  %v7880_v14 = vmul.f32 0.01, %v14689_v36  ;;  %23011 = vst [vmem:[#allocation130_spill] sm:$0xff] %v20481_v47  ;;  %13304 = vperm.xlu0 %16217, %v13170_v35   ;;  %v16987_v10 = vld [vmem:[%s22581_s1 + $0xc88] ss:$28 sps:$4 sm:$0xff]  }
 0x664   : > { %v7881_v51 = vmul.f32 0.01, %v14691_v52  ;;  %23013 = vst [vmem:[#allocation44_spill] sm:$0xff] %v20490_v63  ;;  %v12141_v29 = vld [vmem:[%s22586_s6 + $0xb0] sm:$0xff]  ;;  %v8135_v44 = vmax.f32 %v14687_v42, %v7879_v18  ;;  %v16989_v47 = vld [vmem:[%s22581_s1 + $0xcc4] ss:$28 sps:$4 sm:$0xff]  }
 0x665   : > { %v6751_v37 = vpop.f32.mrb[120].mxu0  ;;  %v7882_v34 = vmul.f32 0.01, %v14693_v15  ;;  %12263 = vperm.xlu1 %16218, %v12141_v29   ;;  %23014 = vst [vmem:[#allocation179_spill] sm:$0xff] %v20502_v22  ;;  %v8136_v63 = vmax.f32 %v14689_v36, %v7880_v14  ;;  %v23015_v54 = vld [vmem:[#allocation59_spill] sm:$0xff]  ;;  %v12142_v18 = vld [vmem:[%s22586_s6 + $0xb8] sm:$0xff]  ;;  %v20517_v14 = vpop.permute.xlu1 %8800 }
 0x666   : > { %v14694_v20 = vadd.f32 %v6751_v37, %v23012_v4  ;;  %v6753_v50 = vpop.f32.mrb[121].mxu0  ;;  %v8137_v58 = vmax.f32 %v14691_v52, %v7881_v51  ;;  %v23017_v52 = vld [vmem:[#allocation133_spill] sm:$0xff]  ;;  %v23020_v36 = vld [vmem:[#allocation134_spill] sm:$0xff] }
 0x667   : > { %v14696_v35 = vadd.f32 %v6753_v50, %v23012_v4  ;;  %v6755_v37 = vpop.f32.mrb[122].mxu0  ;;  %v8138_v23 = vmax.f32 %v14693_v15, %v7882_v34  ;;  %13309 = vperm.xlu0 %16217, %v13171_v60   ;;  %v20512_v50 = vpop.f32.mrb[129].mxu1  ;;  %23021 = vst [vmem:[#allocation134_spill] sm:$0xff] %v20517_v14 }
 0x668   : > { %v14698_v7 = vadd.f32 %v6755_v37, %v23015_v54  ;;  %v6757_v45 = vpop.f32.mrb[123].mxu0  ;;  %v20508_v42 = vpack.c.bf16 %v8137_v58, %v8135_v44  ;;  %v14695_v51 = vadd.f32 %v14694_v20, %v23017_v52  ;;  %23018 = vst [vmem:[#allocation133_spill] sm:$0xff] %v20512_v50  ;;  %v20519_v34 = vpop.f32.mrb[130].mxu1  ;;  %v23023_v37 = vld [vmem:[#allocation135_spill] sm:$0xff]  ;;  %v23027_v52 = vld [vmem:[#allocation46_spill] sm:$0xff] }
 0x669   : > { %v14700_v4 = vadd.f32 %v6757_v45, %v23015_v54  ;;  %v20514_v29 = vpack.c.bf16 %v8138_v23, %v8136_v63  ;;  %v14697_v15 = vadd.f32 %v14696_v35, %v23020_v36  ;;  %23022 = vst [vmem:[#allocation181_spill] sm:$0xff] %v20519_v34  ;;  %12268 = vperm.xlu1 %16218, %v12142_v18   ;;  %v20522_v20 = vpop.f32.mrb[131].mxu1  ;;  %v23025_v45 = vld [vmem:[#allocation136_spill] sm:$0xff]  ;;  %v13172_v23 = vld [vmem:[%s22587_s7 + $0xd8] sm:$0xff]  ;;  %v20528_v58 = vpop.permute.xlu0 %8855  ;;  %v12143_v18 = vld [vmem:[%s22586_s6 + $0xc0] sm:$0xff] }
 0x66a   : > { %23016 = vst [vmem:[#allocation59_spill] sm:$0xff] %v20508_v42  ;;  %7020 = vmatmul.mubr.bf16.gmra.mrb[228].mxu0 %v16987_v10  ;;  %v14699_v22 = vadd.f32 %v14698_v7, %v23023_v37  ;;  %v7883_v44 = vmul.f32 0.01, %v14695_v51  ;;  %23024 = vst [vmem:[#allocation135_spill] sm:$0xff] %v20522_v20  ;;  %v20544_v14 = vpop.f32.mrb[132].mxu1  ;;  %v23028_v20 = vld [vmem:[#allocation61_spill] sm:$0xff]  ;;  %v20547_v8 = vpop.permute.xlu1 %8810 }
 0x66b   : > { %23019 = vst [vmem:[#allocation180_spill] sm:$0xff] %v20514_v29  ;;  %7029 = vmatprep.mubr.bf16.mxu0 %v16989_v47  ;;  %v14701_v54 = vadd.f32 %v14700_v4, %v23025_v45  ;;  %v7884_v60 = vmul.f32 0.01, %v14697_v15  ;;  %23026 = vst [vmem:[#allocation136_spill] sm:$0xff] %v20528_v58  ;;  %13314 = vperm.xlu0 %16217, %v13172_v23   ;;  %v16991_v47 = vld [vmem:[%s22581_s1 + $0xcc0] ss:$28 sps:$4 sm:$0xff]  }
 0x66c   : > { %v7885_v63 = vmul.f32 0.01, %v14699_v22  ;;  %v13173_v4 = vld [vmem:[%s22587_s7 + $0xe0] sm:$0xff]  ;;  %v8139_v37 = vmax.f32 %v14695_v51, %v7883_v44  ;;  %23029 = vst [vmem:[#allocation46_spill] sm:$0xff] %v20547_v8 }
 0x66d   : > { %v6761_v10 = vpop.f32.mrb[124].mxu0  ;;  %v7886_v35 = vmul.f32 0.01, %v14701_v54  ;;  %12273 = vperm.xlu1 %16218, %v12143_v18   ;;  %v8140_v42 = vmax.f32 %v14697_v15, %v7884_v60  ;;  %v16995_v18 = vld [vmem:[%s22581_s1 + $0xcf8] ss:$28 sps:$4 sm:$0xff]  }
 0x66e   : > { %v14702_v7 = vadd.f32 %v6761_v10, %v23027_v52  ;;  %v6763_v36 = vpop.f32.mrb[125].mxu0  ;;  %v8141_v45 = vmax.f32 %v14699_v22, %v7885_v63  ;;  %v16993_v10 = vld [vmem:[%s22581_s1 + $0xcfc] ss:$28 sps:$4 sm:$0xff]   ;;  %v12144_v22 = vld [vmem:[%s22586_s6 + $0xc8] sm:$0xff] }
 0x66f   : > { %v14704_v23 = vadd.f32 %v6763_v36, %v23027_v52  ;;  %v6765_v58 = vpop.f32.mrb[126].mxu0  ;;  %v8142_v29 = vmax.f32 %v14701_v54, %v7886_v35  ;;  %13319 = vperm.xlu0 %16217, %v13173_v4   ;;  %v20556_v52 = vpop.f32.mrb[133].mxu1 }
 0x670   : > { %v14706_v34 = vadd.f32 %v6765_v58, %v23028_v20  ;;  %v6767_v50 = vpop.f32.mrb[127].mxu0  ;;  %v20552_v51 = vpack.c.bf16 %v8141_v45, %v8139_v37  ;;  %v14703_v44 = vadd.f32 %v14702_v7, %v19834_v16  ;;  %v20561_v60 = vpop.f32.mrb[134].mxu1  ;;  %v13475_v37 = vld [vmem:[#allocation2] sm:$0x1] }
 0x671   : > { %v14708_v63 = vadd.f32 %v6767_v50, %v23028_v20  ;;  %v20558_v15 = vpack.c.bf16 %v8142_v29, %v8140_v42  ;;  %v14705_v54 = vadd.f32 %v14704_v23, %v19837_v32  ;;  %v20564_v36 = vpop.permute.xlu0 %8865  ;;  %12278 = vperm.xlu1 %16218, %v12144_v22   ;;  %v20566_v16 = vpop.f32.mrb[135].mxu1  ;;  %v13175_v42 = vld [vmem:[%s22587_s7 + $0xf0] sm:$0xff] }
 0x672   : > { %23030 = vst [vmem:[#allocation61_spill] sm:$0xff] %v20552_v51  ;;  %7030 = vmatmul.mubr.bf16.gmra.mrb[232].mxu0 %v16991_v47  ;;  %v14707_v58 = vadd.f32 %v14706_v34, %v19846_v0  ;;  %v7887_v35 = vmul.f32 0.01, %v14703_v44  ;;  %23032 = vst [vmem:[#allocation183_spill] sm:$0xff] %v20564_v36  ;;  %v23033_v47 = vld [vmem:[#allocation48_spill] sm:$0xff]  ;;  %v20576_v4 = vpop.permute.xlu1 %8820 }
 0x673   : > { %23031 = vst [vmem:[#allocation182_spill] sm:$0xff] %v20558_v15  ;;  %7039 = vmatprep.mubr.bf16.mxu0 %v16993_v10  ;;  %v14709_v50 = vadd.f32 %v14708_v63, %v19854_v26  ;;  %v7888_v20 = vmul.f32 0.01, %v14705_v54  ;;  %13329 = vperm.xlu0 %16217, %v13175_v42   ;;  %23034 = vst [vmem:[#allocation48_spill] sm:$0xff] %v20576_v4  ;;  %v12145_v26 = vld [vmem:[%s22586_s6 + $0xd0] sm:$0xff]  ;;  %v20585_v42 = vpop.f32.mrb[136].mxu1 }
 0x674   : > { %v7889_v32 = vmul.f32 0.01, %v14707_v58  ;;  %v8143_v45 = vmax.f32 %v14703_v44, %v7887_v35  ;;  %v16997_v63 = vld [vmem:[%s22581_s1 + $0xd34] ss:$28 sps:$4 sm:$0xff]   ;;  %v23035_v4 = vld [vmem:[#allocation63_spill] sm:$0xff]  ;;  %v12146_v44 = vld [vmem:[%s22586_s6 + $0xd8] sm:$0xff] }
 0x675   : > { %v6771_v29 = vpop.f32.mrb[128].mxu0  ;;  %v7890_v7 = vmul.f32 0.01, %v14709_v50  ;;  %12283 = vperm.xlu1 %16218, %v12145_v26  }
 0x676   : > { %v14710_v0 = vadd.f32 %v6771_v29, %v23033_v47  ;;  %v6773_v34 = vpop.f32.mrb[129].mxu0  ;;  %v8145_v23 = vmax.f32 %v14707_v58, %v7889_v32  ;;  %v8144_v29 = vmax.f32 %v14705_v54, %v7888_v20  ;;  %v20598_v54 = vpop.f32.mrb[137].mxu1 }
 0x677   : > { %v14712_v10 = vadd.f32 %v6773_v34, %v23033_v47  ;;  %v6775_v22 = vpop.f32.mrb[130].mxu0  ;;  %v8146_v36 = vmax.f32 %v14709_v50, %v7890_v7  ;;  %v20596_v47 = vpop.permute.xlu0 %8875  ;;  %13478 = vperm.xlu0 %16217, %v13475_v37  }
 0x678   : > { %v14714_v8 = vadd.f32 %v6775_v22, %v23035_v4  ;;  %v14711_v51 = vadd.f32 %v14710_v0, %v19880_v13  ;;  %v6777_v15 = vpop.f32.mrb[131].mxu0  ;;  %v20592_v58 = vpack.c.bf16 %v8145_v23, %v8143_v45  ;;  %23037 = vst [vmem:[#allocation184_spill] sm:$0xff] %v20596_v47  ;;  %v20603_v7 = vpop.f32.mrb[138].mxu1  ;;  %v23040_v23 = vld [vmem:[#allocation50_spill] sm:$0xff]  ;;  %v17001_v22 = vld [vmem:[%s22581_s1 + $0xd6c] ss:$28 sps:$4 sm:$0xff]  }
 0x679   : > { %v14716_v35 = vadd.f32 %v6777_v15, %v23035_v4  ;;  %v14713_v32 = vadd.f32 %v14712_v10, %v19883_v43  ;;  %v20600_v50 = vpack.c.bf16 %v8146_v36, %v8144_v29  ;;  %12288 = vperm.xlu1 %16218, %v12146_v44   ;;  %v20606_v15 = vpop.f32.mrb[139].mxu1  ;;  %v20608_v4 = vpop.permute.xlu1 %8830 }
 0x67a   : > { %23036 = vst [vmem:[#allocation63_spill] sm:$0xff] %v20592_v58  ;;  %v7891_v20 = vmul.f32 0.01, %v14711_v51  ;;  %v14715_v13 = vadd.f32 %v14714_v8, %v19889_v27  ;;  %7040 = vmatmul.mubr.bf16.gmra.mrb[236].mxu0 %v16995_v18  ;;  %23039 = vst [vmem:[#allocation186_spill] sm:$0xff] %v20608_v4  ;;  %v16999_v8 = vld [vmem:[%s22581_s1 + $0xd30] ss:$28 sps:$4 sm:$0xff]  }
 0x67b   : > { %23038 = vst [vmem:[#allocation185_spill] sm:$0xff] %v20600_v50  ;;  %v7892_v0 = vmul.f32 0.01, %v14713_v32  ;;  %v14717_v34 = vadd.f32 %v14716_v35, %v19896_v21  ;;  %7049 = vmatprep.mubr.bf16.mxu0 %v16997_v63  ;;  %v20618_v63 = vpop.f32.mrb[140].mxu1 }
 0x67c   : > { %v7893_v43 = vmul.f32 0.01, %v14715_v13  ;;  %v8147_v36 = vmax.f32 %v14711_v51, %v7891_v20  ;;  %v23041_v51 = vld [vmem:[#allocation65_spill] sm:$0xff]  ;;  %v20629_v47 = vpop.f32.mrb[141].mxu1 }
 0x67d   : > { %v7894_v26 = vmul.f32 0.01, %v14717_v34  ;;  %v6781_v37 = vpop.f32.mrb[132].mxu0  ;;  %v8148_v29 = vmax.f32 %v14713_v32, %v7892_v0 }
 0x67e   : > { %v8149_v45 = vmax.f32 %v14715_v13, %v7893_v43  ;;  %v14718_v10 = vadd.f32 %v6781_v37, %v23040_v23  ;;  %v6783_v27 = vpop.f32.mrb[133].mxu0  ;;  %v12147_v43 = vld [vmem:[%s22586_s6 + $0xe0] sm:$0xff] }
 0x67f   : > { %v14720_v21 = vadd.f32 %v6783_v27, %v23040_v23  ;;  %v6785_v18 = vpop.f32.mrb[134].mxu0  ;;  %v8150_v44 = vmax.f32 %v14717_v34, %v7894_v26  ;;  %12293 = vperm.xlu1 %16218, %v12147_v43   ;;  %v12148_v26 = vld [vmem:[%s22586_s6 + $0xe8] sm:$0xff] }
 0x680   : > { %v14722_v35 = vadd.f32 %v6785_v18, %v23041_v51  ;;  %v14719_v20 = vadd.f32 %v14718_v10, %v19923_v28  ;;  %v6787_v13 = vpop.f32.mrb[135].mxu0  ;;  %v20625_v37 = vpack.c.bf16 %v8149_v45, %v8147_v36  ;;  %v20634_v28 = vpop.permute.xlu1 %8840 }
 0x681   : > { %v14724_v23 = vadd.f32 %v6787_v13, %v23041_v51  ;;  %v14721_v27 = vadd.f32 %v14720_v21, %v19935_v46  ;;  %v20631_v32 = vpack.c.bf16 %v8150_v44, %v8148_v29  ;;  %23044 = vst [vmem:[#allocation187_spill] sm:$0xff] %v20634_v28  ;;  %v20639_v36 = vpop.f32.mrb[142].mxu1  ;;  %v23045_v44 = vld [vmem:[#allocation52_spill] sm:$0xff]  ;;  %v17003_v13 = vld [vmem:[%s22581_s1 + $0xd68] ss:$28 sps:$4 sm:$0xff]  }
 0x682   : > { %23042 = vst [vmem:[#allocation50_spill] sm:$0xff] %v20625_v37  ;;  %v7895_v0 = vmul.f32 0.01, %v14719_v20  ;;  %v14723_v34 = vadd.f32 %v14722_v35, %v19940_v40  ;;  %7050 = vmatmul.mubr.bf16.gmra.mrb[240].mxu0 %v16999_v8  ;;  %v20642_v10 = vpop.f32.mrb[143].mxu1 }
 0x683   : > { %23043 = vst [vmem:[#allocation65_spill] sm:$0xff] %v20631_v32  ;;  %v7896_v45 = vmul.f32 0.01, %v14721_v27  ;;  %v14725_v46 = vadd.f32 %v14724_v23, %v19946_v39  ;;  %7059 = vmatprep.mubr.bf16.mxu0 %v17001_v22  ;;  %12298 = vperm.xlu1 %16218, %v12148_v26   ;;  %v17005_v39 = vld [vmem:[%s22581_s1 + $0xda4] ss:$28 sps:$4 sm:$0xff]   ;;  %v20652_v22 = vpop.f32.mrb[144].mxu1 }
 0x684   : > { %v7897_v21 = vmul.f32 0.01, %v14723_v34  ;;  %v8151_v40 = vmax.f32 %v14719_v20, %v7895_v0  ;;  %v23046_v20 = vld [vmem:[#allocation67_spill] sm:$0xff] }
 0x685   : > { %v7898_v18 = vmul.f32 0.01, %v14725_v46  ;;  %v6791_v29 = vpop.f32.mrb[136].mxu0  ;;  %v8152_v23 = vmax.f32 %v14721_v27, %v7896_v45  ;;  %v20665_v27 = vpop.f32.mrb[145].mxu1 }
 0x686   : > { %v8153_v8 = vmax.f32 %v14723_v34, %v7897_v21  ;;  %v14726_v51 = vadd.f32 %v6791_v29, %v23045_v44  ;;  %v6793_v35 = vpop.f32.mrb[137].mxu0  ;;  %v20656_v29 = vpop.permute.xlu1 %8850 }
 0x687   : > { %v14728_v43 = vadd.f32 %v6793_v35, %v23045_v44  ;;  %v6795_v28 = vpop.f32.mrb[138].mxu0  ;;  %v8154_v26 = vmax.f32 %v14725_v46, %v7898_v18  ;;  %23047 = vst [vmem:[#allocation52_spill] sm:$0xff] %v20656_v29  ;;  %v12149_v44 = vld [vmem:[%s22586_s6 + $0xf0] sm:$0xff]  ;;  %v12150_v46 = vld [vmem:[%s22586_s6 + $0xf8] sm:$0xff]  ;;  %v20673_v18 = vpop.f32.mrb[146].mxu1 }
 0x688   : > { %v14730_v0 = vadd.f32 %v6795_v28, %v23046_v20  ;;  %v14727_v34 = vadd.f32 %v14726_v51, %v19971_v59  ;;  %v6797_v21 = vpop.f32.mrb[139].mxu0  ;;  %v20661_v35 = vpack.c.bf16 %v8153_v8, %v8151_v40  ;;  %12303 = vperm.xlu1 %16218, %v12149_v44  }
 0x689   : > { %v14732_v4 = vadd.f32 %v6797_v21, %v23046_v20  ;;  %v14729_v37 = vadd.f32 %v14728_v43, %v19981_v9  ;;  %v20667_v45 = vpack.c.bf16 %v8154_v26, %v8152_v23  ;;  %v20676_v9 = vpop.f32.mrb[147].mxu1  ;;  %v17007_v21 = vld [vmem:[%s22581_s1 + $0xda0] ss:$28 sps:$4 sm:$0xff]  }
 0x68a   : > { %23048 = vst [vmem:[#allocation67_spill] sm:$0xff] %v20661_v35  ;;  %v7899_v28 = vmul.f32 0.01, %v14727_v34  ;;  %v14731_v59 = vadd.f32 %v14730_v0, %v19988_v31  ;;  %7060 = vmatmul.mubr.bf16.gmra.mrb[244].mxu0 %v17003_v13  ;;  %v23050_v31 = vld [vmem:[#allocation54_spill] sm:$0xff]  ;;  %v20682_v44 = vpop.permute.xlu1 %8860  ;;  %v20688_v29 = vpop.f32.mrb[148].mxu1 }
 0x68b   : > { %23049 = vst [vmem:[#allocation188_spill] sm:$0xff] %v20667_v45  ;;  %v7900_v40 = vmul.f32 0.01, %v14729_v37  ;;  %v14733_v8 = vadd.f32 %v14732_v4, %v19994_v55  ;;  %7069 = vmatprep.mubr.bf16.mxu0 %v17005_v39  ;;  %23051 = vst [vmem:[#allocation54_spill] sm:$0xff] %v20682_v44  ;;  %v17009_v39 = vld [vmem:[%s22581_s1 + $0xddc] ss:$28 sps:$4 sm:$0xff]  }
 0x68c   : > { %v7901_v51 = vmul.f32 0.01, %v14731_v59  ;;  %12308 = vperm.xlu1 %16218, %v12150_v46   ;;  %v8155_v26 = vmax.f32 %v14727_v34, %v7899_v28  ;;  %v13174_v44 = vld [vmem:[%s22587_s7 + $0xe8] sm:$0xff]  ;;  %v20699_v45 = vpop.f32.mrb[149].mxu1 }
 0x68d   : > { %v7902_v43 = vmul.f32 0.01, %v14733_v8  ;;  %v6801_v23 = vpop.f32.mrb[140].mxu0  ;;  %v8156_v34 = vmax.f32 %v14729_v37, %v7900_v40 }
 0x68e   : > { %v8157_v20 = vmax.f32 %v14731_v59, %v7901_v51  ;;  %v14734_v13 = vadd.f32 %v6801_v23, %v23050_v31  ;;  %v6803_v0 = vpop.f32.mrb[141].mxu0  ;;  %v23052_v59 = vld [vmem:[#allocation69_spill] sm:$0xff] }
 0x68f   : > { %v14736_v55 = vadd.f32 %v6803_v0, %v23050_v31  ;;  %v6805_v4 = vpop.f32.mrb[142].mxu0  ;;  %v8158_v28 = vmax.f32 %v14733_v8, %v7902_v43  ;;  %v20707_v43 = vpop.f32.mrb[150].mxu1 }
 0x690   : > { %v14738_v46 = vadd.f32 %v6805_v4, %v23052_v59  ;;  %v14735_v51 = vadd.f32 %v14734_v13, %v20017_v49  ;;  %v6807_v23 = vpop.f32.mrb[143].mxu0  ;;  %v20695_v35 = vpack.c.bf16 %v8157_v20, %v8155_v26  ;;  %13324 = vperm.xlu1 %16218, %v13174_v44   ;;  %v13176_v49 = vld [vmem:[%s22587_s7 + $0xf8] sm:$0xff]  ;;  %v20712_v4 = vpop.permute.xlu1 %8870 }
 0x691   : > { %v14740_v31 = vadd.f32 %v6807_v23, %v23052_v59  ;;  %v14737_v0 = vadd.f32 %v14736_v55, %v20029_v61  ;;  %v20701_v37 = vpack.c.bf16 %v8158_v28, %v8156_v34  ;;  %v20710_v61 = vpop.f32.mrb[151].mxu1  ;;  %23055 = vst [vmem:[#allocation190_spill] sm:$0xff] %v20712_v4  ;;  %v23056_v34 = vld [vmem:[#allocation56_spill] sm:$0xff] }
 0x692   : > { %23053 = vst [vmem:[#allocation69_spill] sm:$0xff] %v20695_v35  ;;  %v7903_v40 = vmul.f32 0.01, %v14735_v51  ;;  %v14739_v8 = vadd.f32 %v14738_v46, %v20036_v38  ;;  %7070 = vmatmul.mubr.bf16.gmra.mrb[248].mxu0 %v17007_v21  ;;  %v17011_v46 = vld [vmem:[%s22581_s1 + $0xdd8] ss:$28 sps:$4 sm:$0xff]   ;;  %v20719_v23 = vpop.f32.mrb[152].mxu1 }
 0x693   : > { %23054 = vst [vmem:[#allocation189_spill] sm:$0xff] %v20701_v37  ;;  %v7904_v26 = vmul.f32 0.01, %v14737_v0  ;;  %v14741_v20 = vadd.f32 %v14740_v31, %v20042_v1  ;;  %7079 = vmatprep.mubr.bf16.mxu0 %v17009_v39  ;;  %v23057_v37 = vld [vmem:[#allocation72_spill] sm:$0xff] }
 0x694   : > { %v7905_v13 = vmul.f32 0.01, %v14739_v8  ;;  %13334 = vperm.xlu1 %16218, %v13176_v49   ;;  %v8159_v38 = vmax.f32 %v14735_v51, %v7903_v40 }
 0x695   : > { %v7906_v44 = vmul.f32 0.01, %v14741_v20  ;;  %v6811_v55 = vpop.f32.mrb[144].mxu0  ;;  %v8160_v31 = vmax.f32 %v14737_v0, %v7904_v26 }
 0x696   : > { %v8161_v21 = vmax.f32 %v14739_v8, %v7905_v13  ;;  %v14742_v28 = vadd.f32 %v6811_v55, %v23056_v34  ;;  %v6813_v59 = vpop.f32.mrb[145].mxu0  ;;  %v20727_v55 = vpop.f32.mrb[153].mxu1 }
 0x697   : > { %v14744_v1 = vadd.f32 %v6813_v59, %v23056_v34  ;;  %v6815_v39 = vpop.f32.mrb[146].mxu0  ;;  %v8162_v35 = vmax.f32 %v14741_v20, %v7906_v44  ;;  %v20732_v0 = vpop.f32.mrb[154].mxu1 }
 0x698   : > { %v14746_v32 = vadd.f32 %v6815_v39, %v23057_v37  ;;  %v14743_v49 = vadd.f32 %v14742_v28, %v20065_v19  ;;  %v6817_v51 = vpop.f32.mrb[147].mxu0  ;;  %v20723_v40 = vpack.c.bf16 %v8161_v21, %v8159_v38  ;;  %v20736_v20 = vpop.f32.mrb[155].mxu1 }
 0x699   : > { %v14748_v8 = vadd.f32 %v6817_v51, %v23057_v37  ;;  %v14745_v13 = vadd.f32 %v14744_v1, %v20077_v17  ;;  %v20729_v4 = vpack.c.bf16 %v8162_v35, %v8160_v31  ;;  %v23060_v35 = vld [vmem:[#allocation58_spill] sm:$0xff]  ;;  %v23061_v51 = vld [vmem:[#allocation76_spill] sm:$0xff] }
 0x69a   : > { %23058 = vst [vmem:[#allocation56_spill] sm:$0xff] %v20723_v40  ;;  %v7907_v34 = vmul.f32 0.01, %v14743_v49  ;;  %v14747_v59 = vadd.f32 %v14746_v32, %v20082_v33  ;;  %7080 = vmatmul.mubr.bf16.gmra.mrb[252].mxu0 %v17011_v46  ;;  %v17013_v33 = vld [vmem:[%s22581_s1 + $0x18] ss:$28 sps:$4 sm:$0xff]  }
 0x69b   : > { %23059 = vst [vmem:[#allocation72_spill] sm:$0xff] %v20729_v4  ;;  %v7908_v26 = vmul.f32 0.01, %v14745_v13  ;;  %v14749_v19 = vadd.f32 %v14748_v8, %v20088_v25  ;;  %7122 = vmatprep.mubr.bf16.mxu0 %v22776_v6  ;;  %v20743_v25 = vpop.f32.mrb[156].mxu1 }
 0x69c   : > { %v7909_v37 = vmul.f32 0.01, %v14747_v59  ;;  %v8163_v38 = vmax.f32 %v14743_v49, %v7907_v34 }
 0x69d   : > { %v7910_v44 = vmul.f32 0.01, %v14749_v19  ;;  %v6821_v17 = vpop.f32.mrb[148].mxu0  ;;  %v8164_v39 = vmax.f32 %v14745_v13, %v7908_v26 }
 0x69e   : > { %v8165_v21 = vmax.f32 %v14747_v59, %v7909_v37  ;;  %v14750_v28 = vadd.f32 %v6821_v17, %v23060_v35  ;;  %v6823_v1 = vpop.f32.mrb[149].mxu0  ;;  %v20751_v17 = vpop.f32.mrb[157].mxu1 }
 0x69f   : > { %v14752_v32 = vadd.f32 %v6823_v1, %v23060_v35  ;;  %v6825_v46 = vpop.f32.mrb[150].mxu0  ;;  %v8166_v31 = vmax.f32 %v14749_v19, %v7910_v44  ;;  %v20756_v13 = vpop.f32.mrb[158].mxu1 }
 0x6a0   : > { %v14754_v8 = vadd.f32 %v6825_v46, %v23061_v51  ;;  %v14751_v40 = vadd.f32 %v14750_v28, %v20112_v53  ;;  %v6827_v49 = vpop.f32.mrb[151].mxu0  ;;  %v20747_v34 = vpack.c.bf16 %v8165_v21, %v8163_v38  ;;  %v20760_v19 = vpop.f32.mrb[159].mxu1 }
 0x6a1   : > { %v14756_v59 = vadd.f32 %v6827_v49, %v23061_v51  ;;  %v14753_v37 = vadd.f32 %v14752_v32, %v20122_v56  ;;  %v20753_v4 = vpack.c.bf16 %v8166_v31, %v8164_v39  ;;  %v23064_v32 = vld [vmem:[#allocation60_spill] sm:$0xff] }
 0x6a2   : > { %23062 = vst [vmem:[#allocation58_spill] sm:$0xff] %v20747_v34  ;;  %v7911_v35 = vmul.f32 0.01, %v14751_v40  ;;  %v14755_v1 = vadd.f32 %v14754_v8, %v20129_v57  ;;  %7123 = vmatmul.mubr.bf16.vlgmr.msra.gmra.mrb[0].mxu0 %v17013_v33  ;;  %v17014_v57 = vld [vmem:[%s22581_s1 + $0x50] ss:$28 sps:$4 sm:$0xff]  }
 0x6a3   : > { %23063 = vst [vmem:[#allocation76_spill] sm:$0xff] %v20753_v4  ;;  %v7912_v26 = vmul.f32 0.01, %v14753_v37  ;;  %v14757_v53 = vadd.f32 %v14756_v59, %v20132_v24  ;;  %7132 = vmatprep.mubr.bf16.mxu0 %v22776_v6  ;;  %v20767_v24 = vpop.f32.mrb[160].mxu1  ;;  %v23065_v49 = vld [vmem:[#allocation80_spill] sm:$0xff] }
 0x6a4   : > { %v7913_v44 = vmul.f32 0.01, %v14755_v1  ;;  %v8167_v21 = vmax.f32 %v14751_v40, %v7911_v35 }
 0x6a5   : > { %v7914_v38 = vmul.f32 0.01, %v14757_v53  ;;  %v6831_v56 = vpop.f32.mrb[152].mxu0  ;;  %v8168_v51 = vmax.f32 %v14753_v37, %v7912_v26 }
 0x6a6   : > { %v8169_v28 = vmax.f32 %v14755_v1, %v7913_v44  ;;  %v14758_v46 = vadd.f32 %v6831_v56, %v23064_v32  ;;  %v6833_v39 = vpop.f32.mrb[153].mxu0  ;;  %v20775_v56 = vpop.f32.mrb[161].mxu1 }
 0x6a7   : > { %v14760_v33 = vadd.f32 %v6833_v39, %v23064_v32  ;;  %v6835_v31 = vpop.f32.mrb[154].mxu0  ;;  %v8170_v8 = vmax.f32 %v14757_v53, %v7914_v38  ;;  %v20780_v37 = vpop.f32.mrb[162].mxu1 }
 0x6a8   : > { %v14762_v59 = vadd.f32 %v6835_v31, %v23065_v49  ;;  %v14759_v34 = vadd.f32 %v14758_v46, %v20154_v5  ;;  %v6837_v40 = vpop.f32.mrb[155].mxu0  ;;  %v20771_v35 = vpack.c.bf16 %v8169_v28, %v8167_v21  ;;  %v20784_v53 = vpop.f32.mrb[163].mxu1 }
 0x6a9   : > { %v14764_v1 = vadd.f32 %v6837_v40, %v23065_v49  ;;  %v14761_v44 = vadd.f32 %v14760_v33, %v20166_v41  ;;  %v20777_v4 = vpack.c.bf16 %v8170_v8, %v8168_v51  ;;  %v23068_v33 = vld [vmem:[#allocation62_spill] sm:$0xff]  ;;  %v23069_v40 = vld [vmem:[#allocation83_spill] sm:$0xff] }
 0x6aa   : > { %23066 = vst [vmem:[#allocation60_spill] sm:$0xff] %v20771_v35  ;;  %v7915_v32 = vmul.f32 0.01, %v14759_v34  ;;  %v14763_v39 = vadd.f32 %v14762_v59, %v20173_v11  ;;  %7133 = vmatmul.mubr.bf16.gmra.mrb[4].mxu0 %v17014_v57  ;;  %v17015_v11 = vld [vmem:[%s22581_s1 + $0x88] ss:$28 sps:$4 sm:$0xff]  }
 0x6ab   : > { %23067 = vst [vmem:[#allocation80_spill] sm:$0xff] %v20777_v4  ;;  %v7916_v26 = vmul.f32 0.01, %v14761_v44  ;;  %v14765_v5 = vadd.f32 %v14764_v1, %v20176_v2  ;;  %7142 = vmatprep.mubr.bf16.mxu0 %v22776_v6  ;;  %v20791_v2 = vpop.f32.mrb[164].mxu1 }
 0x6ac   : > { %v7917_v38 = vmul.f32 0.01, %v14763_v39  ;;  %v8171_v28 = vmax.f32 %v14759_v34, %v7915_v32 }
 0x6ad   : > { %v7918_v21 = vmul.f32 0.01, %v14765_v5  ;;  %v6841_v41 = vpop.f32.mrb[156].mxu0  ;;  %v8172_v49 = vmax.f32 %v14761_v44, %v7916_v26 }
 0x6ae   : > { %v8173_v46 = vmax.f32 %v14763_v39, %v7917_v38  ;;  %v14766_v31 = vadd.f32 %v6841_v41, %v23068_v33  ;;  %v6843_v51 = vpop.f32.mrb[157].mxu0  ;;  %v20799_v41 = vpop.f32.mrb[165].mxu1 }
 0x6af   : > { %v14768_v57 = vadd.f32 %v6843_v51, %v23068_v33  ;;  %v6845_v8 = vpop.f32.mrb[158].mxu0  ;;  %v8174_v59 = vmax.f32 %v14765_v5, %v7918_v21  ;;  %v20804_v44 = vpop.f32.mrb[166].mxu1 }
 0x6b0   : > { %v14770_v1 = vadd.f32 %v6845_v8, %v23069_v40  ;;  %v14767_v35 = vadd.f32 %v14766_v31, %v20198_v30  ;;  %v6847_v34 = vpop.f32.mrb[159].mxu0  ;;  %v20795_v32 = vpack.c.bf16 %v8173_v46, %v8171_v28  ;;  %v20808_v5 = vpop.f32.mrb[167].mxu1 }
 0x6b1   : > { %v14772_v39 = vadd.f32 %v6847_v34, %v23069_v40  ;;  %v14769_v38 = vadd.f32 %v14768_v57, %v20210_v62  ;;  %v20801_v4 = vpack.c.bf16 %v8174_v59, %v8172_v49  ;;  %v23072_v57 = vld [vmem:[#allocation64_spill] sm:$0xff]  ;;  %v23073_v34 = vld [vmem:[#allocation87_spill] sm:$0xff] }
 0x6b2   : > { %23070 = vst [vmem:[#allocation62_spill] sm:$0xff] %v20795_v32  ;;  %v7919_v33 = vmul.f32 0.01, %v14767_v35  ;;  %v14771_v51 = vadd.f32 %v14770_v1, %v20215_v48  ;;  %7143 = vmatmul.mubr.bf16.gmra.mrb[8].mxu0 %v17015_v11  ;;  %v17016_v48 = vld [vmem:[%s22581_s1 + $0xc0] ss:$28 sps:$4 sm:$0xff]  }
 0x6b3   : > { %23071 = vst [vmem:[#allocation83_spill] sm:$0xff] %v20801_v4  ;;  %v7920_v26 = vmul.f32 0.01, %v14769_v38  ;;  %v14773_v30 = vadd.f32 %v14772_v39, %v20218_v12  ;;  %7152 = vmatprep.mubr.bf16.mxu0 %v22776_v6  ;;  %v20815_v12 = vpop.f32.mrb[168].mxu1 }
 0x6b4   : > { %v7921_v21 = vmul.f32 0.01, %v14771_v51  ;;  %v8175_v46 = vmax.f32 %v14767_v35, %v7919_v33  ;;  %v20823_v4 = vpop.f32.mrb[169].mxu1 }
 0x6b5   : > { %v7922_v28 = vmul.f32 0.01, %v14773_v30  ;;  %v6851_v62 = vpop.f32.mrb[160].mxu0  ;;  %v8176_v40 = vmax.f32 %v14769_v38, %v7920_v26  ;;  %23076 = vst [vmem:[#allocation87_spill] sm:$0xff] %v20823_v4  ;;  %v20828_v38 = vpop.f32.mrb[170].mxu1 }
 0x6b6   : > { %v8177_v31 = vmax.f32 %v14771_v51, %v7921_v21  ;;  %v14774_v8 = vadd.f32 %v6851_v62, %v23072_v57  ;;  %v6853_v49 = vpop.f32.mrb[161].mxu0  ;;  %v23075_v21 = vld [vmem:[#allocation88_spill] sm:$0xff] }
 0x6b7   : > { %v14776_v11 = vadd.f32 %v6853_v49, %v23072_v57  ;;  %v6855_v59 = vpop.f32.mrb[162].mxu0  ;;  %v8178_v1 = vmax.f32 %v14773_v30, %v7922_v28  ;;  %v23078_v49 = vld [vmem:[#allocation47_spill] sm:$0xff]  ;;  %v23080_v30 = vld [vmem:[#allocation92_spill] sm:$0xff]  ;;  %v20832_v28 = vpop.f32.mrb[171].mxu1 }
 0x6b8   : > { %v14778_v39 = vadd.f32 %v6855_v59, %v23073_v34  ;;  %v14775_v32 = vadd.f32 %v14774_v8, %v20242_v3  ;;  %v6857_v35 = vpop.f32.mrb[163].mxu0  ;;  %v20819_v33 = vpack.c.bf16 %v8177_v31, %v8175_v46  ;;  %23079 = vst [vmem:[#allocation47_spill] sm:$0xff] %v20828_v38  ;;  %23081 = vst [vmem:[#allocation92_spill] sm:$0xff] %v20832_v28 }
 0x6b9   : > { %v14780_v51 = vadd.f32 %v6857_v35, %v23073_v34  ;;  %v14777_v62 = vadd.f32 %v14776_v11, %v23075_v21  ;;  %v20825_v58 = vpack.c.bf16 %v8178_v1, %v8176_v40  ;;  %v23082_v40 = vld [vmem:[#allocation66_spill] sm:$0xff] }
 0x6ba   : > { %23074 = vst [vmem:[#allocation64_spill] sm:$0xff] %v20819_v33  ;;  %v7923_v57 = vmul.f32 0.01, %v14775_v32  ;;  %v14779_v50 = vadd.f32 %v14778_v39, %v23078_v49  ;;  %7153 = vmatmul.mubr.bf16.gmra.mrb[12].mxu0 %v17016_v48  ;;  %v17017_v48 = vld [vmem:[%s22581_s1 + $0xf8] ss:$28 sps:$4 sm:$0xff]  }
 0x6bb   : > { %23077 = vst [vmem:[#allocation88_spill] sm:$0xff] %v20825_v58  ;;  %v7924_v26 = vmul.f32 0.01, %v14777_v62  ;;  %v14781_v3 = vadd.f32 %v14780_v51, %v23080_v30  ;;  %7162 = vmatprep.mubr.bf16.mxu0 %v22776_v6  ;;  %v23084_v30 = vld [vmem:[#allocation91_spill] sm:$0xff] }
 0x6bc   : > { %v7925_v46 = vmul.f32 0.01, %v14779_v50  ;;  %v8179_v11 = vmax.f32 %v14775_v32, %v7923_v57  ;;  %v23085_v58 = vld [vmem:[#allocation95_spill] sm:$0xff] }
 0x6bd   : > { %v7926_v31 = vmul.f32 0.01, %v14781_v3  ;;  %v6861_v8 = vpop.f32.mrb[164].mxu0  ;;  %v20839_v51 = vpop.f32.mrb[172].mxu1  ;;  %v8180_v21 = vmax.f32 %v14777_v62, %v7924_v26 }
 0x6be   : > { %v8181_v59 = vmax.f32 %v14779_v50, %v7925_v46  ;;  %v14782_v1 = vadd.f32 %v6861_v8, %v23082_v40  ;;  %v6863_v34 = vpop.f32.mrb[165].mxu0  ;;  %23083 = vst [vmem:[#allocation66_spill] sm:$0xff] %v20839_v51  ;;  %v23087_v46 = vld [vmem:[#allocation49_spill] sm:$0xff]  ;;  %v20847_v38 = vpop.f32.mrb[173].mxu1 }
 0x6bf   : > { %v14784_v39 = vadd.f32 %v6863_v34, %v23082_v40  ;;  %v6865_v35 = vpop.f32.mrb[166].mxu0  ;;  %v8182_v49 = vmax.f32 %v14781_v3, %v7926_v31  ;;  %23088 = vst [vmem:[#allocation95_spill] sm:$0xff] %v20847_v38  ;;  %v23090_v34 = vld [vmem:[#allocation168_spill] sm:$0xff]  ;;  %v20852_v62 = vpop.f32.mrb[174].mxu1  ;;  %v23092_v3 = vld [vmem:[#allocation102_spill] sm:$0xff] }
 0x6c0   : > { %v14786_v33 = vadd.f32 %v6865_v35, %v23084_v30  ;;  %v14783_v28 = vadd.f32 %v14782_v1, %v23085_v58  ;;  %v6867_v32 = vpop.f32.mrb[167].mxu0  ;;  %v20843_v50 = vpack.c.bf16 %v8181_v59, %v8179_v11  ;;  %23091 = vst [vmem:[#allocation168_spill] sm:$0xff] %v20852_v62  ;;  %v20856_v31 = vpop.f32.mrb[175].mxu1 }
 0x6c1   : > { %v14788_v57 = vadd.f32 %v6867_v32, %v23084_v30  ;;  %v14785_v8 = vadd.f32 %v14784_v39, %v23087_v46  ;;  %v20849_v4 = vpack.c.bf16 %v8182_v49, %v8180_v21  ;;  %23093 = vst [vmem:[#allocation102_spill] sm:$0xff] %v20856_v31  ;;  %v23094_v21 = vld [vmem:[#allocation68_spill] sm:$0xff] }
 0x6c2   : > { %23086 = vst [vmem:[#allocation91_spill] sm:$0xff] %v20843_v50  ;;  %v7927_v40 = vmul.f32 0.01, %v14783_v28  ;;  %v14787_v51 = vadd.f32 %v14786_v33, %v23090_v34  ;;  %7163 = vmatmul.mubr.bf16.gmra.mrb[16].mxu0 %v17017_v48  ;;  %v17018_v33 = vld [vmem:[%s22581_s1 + $0x130] ss:$28 sps:$4 sm:$0xff]  }
 0x6c3   : > { %23089 = vst [vmem:[#allocation49_spill] sm:$0xff] %v20849_v4  ;;  %v7928_v26 = vmul.f32 0.01, %v14785_v8  ;;  %v14789_v58 = vadd.f32 %v14788_v57, %v23092_v3  ;;  %7172 = vmatprep.mubr.bf16.mxu0 %v22776_v6  ;;  %v23096_v3 = vld [vmem:[#allocation94_spill] sm:$0xff]  ;;  %v23097_v4 = vld [vmem:[#allocation39_spill] sm:$0xff] }
 0x6c4   : > { %v7929_v11 = vmul.f32 0.01, %v14787_v51  ;;  %v8183_v39 = vmax.f32 %v14783_v28, %v7927_v40 }
 0x6c5   : > { %v7930_v59 = vmul.f32 0.01, %v14789_v58  ;;  %v6871_v1 = vpop.f32.mrb[168].mxu0  ;;  %v20863_v57 = vpop.f32.mrb[176].mxu1  ;;  %v8184_v46 = vmax.f32 %v14785_v8, %v7928_v26 }
 0x6c6   : > { %v8185_v35 = vmax.f32 %v14787_v51, %v7929_v11  ;;  %v14790_v49 = vadd.f32 %v6871_v1, %v23094_v21  ;;  %v6873_v30 = vpop.f32.mrb[169].mxu0  ;;  %23095 = vst [vmem:[#allocation68_spill] sm:$0xff] %v20863_v57  ;;  %v23099_v11 = vld [vmem:[#allocation106_spill] sm:$0xff]  ;;  %v20871_v62 = vpop.f32.mrb[177].mxu1 }
 0x6c7   : > { %v14792_v48 = vadd.f32 %v6873_v30, %v23094_v21  ;;  %v6875_v32 = vpop.f32.mrb[170].mxu0  ;;  %v8186_v34 = vmax.f32 %v14789_v58, %v7930_v59  ;;  %23100 = vst [vmem:[#allocation39_spill] sm:$0xff] %v20871_v62  ;;  %v23102_v30 = vld [vmem:[#allocation108_spill] sm:$0xff]  ;;  %v20876_v8 = vpop.f32.mrb[178].mxu1  ;;  %v23104_v58 = vld [vmem:[#allocation109_spill] sm:$0xff] }
 0x6c8   : > { %v14794_v50 = vadd.f32 %v6875_v32, %v23096_v3  ;;  %v14791_v31 = vadd.f32 %v14790_v49, %v23097_v4  ;;  %v6877_v28 = vpop.f32.mrb[171].mxu0  ;;  %v20867_v51 = vpack.c.bf16 %v8185_v35, %v8183_v39  ;;  %23103 = vst [vmem:[#allocation108_spill] sm:$0xff] %v20876_v8  ;;  %v20880_v59 = vpop.f32.mrb[179].mxu1 }
 0x6c9   : > { %v14796_v40 = vadd.f32 %v6877_v28, %v23096_v3  ;;  %v14793_v1 = vadd.f32 %v14792_v48, %v23099_v11  ;;  %v20873_v38 = vpack.c.bf16 %v8186_v34, %v8184_v46  ;;  %23105 = vst [vmem:[#allocation109_spill] sm:$0xff] %v20880_v59  ;;  %v23106_v46 = vld [vmem:[#allocation70_spill] sm:$0xff] }
 0x6ca   : > { %23098 = vst [vmem:[#allocation94_spill] sm:$0xff] %v20867_v51  ;;  %v7931_v21 = vmul.f32 0.01, %v14791_v31  ;;  %v14795_v57 = vadd.f32 %v14794_v50, %v23102_v30  ;;  %7173 = vmatmul.mubr.bf16.gmra.mrb[20].mxu0 %v17018_v33  ;;  %v17019_v50 = vld [vmem:[%s22581_s1 + $0x168] ss:$28 sps:$4 sm:$0xff]  }
 0x6cb   : > { %23101 = vst [vmem:[#allocation106_spill] sm:$0xff] %v20873_v38  ;;  %v7932_v26 = vmul.f32 0.01, %v14793_v1  ;;  %v14797_v4 = vadd.f32 %v14796_v40, %v23104_v58  ;;  %7182 = vmatprep.mubr.bf16.mxu0 %v22776_v6  ;;  %v23108_v58 = vld [vmem:[#allocation98_spill] sm:$0xff]  ;;  %v23109_v38 = vld [vmem:[#allocation171_spill] sm:$0xff] }
 0x6cc   : > { %v7933_v39 = vmul.f32 0.01, %v14795_v57  ;;  %v8187_v48 = vmax.f32 %v14791_v31, %v7931_v21 }
 0x6cd   : > { %v7934_v35 = vmul.f32 0.01, %v14797_v4  ;;  %v6881_v49 = vpop.f32.mrb[172].mxu0  ;;  %v20887_v40 = vpop.f32.mrb[180].mxu1  ;;  %v8188_v11 = vmax.f32 %v14793_v1, %v7932_v26 }
 0x6ce   : > { %v8189_v32 = vmax.f32 %v14795_v57, %v7933_v39  ;;  %v14798_v34 = vadd.f32 %v6881_v49, %v23106_v46  ;;  %v6883_v3 = vpop.f32.mrb[173].mxu0  ;;  %23107 = vst [vmem:[#allocation70_spill] sm:$0xff] %v20887_v40  ;;  %v23111_v39 = vld [vmem:[#allocation113_spill] sm:$0xff]  ;;  %v20895_v8 = vpop.f32.mrb[181].mxu1 }
 0x6cf   : > { %v14800_v33 = vadd.f32 %v6883_v3, %v23106_v46  ;;  %v6885_v28 = vpop.f32.mrb[174].mxu0  ;;  %v8190_v30 = vmax.f32 %v14797_v4, %v7934_v35  ;;  %23112 = vst [vmem:[#allocation171_spill] sm:$0xff] %v20895_v8  ;;  %v23114_v3 = vld [vmem:[#allocation173_spill] sm:$0xff]  ;;  %v20900_v1 = vpop.f32.mrb[182].mxu1  ;;  %v23116_v4 = vld [vmem:[#allocation115_spill] sm:$0xff] }
 0x6d0   : > { %v14802_v51 = vadd.f32 %v6885_v28, %v23108_v58  ;;  %v14799_v59 = vadd.f32 %v14798_v34, %v23109_v38  ;;  %v6887_v31 = vpop.f32.mrb[175].mxu0  ;;  %v20891_v57 = vpack.c.bf16 %v8189_v32, %v8187_v48  ;;  %23115 = vst [vmem:[#allocation173_spill] sm:$0xff] %v20900_v1  ;;  %v20904_v35 = vpop.f32.mrb[183].mxu1 }
 0x6d1   : > { %v14804_v21 = vadd.f32 %v6887_v31, %v23108_v58  ;;  %v14801_v49 = vadd.f32 %v14800_v33, %v23111_v39  ;;  %v20897_v62 = vpack.c.bf16 %v8190_v30, %v8188_v11  ;;  %23117 = vst [vmem:[#allocation115_spill] sm:$0xff] %v20904_v35  ;;  %v23118_v11 = vld [vmem:[#allocation75_spill] sm:$0xff] }
 0x6d2   : > { %23110 = vst [vmem:[#allocation98_spill] sm:$0xff] %v20891_v57  ;;  %v7935_v46 = vmul.f32 0.01, %v14799_v59  ;;  %v14803_v40 = vadd.f32 %v14802_v51, %v23114_v3  ;;  %7183 = vmatmul.mubr.bf16.gmra.mrb[24].mxu0 %v17019_v50  ;;  %v17020_v51 = vld [vmem:[%s22581_s1 + $0x1a0] ss:$28 sps:$4 sm:$0xff]  }
 0x6d3   : > { %23113 = vst [vmem:[#allocation113_spill] sm:$0xff] %v20897_v62  ;;  %v7936_v26 = vmul.f32 0.01, %v14801_v49  ;;  %v14805_v38 = vadd.f32 %v14804_v21, %v23116_v4  ;;  %7192 = vmatprep.mubr.bf16.mxu0 %v22776_v6  ;;  %v23120_v4 = vld [vmem:[#allocation103_spill] sm:$0xff]  ;;  %v23121_v62 = vld [vmem:[#allocation41_spill] sm:$0xff] }
 0x6d4   : > { %v7937_v48 = vmul.f32 0.01, %v14803_v40  ;;  %v8191_v33 = vmax.f32 %v14799_v59, %v7935_v46 }
 0x6d5   : > { %v7938_v32 = vmul.f32 0.01, %v14805_v38  ;;  %v6891_v34 = vpop.f32.mrb[176].mxu0  ;;  %v20911_v21 = vpop.f32.mrb[184].mxu1  ;;  %v8192_v39 = vmax.f32 %v14801_v49, %v7936_v26 }
 0x6d6   : > { %v8193_v28 = vmax.f32 %v14803_v40, %v7937_v48  ;;  %v14806_v30 = vadd.f32 %v6891_v34, %v23118_v11  ;;  %v6893_v58 = vpop.f32.mrb[177].mxu0  ;;  %23119 = vst [vmem:[#allocation75_spill] sm:$0xff] %v20911_v21  ;;  %v23123_v48 = vld [vmem:[#allocation119_spill] sm:$0xff]  ;;  %v20919_v1 = vpop.f32.mrb[185].mxu1 }
 0x6d7   : > { %v14808_v50 = vadd.f32 %v6893_v58, %v23118_v11  ;;  %v6895_v31 = vpop.f32.mrb[178].mxu0  ;;  %v8194_v3 = vmax.f32 %v14805_v38, %v7938_v32  ;;  %23124 = vst [vmem:[#allocation41_spill] sm:$0xff] %v20919_v1  ;;  %v23126_v58 = vld [vmem:[#allocation176_spill] sm:$0xff]  ;;  %v20924_v49 = vpop.f32.mrb[186].mxu1  ;;  %v23128_v38 = vld [vmem:[#allocation122_spill] sm:$0xff] }
 0x6d8   : > { %v14810_v57 = vadd.f32 %v6895_v31, %v23120_v4  ;;  %v14807_v35 = vadd.f32 %v14806_v30, %v23121_v62  ;;  %v6897_v59 = vpop.f32.mrb[179].mxu0  ;;  %v20915_v40 = vpack.c.bf16 %v8193_v28, %v8191_v33  ;;  %23127 = vst [vmem:[#allocation176_spill] sm:$0xff] %v20924_v49  ;;  %v20928_v32 = vpop.f32.mrb[187].mxu1 }
 0x6d9   : > { %v14812_v46 = vadd.f32 %v6897_v59, %v23120_v4  ;;  %v14809_v34 = vadd.f32 %v14808_v50, %v23123_v48  ;;  %v20921_v8 = vpack.c.bf16 %v8194_v3, %v8192_v39  ;;  %23129 = vst [vmem:[#allocation122_spill] sm:$0xff] %v20928_v32  ;;  %v23130_v39 = vld [vmem:[#allocation78_spill] sm:$0xff] }
 0x6da   : > { %23122 = vst [vmem:[#allocation103_spill] sm:$0xff] %v20915_v40  ;;  %v7939_v11 = vmul.f32 0.01, %v14807_v35  ;;  %v14811_v21 = vadd.f32 %v14810_v57, %v23126_v58  ;;  %7193 = vmatmul.mubr.bf16.gmra.mrb[28].mxu0 %v17020_v51  ;;  %v17021_v57 = vld [vmem:[%s22581_s1 + $0x1d8] ss:$28 sps:$4 sm:$0xff]  }
 0x6db   : > { %23125 = vst [vmem:[#allocation119_spill] sm:$0xff] %v20921_v8  ;;  %v7940_v26 = vmul.f32 0.01, %v14809_v34  ;;  %v14813_v62 = vadd.f32 %v14812_v46, %v23128_v38  ;;  %7202 = vmatprep.mubr.bf16.mxu0 %v22776_v6  ;;  %v23132_v38 = vld [vmem:[#allocation107_spill] sm:$0xff]  ;;  %v23133_v8 = vld [vmem:[#allocation42_spill] sm:$0xff] }
 0x6dc   : > { %v7941_v33 = vmul.f32 0.01, %v14811_v21  ;;  %v8195_v50 = vmax.f32 %v14807_v35, %v7939_v11 }
 0x6dd   : > { %v7942_v28 = vmul.f32 0.01, %v14813_v62  ;;  %v6901_v30 = vpop.f32.mrb[180].mxu0  ;;  %v20935_v46 = vpop.f32.mrb[188].mxu1  ;;  %v8196_v48 = vmax.f32 %v14809_v34, %v7940_v26 }
 0x6de   : > { %v8197_v31 = vmax.f32 %v14811_v21, %v7941_v33  ;;  %v14814_v3 = vadd.f32 %v6901_v30, %v23130_v39  ;;  %v6903_v4 = vpop.f32.mrb[181].mxu0  ;;  %23131 = vst [vmem:[#allocation78_spill] sm:$0xff] %v20935_v46  ;;  %v23135_v33 = vld [vmem:[#allocation126_spill] sm:$0xff]  ;;  %v20943_v49 = vpop.f32.mrb[189].mxu1 }
 0x6df   : > { %v14816_v51 = vadd.f32 %v6903_v4, %v23130_v39  ;;  %v6905_v59 = vpop.f32.mrb[182].mxu0  ;;  %v8198_v58 = vmax.f32 %v14813_v62, %v7942_v28  ;;  %23136 = vst [vmem:[#allocation42_spill] sm:$0xff] %v20943_v49  ;;  %v23138_v4 = vld [vmem:[#allocation128_spill] sm:$0xff]  ;;  %v20948_v34 = vpop.f32.mrb[190].mxu1  ;;  %v23140_v62 = vld [vmem:[#allocation129_spill] sm:$0xff] }
 0x6e0   : > { %v14818_v40 = vadd.f32 %v6905_v59, %v23132_v38  ;;  %v14815_v32 = vadd.f32 %v14814_v3, %v23133_v8  ;;  %v6907_v35 = vpop.f32.mrb[183].mxu0  ;;  %v20939_v21 = vpack.c.bf16 %v8197_v31, %v8195_v50  ;;  %23139 = vst [vmem:[#allocation128_spill] sm:$0xff] %v20948_v34  ;;  %v20952_v28 = vpop.f32.mrb[191].mxu1 }
 0x6e1   : > { %v14820_v11 = vadd.f32 %v6907_v35, %v23132_v38  ;;  %v14817_v30 = vadd.f32 %v14816_v51, %v23135_v33  ;;  %v20945_v1 = vpack.c.bf16 %v8198_v58, %v8196_v48  ;;  %23141 = vst [vmem:[#allocation129_spill] sm:$0xff] %v20952_v28  ;;  %v23142_v48 = vld [vmem:[#allocation84_spill] sm:$0xff] }
 0x6e2   : > { %23134 = vst [vmem:[#allocation107_spill] sm:$0xff] %v20939_v21  ;;  %v7943_v39 = vmul.f32 0.01, %v14815_v32  ;;  %v14819_v46 = vadd.f32 %v14818_v40, %v23138_v4  ;;  %7203 = vmatmul.mubr.bf16.gmra.mrb[32].mxu0 %v17021_v57  ;;  %v17022_v40 = vld [vmem:[%s22581_s1 + $0x210] ss:$28 sps:$4 sm:$0xff]  }
 0x6e3   : > { %23137 = vst [vmem:[#allocation126_spill] sm:$0xff] %v20945_v1  ;;  %v7944_v26 = vmul.f32 0.01, %v14817_v30  ;;  %v14821_v8 = vadd.f32 %v14820_v11, %v23140_v62  ;;  %7212 = vmatprep.mubr.bf16.mxu0 %v22776_v6  ;;  %v23144_v62 = vld [vmem:[#allocation112_spill] sm:$0xff]  ;;  %v23145_v1 = vld [vmem:[#allocation179_spill] sm:$0xff] }
 0x6e4   : > { %v7945_v50 = vmul.f32 0.01, %v14819_v46  ;;  %v8199_v51 = vmax.f32 %v14815_v32, %v7943_v39 }
 0x6e5   : > { %v7946_v31 = vmul.f32 0.01, %v14821_v8  ;;  %v6911_v3 = vpop.f32.mrb[184].mxu0  ;;  %v20959_v11 = vpop.f32.mrb[192].mxu1  ;;  %v8200_v33 = vmax.f32 %v14817_v30, %v7944_v26 }
 0x6e6   : > { %v8201_v59 = vmax.f32 %v14819_v46, %v7945_v50  ;;  %v14822_v58 = vadd.f32 %v6911_v3, %v23142_v48  ;;  %v6913_v38 = vpop.f32.mrb[185].mxu0  ;;  %23143 = vst [vmem:[#allocation84_spill] sm:$0xff] %v20959_v11  ;;  %v23147_v50 = vld [vmem:[#allocation133_spill] sm:$0xff]  ;;  %v20967_v34 = vpop.f32.mrb[193].mxu1 }
 0x6e7   : > { %v14824_v57 = vadd.f32 %v6913_v38, %v23142_v48  ;;  %v6915_v35 = vpop.f32.mrb[186].mxu0  ;;  %v8202_v4 = vmax.f32 %v14821_v8, %v7946_v31  ;;  %v23149_v38 = vld [vmem:[#allocation181_spill] sm:$0xff]  ;;  %v20972_v30 = vpop.f32.mrb[194].mxu1  ;;  %v23150_v8 = vld [vmem:[#allocation135_spill] sm:$0xff] }
 0x6e8   : > { %v14826_v21 = vadd.f32 %v6915_v35, %v23144_v62  ;;  %v14823_v28 = vadd.f32 %v14822_v58, %v23145_v1  ;;  %v6917_v32 = vpop.f32.mrb[187].mxu0  ;;  %v20963_v46 = vpack.c.bf16 %v8201_v59, %v8199_v51  ;;  %v20976_v31 = vpop.f32.mrb[195].mxu1 }
 0x6e9   : > { %v14828_v39 = vadd.f32 %v6917_v32, %v23144_v62  ;;  %v14825_v3 = vadd.f32 %v14824_v57, %v23147_v50  ;;  %v20969_v49 = vpack.c.bf16 %v8202_v4, %v8200_v33  ;;  %23151 = vst [vmem:[#allocation133_spill] sm:$0xff] %v20976_v31  ;;  %v23152_v33 = vld [vmem:[#allocation90_spill] sm:$0xff] }
 0x6ea   : > { %23146 = vst [vmem:[#allocation112_spill] sm:$0xff] %v20963_v46  ;;  %v7947_v48 = vmul.f32 0.01, %v14823_v28  ;;  %v14827_v11 = vadd.f32 %v14826_v21, %v23149_v38  ;;  %7213 = vmatmul.mubr.bf16.gmra.mrb[36].mxu0 %v17022_v40  ;;  %v17023_v21 = vld [vmem:[%s22581_s1 + $0x248] ss:$28 sps:$4 sm:$0xff]  }
 0x6eb   : > { %23148 = vst [vmem:[#allocation179_spill] sm:$0xff] %v20969_v49  ;;  %v7948_v26 = vmul.f32 0.01, %v14825_v3  ;;  %v14829_v1 = vadd.f32 %v14828_v39, %v23150_v8  ;;  %7222 = vmatprep.mubr.bf16.mxu0 %v22776_v6  ;;  %v23153_v8 = vld [vmem:[#allocation118_spill] sm:$0xff] }
 0x6ec   : > { %v7949_v51 = vmul.f32 0.01, %v14827_v11  ;;  %v8203_v57 = vmax.f32 %v14823_v28, %v7947_v48 }
 0x6ed   : > { %v7950_v59 = vmul.f32 0.01, %v14829_v1  ;;  %v6921_v58 = vpop.f32.mrb[188].mxu0  ;;  %v20983_v39 = vpop.f32.mrb[196].mxu1  ;;  %v8204_v50 = vmax.f32 %v14825_v3, %v7948_v26 }
 0x6ee   : > { %v8205_v35 = vmax.f32 %v14827_v11, %v7949_v51  ;;  %v14830_v4 = vadd.f32 %v6921_v58, %v23152_v33  ;;  %v6923_v62 = vpop.f32.mrb[189].mxu0  ;;  %v20991_v58 = vpop.f32.mrb[197].mxu1 }
 0x6ef   : > { %v14832_v40 = vadd.f32 %v6923_v62, %v23152_v33  ;;  %v6925_v32 = vpop.f32.mrb[190].mxu0  ;;  %v8206_v38 = vmax.f32 %v14829_v1, %v7950_v59  ;;  %v20996_v3 = vpop.f32.mrb[198].mxu1  ;;  %v23157_v62 = vld [vmem:[#allocation97_spill] sm:$0xff] }
 0x6f0   : > { %v14834_v46 = vadd.f32 %v6925_v32, %v23153_v8  ;;  %v14831_v49 = vadd.f32 %v14830_v4, %v20544_v14  ;;  %v6927_v28 = vpop.f32.mrb[191].mxu0  ;;  %v20987_v11 = vpack.c.bf16 %v8205_v35, %v8203_v57  ;;  %v21000_v14 = vpop.f32.mrb[199].mxu1 }
 0x6f1   : > { %v14836_v48 = vadd.f32 %v6927_v28, %v23153_v8  ;;  %v14833_v51 = vadd.f32 %v14832_v40, %v20556_v52  ;;  %v20993_v31 = vpack.c.bf16 %v8206_v38, %v8204_v50  ;;  %23156 = vst [vmem:[#allocation90_spill] sm:$0xff] %v21000_v14  ;;  %v23158_v8 = vld [vmem:[#allocation123_spill] sm:$0xff] }
 0x6f2   : > { %23154 = vst [vmem:[#allocation181_spill] sm:$0xff] %v20987_v11  ;;  %v14835_v33 = vadd.f32 %v14834_v46, %v20561_v60  ;;  %7223 = vmatmul.mubr.bf16.gmra.mrb[40].mxu0 %v17023_v21  ;;  %v7951_v59 = vmul.f32 0.01, %v14831_v49  ;;  %v17024_v60 = vld [vmem:[%s22581_s1 + $0x280] ss:$28 sps:$4 sm:$0xff]  }
 0x6f3   : > { %23155 = vst [vmem:[#allocation135_spill] sm:$0xff] %v20993_v31  ;;  %v7952_v26 = vmul.f32 0.01, %v14833_v51  ;;  %v14837_v1 = vadd.f32 %v14836_v48, %v20566_v16  ;;  %7232 = vmatprep.mubr.bf16.mxu0 %v22776_v6 }
 0x6f4   : > { %v7953_v57 = vmul.f32 0.01, %v14835_v33  ;;  %v8207_v38 = vmax.f32 %v14831_v49, %v7951_v59 }
 0x6f5   : > { %v7954_v35 = vmul.f32 0.01, %v14837_v1  ;;  %v6931_v52 = vpop.f32.mrb[192].mxu0  ;;  %v8208_v16 = vmax.f32 %v14833_v51, %v7952_v26 }
 0x6f6   : > { %v8209_v4 = vmax.f32 %v14835_v33, %v7953_v57  ;;  %v14838_v40 = vadd.f32 %v6931_v52, %v23157_v62  ;;  %v6933_v32 = vpop.f32.mrb[193].mxu0 }
 0x6f7   : > { %v14840_v46 = vadd.f32 %v6933_v32, %v23157_v62  ;;  %v6935_v21 = vpop.f32.mrb[194].mxu0  ;;  %v8210_v50 = vmax.f32 %v14837_v1, %v7954_v35  ;;  %v23159_v35 = vld [vmem:[#allocation101_spill] sm:$0xff] }
 0x6f8   : > { %v14842_v28 = vadd.f32 %v6935_v21, %v23158_v8  ;;  %v14839_v48 = vadd.f32 %v14838_v40, %v20585_v42  ;;  %v6937_v11 = vpop.f32.mrb[195].mxu0  ;;  %v21014_v62 = vpack.c.bf16 %v8209_v4, %v8207_v38  ;;  %v23160_v21 = vld [vmem:[#allocation127_spill] sm:$0xff] }
 0x6f9   : > { %v14844_v33 = vadd.f32 %v6937_v11, %v23158_v8  ;;  %v14841_v57 = vadd.f32 %v14840_v46, %v20598_v54  ;;  %v21011_v52 = vpack.c.bf16 %v8210_v50, %v8208_v16 }
 0x6fa   : > { %v7955_v31 = vmul.f32 0.01, %v14839_v48  ;;  %v14843_v14 = vadd.f32 %v14842_v28, %v20603_v7  ;;  %7233 = vmatmul.mubr.bf16.gmra.mrb[44].mxu0 %v17024_v60  ;;  %v17025_v7 = vld [vmem:[%s22581_s1 + $0x2b8] ss:$28 sps:$4 sm:$0xff]  }
 0x6fb   : > { %v7956_v51 = vmul.f32 0.01, %v14841_v57  ;;  %v14845_v49 = vadd.f32 %v14844_v33, %v20606_v15  ;;  %7242 = vmatprep.mubr.bf16.mxu0 %v22776_v6 }
 0x6fc   : > { %v7957_v26 = vmul.f32 0.01, %v14843_v14  ;;  %v8211_v59 = vmax.f32 %v14839_v48, %v7955_v31 }
 0x6fd   : > { %v7958_v42 = vmul.f32 0.01, %v14845_v49  ;;  %v6941_v1 = vpop.f32.mrb[196].mxu0  ;;  %v8212_v32 = vmax.f32 %v14841_v57, %v7956_v51 }
 0x6fe   : > { %v8213_v11 = vmax.f32 %v14843_v14, %v7957_v26  ;;  %v14846_v54 = vadd.f32 %v6941_v1, %v23159_v35  ;;  %v6943_v40 = vpop.f32.mrb[197].mxu0  ;;  %v23161_v1 = vld [vmem:[#allocation105_spill] sm:$0xff] }
 0x6ff   : > { %v8214_v4 = vmax.f32 %v14845_v49, %v7958_v42  ;;  %v14848_v60 = vadd.f32 %v6943_v40, %v23159_v35  ;;  %v6945_v46 = vpop.f32.mrb[198].mxu0 }
 0x700   : > { %v21023_v15 = vpack.c.bf16 %v8213_v11, %v8211_v59  ;;  %v14850_v16 = vadd.f32 %v6945_v46, %v23160_v21  ;;  %v14847_v50 = vadd.f32 %v14846_v54, %v20618_v63  ;;  %v6947_v31 = vpop.f32.mrb[199].mxu0 }
 0x701   : > { %v14852_v14 = vadd.f32 %v6947_v31, %v23160_v21  ;;  %v14849_v38 = vadd.f32 %v14848_v60, %v20629_v47  ;;  %v21029_v8 = vpack.c.bf16 %v8214_v4, %v8212_v32  ;;  %v17026_v47 = vld [vmem:[%s22581_s1 + $0x2f0] ss:$28 sps:$4 sm:$0xff]  }
 0x702   : > { %v7959_v28 = vmul.f32 0.01, %v14847_v50  ;;  %v14851_v48 = vadd.f32 %v14850_v16, %v20639_v36  ;;  %7243 = vmatmul.mubr.bf16.gmra.mrb[48].mxu0 %v17025_v7 }
 0x703   : > { %v7960_v33 = vmul.f32 0.01, %v14849_v38  ;;  %v14853_v57 = vadd.f32 %v14852_v14, %v20642_v10  ;;  %7252 = vmatprep.mubr.bf16.mxu0 %v22776_v6  ;;  %v23162_v6 = vld [vmem:[#allocation132_spill] sm:$0xff] }
 0x704   : > { %v7961_v51 = vmul.f32 0.01, %v14851_v48  ;;  %v8215_v63 = vmax.f32 %v14847_v50, %v7959_v28 }
 0x705   : > { %v7962_v49 = vmul.f32 0.01, %v14853_v57  ;;  %v6951_v26 = vpop.f32.mrb[200].mxu0  ;;  %v8216_v35 = vmax.f32 %v14849_v38, %v7960_v33 }
 0x706   : > { %v8217_v42 = vmax.f32 %v14851_v48, %v7961_v51  ;;  %v14854_v59 = vadd.f32 %v6951_v26, %v23161_v1  ;;  %v6953_v11 = vpop.f32.mrb[201].mxu0 }
 0x707   : > { %v8218_v36 = vmax.f32 %v14853_v57, %v7962_v49  ;;  %v14856_v54 = vadd.f32 %v6953_v11, %v23161_v1  ;;  %v6955_v40 = vpop.f32.mrb[202].mxu0 }
 0x708   : > { %v21039_v10 = vpack.c.bf16 %v8217_v42, %v8215_v63  ;;  %v14858_v7 = vadd.f32 %v6955_v40, %v23162_v6  ;;  %v14855_v32 = vadd.f32 %v14854_v59, %v20652_v22  ;;  %v6957_v4 = vpop.f32.mrb[203].mxu0  ;;  %v23163_v22 = vld [vmem:[#allocation111_spill] sm:$0xff] }
 0x709   : > { %v14860_v60 = vadd.f32 %v6957_v4, %v23162_v6  ;;  %v14857_v46 = vadd.f32 %v14856_v54, %v20665_v27  ;;  %v21045_v21 = vpack.c.bf16 %v8218_v36, %v8216_v35 }
 0x70a   : > { %v7963_v16 = vmul.f32 0.01, %v14855_v32  ;;  %v14859_v50 = vadd.f32 %v14858_v7, %v20673_v18  ;;  %7253 = vmatmul.mubr.bf16.gmra.mrb[52].mxu0 %v17026_v47  ;;  %v23164_v18 = vld [vmem:[#allocation138_spill] sm:$0xff] }
 0x70b   : > { %v7964_v31 = vmul.f32 0.01, %v14857_v46  ;;  %v14861_v14 = vadd.f32 %v14860_v60, %v20676_v9 }
 0x70c   : > { %v7965_v38 = vmul.f32 0.01, %v14859_v50  ;;  %v8219_v33 = vmax.f32 %v14855_v32, %v7963_v16 }
 0x70d   : > { %v7966_v28 = vmul.f32 0.01, %v14861_v14  ;;  %v6961_v48 = vpop.f32.mrb[204].mxu0  ;;  %v8220_v26 = vmax.f32 %v14857_v46, %v7964_v31 }
 0x70e   : > { %v8221_v57 = vmax.f32 %v14859_v50, %v7965_v38  ;;  %v14862_v51 = vadd.f32 %v6961_v48, %v23163_v22  ;;  %v6963_v49 = vpop.f32.mrb[205].mxu0  ;;  %v23165_v50 = vld [vmem:[#allocation117_spill] sm:$0xff] }
 0x70f   : > { %v8222_v63 = vmax.f32 %v14861_v14, %v7966_v28  ;;  %v14864_v27 = vadd.f32 %v6963_v49, %v23163_v22  ;;  %v6965_v42 = vpop.f32.mrb[206].mxu0 }
 0x710   : > { %v21051_v1 = vpack.c.bf16 %v8221_v57, %v8219_v33  ;;  %v14866_v59 = vadd.f32 %v6965_v42, %v23164_v18  ;;  %v14863_v11 = vadd.f32 %v14862_v51, %v20688_v29  ;;  %v6967_v9 = vpop.f32.mrb[207].mxu0  ;;  %v23166_v33 = vld [vmem:[#allocation142_spill] sm:$0xff] }
 0x711   : > { %v14868_v47 = vadd.f32 %v6967_v9, %v23164_v18  ;;  %v14865_v35 = vadd.f32 %v14864_v27, %v20699_v45  ;;  %v21057_v36 = vpack.c.bf16 %v8222_v63, %v8220_v26 }
 0x712   : > { %v7967_v54 = vmul.f32 0.01, %v14863_v11  ;;  %v14867_v40 = vadd.f32 %v14866_v59, %v20707_v43 }
 0x713   : > { %v7968_v6 = vmul.f32 0.01, %v14865_v35  ;;  %v14869_v7 = vadd.f32 %v14868_v47, %v20710_v61 }
 0x714   : > { %v7969_v32 = vmul.f32 0.01, %v14867_v40  ;;  %v8223_v46 = vmax.f32 %v14863_v11, %v7967_v54 }
 0x715   : > { %v7970_v4 = vmul.f32 0.01, %v14869_v7  ;;  %v6971_v60 = vpop.f32.mrb[208].mxu0  ;;  %v8224_v14 = vmax.f32 %v14865_v35, %v7968_v6  ;;  %v23167_v35 = vld [vmem:[#allocation121_spill] sm:$0xff] }
 0x716   : > { %v8225_v16 = vmax.f32 %v14867_v40, %v7969_v32  ;;  %v14870_v29 = vadd.f32 %v6971_v60, %v23165_v50  ;;  %v6973_v31 = vpop.f32.mrb[209].mxu0 }
 0x717   : > { %v8226_v38 = vmax.f32 %v14869_v7, %v7970_v4  ;;  %v14872_v45 = vadd.f32 %v6973_v31, %v23165_v50  ;;  %v6975_v28 = vpop.f32.mrb[210].mxu0  ;;  %v23168_v4 = vld [vmem:[#allocation146_spill] sm:$0xff] }
 0x718   : > { %v21063_v48 = vpack.c.bf16 %v8225_v16, %v8223_v46  ;;  %v14874_v43 = vadd.f32 %v6975_v28, %v23166_v33  ;;  %v14871_v57 = vadd.f32 %v14870_v29, %v20719_v23  ;;  %v6977_v61 = vpop.f32.mrb[211].mxu0 }
 0x719   : > { %v14876_v22 = vadd.f32 %v6977_v61, %v23166_v33  ;;  %v14873_v51 = vadd.f32 %v14872_v45, %v20727_v55  ;;  %v21069_v49 = vpack.c.bf16 %v8226_v38, %v8224_v14  ;;  %v23169_v61 = vld [vmem:[#allocation125_spill] sm:$0xff] }
 0x71a   : > { %v7971_v26 = vmul.f32 0.01, %v14871_v57  ;;  %v14875_v63 = vadd.f32 %v14874_v43, %v20732_v0 }
 0x71b   : > { %v7972_v27 = vmul.f32 0.01, %v14873_v51  ;;  %v14877_v42 = vadd.f32 %v14876_v22, %v20736_v20 }
 0x71c   : > { %v7973_v18 = vmul.f32 0.01, %v14875_v63  ;;  %v8227_v9 = vmax.f32 %v14871_v57, %v7971_v26 }
 0x71d   : > { %v7974_v59 = vmul.f32 0.01, %v14877_v42  ;;  %v6981_v11 = vpop.f32.mrb[212].mxu0  ;;  %v8228_v40 = vmax.f32 %v14873_v51, %v7972_v27 }
 0x71e   : > { %v8229_v47 = vmax.f32 %v14875_v63, %v7973_v18  ;;  %v14878_v23 = vadd.f32 %v6981_v11, %v23167_v35  ;;  %v6983_v54 = vpop.f32.mrb[213].mxu0 }
 0x71f   : > { %v8230_v6 = vmax.f32 %v14877_v42, %v7974_v59  ;;  %v14880_v55 = vadd.f32 %v6983_v54, %v23167_v35  ;;  %v6985_v7 = vpop.f32.mrb[214].mxu0  ;;  %v23170_v42 = vld [vmem:[#allocation150_spill] sm:$0xff] }
 0x720   : > { %v21075_v32 = vpack.c.bf16 %v8229_v47, %v8227_v9  ;;  %v14882_v0 = vadd.f32 %v6985_v7, %v23168_v4  ;;  %v14879_v60 = vadd.f32 %v14878_v23, %v20743_v25  ;;  %v6987_v20 = vpop.f32.mrb[215].mxu0 }
 0x721   : > { %v14884_v46 = vadd.f32 %v6987_v20, %v23168_v4  ;;  %v14881_v16 = vadd.f32 %v14880_v55, %v20751_v17  ;;  %v21081_v50 = vpack.c.bf16 %v8230_v6, %v8228_v40 }
 0x722   : > { %v7975_v29 = vmul.f32 0.01, %v14879_v60  ;;  %v14883_v31 = vadd.f32 %v14882_v0, %v20756_v13  ;;  %v23171_v0 = vld [vmem:[#allocation131_spill] sm:$0xff] }
 0x723   : > { %v7976_v14 = vmul.f32 0.01, %v14881_v16  ;;  %v14885_v38 = vadd.f32 %v14884_v46, %v20760_v19 }
 0x724   : > { %v7977_v45 = vmul.f32 0.01, %v14883_v31  ;;  %v8231_v43 = vmax.f32 %v14879_v60, %v7975_v29 }
 0x725   : > { %v7978_v28 = vmul.f32 0.01, %v14885_v38  ;;  %v6991_v33 = vpop.f32.mrb[216].mxu0  ;;  %v8232_v51 = vmax.f32 %v14881_v16, %v7976_v14 }
 0x726   : > { %v8233_v57 = vmax.f32 %v14883_v31, %v7977_v45  ;;  %v14886_v25 = vadd.f32 %v6991_v33, %v23169_v61  ;;  %v6993_v22 = vpop.f32.mrb[217].mxu0  ;;  %v23172_v31 = vld [vmem:[#allocation154_spill] sm:$0xff] }
 0x727   : > { %v8234_v26 = vmax.f32 %v14885_v38, %v7978_v28  ;;  %v14888_v17 = vadd.f32 %v6993_v22, %v23169_v61  ;;  %v6995_v63 = vpop.f32.mrb[218].mxu0 }
 0x728   : > { %v21087_v27 = vpack.c.bf16 %v8233_v57, %v8231_v43  ;;  %v14890_v13 = vadd.f32 %v6995_v63, %v23170_v42  ;;  %v14887_v18 = vadd.f32 %v14886_v25, %v20767_v24  ;;  %v6997_v19 = vpop.f32.mrb[219].mxu0  ;;  %v23173_v63 = vld [vmem:[#allocation137_spill] sm:$0xff] }
 0x729   : > { %v14892_v59 = vadd.f32 %v6997_v19, %v23170_v42  ;;  %v14889_v11 = vadd.f32 %v14888_v17, %v20775_v56  ;;  %v21093_v9 = vpack.c.bf16 %v8234_v26, %v8232_v51 }
 0x72a   : > { %v7979_v47 = vmul.f32 0.01, %v14887_v18  ;;  %v14891_v35 = vadd.f32 %v14890_v13, %v20780_v37 }
 0x72b   : > { %v7980_v23 = vmul.f32 0.01, %v14889_v11  ;;  %v14893_v54 = vadd.f32 %v14892_v59, %v20784_v53 }
 0x72c   : > { %v7981_v40 = vmul.f32 0.01, %v14891_v35  ;;  %v8235_v7 = vmax.f32 %v14887_v18, %v7979_v47 }
 0x72d   : > { %v7982_v6 = vmul.f32 0.01, %v14893_v54  ;;  %v7001_v55 = vpop.f32.mrb[220].mxu0  ;;  %v8236_v20 = vmax.f32 %v14889_v11, %v7980_v23  ;;  %v23174_v11 = vld [vmem:[#allocation156_spill] sm:$0xff]  ;;  %v23175_v23 = vld [vmem:[#allocation87_spill] sm:$0xff] }
 0x72e   : > { %v8237_v4 = vmax.f32 %v14891_v35, %v7981_v40  ;;  %v14894_v24 = vadd.f32 %v7001_v55, %v23171_v0  ;;  %v7003_v60 = vpop.f32.mrb[221].mxu0  ;;  %v23176_v55 = vld [vmem:[#allocation47_spill] sm:$0xff] }
 0x72f   : > { %v8238_v46 = vmax.f32 %v14893_v54, %v7982_v6  ;;  %v14896_v56 = vadd.f32 %v7003_v60, %v23171_v0  ;;  %v7005_v16 = vpop.f32.mrb[222].mxu0  ;;  %v23177_v0 = vld [vmem:[#allocation92_spill] sm:$0xff] }
 0x730   : > { %v21099_v29 = vpack.c.bf16 %v8237_v4, %v8235_v7  ;;  %v14898_v37 = vadd.f32 %v7005_v16, %v23172_v31  ;;  %v14895_v14 = vadd.f32 %v14894_v24, %v20791_v2  ;;  %v7007_v53 = vpop.f32.mrb[223].mxu0 }
 0x731   : > { %v14900_v38 = vadd.f32 %v7007_v53, %v23172_v31  ;;  %v14897_v45 = vadd.f32 %v14896_v56, %v20799_v41  ;;  %v21105_v28 = vpack.c.bf16 %v8238_v46, %v8236_v20  ;;  %v23178_v31 = vld [vmem:[#allocation141_spill] sm:$0xff] }
 0x732   : > { %v7983_v33 = vmul.f32 0.01, %v14895_v14  ;;  %v14899_v43 = vadd.f32 %v14898_v37, %v20804_v44 }
 0x733   : > { %v7984_v57 = vmul.f32 0.01, %v14897_v45  ;;  %v14901_v61 = vadd.f32 %v14900_v38, %v20808_v5 }
 0x734   : > { %v7985_v25 = vmul.f32 0.01, %v14899_v43  ;;  %v8239_v26 = vmax.f32 %v14895_v14, %v7983_v33 }
 0x735   : > { %v7986_v22 = vmul.f32 0.01, %v14901_v61  ;;  %v7011_v51 = vpop.f32.mrb[224].mxu0  ;;  %v8240_v13 = vmax.f32 %v14897_v45, %v7984_v57 }
 0x736   : > { %v8241_v17 = vmax.f32 %v14899_v43, %v7985_v25  ;;  %v14902_v2 = vadd.f32 %v7011_v51, %v23173_v63  ;;  %v7013_v42 = vpop.f32.mrb[225].mxu0  ;;  %v23179_v43 = vld [vmem:[#allocation160_spill] sm:$0xff] }
 0x737   : > { %v8242_v18 = vmax.f32 %v14901_v61, %v7986_v22  ;;  %v14904_v41 = vadd.f32 %v7013_v42, %v23173_v63  ;;  %v7015_v19 = vpop.f32.mrb[226].mxu0  ;;  %v23180_v61 = vld [vmem:[#allocation66_spill] sm:$0xff]  ;;  %v23182_v42 = vld [vmem:[#allocation168_spill] sm:$0xff] }
 0x738   : > { %v21111_v59 = vpack.c.bf16 %v8241_v17, %v8239_v26  ;;  %v14906_v44 = vadd.f32 %v7015_v19, %v23174_v11  ;;  %v14903_v47 = vadd.f32 %v14902_v2, %v20815_v12  ;;  %v7017_v5 = vpop.f32.mrb[227].mxu0  ;;  %v23181_v26 = vld [vmem:[#allocation95_spill] sm:$0xff] }
 0x739   : > { %v14908_v35 = vadd.f32 %v7017_v5, %v23174_v11  ;;  %v14905_v54 = vadd.f32 %v14904_v41, %v23175_v23  ;;  %v21117_v40 = vpack.c.bf16 %v8242_v18, %v8240_v13  ;;  %v23183_v41 = vld [vmem:[#allocation102_spill] sm:$0xff]  ;;  %v23184_v23 = vld [vmem:[#allocation145_spill] sm:$0xff] }
 0x73a   : > { %v7987_v6 = vmul.f32 0.01, %v14903_v47  ;;  %v14907_v7 = vadd.f32 %v14906_v44, %v23176_v55 }
 0x73b   : > { %v7988_v4 = vmul.f32 0.01, %v14905_v54  ;;  %v14909_v24 = vadd.f32 %v14908_v35, %v23177_v0 }
 0x73c   : > { %v7989_v60 = vmul.f32 0.01, %v14907_v7  ;;  %v8243_v56 = vmax.f32 %v14903_v47, %v7987_v6 }
 0x73d   : > { %v7990_v20 = vmul.f32 0.01, %v14909_v24  ;;  %v7021_v46 = vpop.f32.mrb[228].mxu0  ;;  %v8244_v14 = vmax.f32 %v14905_v54, %v7988_v4 }
 0x73e   : > { %v8245_v16 = vmax.f32 %v14907_v7, %v7989_v60  ;;  %v14910_v12 = vadd.f32 %v7021_v46, %v23178_v31  ;;  %v7023_v37 = vpop.f32.mrb[229].mxu0  ;;  %v23185_v60 = vld [vmem:[#allocation164_spill] sm:$0xff] }
 0x73f   : > { %v8246_v53 = vmax.f32 %v14909_v24, %v7990_v20  ;;  %v14912_v38 = vadd.f32 %v7023_v37, %v23178_v31  ;;  %v7025_v45 = vpop.f32.mrb[230].mxu0  ;;  %v23186_v46 = vld [vmem:[#allocation68_spill] sm:$0xff] }
 0x740   : > { %v21123_v33 = vpack.c.bf16 %v8245_v16, %v8243_v56  ;;  %v14914_v57 = vadd.f32 %v7025_v45, %v23179_v43  ;;  %v14911_v25 = vadd.f32 %v14910_v12, %v23180_v61  ;;  %v7027_v22 = vpop.f32.mrb[231].mxu0  ;;  %v23187_v12 = vld [vmem:[#allocation39_spill] sm:$0xff] }
 0x741   : > { %v14916_v51 = vadd.f32 %v7027_v22, %v23179_v43  ;;  %v14913_v17 = vadd.f32 %v14912_v38, %v23181_v26  ;;  %v21129_v63 = vpack.c.bf16 %v8246_v53, %v8244_v14  ;;  %v23188_v38 = vld [vmem:[#allocation108_spill] sm:$0xff] }
 0x742   : > { %v7991_v2 = vmul.f32 0.01, %v14911_v25  ;;  %v14915_v13 = vadd.f32 %v14914_v57, %v23182_v42  ;;  %v23189_v57 = vld [vmem:[#allocation109_spill] sm:$0xff] }
 0x743   : > { %v7992_v18 = vmul.f32 0.01, %v14913_v17  ;;  %v14917_v19 = vadd.f32 %v14916_v51, %v23183_v41 }
 0x744   : > { %v7993_v11 = vmul.f32 0.01, %v14915_v13  ;;  %v8247_v5 = vmax.f32 %v14911_v25, %v7991_v2  ;;  %v23190_v2 = vld [vmem:[#allocation147_spill] sm:$0xff] }
 0x745   : > { %v7994_v44 = vmul.f32 0.01, %v14917_v19  ;;  %v7031_v47 = vpop.f32.mrb[232].mxu0  ;;  %v8248_v55 = vmax.f32 %v14913_v17, %v7992_v18 }
 0x746   : > { %v8249_v35 = vmax.f32 %v14915_v13, %v7993_v11  ;;  %v14918_v54 = vadd.f32 %v7031_v47, %v23184_v23  ;;  %v7033_v6 = vpop.f32.mrb[233].mxu0  ;;  %v23191_v47 = vld [vmem:[#allocation71_spill] sm:$0xff] }
 0x747   : > { %v8250_v7 = vmax.f32 %v14917_v19, %v7994_v44  ;;  %v14920_v4 = vadd.f32 %v7033_v6, %v23184_v23  ;;  %v7035_v0 = vpop.f32.mrb[234].mxu0 }
 0x748   : > { %v21135_v24 = vpack.c.bf16 %v8249_v35, %v8247_v5  ;;  %v14922_v20 = vadd.f32 %v7035_v0, %v23185_v60  ;;  %v14919_v56 = vadd.f32 %v14918_v54, %v23186_v46  ;;  %v7037_v16 = vpop.f32.mrb[235].mxu0  ;;  %v23192_v35 = vld [vmem:[#allocation70_spill] sm:$0xff] }
 0x749   : > { %v14924_v31 = vadd.f32 %v7037_v16, %v23185_v60  ;;  %v14921_v37 = vadd.f32 %v14920_v4, %v23187_v12  ;;  %v21141_v14 = vpack.c.bf16 %v8250_v7, %v8248_v55  ;;  %v23193_v55 = vld [vmem:[#allocation171_spill] sm:$0xff]  ;;  %v23194_v60 = vld [vmem:[#allocation173_spill] sm:$0xff] }
 0x74a   : > { %v7995_v53 = vmul.f32 0.01, %v14919_v56  ;;  %v14923_v45 = vadd.f32 %v14922_v20, %v23188_v38 }
 0x74b   : > { %v7996_v43 = vmul.f32 0.01, %v14921_v37  ;;  %v14925_v61 = vadd.f32 %v14924_v31, %v23189_v57 }
 0x74c   : > { %v7997_v25 = vmul.f32 0.01, %v14923_v45  ;;  %v8251_v26 = vmax.f32 %v14919_v56, %v7995_v53  ;;  %v23195_v56 = vld [vmem:[#allocation115_spill] sm:$0xff] }
 0x74d   : > { %v7998_v22 = vmul.f32 0.01, %v14925_v61  ;;  %v7041_v51 = vpop.f32.mrb[236].mxu0  ;;  %v8252_v18 = vmax.f32 %v14921_v37, %v7996_v43 }
 0x74e   : > { %v8253_v17 = vmax.f32 %v14923_v45, %v7997_v25  ;;  %v14926_v42 = vadd.f32 %v7041_v51, %v23190_v2  ;;  %v7043_v13 = vpop.f32.mrb[237].mxu0  ;;  %v23196_v45 = vld [vmem:[#allocation151_spill] sm:$0xff] }
 0x74f   : > { %v8254_v41 = vmax.f32 %v14925_v61, %v7998_v22  ;;  %v14928_v19 = vadd.f32 %v7043_v13, %v23190_v2  ;;  %v7045_v11 = vpop.f32.mrb[238].mxu0 }
 0x750   : > { %v21147_v44 = vpack.c.bf16 %v8253_v17, %v8251_v26  ;;  %v14930_v5 = vadd.f32 %v7045_v11, %v23191_v47  ;;  %v14927_v23 = vadd.f32 %v14926_v42, %v23192_v35  ;;  %v7047_v54 = vpop.f32.mrb[239].mxu0  ;;  %v23197_v17 = vld [vmem:[#allocation74_spill] sm:$0xff]  ;;  %v23198_v42 = vld [vmem:[#allocation75_spill] sm:$0xff]  ;;  %v23200_v35 = vld [vmem:[#allocation176_spill] sm:$0xff] }
 0x751   : > { %v14932_v6 = vadd.f32 %v7047_v54, %v23191_v47  ;;  %v14929_v7 = vadd.f32 %v14928_v19, %v23193_v55  ;;  %v21153_v4 = vpack.c.bf16 %v8254_v41, %v8252_v18  ;;  %v23199_v19 = vld [vmem:[#allocation41_spill] sm:$0xff] }
 0x752   : > { %v7999_v0 = vmul.f32 0.01, %v14927_v23  ;;  %v14931_v20 = vadd.f32 %v14930_v5, %v23194_v60 }
 0x753   : > { %v8000_v46 = vmul.f32 0.01, %v14929_v7  ;;  %v14933_v16 = vadd.f32 %v14932_v6, %v23195_v56  ;;  %v23201_v6 = vld [vmem:[#allocation122_spill] sm:$0xff]  ;;  %v23202_v56 = vld [vmem:[#allocation155_spill] sm:$0xff] }
 0x754   : > { %v8001_v31 = vmul.f32 0.01, %v14931_v20  ;;  %v8255_v53 = vmax.f32 %v14927_v23, %v7999_v0 }
 0x755   : > { %v8002_v12 = vmul.f32 0.01, %v14933_v16  ;;  %v7051_v37 = vpop.f32.mrb[240].mxu0  ;;  %v8256_v61 = vmax.f32 %v14929_v7, %v8000_v46 }
 0x756   : > { %v8257_v38 = vmax.f32 %v14931_v20, %v8001_v31  ;;  %v14934_v43 = vadd.f32 %v7051_v37, %v23196_v45  ;;  %v7053_v57 = vpop.f32.mrb[241].mxu0 }
 0x757   : > { %v8258_v25 = vmax.f32 %v14933_v16, %v8002_v12  ;;  %v14936_v22 = vadd.f32 %v7053_v57, %v23196_v45  ;;  %v7055_v51 = vpop.f32.mrb[242].mxu0 }
 0x758   : > { %v21159_v26 = vpack.c.bf16 %v8257_v38, %v8255_v53  ;;  %v14938_v2 = vadd.f32 %v7055_v51, %v23197_v17  ;;  %v14935_v13 = vadd.f32 %v14934_v43, %v23198_v42  ;;  %v7057_v18 = vpop.f32.mrb[243].mxu0  ;;  %v23203_v43 = vld [vmem:[#allocation79_spill] sm:$0xff] }
 0x759   : > { %v14940_v41 = vadd.f32 %v7057_v18, %v23197_v17  ;;  %v14937_v11 = vadd.f32 %v14936_v22, %v23199_v19  ;;  %v21165_v47 = vpack.c.bf16 %v8258_v25, %v8256_v61  ;;  %v23204_v61 = vld [vmem:[#allocation78_spill] sm:$0xff]  ;;  %v23206_v18 = vld [vmem:[#allocation128_spill] sm:$0xff] }
 0x75a   : > { %v8003_v5 = vmul.f32 0.01, %v14935_v13  ;;  %v14939_v23 = vadd.f32 %v14938_v2, %v23200_v35  ;;  %v23205_v17 = vld [vmem:[#allocation42_spill] sm:$0xff] }
 0x75b   : > { %v8004_v54 = vmul.f32 0.01, %v14937_v11  ;;  %v14941_v55 = vadd.f32 %v14940_v41, %v23201_v6 }
 0x75c   : > { %v8005_v7 = vmul.f32 0.01, %v14939_v23  ;;  %v8259_v20 = vmax.f32 %v14935_v13, %v8003_v5 }
 0x75d   : > { %v8006_v0 = vmul.f32 0.01, %v14941_v55  ;;  %v7061_v60 = vpop.f32.mrb[244].mxu0  ;;  %v8260_v12 = vmax.f32 %v14937_v11, %v8004_v54  ;;  %v23207_v11 = vld [vmem:[#allocation129_spill] sm:$0xff] }
 0x75e   : > { %v8261_v46 = vmax.f32 %v14939_v23, %v8005_v7  ;;  %v14942_v16 = vadd.f32 %v7061_v60, %v23202_v56  ;;  %v7063_v31 = vpop.f32.mrb[245].mxu0  ;;  %v23208_v7 = vld [vmem:[#allocation159_spill] sm:$0xff] }
 0x75f   : > { %v8262_v37 = vmax.f32 %v14941_v55, %v8006_v0  ;;  %v14944_v53 = vadd.f32 %v7063_v31, %v23202_v56  ;;  %v7065_v38 = vpop.f32.mrb[246].mxu0 }
 0x760   : > { %v21171_v45 = vpack.c.bf16 %v8261_v46, %v8259_v20  ;;  %v14946_v57 = vadd.f32 %v7065_v38, %v23203_v43  ;;  %v14943_v25 = vadd.f32 %v14942_v16, %v23204_v61  ;;  %v7067_v22 = vpop.f32.mrb[247].mxu0 }
 0x761   : > { %v14948_v51 = vadd.f32 %v7067_v22, %v23203_v43  ;;  %v14945_v2 = vadd.f32 %v14944_v53, %v23205_v17  ;;  %v21177_v42 = vpack.c.bf16 %v8262_v37, %v8260_v12  ;;  %v23209_v12 = vld [vmem:[#allocation45_spill] sm:$0xff]  ;;  %v23210_v53 = vld [vmem:[#allocation84_spill] sm:$0xff] }
 0x762   : > { %v8007_v13 = vmul.f32 0.01, %v14943_v25  ;;  %v14947_v41 = vadd.f32 %v14946_v57, %v23206_v18 }
 0x763   : > { %v8008_v19 = vmul.f32 0.01, %v14945_v2  ;;  %v14949_v5 = vadd.f32 %v14948_v51, %v23207_v11 }
 0x764   : > { %v8009_v35 = vmul.f32 0.01, %v14947_v41  ;;  %v8263_v6 = vmax.f32 %v14943_v25, %v8007_v13 }
 0x765   : > { %v8010_v23 = vmul.f32 0.01, %v14949_v5  ;;  %v7071_v54 = vpop.f32.mrb[248].mxu0  ;;  %v8264_v20 = vmax.f32 %v14945_v2, %v8008_v19  ;;  %v23211_v2 = vld [vmem:[#allocation133_spill] sm:$0xff] }
 0x766   : > { %v8265_v55 = vmax.f32 %v14947_v41, %v8009_v35  ;;  %v14950_v0 = vadd.f32 %v7071_v54, %v23208_v7  ;;  %v7073_v60 = vpop.f32.mrb[249].mxu0  ;;  %v23212_v35 = vld [vmem:[#allocation161_spill] sm:$0xff] }
 0x767   : > { %v8266_v46 = vmax.f32 %v14949_v5, %v8010_v23  ;;  %v14952_v56 = vadd.f32 %v7073_v60, %v23208_v7  ;;  %v7075_v16 = vpop.f32.mrb[250].mxu0  ;;  %v23213_v60 = vld [vmem:[#allocation37_spill] sm:$0xff] }
 0x768   : > { %v21183_v31 = vpack.c.bf16 %v8265_v55, %v8263_v6  ;;  %v14954_v37 = vadd.f32 %v7075_v16, %v23209_v12  ;;  %v14951_v38 = vadd.f32 %v14950_v0, %v23210_v53  ;;  %v7077_v43 = vpop.f32.mrb[251].mxu0 }
 0x769   : > { %v14956_v57 = vadd.f32 %v7077_v43, %v23209_v12  ;;  %v14953_v61 = vadd.f32 %v14952_v56, %v20967_v34  ;;  %v21189_v25 = vpack.c.bf16 %v8266_v46, %v8264_v20  ;;  %v21204_v12 = vld [vmem:[%s22583_s3] sm:$0xff] }
 0x76a   : > { %v8011_v22 = vmul.f32 0.01, %v14951_v38  ;;  %v14955_v51 = vadd.f32 %v14954_v37, %v20972_v30  ;;  %v21209_v37 = vld [vmem:[%s22583_s3 + $0x20] sm:$0xff] }
 0x76b   : > { %v8012_v17 = vmul.f32 0.01, %v14953_v61  ;;  %v14957_v13 = vadd.f32 %v14956_v57, %v23211_v2  ;;  %v14168_v43 = vcombine.high %v21204_v12, %v21209_v37 }
 0x76c   : > { %v8013_v18 = vmul.f32 0.01, %v14955_v51  ;;  %v8267_v11 = vmax.f32 %v14951_v38, %v8011_v22  ;;  %v14167_v22 = vcombine.low %v21204_v12, %v21209_v37  ;;  %v23252_v12 = vld [vmem:[#allocation157_spill] sm:$0xff]  ;;  %v23253_v37 = vld [vmem:[#allocation163_spill] sm:$0xff] }
 0x76d   : > { %v8014_v41 = vmul.f32 0.01, %v14957_v13  ;;  %v7081_v19 = vpop.f32.mrb[252].mxu0  ;;  %v8268_v6 = vmax.f32 %v14953_v61, %v8012_v17  ;;  %10355 = vmatprep.mubr.bf16.mxu1 %v14168_v43 }
 0x76e   : > { %v8269_v5 = vmax.f32 %v14955_v51, %v8013_v18  ;;  %v14958_v23 = vadd.f32 %v7081_v19, %v23212_v35  ;;  %v7083_v54 = vpop.f32.mrb[253].mxu0 }
 0x76f   : > { %v8270_v55 = vmax.f32 %v14957_v13, %v8014_v41  ;;  %v14960_v34 = vadd.f32 %v7083_v54, %v23212_v35  ;;  %v7085_v7 = vpop.f32.mrb[254].mxu0  ;;  %v23215_v41 = vld [vmem:[#allocation7_spill] sm:$0xff] }
 0x770   : > { %v21195_v0 = vpack.c.bf16 %v8269_v5, %v8267_v11  ;;  %v14962_v30 = vadd.f32 %v7085_v7, %v23213_v60  ;;  %v14959_v20 = vadd.f32 %v14958_v23, %v20983_v39  ;;  %v7087_v46 = vpop.f32.mrb[255].mxu0 }
 0x771   : > { %v14964_v56 = vadd.f32 %v7087_v46, %v23213_v60  ;;  %v14961_v16 = vadd.f32 %v14960_v34, %v20991_v58  ;;  %v21211_v53 = vpack.c.bf16 %v8270_v55, %v8268_v6  ;;  %v23214_v58 = vld [vmem:[#allocation90_spill] sm:$0xff]  ;;  %v23216_v55 = vld [vmem:[#allocation8_spill] sm:$0xff] }
 0x772   : > { %v8015_v38 = vmul.f32 0.01, %v14959_v20  ;;  %v14963_v39 = vadd.f32 %v14962_v30, %v20996_v3 }
 0x773   : > { %v8016_v57 = vmul.f32 0.01, %v14961_v16  ;;  %v14965_v61 = vadd.f32 %v14964_v56, %v23214_v58 }
 0x774   : > { %v8017_v51 = vmul.f32 0.01, %v14963_v39  ;;  %v8271_v13 = vmax.f32 %v14959_v20, %v8015_v38 }
 0x775   : > { %v8018_v17 = vmul.f32 0.01, %v14965_v61  ;;  %v7124_v2 = vpop.f32.mrb[0].mxu0  ;;  %v8272_v5 = vmax.f32 %v14961_v16, %v8016_v57 }
 0x776   : > { %v8273_v18 = vmax.f32 %v14963_v39, %v8017_v51  ;;  %v14510_v19 = vadd.f32 %v7124_v2, %v23215_v41  ;;  %v7126_v11 = vpop.f32.mrb[1].mxu0 }
 0x777   : > { %v8274_v3 = vmax.f32 %v14965_v61, %v8018_v17  ;;  %v14511_v35 = vadd.f32 %v7126_v11, %v23215_v41  ;;  %v7128_v23 = vpop.f32.mrb[2].mxu0  ;;  %v23217_v61 = vld [vmem:[#allocation14_spill] sm:$0xff]  ;;  %v23218_v11 = vld [vmem:[#allocation16_spill] sm:$0xff] }
 0x778   : > { %v21221_v54 = vpack.c.bf16 %v8273_v18, %v8271_v13  ;;  %v7763_v6 = vmul.f32 0.01, %v14510_v19  ;;  %v14512_v34 = vadd.f32 %v7128_v23, %v23216_v55  ;;  %v7130_v7 = vpop.f32.mrb[3].mxu0 }
 0x779   : > { %v7764_v60 = vmul.f32 0.01, %v14511_v35  ;;  %v14513_v30 = vadd.f32 %v7130_v7, %v23216_v55  ;;  %v21225_v46 = vpack.c.bf16 %v8274_v3, %v8272_v5 }
 0x77a   : > { %v7765_v20 = vmul.f32 0.01, %v14512_v34  ;;  %v8019_v38 = vmax.f32 %v14510_v19, %v7763_v6 }
 0x77b   : > { %v7766_v56 = vmul.f32 0.01, %v14513_v30  ;;  %v8020_v16 = vmax.f32 %v14511_v35, %v7764_v60 }
 0x77c   : > { %v8021_v39 = vmax.f32 %v14512_v34, %v7765_v20 }
 0x77d   : > { %v8022_v43 = vmax.f32 %v14513_v30, %v7766_v56  ;;  %v7134_v57 = vpop.f32.mrb[4].mxu0  ;;  %v23219_v56 = vld [vmem:[#allocation9_spill] sm:$0xff] }
 0x77e   : > { %v8531_v58 = vpack.c.bf16 %v8021_v39, %v8019_v38  ;;  %v14514_v51 = vadd.f32 %v7134_v57, %v23217_v61  ;;  %v7136_v17 = vpop.f32.mrb[5].mxu0 }
 0x77f   : > { %v14515_v2 = vadd.f32 %v7136_v17, %v23217_v61  ;;  %v7138_v13 = vpop.f32.mrb[6].mxu0  ;;  %v8532_v18 = vpack.c.bf16 %v8022_v43, %v8020_v16  ;;  %v23220_v17 = vld [vmem:[#allocation18_spill] sm:$0xff] }
 0x780   : > { %v7767_v41 = vmul.f32 0.01, %v14514_v51  ;;  %v14516_v23 = vadd.f32 %v7138_v13, %v23218_v11  ;;  %v7140_v5 = vpop.f32.mrb[7].mxu0 }
 0x781   : > { %v7768_v3 = vmul.f32 0.01, %v14515_v2  ;;  %v14517_v55 = vadd.f32 %v7140_v5, %v23218_v11  ;;  %10323 = vmatprep.subr.bf16.mxu1 %v8532_v18 }
 0x782   : > { %v7769_v19 = vmul.f32 0.01, %v14516_v23  ;;  %10324 = vmatpush1.bf16.msra.mxu1 %v8531_v58  ;;  %v8023_v6 = vmax.f32 %v14514_v51, %v7767_v41 }
 0x783   : > { %v7770_v35 = vmul.f32 0.01, %v14517_v55  ;;  %v8024_v7 = vmax.f32 %v14515_v2, %v7768_v3 }
 0x784   : > { %v8025_v34 = vmax.f32 %v14516_v23, %v7769_v19 }
 0x785   : > { %v8026_v60 = vmax.f32 %v14517_v55, %v7770_v35  ;;  %v7144_v30 = vpop.f32.mrb[8].mxu0  ;;  %v23221_v35 = vld [vmem:[#allocation10_spill] sm:$0xff] }
 0x786   : > { %v8533_v20 = vpack.c.bf16 %v8025_v34, %v8023_v6  ;;  %v14518_v38 = vadd.f32 %v7144_v30, %v23219_v56  ;;  %v7146_v39 = vpop.f32.mrb[9].mxu0 }
 0x787   : > { %v14519_v16 = vadd.f32 %v7146_v39, %v23219_v56  ;;  %v7148_v43 = vpop.f32.mrb[10].mxu0  ;;  %v8534_v57 = vpack.c.bf16 %v8026_v60, %v8024_v7  ;;  %v23222_v39 = vld [vmem:[#allocation20_spill] sm:$0xff] }
 0x788   : > { %v7771_v61 = vmul.f32 0.01, %v14518_v38  ;;  %v14520_v13 = vadd.f32 %v7148_v43, %v23220_v17  ;;  %v7150_v18 = vpop.f32.mrb[11].mxu0 }
 0x789   : > { %v7772_v11 = vmul.f32 0.01, %v14519_v16  ;;  %v14521_v58 = vadd.f32 %v7150_v18, %v23220_v17  ;;  %10325 = vmatprep.subr.bf16.mxu1 %v8534_v57 }
 0x78a   : > { %v7773_v51 = vmul.f32 0.01, %v14520_v13  ;;  %10326 = vmatpush1.bf16.msra.mxu1 %v8533_v20  ;;  %v8027_v41 = vmax.f32 %v14518_v38, %v7771_v61 }
 0x78b   : > { %v7774_v2 = vmul.f32 0.01, %v14521_v58  ;;  %v8028_v5 = vmax.f32 %v14519_v16, %v7772_v11 }
 0x78c   : > { %v8029_v23 = vmax.f32 %v14520_v13, %v7773_v51 }
 0x78d   : > { %v8030_v3 = vmax.f32 %v14521_v58, %v7774_v2  ;;  %v7154_v55 = vpop.f32.mrb[12].mxu0  ;;  %v23223_v2 = vld [vmem:[#allocation11_spill] sm:$0xff] }
 0x78e   : > { %v8535_v19 = vpack.c.bf16 %v8029_v23, %v8027_v41  ;;  %v14522_v6 = vadd.f32 %v7154_v55, %v23221_v35  ;;  %v7156_v34 = vpop.f32.mrb[13].mxu0 }
 0x78f   : > { %v14523_v7 = vadd.f32 %v7156_v34, %v23221_v35  ;;  %v7158_v60 = vpop.f32.mrb[14].mxu0  ;;  %v8536_v30 = vpack.c.bf16 %v8030_v3, %v8028_v5  ;;  %v23224_v34 = vld [vmem:[#allocation22_spill] sm:$0xff] }
 0x790   : > { %v7775_v56 = vmul.f32 0.01, %v14522_v6  ;;  %v14524_v43 = vadd.f32 %v7158_v60, %v23222_v39  ;;  %v7160_v57 = vpop.f32.mrb[15].mxu0 }
 0x791   : > { %v7776_v17 = vmul.f32 0.01, %v14523_v7  ;;  %v14525_v20 = vadd.f32 %v7160_v57, %v23222_v39  ;;  %10327 = vmatprep.subr.bf16.mxu1 %v8536_v30 }
 0x792   : > { %v7777_v38 = vmul.f32 0.01, %v14524_v43  ;;  %10328 = vmatpush1.bf16.msra.mxu1 %v8535_v19  ;;  %v8031_v61 = vmax.f32 %v14522_v6, %v7775_v56 }
 0x793   : > { %v7778_v16 = vmul.f32 0.01, %v14525_v20  ;;  %v8032_v18 = vmax.f32 %v14523_v7, %v7776_v17 }
 0x794   : > { %v8033_v13 = vmax.f32 %v14524_v43, %v7777_v38 }
 0x795   : > { %v8034_v11 = vmax.f32 %v14525_v20, %v7778_v16  ;;  %v7164_v58 = vpop.f32.mrb[16].mxu0  ;;  %v23225_v16 = vld [vmem:[#allocation12_spill] sm:$0xff] }
 0x796   : > { %v8537_v51 = vpack.c.bf16 %v8033_v13, %v8031_v61  ;;  %v14526_v41 = vadd.f32 %v7164_v58, %v23223_v2  ;;  %v7166_v23 = vpop.f32.mrb[17].mxu0 }
 0x797   : > { %v14527_v5 = vadd.f32 %v7166_v23, %v23223_v2  ;;  %v7168_v3 = vpop.f32.mrb[18].mxu0  ;;  %v8538_v55 = vpack.c.bf16 %v8034_v11, %v8032_v18  ;;  %v23226_v23 = vld [vmem:[#allocation24_spill] sm:$0xff] }
 0x798   : > { %v7779_v35 = vmul.f32 0.01, %v14526_v41  ;;  %v14528_v60 = vadd.f32 %v7168_v3, %v23224_v34  ;;  %v7170_v30 = vpop.f32.mrb[19].mxu0 }
 0x799   : > { %v7780_v39 = vmul.f32 0.01, %v14527_v5  ;;  %v14529_v19 = vadd.f32 %v7170_v30, %v23224_v34  ;;  %10329 = vmatprep.subr.bf16.mxu1 %v8538_v55 }
 0x79a   : > { %v7781_v6 = vmul.f32 0.01, %v14528_v60  ;;  %10330 = vmatpush1.bf16.msra.mxu1 %v8537_v51  ;;  %v8035_v56 = vmax.f32 %v14526_v41, %v7779_v35 }
 0x79b   : > { %v7782_v7 = vmul.f32 0.01, %v14529_v19  ;;  %v8036_v57 = vmax.f32 %v14527_v5, %v7780_v39 }
 0x79c   : > { %v8037_v43 = vmax.f32 %v14528_v60, %v7781_v6 }
 0x79d   : > { %v8038_v17 = vmax.f32 %v14529_v19, %v7782_v7  ;;  %v7174_v20 = vpop.f32.mrb[20].mxu0  ;;  %v23227_v7 = vld [vmem:[#allocation13_spill] sm:$0xff] }
 0x79e   : > { %v8539_v38 = vpack.c.bf16 %v8037_v43, %v8035_v56  ;;  %v14530_v61 = vadd.f32 %v7174_v20, %v23225_v16  ;;  %v7176_v13 = vpop.f32.mrb[21].mxu0 }
 0x79f   : > { %v14531_v18 = vadd.f32 %v7176_v13, %v23225_v16  ;;  %v7178_v11 = vpop.f32.mrb[22].mxu0  ;;  %v8540_v58 = vpack.c.bf16 %v8038_v17, %v8036_v57  ;;  %v23228_v13 = vld [vmem:[#allocation26_spill] sm:$0xff] }
 0x7a0   : > { %v7783_v2 = vmul.f32 0.01, %v14530_v61  ;;  %v14532_v3 = vadd.f32 %v7178_v11, %v23226_v23  ;;  %v7180_v55 = vpop.f32.mrb[23].mxu0 }
 0x7a1   : > { %v7784_v34 = vmul.f32 0.01, %v14531_v18  ;;  %v14533_v51 = vadd.f32 %v7180_v55, %v23226_v23  ;;  %10331 = vmatprep.subr.bf16.mxu1 %v8540_v58 }
 0x7a2   : > { %v7785_v41 = vmul.f32 0.01, %v14532_v3  ;;  %10332 = vmatpush1.bf16.msra.mxu1 %v8539_v38  ;;  %v8039_v35 = vmax.f32 %v14530_v61, %v7783_v2 }
 0x7a3   : > { %v7786_v5 = vmul.f32 0.01, %v14533_v51  ;;  %v8040_v30 = vmax.f32 %v14531_v18, %v7784_v34 }
 0x7a4   : > { %v8041_v60 = vmax.f32 %v14532_v3, %v7785_v41 }
 0x7a5   : > { %v8042_v39 = vmax.f32 %v14533_v51, %v7786_v5  ;;  %v7184_v19 = vpop.f32.mrb[24].mxu0  ;;  %v23229_v5 = vld [vmem:[#allocation15_spill] sm:$0xff] }
 0x7a6   : > { %v8541_v6 = vpack.c.bf16 %v8041_v60, %v8039_v35  ;;  %v14534_v56 = vadd.f32 %v7184_v19, %v23227_v7  ;;  %v7186_v43 = vpop.f32.mrb[25].mxu0 }
 0x7a7   : > { %v14535_v57 = vadd.f32 %v7186_v43, %v23227_v7  ;;  %v7188_v17 = vpop.f32.mrb[26].mxu0  ;;  %v8542_v20 = vpack.c.bf16 %v8042_v39, %v8040_v30  ;;  %v23230_v43 = vld [vmem:[#allocation28_spill] sm:$0xff] }
 0x7a8   : > { %v7787_v16 = vmul.f32 0.01, %v14534_v56  ;;  %v14536_v11 = vadd.f32 %v7188_v17, %v23228_v13  ;;  %v7190_v58 = vpop.f32.mrb[27].mxu0 }
 0x7a9   : > { %v7788_v23 = vmul.f32 0.01, %v14535_v57  ;;  %v14537_v38 = vadd.f32 %v7190_v58, %v23228_v13  ;;  %10333 = vmatprep.subr.bf16.mxu1 %v8542_v20 }
 0x7aa   : > { %v7789_v61 = vmul.f32 0.01, %v14536_v11  ;;  %10334 = vmatpush1.bf16.msra.mxu1 %v8541_v6  ;;  %v8043_v2 = vmax.f32 %v14534_v56, %v7787_v16 }
 0x7ab   : > { %v7790_v18 = vmul.f32 0.01, %v14537_v38  ;;  %v8044_v55 = vmax.f32 %v14535_v57, %v7788_v23 }
 0x7ac   : > { %v8045_v3 = vmax.f32 %v14536_v11, %v7789_v61 }
 0x7ad   : > { %v8046_v34 = vmax.f32 %v14537_v38, %v7790_v18  ;;  %v7194_v51 = vpop.f32.mrb[28].mxu0  ;;  %v23231_v18 = vld [vmem:[#allocation17_spill] sm:$0xff] }
 0x7ae   : > { %v8543_v41 = vpack.c.bf16 %v8045_v3, %v8043_v2  ;;  %v14538_v35 = vadd.f32 %v7194_v51, %v23229_v5  ;;  %v7196_v60 = vpop.f32.mrb[29].mxu0 }
 0x7af   : > { %v14539_v30 = vadd.f32 %v7196_v60, %v23229_v5  ;;  %v7198_v39 = vpop.f32.mrb[30].mxu0  ;;  %v8544_v19 = vpack.c.bf16 %v8046_v34, %v8044_v55  ;;  %v23232_v60 = vld [vmem:[#allocation29_spill] sm:$0xff] }
 0x7b0   : > { %v7791_v7 = vmul.f32 0.01, %v14538_v35  ;;  %v14540_v17 = vadd.f32 %v7198_v39, %v23230_v43  ;;  %v7200_v20 = vpop.f32.mrb[31].mxu0 }
 0x7b1   : > { %v7792_v13 = vmul.f32 0.01, %v14539_v30  ;;  %v14541_v6 = vadd.f32 %v7200_v20, %v23230_v43  ;;  %10335 = vmatprep.subr.bf16.mxu1 %v8544_v19 }
 0x7b2   : > { %v7793_v56 = vmul.f32 0.01, %v14540_v17  ;;  %10336 = vmatpush1.bf16.msra.mxu1 %v8543_v41  ;;  %v8047_v16 = vmax.f32 %v14538_v35, %v7791_v7 }
 0x7b3   : > { %v7794_v57 = vmul.f32 0.01, %v14541_v6  ;;  %v8048_v58 = vmax.f32 %v14539_v30, %v7792_v13 }
 0x7b4   : > { %v8049_v11 = vmax.f32 %v14540_v17, %v7793_v56 }
 0x7b5   : > { %v8050_v23 = vmax.f32 %v14541_v6, %v7794_v57  ;;  %v7204_v38 = vpop.f32.mrb[32].mxu0  ;;  %v23233_v57 = vld [vmem:[#allocation19_spill] sm:$0xff] }
 0x7b6   : > { %v8545_v61 = vpack.c.bf16 %v8049_v11, %v8047_v16  ;;  %v14542_v2 = vadd.f32 %v7204_v38, %v23231_v18  ;;  %v7206_v3 = vpop.f32.mrb[33].mxu0 }
 0x7b7   : > { %v14543_v55 = vadd.f32 %v7206_v3, %v23231_v18  ;;  %v7208_v34 = vpop.f32.mrb[34].mxu0  ;;  %v8546_v51 = vpack.c.bf16 %v8050_v23, %v8048_v58  ;;  %v23234_v3 = vld [vmem:[#allocation30_spill] sm:$0xff] }
 0x7b8   : > { %v7795_v5 = vmul.f32 0.01, %v14542_v2  ;;  %v14544_v39 = vadd.f32 %v7208_v34, %v23232_v60  ;;  %v7210_v19 = vpop.f32.mrb[35].mxu0 }
 0x7b9   : > { %v7796_v43 = vmul.f32 0.01, %v14543_v55  ;;  %v14545_v41 = vadd.f32 %v7210_v19, %v23232_v60  ;;  %10337 = vmatprep.subr.bf16.mxu1 %v8546_v51 }
 0x7ba   : > { %v7797_v35 = vmul.f32 0.01, %v14544_v39  ;;  %10338 = vmatpush1.bf16.msra.mxu1 %v8545_v61  ;;  %v8051_v7 = vmax.f32 %v14542_v2, %v7795_v5 }
 0x7bb   : > { %v7798_v30 = vmul.f32 0.01, %v14545_v41  ;;  %v8052_v20 = vmax.f32 %v14543_v55, %v7796_v43 }
 0x7bc   : > { %v8053_v17 = vmax.f32 %v14544_v39, %v7797_v35 }
 0x7bd   : > { %v8054_v13 = vmax.f32 %v14545_v41, %v7798_v30  ;;  %v7214_v6 = vpop.f32.mrb[36].mxu0  ;;  %v23235_v30 = vld [vmem:[#allocation21_spill] sm:$0xff] }
 0x7be   : > { %v8547_v56 = vpack.c.bf16 %v8053_v17, %v8051_v7  ;;  %v14546_v16 = vadd.f32 %v7214_v6, %v23233_v57  ;;  %v7216_v11 = vpop.f32.mrb[37].mxu0 }
 0x7bf   : > { %v14547_v58 = vadd.f32 %v7216_v11, %v23233_v57  ;;  %v7218_v23 = vpop.f32.mrb[38].mxu0  ;;  %v8548_v38 = vpack.c.bf16 %v8054_v13, %v8052_v20  ;;  %v23236_v11 = vld [vmem:[#allocation31_spill] sm:$0xff] }
 0x7c0   : > { %v7799_v18 = vmul.f32 0.01, %v14546_v16  ;;  %v14548_v34 = vadd.f32 %v7218_v23, %v23234_v3  ;;  %v7220_v51 = vpop.f32.mrb[39].mxu0 }
 0x7c1   : > { %v7800_v60 = vmul.f32 0.01, %v14547_v58  ;;  %v14549_v61 = vadd.f32 %v7220_v51, %v23234_v3  ;;  %10339 = vmatprep.subr.bf16.mxu1 %v8548_v38 }
 0x7c2   : > { %v7801_v2 = vmul.f32 0.01, %v14548_v34  ;;  %10340 = vmatpush1.bf16.msra.mxu1 %v8547_v56  ;;  %v8055_v5 = vmax.f32 %v14546_v16, %v7799_v18 }
 0x7c3   : > { %v7802_v55 = vmul.f32 0.01, %v14549_v61  ;;  %v8056_v19 = vmax.f32 %v14547_v58, %v7800_v60 }
 0x7c4   : > { %v8057_v39 = vmax.f32 %v14548_v34, %v7801_v2 }
 0x7c5   : > { %v8058_v43 = vmax.f32 %v14549_v61, %v7802_v55  ;;  %v7224_v41 = vpop.f32.mrb[40].mxu0  ;;  %v23237_v55 = vld [vmem:[#allocation23_spill] sm:$0xff] }
 0x7c6   : > { %v8549_v35 = vpack.c.bf16 %v8057_v39, %v8055_v5  ;;  %v14550_v7 = vadd.f32 %v7224_v41, %v23235_v30  ;;  %v7226_v17 = vpop.f32.mrb[41].mxu0 }
 0x7c7   : > { %v14551_v20 = vadd.f32 %v7226_v17, %v23235_v30  ;;  %v7228_v13 = vpop.f32.mrb[42].mxu0  ;;  %v8550_v6 = vpack.c.bf16 %v8058_v43, %v8056_v19  ;;  %v23238_v17 = vld [vmem:[#allocation32_spill] sm:$0xff] }
 0x7c8   : > { %v7803_v57 = vmul.f32 0.01, %v14550_v7  ;;  %v14552_v23 = vadd.f32 %v7228_v13, %v23236_v11  ;;  %v7230_v38 = vpop.f32.mrb[43].mxu0 }
 0x7c9   : > { %v7804_v3 = vmul.f32 0.01, %v14551_v20  ;;  %v14553_v56 = vadd.f32 %v7230_v38, %v23236_v11  ;;  %10341 = vmatprep.subr.bf16.mxu1 %v8550_v6 }
 0x7ca   : > { %v7805_v16 = vmul.f32 0.01, %v14552_v23  ;;  %10342 = vmatpush1.bf16.msra.mxu1 %v8549_v35  ;;  %v8059_v18 = vmax.f32 %v14550_v7, %v7803_v57 }
 0x7cb   : > { %v7806_v58 = vmul.f32 0.01, %v14553_v56  ;;  %v8060_v51 = vmax.f32 %v14551_v20, %v7804_v3 }
 0x7cc   : > { %v8061_v34 = vmax.f32 %v14552_v23, %v7805_v16 }
 0x7cd   : > { %v8062_v60 = vmax.f32 %v14553_v56, %v7806_v58  ;;  %v7234_v61 = vpop.f32.mrb[44].mxu0  ;;  %v23239_v58 = vld [vmem:[#allocation25_spill] sm:$0xff] }
 0x7ce   : > { %v8551_v2 = vpack.c.bf16 %v8061_v34, %v8059_v18  ;;  %v14554_v5 = vadd.f32 %v7234_v61, %v23237_v55  ;;  %v7236_v39 = vpop.f32.mrb[45].mxu0 }
 0x7cf   : > { %v14555_v19 = vadd.f32 %v7236_v39, %v23237_v55  ;;  %v7238_v43 = vpop.f32.mrb[46].mxu0  ;;  %v8552_v41 = vpack.c.bf16 %v8062_v60, %v8060_v51  ;;  %v23240_v39 = vld [vmem:[#allocation33_spill] sm:$0xff] }
 0x7d0   : > { %v7807_v30 = vmul.f32 0.01, %v14554_v5  ;;  %v14556_v13 = vadd.f32 %v7238_v43, %v23238_v17  ;;  %v7240_v6 = vpop.f32.mrb[47].mxu0 }
 0x7d1   : > { %v7808_v11 = vmul.f32 0.01, %v14555_v19  ;;  %v14557_v35 = vadd.f32 %v7240_v6, %v23238_v17  ;;  %10343 = vmatprep.subr.bf16.mxu1 %v8552_v41 }
 0x7d2   : > { %v7809_v7 = vmul.f32 0.01, %v14556_v13  ;;  %10344 = vmatpush1.bf16.msra.mxu1 %v8551_v2  ;;  %v8063_v57 = vmax.f32 %v14554_v5, %v7807_v30 }
 0x7d3   : > { %v7810_v20 = vmul.f32 0.01, %v14557_v35  ;;  %v8064_v38 = vmax.f32 %v14555_v19, %v7808_v11 }
 0x7d4   : > { %v8065_v23 = vmax.f32 %v14556_v13, %v7809_v7 }
 0x7d5   : > { %v8066_v3 = vmax.f32 %v14557_v35, %v7810_v20  ;;  %v7244_v56 = vpop.f32.mrb[48].mxu0  ;;  %v23241_v20 = vld [vmem:[#allocation27_spill] sm:$0xff] }
 0x7d6   : > { %v8553_v16 = vpack.c.bf16 %v8065_v23, %v8063_v57  ;;  %v14558_v18 = vadd.f32 %v7244_v56, %v23239_v58  ;;  %v7246_v34 = vpop.f32.mrb[49].mxu0 }
 0x7d7   : > { %v14559_v51 = vadd.f32 %v7246_v34, %v23239_v58  ;;  %v7248_v60 = vpop.f32.mrb[50].mxu0  ;;  %v8554_v61 = vpack.c.bf16 %v8066_v3, %v8064_v38  ;;  %v23242_v34 = vld [vmem:[#allocation34_spill] sm:$0xff] }
 0x7d8   : > { %v7811_v55 = vmul.f32 0.01, %v14558_v18  ;;  %v14560_v43 = vadd.f32 %v7248_v60, %v23240_v39  ;;  %v7250_v41 = vpop.f32.mrb[51].mxu0 }
 0x7d9   : > { %v7812_v17 = vmul.f32 0.01, %v14559_v51  ;;  %v14561_v2 = vadd.f32 %v7250_v41, %v23240_v39  ;;  %10345 = vmatprep.subr.bf16.mxu1 %v8554_v61 }
 0x7da   : > { %v7813_v5 = vmul.f32 0.01, %v14560_v43  ;;  %10346 = vmatpush1.bf16.msra.mxu1 %v8553_v16  ;;  %v8067_v30 = vmax.f32 %v14558_v18, %v7811_v55 }
 0x7db   : > { %v7814_v19 = vmul.f32 0.01, %v14561_v2  ;;  %v8068_v6 = vmax.f32 %v14559_v51, %v7812_v17 }
 0x7dc   : > { %v8069_v13 = vmax.f32 %v14560_v43, %v7813_v5 }
 0x7dd   : > { %v8070_v11 = vmax.f32 %v14561_v2, %v7814_v19  ;;  %v7254_v35 = vpop.f32.mrb[52].mxu0  ;;  %v23243_v19 = vld [vmem:[#allocation140_spill] sm:$0xff] }
 0x7de   : > { %v8555_v7 = vpack.c.bf16 %v8069_v13, %v8067_v30  ;;  %v14562_v57 = vadd.f32 %v7254_v35, %v23241_v20  ;;  %v7256_v23 = vpop.f32.mrb[53].mxu0  ;;  %v23244_v30 = vld [vmem:[#allocation139_spill] sm:$0xff]  ;;  %v23245_v13 = vld [vmem:[#allocation144_spill] sm:$0xff] }
 0x7df   : > { %v14563_v38 = vadd.f32 %v7256_v23, %v23241_v20  ;;  %v7258_v3 = vpop.f32.mrb[54].mxu0  ;;  %v8556_v56 = vpack.c.bf16 %v8070_v11, %v8068_v6  ;;  %v8283_v6 = vld [vmem:[%s22583_s3 + $0x40] sm:$0xff]  ;;  %v23247_v20 = vld [vmem:[#allocation149_spill] sm:$0xff] }
 0x7e0   : > { %v7815_v58 = vmul.f32 0.01, %v14562_v57  ;;  %v14564_v60 = vadd.f32 %v7258_v3, %v23242_v34  ;;  %v7260_v61 = vpop.f32.mrb[55].mxu0  ;;  %v8287_v11 = vld [vmem:[%s22583_s3 + $0x60] sm:$0xff]  ;;  %v23249_v23 = vld [vmem:[#allocation153_spill] sm:$0xff] }
 0x7e1   : > { %v7816_v39 = vmul.f32 0.01, %v14563_v38  ;;  %v14565_v16 = vadd.f32 %v7260_v61, %v23242_v34  ;;  %10347 = vmatprep.subr.bf16.mxu1 %v8556_v56  ;;  %v23246_v35 = vld [vmem:[#allocation143_spill] sm:$0xff]  ;;  %v14175_v56 = vcombine.low %v8283_v6, %v8287_v11 }
 0x7e2   : > { %v7817_v18 = vmul.f32 0.01, %v14564_v60  ;;  %10348 = vmatpush1.bf16.msra.mxu1 %v8555_v7  ;;  %v8071_v55 = vmax.f32 %v14562_v57, %v7815_v58  ;;  %v14176_v7 = vcombine.high %v8283_v6, %v8287_v11  ;;  %v23248_v57 = vld [vmem:[#allocation148_spill] sm:$0xff]  ;;  %v8295_v3 = vld [vmem:[%s22583_s3 + $0xa0] sm:$0xff]  ;;  %v23261_v6 = vld [vmem:[#allocation89_spill] sm:$0xff] }
 0x7e3   : > { %v7818_v51 = vmul.f32 0.01, %v14565_v16  ;;  %v8072_v41 = vmax.f32 %v14563_v38, %v7816_v39  ;;  %v8291_v38 = vld [vmem:[%s22583_s3 + $0x80] sm:$0xff]  ;;  %v23250_v58 = vld [vmem:[#allocation152_spill] sm:$0xff] }
 0x7e4   : > { %v8073_v43 = vmax.f32 %v14564_v60, %v7817_v18  ;;  %v14184_v34 = vcombine.high %v8291_v38, %v8295_v3  ;;  %v23251_v60 = vld [vmem:[#allocation158_spill] sm:$0xff]  ;;  %v14183_v39 = vcombine.low %v8291_v38, %v8295_v3 }
 0x7e5   : > { %v8074_v17 = vmax.f32 %v14565_v16, %v7818_v51  ;;  %v8303_v61 = vld [vmem:[%s22583_s3 + $0xe0] sm:$0xff] }
 0x7e6   : > { %v8557_v2 = vpack.c.bf16 %v8073_v43, %v8071_v55  ;;  %v23254_v16 = vld [vmem:[#allocation162_spill] sm:$0xff]  ;;  %v23255_v51 = vld [vmem:[#allocation167_spill] sm:$0xff] }
 0x7e7   : > { %v8558_v5 = vpack.c.bf16 %v8074_v17, %v8072_v41  ;;  %v23256_v55 = vld [vmem:[#allocation166_spill] sm:$0xff]  ;;  %v23257_v43 = vld [vmem:[#allocation43_spill] sm:$0xff] }
 0x7e8   : > { %v8307_v41 = vld [vmem:[%s22583_s3 + $0x100] sm:$0xff] }
 0x7e9   : > { %10349 = vmatprep.subr.bf16.mxu1 %v8558_v5  ;;  %v8311_v17 = vld [vmem:[%s22583_s3 + $0x120] sm:$0xff] }
 0x7ea   : > { %10350 = vmatpush1.bf16.msra.mxu1 %v8557_v2  ;;  %v23258_v5 = vld [vmem:[#allocation35_spill] sm:$0xff]  ;;  %v23264_v38 = vld [vmem:[#allocation38_spill] sm:$0xff] }
 0x7eb   : > { %10351 = vmatprep.subr.bf16.mxu1 %v23243_v19  ;;  %v14200_v19 = vcombine.high %v8307_v41, %v8311_v17  ;;  %v8315_v11 = vld [vmem:[%s22583_s3 + $0x140] sm:$0xff] }
 0x7ec   : > { %v23265_v3 = vld [vmem:[#allocation170_spill] sm:$0xff] }
 0x7ee   : > { %10352 = vmatpush1.bf16.msra.mxu1 %v23244_v30  ;;  %v23259_v30 = vld [vmem:[#allocation36_spill] sm:$0xff] }
 0x7ef   : > { %10353 = vmatprep.subr.bf16.mxu1 %v23245_v13  ;;  %v23260_v13 = vld [vmem:[#allocation82_spill] sm:$0xff] }
 0x7f2   : > { %10354 = vmatpush1.bf16.msra.mxu1 %v23246_v35  ;;  %v8319_v35 = vld [vmem:[%s22583_s3 + $0x160] sm:$0xff] }
 0x7f3   : > { %10676 = vmatprep.subr.bf16.mxu1 %v23247_v20  ;;  %v23262_v20 = vld [vmem:[#allocation86_spill] sm:$0xff] }
 0x7f5   : > { %10356 = vmatmul.mubr.bf16.vlgmr.msra.gmra.mrb[200].mxu1 %v14167_v22  ;;  %v8299_v22 = vld [vmem:[%s22583_s3 + $0xc0] sm:$0xff] }
 0x7f6   : > { %10677 = vmatpush1.bf16.msra.mxu1 %v23248_v57  ;;  %10365 = vmatprep.mubr.bf16.mxu1 %v14176_v7  ;;  %v14192_v18 = vcombine.high %v8299_v22, %v8303_v61  ;;  %v14191_v2 = vcombine.low %v8299_v22, %v8303_v61  ;;  %v14199_v7 = vcombine.low %v8307_v41, %v8311_v17  ;;  %v23268_v22 = vld [vmem:[#allocation53_spill] sm:$0xff]  ;;  %v23269_v61 = vld [vmem:[#allocation175_spill] sm:$0xff]  ;;  %v23273_v17 = vld [vmem:[#allocation180_spill] sm:$0xff] }
 0x7f7   : > { %10678 = vmatprep.subr.bf16.mxu1 %v23249_v23  ;;  %v14208_v57 = vcombine.high %v8315_v11, %v8319_v35  ;;  %v23263_v23 = vld [vmem:[#allocation99_spill] sm:$0xff]  ;;  %v23272_v41 = vld [vmem:[#allocation177_spill] sm:$0xff] }
 0x7fa   : > { %10679 = vmatpush1.bf16.msra.mxu1 %v23250_v58  ;;  %v8327_v58 = vld [vmem:[%s22583_s3 + $0x1a0] sm:$0xff] }
 0x7fb   : > { %10680 = vmatprep.subr.bf16.mxu1 %v23251_v60  ;;  %v23266_v60 = vld [vmem:[#allocation169_spill] sm:$0xff] }
 0x7fd   : > { %10366 = vmatmul.mubr.bf16.gmra.mrb[204].mxu1 %v14175_v56  ;;  %v8323_v56 = vld [vmem:[%s22583_s3 + $0x180] sm:$0xff] }
 0x7fe   : > { %10681 = vmatpush1.bf16.msra.mxu1 %v23252_v12  ;;  %10375 = vmatprep.mubr.bf16.mxu1 %v14184_v34  ;;  %v14207_v34 = vcombine.low %v8315_v11, %v8319_v35  ;;  %v14216_v12 = vcombine.high %v8323_v56, %v8327_v58  ;;  %v23276_v11 = vld [vmem:[#allocation61_spill] sm:$0xff] }
 0x7ff   : > { %10682 = vmatprep.subr.bf16.mxu1 %v23253_v37  ;;  %v23267_v37 = vld [vmem:[#allocation172_spill] sm:$0xff]  ;;  %v23277_v35 = vld [vmem:[#allocation185_spill] sm:$0xff] }
 0x802   : > { %10683 = vmatpush1.bf16.msra.mxu1 %v23254_v16  ;;  %v8335_v16 = vld [vmem:[%s22583_s3 + $0x1e0] sm:$0xff] }
 0x803   : > { %10684 = vmatprep.subr.bf16.mxu1 %v23255_v51  ;;  %v23270_v51 = vld [vmem:[#allocation174_spill] sm:$0xff] }
 0x805   : > { %10376 = vmatmul.mubr.bf16.gmra.mrb[208].mxu1 %v14183_v39  ;;  %v8331_v39 = vld [vmem:[%s22583_s3 + $0x1c0] sm:$0xff] }
 0x806   : > { %10685 = vmatpush1.bf16.msra.mxu1 %v23256_v55  ;;  %10385 = vmatprep.mubr.bf16.mxu1 %v14192_v18  ;;  %v14215_v18 = vcombine.low %v8323_v56, %v8327_v58  ;;  %v14224_v55 = vcombine.high %v8331_v39, %v8335_v16  ;;  %v8355_v56 = vld [vmem:[%s22583_s3 + $0x280] sm:$0xff] }
 0x807   : > { %10686 = vmatprep.subr.bf16.mxu1 %v23257_v43  ;;  %v23271_v43 = vld [vmem:[#allocation178_spill] sm:$0xff] }
 0x808   : > { %v8359_v58 = vld [vmem:[%s22583_s3 + $0x2a0] sm:$0xff] }
 0x80a   : > { %10687 = vmatpush1.bf16.msra.mxu1 %v23258_v5  ;;  %v8343_v5 = vld [vmem:[%s22583_s3 + $0x220] sm:$0xff] }
 0x80b   : > { %10688 = vmatprep.subr.bf16.mxu1 %v23259_v30  ;;  %v23274_v30 = vld [vmem:[#allocation59_spill] sm:$0xff] }
 0x80d   : > { %10386 = vmatmul.mubr.bf16.gmra.mrb[212].mxu1 %v14191_v2  ;;  %v8339_v2 = vld [vmem:[%s22583_s3 + $0x200] sm:$0xff] }
 0x80e   : > { %10689 = vmatpush1.bf16.msra.mxu1 %v23260_v13  ;;  %10395 = vmatprep.mubr.bf16.mxu1 %v14200_v19  ;;  %v14223_v19 = vcombine.low %v8331_v39, %v8335_v16  ;;  %v14232_v13 = vcombine.high %v8339_v2, %v8343_v5  ;;  %v8371_v39 = vld [vmem:[%s22583_s3 + $0x300] sm:$0xff] }
 0x80f   : > { %10690 = vmatprep.subr.bf16.mxu1 %v23261_v6  ;;  %v23275_v6 = vld [vmem:[#allocation182_spill] sm:$0xff] }
 0x810   : > { %v8375_v16 = vld [vmem:[%s22583_s3 + $0x320] sm:$0xff] }
 0x812   : > { %10691 = vmatpush1.bf16.msra.mxu1 %v23262_v20  ;;  %v8351_v20 = vld [vmem:[%s22583_s3 + $0x260] sm:$0xff] }
 0x813   : > { %10692 = vmatprep.subr.bf16.mxu1 %v23263_v23  ;;  %v23278_v23 = vld [vmem:[#allocation63_spill] sm:$0xff] }
 0x815   : > { %10396 = vmatmul.mubr.bf16.gmra.mrb[216].mxu1 %v14199_v7  ;;  %v8347_v7 = vld [vmem:[%s22583_s3 + $0x240] sm:$0xff] }
 0x816   : > { %10693 = vmatpush1.bf16.msra.mxu1 %v23264_v38  ;;  %10405 = vmatprep.mubr.bf16.mxu1 %v14208_v57  ;;  %v14231_v57 = vcombine.low %v8339_v2, %v8343_v5  ;;  %v14240_v38 = vcombine.high %v8347_v7, %v8351_v20  ;;  %v8387_v2 = vld [vmem:[%s22583_s3 + $0x380] sm:$0xff] }
 0x817   : > { %10694 = vmatprep.subr.bf16.mxu1 %v23265_v3  ;;  %v23279_v3 = vld [vmem:[#allocation65_spill] sm:$0xff]  ;;  %v8391_v5 = vld [vmem:[%s22583_s3 + $0x3a0] sm:$0xff] }
 0x81a   : > { %10695 = vmatpush1.bf16.msra.mxu1 %v23266_v60  ;;  %v14248_v60 = vcombine.high %v8355_v56, %v8359_v58 }
 0x81b   : > { %10696 = vmatprep.subr.bf16.mxu1 %v23267_v37  ;;  %v8367_v37 = vld [vmem:[%s22583_s3 + $0x2e0] sm:$0xff] }
 0x81d   : > { %10406 = vmatmul.mubr.bf16.gmra.mrb[220].mxu1 %v14207_v34  ;;  %v14239_v34 = vcombine.low %v8347_v7, %v8351_v20  ;;  %v8403_v7 = vld [vmem:[%s22583_s3 + $0x400] sm:$0xff] }
 0x81e   : > { %10697 = vmatpush1.bf16.msra.mxu1 %v23268_v22  ;;  %10415 = vmatprep.mubr.bf16.mxu1 %v14216_v12  ;;  %v8363_v12 = vld [vmem:[%s22583_s3 + $0x2c0] sm:$0xff]  ;;  %v14247_v22 = vcombine.low %v8355_v56, %v8359_v58 }
 0x81f   : > { %10698 = vmatprep.subr.bf16.mxu1 %v23269_v61  ;;  %v14256_v61 = vcombine.high %v8363_v12, %v8367_v37  ;;  %v8407_v20 = vld [vmem:[%s22583_s3 + $0x420] sm:$0xff] }
 0x820   : > { %v14295_v56 = vcombine.low %v8403_v7, %v8407_v20 }
 0x822   : > { %10699 = vmatpush1.bf16.msra.mxu1 %v23270_v51  ;;  %v14264_v51 = vcombine.high %v8371_v39, %v8375_v16 }
 0x823   : > { %10700 = vmatprep.subr.bf16.mxu1 %v23271_v43  ;;  %v8383_v43 = vld [vmem:[%s22583_s3 + $0x360] sm:$0xff] }
 0x825   : > { %10416 = vmatmul.mubr.bf16.gmra.mrb[224].mxu1 %v14215_v18  ;;  %v14255_v18 = vcombine.low %v8363_v12, %v8367_v37 }
 0x826   : > { %10701 = vmatpush1.bf16.msra.mxu1 %v23272_v41  ;;  %10425 = vmatprep.mubr.bf16.mxu1 %v14224_v55  ;;  %v8379_v55 = vld [vmem:[%s22583_s3 + $0x340] sm:$0xff]  ;;  %v14263_v41 = vcombine.low %v8371_v39, %v8375_v16 }
 0x827   : > { %10702 = vmatprep.subr.bf16.mxu1 %v23273_v17  ;;  %v14272_v17 = vcombine.high %v8379_v55, %v8383_v43 }
 0x82a   : > { %10703 = vmatpush1.bf16.msra.mxu1 %v23274_v30  ;;  %v14280_v30 = vcombine.high %v8387_v2, %v8391_v5 }
 0x82b   : > { %10704 = vmatprep.subr.bf16.mxu1 %v23275_v6  ;;  %v8399_v6 = vld [vmem:[%s22583_s3 + $0x3e0] sm:$0xff] }
 0x82d   : > { %10426 = vmatmul.mubr.bf16.gmra.mrb[228].mxu1 %v14223_v19  ;;  %v14271_v19 = vcombine.low %v8379_v55, %v8383_v43 }
 0x82e   : > { %10705 = vmatpush1.bf16.msra.mxu1 %v23276_v11  ;;  %10435 = vmatprep.mubr.bf16.mxu1 %v14232_v13  ;;  %v8395_v13 = vld [vmem:[%s22583_s3 + $0x3c0] sm:$0xff]  ;;  %v14279_v11 = vcombine.low %v8387_v2, %v8391_v5 }
 0x82f   : > { %10706 = vmatprep.subr.bf16.mxu1 %v23277_v35  ;;  %v14288_v35 = vcombine.high %v8395_v13, %v8399_v6 }
 0x832   : > { %10707 = vmatpush1.bf16.msra.mxu1 %v23278_v23  ;;  %v14296_v23 = vcombine.high %v8403_v7, %v8407_v20 }
 0x833   : > { %11029 = vmatprep.subr.bf16.mxu1 %v23279_v3  ;;  %v8415_v3 = vld [vmem:[%s22583_s3 + $0x460] sm:$0xff] }
 0x835   : > { %10436 = vmatmul.mubr.bf16.gmra.mrb[232].mxu1 %v14231_v57  ;;  %v14287_v57 = vcombine.low %v8395_v13, %v8399_v6 }
 0x836   : > { %10445 = vmatprep.mubr.bf16.mxu1 %v14240_v38  ;;  %v8411_v38 = vld [vmem:[%s22583_s3 + $0x440] sm:$0xff] }
 0x837   : > { %v14304_v58 = vcombine.high %v8411_v38, %v8415_v3  ;;  %v14303_v12 = vcombine.low %v8411_v38, %v8415_v3 }
 0x83d   : > { %10446 = vmatmul.mubr.bf16.gmra.mrb[236].mxu1 %v14239_v34  ;;  %v8419_v34 = vld [vmem:[%s22583_s3 + $0x480] sm:$0xff] }
 0x83e   : > { %10455 = vmatprep.mubr.bf16.mxu1 %v14248_v60  ;;  %v8423_v60 = vld [vmem:[%s22583_s3 + $0x4a0] sm:$0xff] }
 0x83f   : > { %v14312_v37 = vcombine.high %v8419_v34, %v8423_v60  ;;  %v14311_v39 = vcombine.low %v8419_v34, %v8423_v60 }
 0x845   : > { %10456 = vmatmul.mubr.bf16.gmra.mrb[240].mxu1 %v14247_v22  ;;  %v8427_v22 = vld [vmem:[%s22583_s3 + $0x4c0] sm:$0xff] }
 0x846   : > { %10465 = vmatprep.mubr.bf16.mxu1 %v14256_v61  ;;  %v8431_v61 = vld [vmem:[%s22583_s3 + $0x4e0] sm:$0xff] }
 0x847   : > { %v14320_v16 = vcombine.high %v8427_v22, %v8431_v61  ;;  %v14319_v55 = vcombine.low %v8427_v22, %v8431_v61 }
 0x84d   : > { %10466 = vmatmul.mubr.bf16.gmra.mrb[244].mxu1 %v14255_v18  ;;  %v8435_v18 = vld [vmem:[%s22583_s3 + $0x500] sm:$0xff] }
 0x84e   : > { %10475 = vmatprep.mubr.bf16.mxu1 %v14264_v51  ;;  %v8439_v51 = vld [vmem:[%s22583_s3 + $0x520] sm:$0xff] }
 0x84f   : > { %v14328_v43 = vcombine.high %v8435_v18, %v8439_v51  ;;  %v14327_v2 = vcombine.low %v8435_v18, %v8439_v51 }
 0x855   : > { %10476 = vmatmul.mubr.bf16.gmra.mrb[248].mxu1 %v14263_v41  ;;  %v8443_v41 = vld [vmem:[%s22583_s3 + $0x540] sm:$0xff] }
 0x856   : > { %10485 = vmatprep.mubr.bf16.mxu1 %v14272_v17  ;;  %v8447_v17 = vld [vmem:[%s22583_s3 + $0x560] sm:$0xff] }
 0x857   : > { %v14336_v5 = vcombine.high %v8443_v41, %v8447_v17  ;;  %v14335_v13 = vcombine.low %v8443_v41, %v8447_v17 }
 0x85d   : > { %10486 = vmatmul.mubr.bf16.gmra.mrb[252].mxu1 %v14271_v19  ;;  %v8451_v19 = vld [vmem:[%s22583_s3 + $0x580] sm:$0xff] }
 0x85e   : > { %10495 = vmatprep.mubr.bf16.mxu1 %v14280_v30  ;;  %v8455_v30 = vld [vmem:[%s22583_s3 + $0x5a0] sm:$0xff] }
 0x85f   : > { %v14344_v6 = vcombine.high %v8451_v19, %v8455_v30  ;;  %v14343_v7 = vcombine.low %v8451_v19, %v8455_v30 }
 0x865   : > { %10496 = vmatmul.mubr.bf16.gmra.mrb[0].mxu1 %v14279_v11  ;;  %v8459_v11 = vld [vmem:[%s22583_s3 + $0x5c0] sm:$0xff] }
 0x866   : > { %10505 = vmatprep.mubr.bf16.mxu1 %v14288_v35  ;;  %v8463_v35 = vld [vmem:[%s22583_s3 + $0x5e0] sm:$0xff] }
 0x867   : > { %v14352_v20 = vcombine.high %v8459_v11, %v8463_v35  ;;  %v14351_v38 = vcombine.low %v8459_v11, %v8463_v35 }
 0x86d   : > { %10506 = vmatmul.mubr.bf16.gmra.mrb[4].mxu1 %v14287_v57  ;;  %v8467_v57 = vld [vmem:[%s22583_s3 + $0x600] sm:$0xff] }
 0x86e   : > { %10515 = vmatprep.mubr.bf16.mxu1 %v14296_v23  ;;  %v8471_v23 = vld [vmem:[%s22583_s3 + $0x620] sm:$0xff] }
 0x86f   : > { %v14360_v3 = vcombine.high %v8467_v57, %v8471_v23  ;;  %v14359_v34 = vcombine.low %v8467_v57, %v8471_v23 }
 0x875   : > { %10516 = vmatmul.mubr.bf16.gmra.mrb[8].mxu1 %v14295_v56  ;;  %v8475_v56 = vld [vmem:[%s22583_s3 + $0x640] sm:$0xff] }
 0x876   : > { %10525 = vmatprep.mubr.bf16.mxu1 %v14304_v58  ;;  %v8479_v58 = vld [vmem:[%s22583_s3 + $0x660] sm:$0xff] }
 0x877   : > { %v14368_v60 = vcombine.high %v8475_v56, %v8479_v58  ;;  %v14367_v22 = vcombine.low %v8475_v56, %v8479_v58 }
 0x87d   : > { %10526 = vmatmul.mubr.bf16.gmra.mrb[12].mxu1 %v14303_v12  ;;  %v8483_v12 = vld [vmem:[%s22583_s3 + $0x680] sm:$0xff] }
 0x87e   : > { %10535 = vmatprep.mubr.bf16.mxu1 %v14312_v37  ;;  %v8487_v37 = vld [vmem:[%s22583_s3 + $0x6a0] sm:$0xff] }
 0x87f   : > { %v14376_v61 = vcombine.high %v8483_v12, %v8487_v37  ;;  %v14375_v18 = vcombine.low %v8483_v12, %v8487_v37 }
 0x885   : > { %10536 = vmatmul.mubr.bf16.gmra.mrb[16].mxu1 %v14311_v39  ;;  %v8491_v39 = vld [vmem:[%s22583_s3 + $0x6c0] sm:$0xff] }
 0x886   : > { %10545 = vmatprep.mubr.bf16.mxu1 %v14320_v16  ;;  %v8495_v16 = vld [vmem:[%s22583_s3 + $0x6e0] sm:$0xff] }
 0x887   : > { %v14384_v51 = vcombine.high %v8491_v39, %v8495_v16  ;;  %v14383_v41 = vcombine.low %v8491_v39, %v8495_v16  ;;  %v8292_v39 = vld [vmem:[%s22583_s3 + $0x88] sm:$0xff] }
 0x888   : > { %v8296_v16 = vld [vmem:[%s22583_s3 + $0xa8] sm:$0xff] }
 0x88d   : > { %10546 = vmatmul.mubr.bf16.gmra.mrb[20].mxu1 %v14319_v55  ;;  %v8499_v55 = vld [vmem:[%s22583_s3 + $0x700] sm:$0xff] }
 0x88e   : > { %10555 = vmatprep.mubr.bf16.mxu1 %v14328_v43  ;;  %v8503_v43 = vld [vmem:[%s22583_s3 + $0x720] sm:$0xff] }
 0x88f   : > { %v14392_v17 = vcombine.high %v8499_v55, %v8503_v43  ;;  %v14391_v19 = vcombine.low %v8499_v55, %v8503_v43  ;;  %v14186_v55 = vcombine.high %v8292_v39, %v8296_v16  ;;  %v23283_v43 = vld [vmem:[#allocation189_spill] sm:$0xff] }
 0x895   : > { %10556 = vmatmul.mubr.bf16.gmra.mrb[24].mxu1 %v14327_v2  ;;  %v8507_v2 = vld [vmem:[%s22583_s3 + $0x740] sm:$0xff] }
 0x896   : > { %10565 = vmatprep.mubr.bf16.mxu1 %v14336_v5  ;;  %v8511_v5 = vld [vmem:[%s22583_s3 + $0x760] sm:$0xff] }
 0x897   : > { %v14400_v30 = vcombine.high %v8507_v2, %v8511_v5  ;;  %v14399_v11 = vcombine.low %v8507_v2, %v8511_v5  ;;  %v8300_v2 = vld [vmem:[%s22583_s3 + $0xc8] sm:$0xff] }
 0x898   : > { %v8304_v5 = vld [vmem:[%s22583_s3 + $0xe8] sm:$0xff] }
 0x89d   : > { %10566 = vmatmul.mubr.bf16.gmra.mrb[28].mxu1 %v14335_v13  ;;  %v8515_v13 = vld [vmem:[%s22583_s3 + $0x780] sm:$0xff] }
 0x89e   : > { %10575 = vmatprep.mubr.bf16.mxu1 %v14344_v6  ;;  %v8519_v6 = vld [vmem:[%s22583_s3 + $0x7a0] sm:$0xff] }
 0x89f   : > { %v14408_v35 = vcombine.high %v8515_v13, %v8519_v6  ;;  %v14407_v57 = vcombine.low %v8515_v13, %v8519_v6  ;;  %v14194_v13 = vcombine.high %v8300_v2, %v8304_v5  ;;  %v23287_v6 = vld [vmem:[#allocation76_spill] sm:$0xff] }
 0x8a5   : > { %10576 = vmatmul.mubr.bf16.gmra.mrb[32].mxu1 %v14343_v7  ;;  %v8523_v7 = vld [vmem:[%s22583_s3 + $0x7c0] sm:$0xff] }
 0x8a6   : > { %10585 = vmatprep.mubr.bf16.mxu1 %v14352_v20  ;;  %v8527_v20 = vld [vmem:[%s22583_s3 + $0x7e0] sm:$0xff] }
 0x8a7   : > { %v14416_v23 = vcombine.high %v8523_v7, %v8527_v20  ;;  %v14415_v56 = vcombine.low %v8523_v7, %v8527_v20  ;;  %v8308_v7 = vld [vmem:[%s22583_s3 + $0x108] sm:$0xff] }
 0x8a8   : > { %v8312_v20 = vld [vmem:[%s22583_s3 + $0x128] sm:$0xff] }
 0x8ad   : > { %10586 = vmatmul.mubr.bf16.gmra.mrb[36].mxu1 %v14351_v38  ;;  %v8276_v38 = vld [vmem:[%s22583_s3 + $0x8] sm:$0xff] }
 0x8ae   : > { %10595 = vmatprep.mubr.bf16.mxu1 %v14360_v3  ;;  %v8280_v3 = vld [vmem:[%s22583_s3 + $0x28] sm:$0xff] }
 0x8af   : > { %v14170_v58 = vcombine.high %v8276_v38, %v8280_v3  ;;  %v14169_v12 = vcombine.low %v8276_v38, %v8280_v3  ;;  %v14202_v38 = vcombine.high %v8308_v7, %v8312_v20  ;;  %v23291_v3 = vld [vmem:[#allocation83_spill] sm:$0xff] }
 0x8b5   : > { %10596 = vmatmul.mubr.bf16.gmra.mrb[40].mxu1 %v14359_v34  ;;  %v8284_v34 = vld [vmem:[%s22583_s3 + $0x48] sm:$0xff] }
 0x8b6   : > { %10605 = vmatprep.mubr.bf16.mxu1 %v14368_v60  ;;  %v8288_v60 = vld [vmem:[%s22583_s3 + $0x68] sm:$0xff] }
 0x8b7   : > { %v14178_v37 = vcombine.high %v8284_v34, %v8288_v60 }
 0x8bd   : > { %10606 = vmatmul.mubr.bf16.gmra.mrb[44].mxu1 %v14367_v22  ;;  %v23280_v22 = vld [vmem:[#allocation50_spill] sm:$0xff] }
 0x8be   : > { %10615 = vmatprep.mubr.bf16.mxu1 %v14376_v61  ;;  %v23281_v61 = vld [vmem:[#allocation188_spill] sm:$0xff] }
 0x8c5   : > { %10616 = vmatmul.mubr.bf16.gmra.mrb[48].mxu1 %v14375_v18  ;;  %v14177_v18 = vcombine.low %v8284_v34, %v8288_v60  ;;  %v8316_v34 = vld [vmem:[%s22583_s3 + $0x148] sm:$0xff] }
 0x8c6   : > { %10625 = vmatprep.mubr.bf16.mxu1 %v14384_v51  ;;  %v23282_v51 = vld [vmem:[#allocation67_spill] sm:$0xff] }
 0x8c7   : > { %v8320_v60 = vld [vmem:[%s22583_s3 + $0x168] sm:$0xff] }
 0x8cd   : > { %10626 = vmatmul.mubr.bf16.gmra.mrb[52].mxu1 %v14383_v41  ;;  %v23284_v41 = vld [vmem:[#allocation69_spill] sm:$0xff] }
 0x8ce   : > { %10635 = vmatprep.mubr.bf16.mxu1 %v14392_v17  ;;  %v23285_v17 = vld [vmem:[#allocation72_spill] sm:$0xff] }
 0x8d5   : > { %10636 = vmatmul.mubr.bf16.gmra.mrb[56].mxu1 %v14391_v19  ;;  %v14185_v19 = vcombine.low %v8292_v39, %v8296_v16  ;;  %v23296_v39 = vld [vmem:[#allocation91_spill] sm:$0xff]  ;;  %v23297_v16 = vld [vmem:[#allocation106_spill] sm:$0xff] }
 0x8d6   : > { %10645 = vmatprep.mubr.bf16.mxu1 %v14400_v30  ;;  %v23286_v30 = vld [vmem:[#allocation56_spill] sm:$0xff] }
 0x8dd   : > { %10646 = vmatmul.mubr.bf16.gmra.mrb[60].mxu1 %v14399_v11  ;;  %v23288_v11 = vld [vmem:[#allocation58_spill] sm:$0xff] }
 0x8de   : > { %10655 = vmatprep.mubr.bf16.mxu1 %v14408_v35  ;;  %v23289_v35 = vld [vmem:[#allocation80_spill] sm:$0xff] }
 0x8e5   : > { %10656 = vmatmul.mubr.bf16.gmra.mrb[64].mxu1 %v14407_v57  ;;  %v14193_v57 = vcombine.low %v8300_v2, %v8304_v5  ;;  %v23300_v2 = vld [vmem:[#allocation98_spill] sm:$0xff]  ;;  %v23301_v5 = vld [vmem:[#allocation119_spill] sm:$0xff] }
 0x8e6   : > { %10665 = vmatprep.mubr.bf16.mxu1 %v14416_v23  ;;  %v23290_v23 = vld [vmem:[#allocation60_spill] sm:$0xff] }
 0x8ed   : > { %10666 = vmatmul.mubr.bf16.gmra.mrb[68].mxu1 %v14415_v56  ;;  %v23292_v56 = vld [vmem:[#allocation62_spill] sm:$0xff] }
 0x8ee   : > { %10708 = vmatprep.mubr.bf16.mxu1 %v14170_v58  ;;  %v23293_v58 = vld [vmem:[#allocation88_spill] sm:$0xff] }
 0x8f5   : > { %10709 = vmatmul.mubr.bf16.vlgmr.msra.gmra.mrb[200].mxu1 %v14169_v12  ;;  %v14201_v12 = vcombine.low %v8308_v7, %v8312_v20  ;;  %v23304_v7 = vld [vmem:[#allocation107_spill] sm:$0xff] }
 0x8f6   : > { %11030 = vmatpush1.bf16.msra.mxu1 %v23280_v22  ;;  %10718 = vmatprep.mubr.bf16.mxu1 %v14178_v37  ;;  %v23294_v37 = vld [vmem:[#allocation64_spill] sm:$0xff]  ;;  %v14210_v22 = vcombine.high %v8316_v34, %v8320_v60  ;;  %v23305_v20 = vld [vmem:[#allocation179_spill] sm:$0xff] }
 0x8f7   : > { %11031 = vmatprep.subr.bf16.mxu1 %v23281_v61  ;;  %v23295_v61 = vld [vmem:[#allocation49_spill] sm:$0xff] }
 0x8fa   : > { %11032 = vmatpush1.bf16.msra.mxu1 %v23282_v51  ;;  %v8328_v51 = vld [vmem:[%s22583_s3 + $0x1a8] sm:$0xff] }
 0x8fb   : > { %11033 = vmatprep.subr.bf16.mxu1 %v23283_v43  ;;  %v23298_v43 = vld [vmem:[#allocation94_spill] sm:$0xff] }
 0x8fd   : > { %10719 = vmatmul.mubr.bf16.gmra.mrb[204].mxu1 %v14177_v18  ;;  %v8324_v18 = vld [vmem:[%s22583_s3 + $0x188] sm:$0xff] }
 0x8fe   : > { %11034 = vmatpush1.bf16.msra.mxu1 %v23284_v41  ;;  %10728 = vmatprep.mubr.bf16.mxu1 %v14186_v55  ;;  %v14209_v55 = vcombine.low %v8316_v34, %v8320_v60  ;;  %v14218_v41 = vcombine.high %v8324_v18, %v8328_v51  ;;  %v23308_v34 = vld [vmem:[#allocation181_spill] sm:$0xff]  ;;  %v8348_v60 = vld [vmem:[%s22583_s3 + $0x248] sm:$0xff] }
 0x8ff   : > { %11035 = vmatprep.subr.bf16.mxu1 %v23285_v17  ;;  %v23299_v17 = vld [vmem:[#allocation113_spill] sm:$0xff] }
 0x902   : > { %11036 = vmatpush1.bf16.msra.mxu1 %v23286_v30  ;;  %v8336_v30 = vld [vmem:[%s22583_s3 + $0x1e8] sm:$0xff] }
 0x903   : > { %11037 = vmatprep.subr.bf16.mxu1 %v23287_v6  ;;  %v23302_v6 = vld [vmem:[#allocation103_spill] sm:$0xff] }
 0x905   : > { %10729 = vmatmul.mubr.bf16.gmra.mrb[208].mxu1 %v14185_v19  ;;  %v8332_v19 = vld [vmem:[%s22583_s3 + $0x1c8] sm:$0xff] }
 0x906   : > { %11038 = vmatpush1.bf16.msra.mxu1 %v23288_v11  ;;  %10738 = vmatprep.mubr.bf16.mxu1 %v14194_v13  ;;  %v14217_v13 = vcombine.low %v8324_v18, %v8328_v51  ;;  %v14226_v11 = vcombine.high %v8332_v19, %v8336_v30 }
 0x907   : > { %11039 = vmatprep.subr.bf16.mxu1 %v23289_v35  ;;  %v23303_v35 = vld [vmem:[#allocation126_spill] sm:$0xff] }
 0x90a   : > { %11040 = vmatpush1.bf16.msra.mxu1 %v23290_v23  ;;  %v8344_v23 = vld [vmem:[%s22583_s3 + $0x228] sm:$0xff] }
 0x90b   : > { %11041 = vmatprep.subr.bf16.mxu1 %v23291_v3  ;;  %v23306_v3 = vld [vmem:[#allocation112_spill] sm:$0xff] }
 0x90d   : > { %10739 = vmatmul.mubr.bf16.gmra.mrb[212].mxu1 %v14193_v57  ;;  %v8340_v57 = vld [vmem:[%s22583_s3 + $0x208] sm:$0xff] }
 0x90e   : > { %11042 = vmatpush1.bf16.msra.mxu1 %v23292_v56  ;;  %10748 = vmatprep.mubr.bf16.mxu1 %v14202_v38  ;;  %v14225_v38 = vcombine.low %v8332_v19, %v8336_v30  ;;  %v14234_v56 = vcombine.high %v8340_v57, %v8344_v23 }
 0x90f   : > { %11043 = vmatprep.subr.bf16.mxu1 %v23293_v58  ;;  %v23307_v58 = vld [vmem:[#allocation135_spill] sm:$0xff] }
 0x912   : > { %11044 = vmatpush1.bf16.msra.mxu1 %v23294_v37  ;;  %v14233_v37 = vcombine.low %v8340_v57, %v8344_v23 }
 0x913   : > { %11045 = vmatprep.subr.bf16.mxu1 %v23295_v61  ;;  %v8360_v61 = vld [vmem:[%s22583_s3 + $0x2a8] sm:$0xff] }
 0x915   : > { %10749 = vmatmul.mubr.bf16.gmra.mrb[216].mxu1 %v14201_v12  ;;  %v8352_v12 = vld [vmem:[%s22583_s3 + $0x268] sm:$0xff] }
 0x916   : > { %11046 = vmatpush1.bf16.msra.mxu1 %v23296_v39  ;;  %10758 = vmatprep.mubr.bf16.mxu1 %v14210_v22  ;;  %v14242_v22 = vcombine.high %v8348_v60, %v8352_v12  ;;  %v14241_v39 = vcombine.low %v8348_v60, %v8352_v12  ;;  %v8416_v60 = vld [vmem:[%s22583_s3 + $0x468] sm:$0xff] }
 0x917   : > { %11047 = vmatprep.subr.bf16.mxu1 %v23297_v16 }
 0x91a   : > { %11048 = vmatpush1.bf16.msra.mxu1 %v23298_v43  ;;  %v8376_v43 = vld [vmem:[%s22583_s3 + $0x328] sm:$0xff] }
 0x91b   : > { %11049 = vmatprep.subr.bf16.mxu1 %v23299_v17 }
 0x91d   : > { %10759 = vmatmul.mubr.bf16.gmra.mrb[220].mxu1 %v14209_v55  ;;  %v8372_v55 = vld [vmem:[%s22583_s3 + $0x308] sm:$0xff] }
 0x91e   : > { %11050 = vmatpush1.bf16.msra.mxu1 %v23300_v2  ;;  %10768 = vmatprep.mubr.bf16.mxu1 %v14218_v41  ;;  %v14266_v17 = vcombine.high %v8372_v55, %v8376_v43  ;;  %v8380_v2 = vld [vmem:[%s22583_s3 + $0x348] sm:$0xff]  ;;  %v14265_v19 = vcombine.low %v8372_v55, %v8376_v43 }
 0x91f   : > { %11051 = vmatprep.subr.bf16.mxu1 %v23301_v5  ;;  %v8384_v5 = vld [vmem:[%s22583_s3 + $0x368] sm:$0xff] }
 0x920   : > { %v14274_v30 = vcombine.high %v8380_v2, %v8384_v5  ;;  %v8440_v55 = vld [vmem:[%s22583_s3 + $0x528] sm:$0xff] }
 0x922   : > { %11052 = vmatpush1.bf16.msra.mxu1 %v23302_v6  ;;  %v8392_v6 = vld [vmem:[%s22583_s3 + $0x3a8] sm:$0xff] }
 0x923   : > { %11053 = vmatprep.subr.bf16.mxu1 %v23303_v35 }
 0x925   : > { %10769 = vmatmul.mubr.bf16.gmra.mrb[224].mxu1 %v14217_v13  ;;  %v8388_v13 = vld [vmem:[%s22583_s3 + $0x388] sm:$0xff] }
 0x926   : > { %11054 = vmatpush1.bf16.msra.mxu1 %v23304_v7  ;;  %10778 = vmatprep.mubr.bf16.mxu1 %v14226_v11  ;;  %v14273_v11 = vcombine.low %v8380_v2, %v8384_v5  ;;  %v14282_v35 = vcombine.high %v8388_v13, %v8392_v6  ;;  %v8396_v7 = vld [vmem:[%s22583_s3 + $0x3c8] sm:$0xff]  ;;  %v14281_v57 = vcombine.low %v8388_v13, %v8392_v6 }
 0x927   : > { %11055 = vmatprep.subr.bf16.mxu1 %v23305_v20  ;;  %v8400_v20 = vld [vmem:[%s22583_s3 + $0x3e8] sm:$0xff] }
 0x928   : > { %v14290_v23 = vcombine.high %v8396_v7, %v8400_v20  ;;  %v8448_v2 = vld [vmem:[%s22583_s3 + $0x568] sm:$0xff] }
 0x929   : > { %v8456_v13 = vld [vmem:[%s22583_s3 + $0x5a8] sm:$0xff] }
 0x92a   : > { %11056 = vmatpush1.bf16.msra.mxu1 %v23306_v3  ;;  %v8408_v3 = vld [vmem:[%s22583_s3 + $0x428] sm:$0xff] }
 0x92b   : > { %11057 = vmatprep.subr.bf16.mxu1 %v23307_v58 }
 0x92d   : > { %10779 = vmatmul.mubr.bf16.gmra.mrb[228].mxu1 %v14225_v38  ;;  %v8404_v38 = vld [vmem:[%s22583_s3 + $0x408] sm:$0xff] }
 0x92e   : > { %11058 = vmatpush1.bf16.msra.mxu1 %v23308_v34  ;;  %10788 = vmatprep.mubr.bf16.mxu1 %v14234_v56  ;;  %v14289_v56 = vcombine.low %v8396_v7, %v8400_v20  ;;  %v14298_v58 = vcombine.high %v8404_v38, %v8408_v3  ;;  %v8412_v34 = vld [vmem:[%s22583_s3 + $0x448] sm:$0xff]  ;;  %v14297_v12 = vcombine.low %v8404_v38, %v8408_v3 }
 0x92f   : > { %11059 = vmatprep.subr.bf16.mxu1 %v21011_v52  ;;  %v8356_v52 = vld [vmem:[%s22583_s3 + $0x288] sm:$0xff] }
 0x930   : > { %v14250_v16 = vcombine.high %v8356_v52, %v8360_v61  ;;  %v14249_v18 = vcombine.low %v8356_v52, %v8360_v61  ;;  %v8424_v52 = vld [vmem:[%s22583_s3 + $0x4a8] sm:$0xff]  ;;  %v14305_v61 = vcombine.low %v8412_v34, %v8416_v60 }
 0x931   : > { %v8464_v7 = vld [vmem:[%s22583_s3 + $0x5e8] sm:$0xff] }
 0x932   : > { %11060 = vmatpush1.bf16.msra.mxu1 %v21014_v62  ;;  %v8364_v62 = vld [vmem:[%s22583_s3 + $0x2c8] sm:$0xff] }
 0x933   : > { %11382 = vmatprep.subr.bf16.mxu1 %v21029_v8  ;;  %v8368_v8 = vld [vmem:[%s22583_s3 + $0x2e8] sm:$0xff] }
 0x934   : > { %v14258_v51 = vcombine.high %v8364_v62, %v8368_v8  ;;  %v14257_v41 = vcombine.low %v8364_v62, %v8368_v8  ;;  %v8432_v62 = vld [vmem:[%s22583_s3 + $0x4e8] sm:$0xff] }
 0x935   : > { %10789 = vmatmul.mubr.bf16.gmra.mrb[232].mxu1 %v14233_v37  ;;  %v14306_v37 = vcombine.high %v8412_v34, %v8416_v60  ;;  %v8472_v38 = vld [vmem:[%s22583_s3 + $0x628] sm:$0xff] }
 0x936   : > { %10798 = vmatprep.mubr.bf16.mxu1 %v14242_v22  ;;  %v8420_v22 = vld [vmem:[%s22583_s3 + $0x488] sm:$0xff] }
 0x937   : > { %v14313_v8 = vcombine.low %v8420_v22, %v8424_v52  ;;  %v8480_v34 = vld [vmem:[%s22583_s3 + $0x668] sm:$0xff] }
 0x93d   : > { %10799 = vmatmul.mubr.bf16.gmra.mrb[236].mxu1 %v14241_v39  ;;  %v14314_v39 = vcombine.high %v8420_v22, %v8424_v52  ;;  %v8488_v22 = vld [vmem:[%s22583_s3 + $0x6a8] sm:$0xff] }
 0x93e   : > { %10808 = vmatprep.mubr.bf16.mxu1 %v14250_v16  ;;  %v8428_v16 = vld [vmem:[%s22583_s3 + $0x4c8] sm:$0xff] }
 0x93f   : > { %v14321_v43 = vcombine.low %v8428_v16, %v8432_v62 }
 0x945   : > { %10809 = vmatmul.mubr.bf16.gmra.mrb[240].mxu1 %v14249_v18  ;;  %v14322_v18 = vcombine.high %v8428_v16, %v8432_v62  ;;  %v8496_v16 = vld [vmem:[%s22583_s3 + $0x6e8] sm:$0xff] }
 0x946   : > { %10818 = vmatprep.mubr.bf16.mxu1 %v14258_v51  ;;  %v8436_v51 = vld [vmem:[%s22583_s3 + $0x508] sm:$0xff] }
 0x947   : > { %v14329_v5 = vcombine.low %v8436_v51, %v8440_v55 }
 0x94d   : > { %10819 = vmatmul.mubr.bf16.gmra.mrb[244].mxu1 %v14257_v41  ;;  %v14330_v41 = vcombine.high %v8436_v51, %v8440_v55  ;;  %v8504_v51 = vld [vmem:[%s22583_s3 + $0x728] sm:$0xff] }
 0x94e   : > { %10828 = vmatprep.mubr.bf16.mxu1 %v14266_v17  ;;  %v8444_v17 = vld [vmem:[%s22583_s3 + $0x548] sm:$0xff] }
 0x94f   : > { %v14337_v6 = vcombine.low %v8444_v17, %v8448_v2 }
 0x955   : > { %10829 = vmatmul.mubr.bf16.gmra.mrb[248].mxu1 %v14265_v19  ;;  %v14338_v19 = vcombine.high %v8444_v17, %v8448_v2  ;;  %v8512_v17 = vld [vmem:[%s22583_s3 + $0x768] sm:$0xff] }
 0x956   : > { %10838 = vmatprep.mubr.bf16.mxu1 %v14274_v30  ;;  %v8452_v30 = vld [vmem:[%s22583_s3 + $0x588] sm:$0xff] }
 0x957   : > { %v14345_v20 = vcombine.low %v8452_v30, %v8456_v13 }
 0x95d   : > { %10839 = vmatmul.mubr.bf16.gmra.mrb[252].mxu1 %v14273_v11  ;;  %v14346_v11 = vcombine.high %v8452_v30, %v8456_v13  ;;  %v8520_v30 = vld [vmem:[%s22583_s3 + $0x7a8] sm:$0xff] }
 0x95e   : > { %10848 = vmatprep.mubr.bf16.mxu1 %v14282_v35  ;;  %v8460_v35 = vld [vmem:[%s22583_s3 + $0x5c8] sm:$0xff] }
 0x95f   : > { %v14353_v3 = vcombine.low %v8460_v35, %v8464_v7 }
 0x965   : > { %10849 = vmatmul.mubr.bf16.gmra.mrb[0].mxu1 %v14281_v57  ;;  %v14354_v57 = vcombine.high %v8460_v35, %v8464_v7  ;;  %v8528_v35 = vld [vmem:[%s22583_s3 + $0x7e8] sm:$0xff] }
 0x966   : > { %10858 = vmatprep.mubr.bf16.mxu1 %v14290_v23  ;;  %v8468_v23 = vld [vmem:[%s22583_s3 + $0x608] sm:$0xff] }
 0x967   : > { %v14361_v60 = vcombine.low %v8468_v23, %v8472_v38 }
 0x96d   : > { %10859 = vmatmul.mubr.bf16.gmra.mrb[4].mxu1 %v14289_v56  ;;  %v14362_v56 = vcombine.high %v8468_v23, %v8472_v38  ;;  %v8281_v23 = vld [vmem:[%s22583_s3 + $0x30] sm:$0xff] }
 0x96e   : > { %10868 = vmatprep.mubr.bf16.mxu1 %v14298_v58  ;;  %v8476_v58 = vld [vmem:[%s22583_s3 + $0x648] sm:$0xff] }
 0x96f   : > { %v14369_v52 = vcombine.low %v8476_v58, %v8480_v34 }
 0x975   : > { %10869 = vmatmul.mubr.bf16.gmra.mrb[8].mxu1 %v14297_v12  ;;  %v14370_v12 = vcombine.high %v8476_v58, %v8480_v34  ;;  %v8289_v58 = vld [vmem:[%s22583_s3 + $0x70] sm:$0xff] }
 0x976   : > { %10878 = vmatprep.mubr.bf16.mxu1 %v14306_v37  ;;  %v8484_v37 = vld [vmem:[%s22583_s3 + $0x688] sm:$0xff] }
 0x977   : > { %v14377_v62 = vcombine.low %v8484_v37, %v8488_v22 }
 0x97d   : > { %10879 = vmatmul.mubr.bf16.gmra.mrb[12].mxu1 %v14305_v61  ;;  %v14378_v61 = vcombine.high %v8484_v37, %v8488_v22  ;;  %v8297_v37 = vld [vmem:[%s22583_s3 + $0xb0] sm:$0xff] }
 0x97e   : > { %10888 = vmatprep.mubr.bf16.mxu1 %v14314_v39  ;;  %v8492_v39 = vld [vmem:[%s22583_s3 + $0x6c8] sm:$0xff] }
 0x97f   : > { %v14385_v55 = vcombine.low %v8492_v39, %v8496_v16 }
 0x985   : > { %10889 = vmatmul.mubr.bf16.gmra.mrb[16].mxu1 %v14313_v8  ;;  %v14386_v8 = vcombine.high %v8492_v39, %v8496_v16  ;;  %v8365_v16 = vld [vmem:[%s22583_s3 + $0x2d0] sm:$0xff] }
 0x986   : > { %10898 = vmatprep.mubr.bf16.mxu1 %v14322_v18  ;;  %v8500_v18 = vld [vmem:[%s22583_s3 + $0x708] sm:$0xff] }
 0x987   : > { %v14393_v2 = vcombine.low %v8500_v18, %v8504_v51 }
 0x98d   : > { %10899 = vmatmul.mubr.bf16.gmra.mrb[20].mxu1 %v14321_v43  ;;  %v14394_v43 = vcombine.high %v8500_v18, %v8504_v51  ;;  %v8373_v18 = vld [vmem:[%s22583_s3 + $0x310] sm:$0xff] }
 0x98e   : > { %10908 = vmatprep.mubr.bf16.mxu1 %v14330_v41  ;;  %v8508_v41 = vld [vmem:[%s22583_s3 + $0x748] sm:$0xff]  ;;  %v8377_v51 = vld [vmem:[%s22583_s3 + $0x330] sm:$0xff] }
 0x98f   : > { %v14401_v13 = vcombine.low %v8508_v41, %v8512_v17 }
 0x995   : > { %10909 = vmatmul.mubr.bf16.gmra.mrb[24].mxu1 %v14329_v5  ;;  %v14402_v5 = vcombine.high %v8508_v41, %v8512_v17  ;;  %v8381_v41 = vld [vmem:[%s22583_s3 + $0x350] sm:$0xff] }
 0x996   : > { %10918 = vmatprep.mubr.bf16.mxu1 %v14338_v19  ;;  %v8516_v19 = vld [vmem:[%s22583_s3 + $0x788] sm:$0xff]  ;;  %v8385_v17 = vld [vmem:[%s22583_s3 + $0x370] sm:$0xff] }
 0x997   : > { %v14409_v7 = vcombine.low %v8516_v19, %v8520_v30 }
 0x99d   : > { %10919 = vmatmul.mubr.bf16.gmra.mrb[28].mxu1 %v14337_v6  ;;  %v14410_v6 = vcombine.high %v8516_v19, %v8520_v30  ;;  %v8389_v19 = vld [vmem:[%s22583_s3 + $0x390] sm:$0xff] }
 0x99e   : > { %10928 = vmatprep.mubr.bf16.mxu1 %v14346_v11  ;;  %v8524_v11 = vld [vmem:[%s22583_s3 + $0x7c8] sm:$0xff]  ;;  %v8393_v30 = vld [vmem:[%s22583_s3 + $0x3b0] sm:$0xff] }
 0x99f   : > { %v14417_v38 = vcombine.low %v8524_v11, %v8528_v35 }
 0x9a5   : > { %10929 = vmatmul.mubr.bf16.gmra.mrb[32].mxu1 %v14345_v20  ;;  %v14418_v20 = vcombine.high %v8524_v11, %v8528_v35  ;;  %v8397_v11 = vld [vmem:[%s22583_s3 + $0x3d0] sm:$0xff] }
 0x9a6   : > { %10938 = vmatprep.mubr.bf16.mxu1 %v14354_v57  ;;  %v8277_v57 = vld [vmem:[%s22583_s3 + $0x10] sm:$0xff] }
 0x9a7   : > { %v14171_v34 = vcombine.low %v8277_v57, %v8281_v23  ;;  %v8401_v35 = vld [vmem:[%s22583_s3 + $0x3f0] sm:$0xff] }
 0x9ad   : > { %10939 = vmatmul.mubr.bf16.gmra.mrb[36].mxu1 %v14353_v3  ;;  %v14172_v3 = vcombine.high %v8277_v57, %v8281_v23  ;;  %v8405_v57 = vld [vmem:[%s22583_s3 + $0x410] sm:$0xff] }
 0x9ae   : > { %10948 = vmatprep.mubr.bf16.mxu1 %v14362_v56  ;;  %v8285_v56 = vld [vmem:[%s22583_s3 + $0x50] sm:$0xff] }
 0x9af   : > { %v14179_v22 = vcombine.low %v8285_v56, %v8289_v58  ;;  %v8409_v23 = vld [vmem:[%s22583_s3 + $0x430] sm:$0xff] }
 0x9b5   : > { %10949 = vmatmul.mubr.bf16.gmra.mrb[40].mxu1 %v14361_v60  ;;  %v14180_v60 = vcombine.high %v8285_v56, %v8289_v58  ;;  %v8413_v56 = vld [vmem:[%s22583_s3 + $0x450] sm:$0xff] }
 0x9b6   : > { %10958 = vmatprep.mubr.bf16.mxu1 %v14370_v12  ;;  %v8293_v12 = vld [vmem:[%s22583_s3 + $0x90] sm:$0xff] }
 0x9b7   : > { %v8417_v58 = vld [vmem:[%s22583_s3 + $0x470] sm:$0xff] }
 0x9bd   : > { %10959 = vmatmul.mubr.bf16.gmra.mrb[44].mxu1 %v14369_v52  ;;  %v14188_v52 = vcombine.high %v8293_v12, %v8297_v37 }
 0x9be   : > { %10968 = vmatprep.mubr.bf16.mxu1 %v14378_v61  ;;  %v14187_v61 = vcombine.low %v8293_v12, %v8297_v37  ;;  %v8421_v12 = vld [vmem:[%s22583_s3 + $0x490] sm:$0xff] }
 0x9bf   : > { %v8425_v37 = vld [vmem:[%s22583_s3 + $0x4b0] sm:$0xff] }
 0x9c5   : > { %10969 = vmatmul.mubr.bf16.gmra.mrb[48].mxu1 %v14377_v62 }
 0x9c6   : > { %10978 = vmatprep.mubr.bf16.mxu1 %v14386_v8 }
 0x9cd   : > { %10979 = vmatmul.mubr.bf16.gmra.mrb[52].mxu1 %v14385_v55 }
 0x9ce   : > { %10988 = vmatprep.mubr.bf16.mxu1 %v14394_v43  ;;  %v14268_v43 = vcombine.high %v8373_v18, %v8377_v51 }
 0x9d5   : > { %10989 = vmatmul.mubr.bf16.gmra.mrb[56].mxu1 %v14393_v2  ;;  %v14267_v2 = vcombine.low %v8373_v18, %v8377_v51  ;;  %v8501_v18 = vld [vmem:[%s22583_s3 + $0x710] sm:$0xff] }
 0x9d6   : > { %10998 = vmatprep.mubr.bf16.mxu1 %v14402_v5  ;;  %v14276_v5 = vcombine.high %v8381_v41, %v8385_v17  ;;  %v8505_v51 = vld [vmem:[%s22583_s3 + $0x730] sm:$0xff] }
 0x9dd   : > { %10999 = vmatmul.mubr.bf16.gmra.mrb[60].mxu1 %v14401_v13  ;;  %v14275_v13 = vcombine.low %v8381_v41, %v8385_v17  ;;  %v8509_v41 = vld [vmem:[%s22583_s3 + $0x750] sm:$0xff] }
 0x9de   : > { %11008 = vmatprep.mubr.bf16.mxu1 %v14410_v6  ;;  %v14284_v6 = vcombine.high %v8389_v19, %v8393_v30  ;;  %v8513_v17 = vld [vmem:[%s22583_s3 + $0x770] sm:$0xff] }
 0x9e5   : > { %11009 = vmatmul.mubr.bf16.gmra.mrb[64].mxu1 %v14409_v7  ;;  %v14283_v7 = vcombine.low %v8389_v19, %v8393_v30  ;;  %v8517_v19 = vld [vmem:[%s22583_s3 + $0x790] sm:$0xff] }
 0x9e6   : > { %11018 = vmatprep.mubr.bf16.mxu1 %v14418_v20  ;;  %v14292_v20 = vcombine.high %v8397_v11, %v8401_v35  ;;  %v8521_v30 = vld [vmem:[%s22583_s3 + $0x7b0] sm:$0xff] }
 0x9ed   : > { %11019 = vmatmul.mubr.bf16.gmra.mrb[68].mxu1 %v14417_v38  ;;  %v14291_v38 = vcombine.low %v8397_v11, %v8401_v35  ;;  %v8525_v11 = vld [vmem:[%s22583_s3 + $0x7d0] sm:$0xff] }
 0x9ee   : > { %11061 = vmatprep.mubr.bf16.mxu1 %v14172_v3  ;;  %v14300_v3 = vcombine.high %v8405_v57, %v8409_v23  ;;  %v8529_v35 = vld [vmem:[%s22583_s3 + $0x7f0] sm:$0xff] }
 0x9f5   : > { %11062 = vmatmul.mubr.bf16.vlgmr.msra.gmra.mrb[200].mxu1 %v14171_v34  ;;  %v14299_v34 = vcombine.low %v8405_v57, %v8409_v23  ;;  %v8278_v57 = vld [vmem:[%s22583_s3 + $0x18] sm:$0xff] }
 0x9f6   : > { %11383 = vmatpush1.bf16.msra.mxu1 %v21023_v15  ;;  %11071 = vmatprep.mubr.bf16.mxu1 %v14180_v60  ;;  %v8301_v15 = vld [vmem:[%s22583_s3 + $0xd0] sm:$0xff]  ;;  %v14308_v60 = vcombine.high %v8413_v56, %v8417_v58  ;;  %v8282_v23 = vld [vmem:[%s22583_s3 + $0x38] sm:$0xff] }
 0x9f7   : > { %11384 = vmatprep.subr.bf16.mxu1 %v21045_v21  ;;  %v8305_v21 = vld [vmem:[%s22583_s3 + $0xf0] sm:$0xff] }
 0x9fa   : > { %11385 = vmatpush1.bf16.msra.mxu1 %v21039_v10  ;;  %v14196_v10 = vcombine.high %v8301_v15, %v8305_v21 }
 0x9fb   : > { %11386 = vmatprep.subr.bf16.mxu1 %v21057_v36  ;;  %v8313_v36 = vld [vmem:[%s22583_s3 + $0x130] sm:$0xff] }
 0x9fd   : > { %11072 = vmatmul.mubr.bf16.gmra.mrb[204].mxu1 %v14179_v22  ;;  %v14307_v22 = vcombine.low %v8413_v56, %v8417_v58  ;;  %v8286_v56 = vld [vmem:[%s22583_s3 + $0x58] sm:$0xff] }
 0x9fe   : > { %11387 = vmatpush1.bf16.msra.mxu1 %v21051_v1  ;;  %11081 = vmatprep.mubr.bf16.mxu1 %v14188_v52  ;;  %v8309_v1 = vld [vmem:[%s22583_s3 + $0x110] sm:$0xff]  ;;  %v14316_v52 = vcombine.high %v8421_v12, %v8425_v37  ;;  %v8290_v58 = vld [vmem:[%s22583_s3 + $0x78] sm:$0xff] }
 0x9ff   : > { %11388 = vmatprep.subr.bf16.mxu1 %v21069_v49  ;;  %v14195_v49 = vcombine.low %v8301_v15, %v8305_v21  ;;  %v8429_v15 = vld [vmem:[%s22583_s3 + $0x4d0] sm:$0xff] }
 0xa00   : > { %v8433_v21 = vld [vmem:[%s22583_s3 + $0x4f0] sm:$0xff] }
 0xa02   : > { %11389 = vmatpush1.bf16.msra.mxu1 %v21063_v48  ;;  %v14204_v48 = vcombine.high %v8309_v1, %v8313_v36 }
 0xa03   : > { %11390 = vmatprep.subr.bf16.mxu1 %v21081_v50  ;;  %v8321_v50 = vld [vmem:[%s22583_s3 + $0x170] sm:$0xff] }
 0xa05   : > { %11082 = vmatmul.mubr.bf16.gmra.mrb[208].mxu1 %v14187_v61  ;;  %v14315_v61 = vcombine.low %v8421_v12, %v8425_v37  ;;  %v8294_v12 = vld [vmem:[%s22583_s3 + $0x98] sm:$0xff] }
 0xa06   : > { %11391 = vmatpush1.bf16.msra.mxu1 %v21075_v32  ;;  %11091 = vmatprep.mubr.bf16.mxu1 %v14196_v10  ;;  %v8317_v32 = vld [vmem:[%s22583_s3 + $0x150] sm:$0xff]  ;;  %v14324_v10 = vcombine.high %v8429_v15, %v8433_v21  ;;  %v8298_v37 = vld [vmem:[%s22583_s3 + $0xb8] sm:$0xff] }
 0xa07   : > { %11392 = vmatprep.subr.bf16.mxu1 %v21093_v9  ;;  %v14203_v9 = vcombine.low %v8309_v1, %v8313_v36  ;;  %v8437_v1 = vld [vmem:[%s22583_s3 + $0x510] sm:$0xff] }
 0xa08   : > { %v8441_v36 = vld [vmem:[%s22583_s3 + $0x530] sm:$0xff] }
 0xa0a   : > { %11393 = vmatpush1.bf16.msra.mxu1 %v21087_v27  ;;  %v14212_v27 = vcombine.high %v8317_v32, %v8321_v50 }
 0xa0b   : > { %11394 = vmatprep.subr.bf16.mxu1 %v21105_v28  ;;  %v8329_v28 = vld [vmem:[%s22583_s3 + $0x1b0] sm:$0xff] }
 0xa0d   : > { %11092 = vmatmul.mubr.bf16.gmra.mrb[212].mxu1 %v14195_v49  ;;  %v14323_v49 = vcombine.low %v8429_v15, %v8433_v21  ;;  %v8302_v15 = vld [vmem:[%s22583_s3 + $0xd8] sm:$0xff] }
 0xa0e   : > { %11395 = vmatpush1.bf16.msra.mxu1 %v21099_v29  ;;  %11101 = vmatprep.mubr.bf16.mxu1 %v14204_v48  ;;  %v8325_v29 = vld [vmem:[%s22583_s3 + $0x190] sm:$0xff]  ;;  %v14332_v48 = vcombine.high %v8437_v1, %v8441_v36  ;;  %v8306_v21 = vld [vmem:[%s22583_s3 + $0xf8] sm:$0xff] }
 0xa0f   : > { %11396 = vmatprep.subr.bf16.mxu1 %v21117_v40  ;;  %v14211_v40 = vcombine.low %v8317_v32, %v8321_v50  ;;  %v8445_v32 = vld [vmem:[%s22583_s3 + $0x550] sm:$0xff] }
 0xa10   : > { %v8449_v50 = vld [vmem:[%s22583_s3 + $0x570] sm:$0xff] }
 0xa12   : > { %11397 = vmatpush1.bf16.msra.mxu1 %v21111_v59  ;;  %v14220_v59 = vcombine.high %v8325_v29, %v8329_v28 }
 0xa13   : > { %11398 = vmatprep.subr.bf16.mxu1 %v21129_v63  ;;  %v8337_v63 = vld [vmem:[%s22583_s3 + $0x1f0] sm:$0xff] }
 0xa15   : > { %11102 = vmatmul.mubr.bf16.gmra.mrb[216].mxu1 %v14203_v9  ;;  %v14331_v9 = vcombine.low %v8437_v1, %v8441_v36  ;;  %v8310_v1 = vld [vmem:[%s22583_s3 + $0x118] sm:$0xff] }
 0xa16   : > { %11399 = vmatpush1.bf16.msra.mxu1 %v21123_v33  ;;  %11111 = vmatprep.mubr.bf16.mxu1 %v14212_v27  ;;  %v8333_v33 = vld [vmem:[%s22583_s3 + $0x1d0] sm:$0xff]  ;;  %v14340_v27 = vcombine.high %v8445_v32, %v8449_v50  ;;  %v8314_v36 = vld [vmem:[%s22583_s3 + $0x138] sm:$0xff] }
 0xa17   : > { %11400 = vmatprep.subr.bf16.mxu1 %v21141_v14  ;;  %v14219_v14 = vcombine.low %v8325_v29, %v8329_v28  ;;  %v8453_v29 = vld [vmem:[%s22583_s3 + $0x590] sm:$0xff] }
 0xa18   : > { %v8457_v28 = vld [vmem:[%s22583_s3 + $0x5b0] sm:$0xff] }
 0xa1a   : > { %11401 = vmatpush1.bf16.msra.mxu1 %v21135_v24  ;;  %v14228_v24 = vcombine.high %v8333_v33, %v8337_v63 }
 0xa1b   : > { %11402 = vmatprep.subr.bf16.mxu1 %v21153_v4  ;;  %v8345_v4 = vld [vmem:[%s22583_s3 + $0x230] sm:$0xff] }
 0xa1d   : > { %11112 = vmatmul.mubr.bf16.gmra.mrb[220].mxu1 %v14211_v40  ;;  %v14339_v40 = vcombine.low %v8445_v32, %v8449_v50  ;;  %v8318_v32 = vld [vmem:[%s22583_s3 + $0x158] sm:$0xff] }
 0xa1e   : > { %11403 = vmatpush1.bf16.msra.mxu1 %v21147_v44  ;;  %11121 = vmatprep.mubr.bf16.mxu1 %v14220_v59  ;;  %v8341_v44 = vld [vmem:[%s22583_s3 + $0x210] sm:$0xff]  ;;  %v14348_v59 = vcombine.high %v8453_v29, %v8457_v28  ;;  %v8322_v50 = vld [vmem:[%s22583_s3 + $0x178] sm:$0xff] }
 0xa1f   : > { %11404 = vmatprep.subr.bf16.mxu1 %v21165_v47  ;;  %v14227_v47 = vcombine.low %v8333_v33, %v8337_v63  ;;  %v8461_v33 = vld [vmem:[%s22583_s3 + $0x5d0] sm:$0xff] }
 0xa20   : > { %v8465_v63 = vld [vmem:[%s22583_s3 + $0x5f0] sm:$0xff] }
 0xa22   : > { %11405 = vmatpush1.bf16.msra.mxu1 %v21159_v26  ;;  %v14236_v26 = vcombine.high %v8341_v44, %v8345_v4 }
 0xa23   : > { %11406 = vmatprep.subr.bf16.mxu1 %v21177_v42  ;;  %v8353_v42 = vld [vmem:[%s22583_s3 + $0x270] sm:$0xff] }
 0xa25   : > { %11122 = vmatmul.mubr.bf16.gmra.mrb[224].mxu1 %v14219_v14  ;;  %v14347_v14 = vcombine.low %v8453_v29, %v8457_v28  ;;  %v8326_v29 = vld [vmem:[%s22583_s3 + $0x198] sm:$0xff] }
 0xa26   : > { %11407 = vmatpush1.bf16.msra.mxu1 %v21171_v45  ;;  %11131 = vmatprep.mubr.bf16.mxu1 %v14228_v24  ;;  %v8349_v45 = vld [vmem:[%s22583_s3 + $0x250] sm:$0xff]  ;;  %v14356_v24 = vcombine.high %v8461_v33, %v8465_v63  ;;  %v8330_v28 = vld [vmem:[%s22583_s3 + $0x1b8] sm:$0xff] }
 0xa27   : > { %11408 = vmatprep.subr.bf16.mxu1 %v21189_v25  ;;  %v14235_v25 = vcombine.low %v8341_v44, %v8345_v4  ;;  %v8469_v44 = vld [vmem:[%s22583_s3 + $0x610] sm:$0xff] }
 0xa28   : > { %v8473_v4 = vld [vmem:[%s22583_s3 + $0x630] sm:$0xff] }
 0xa2a   : > { %11409 = vmatpush1.bf16.msra.mxu1 %v21183_v31  ;;  %v14244_v31 = vcombine.high %v8349_v45, %v8353_v42 }
 0xa2b   : > { %11410 = vmatprep.subr.bf16.mxu1 %v21211_v53  ;;  %v8361_v53 = vld [vmem:[%s22583_s3 + $0x2b0] sm:$0xff] }
 0xa2d   : > { %11132 = vmatmul.mubr.bf16.gmra.mrb[228].mxu1 %v14227_v47  ;;  %v14355_v47 = vcombine.low %v8461_v33, %v8465_v63  ;;  %v8334_v33 = vld [vmem:[%s22583_s3 + $0x1d8] sm:$0xff] }
 0xa2e   : > { %11411 = vmatpush1.bf16.msra.mxu1 %v21195_v0  ;;  %11141 = vmatprep.mubr.bf16.mxu1 %v14236_v26  ;;  %v8357_v0 = vld [vmem:[%s22583_s3 + $0x290] sm:$0xff]  ;;  %v14364_v26 = vcombine.high %v8469_v44, %v8473_v4  ;;  %v8338_v63 = vld [vmem:[%s22583_s3 + $0x1f8] sm:$0xff] }
 0xa2f   : > { %11412 = vmatprep.subr.bf16.mxu1 %v21225_v46  ;;  %v14243_v46 = vcombine.low %v8349_v45, %v8353_v42  ;;  %v14252_v39 = vcombine.high %v8357_v0, %v8361_v53  ;;  %v14251_v62 = vcombine.low %v8357_v0, %v8361_v53  ;;  %v8477_v45 = vld [vmem:[%s22583_s3 + $0x650] sm:$0xff] }
 0xa30   : > { %v8481_v42 = vld [vmem:[%s22583_s3 + $0x670] sm:$0xff] }
 0xa31   : > { %v8485_v0 = vld [vmem:[%s22583_s3 + $0x690] sm:$0xff] }
 0xa32   : > { %11413 = vmatpush1.bf16.msra.mxu1 %v21221_v54  ;;  %v8369_v54 = vld [vmem:[%s22583_s3 + $0x2f0] sm:$0xff] }
 0xa33   : > { %v14260_v8 = vcombine.high %v8365_v16, %v8369_v54  ;;  %v14259_v55 = vcombine.low %v8365_v16, %v8369_v54  ;;  %v8489_v53 = vld [vmem:[%s22583_s3 + $0x6b0] sm:$0xff] }
 0xa34   : > { %v8493_v16 = vld [vmem:[%s22583_s3 + $0x6d0] sm:$0xff] }
 0xa35   : > { %11142 = vmatmul.mubr.bf16.gmra.mrb[232].mxu1 %v14235_v25  ;;  %v14363_v25 = vcombine.low %v8469_v44, %v8473_v4  ;;  %v8497_v54 = vld [vmem:[%s22583_s3 + $0x6f0] sm:$0xff]  ;;  %v8342_v44 = vld [vmem:[%s22583_s3 + $0x218] sm:$0xff] }
 0xa36   : > { %11151 = vmatprep.mubr.bf16.mxu1 %v14244_v31  ;;  %v14372_v31 = vcombine.high %v8477_v45, %v8481_v42  ;;  %v8346_v4 = vld [vmem:[%s22583_s3 + $0x238] sm:$0xff] }
 0xa3d   : > { %11152 = vmatmul.mubr.bf16.gmra.mrb[236].mxu1 %v14243_v46  ;;  %v14371_v46 = vcombine.low %v8477_v45, %v8481_v42  ;;  %v8350_v45 = vld [vmem:[%s22583_s3 + $0x258] sm:$0xff] }
 0xa3e   : > { %11161 = vmatprep.mubr.bf16.mxu1 %v14252_v39  ;;  %v14380_v39 = vcombine.high %v8485_v0, %v8489_v53  ;;  %v8354_v42 = vld [vmem:[%s22583_s3 + $0x278] sm:$0xff] }
 0xa45   : > { %11162 = vmatmul.mubr.bf16.gmra.mrb[240].mxu1 %v14251_v62  ;;  %v14379_v62 = vcombine.low %v8485_v0, %v8489_v53  ;;  %v8358_v0 = vld [vmem:[%s22583_s3 + $0x298] sm:$0xff] }
 0xa46   : > { %11171 = vmatprep.mubr.bf16.mxu1 %v14260_v8  ;;  %v14388_v8 = vcombine.high %v8493_v16, %v8497_v54  ;;  %v8362_v53 = vld [vmem:[%s22583_s3 + $0x2b8] sm:$0xff] }
 0xa4d   : > { %11172 = vmatmul.mubr.bf16.gmra.mrb[244].mxu1 %v14259_v55  ;;  %v14387_v55 = vcombine.low %v8493_v16, %v8497_v54  ;;  %v8366_v16 = vld [vmem:[%s22583_s3 + $0x2d8] sm:$0xff] }
 0xa4e   : > { %11181 = vmatprep.mubr.bf16.mxu1 %v14268_v43  ;;  %v14396_v43 = vcombine.high %v8501_v18, %v8505_v51  ;;  %v8370_v54 = vld [vmem:[%s22583_s3 + $0x2f8] sm:$0xff] }
 0xa55   : > { %11182 = vmatmul.mubr.bf16.gmra.mrb[248].mxu1 %v14267_v2  ;;  %v14395_v2 = vcombine.low %v8501_v18, %v8505_v51  ;;  %v8374_v18 = vld [vmem:[%s22583_s3 + $0x318] sm:$0xff] }
 0xa56   : > { %11191 = vmatprep.mubr.bf16.mxu1 %v14276_v5  ;;  %v14404_v5 = vcombine.high %v8509_v41, %v8513_v17  ;;  %v8378_v51 = vld [vmem:[%s22583_s3 + $0x338] sm:$0xff] }
 0xa5d   : > { %11192 = vmatmul.mubr.bf16.gmra.mrb[252].mxu1 %v14275_v13  ;;  %v14403_v13 = vcombine.low %v8509_v41, %v8513_v17  ;;  %v8382_v41 = vld [vmem:[%s22583_s3 + $0x358] sm:$0xff] }
 0xa5e   : > { %11201 = vmatprep.mubr.bf16.mxu1 %v14284_v6  ;;  %v14412_v6 = vcombine.high %v8517_v19, %v8521_v30  ;;  %v8386_v17 = vld [vmem:[%s22583_s3 + $0x378] sm:$0xff] }
 0xa65   : > { %11202 = vmatmul.mubr.bf16.gmra.mrb[0].mxu1 %v14283_v7  ;;  %v14411_v7 = vcombine.low %v8517_v19, %v8521_v30  ;;  %v8390_v19 = vld [vmem:[%s22583_s3 + $0x398] sm:$0xff] }
 0xa66   : > { %11211 = vmatprep.mubr.bf16.mxu1 %v14292_v20  ;;  %v14420_v20 = vcombine.high %v8525_v11, %v8529_v35  ;;  %v8394_v30 = vld [vmem:[%s22583_s3 + $0x3b8] sm:$0xff] }
 0xa6d   : > { %11212 = vmatmul.mubr.bf16.gmra.mrb[4].mxu1 %v14291_v38  ;;  %v14419_v38 = vcombine.low %v8525_v11, %v8529_v35  ;;  %v8398_v11 = vld [vmem:[%s22583_s3 + $0x3d8] sm:$0xff] }
 0xa6e   : > { %11221 = vmatprep.mubr.bf16.mxu1 %v14300_v3  ;;  %v14174_v3 = vcombine.high %v8278_v57, %v8282_v23  ;;  %v8402_v35 = vld [vmem:[%s22583_s3 + $0x3f8] sm:$0xff] }
 0xa75   : > { %11222 = vmatmul.mubr.bf16.gmra.mrb[8].mxu1 %v14299_v34  ;;  %v14173_v34 = vcombine.low %v8278_v57, %v8282_v23  ;;  %v8406_v57 = vld [vmem:[%s22583_s3 + $0x418] sm:$0xff] }
 0xa76   : > { %11231 = vmatprep.mubr.bf16.mxu1 %v14308_v60  ;;  %v14182_v60 = vcombine.high %v8286_v56, %v8290_v58  ;;  %v8410_v23 = vld [vmem:[%s22583_s3 + $0x438] sm:$0xff] }
 0xa7d   : > { %11232 = vmatmul.mubr.bf16.gmra.mrb[12].mxu1 %v14307_v22  ;;  %v14181_v22 = vcombine.low %v8286_v56, %v8290_v58  ;;  %v8414_v56 = vld [vmem:[%s22583_s3 + $0x458] sm:$0xff] }
 0xa7e   : > { %11241 = vmatprep.mubr.bf16.mxu1 %v14316_v52  ;;  %v14190_v52 = vcombine.high %v8294_v12, %v8298_v37  ;;  %v8418_v58 = vld [vmem:[%s22583_s3 + $0x478] sm:$0xff] }
 0xa85   : > { %11242 = vmatmul.mubr.bf16.gmra.mrb[16].mxu1 %v14315_v61  ;;  %v14189_v61 = vcombine.low %v8294_v12, %v8298_v37  ;;  %v8422_v12 = vld [vmem:[%s22583_s3 + $0x498] sm:$0xff] }
 0xa86   : > { %11251 = vmatprep.mubr.bf16.mxu1 %v14324_v10  ;;  %v14198_v10 = vcombine.high %v8302_v15, %v8306_v21  ;;  %v8426_v37 = vld [vmem:[%s22583_s3 + $0x4b8] sm:$0xff] }
 0xa8d   : > { %11252 = vmatmul.mubr.bf16.gmra.mrb[20].mxu1 %v14323_v49  ;;  %v14197_v49 = vcombine.low %v8302_v15, %v8306_v21  ;;  %v8430_v15 = vld [vmem:[%s22583_s3 + $0x4d8] sm:$0xff] }
 0xa8e   : > { %11261 = vmatprep.mubr.bf16.mxu1 %v14332_v48  ;;  %v14206_v48 = vcombine.high %v8310_v1, %v8314_v36  ;;  %v8434_v21 = vld [vmem:[%s22583_s3 + $0x4f8] sm:$0xff] }
 0xa95   : > { %11262 = vmatmul.mubr.bf16.gmra.mrb[24].mxu1 %v14331_v9  ;;  %v14205_v9 = vcombine.low %v8310_v1, %v8314_v36  ;;  %v8438_v1 = vld [vmem:[%s22583_s3 + $0x518] sm:$0xff] }
 0xa96   : > { %11271 = vmatprep.mubr.bf16.mxu1 %v14340_v27  ;;  %v14214_v27 = vcombine.high %v8318_v32, %v8322_v50  ;;  %v8442_v36 = vld [vmem:[%s22583_s3 + $0x538] sm:$0xff] }
 0xa9d   : > { %11272 = vmatmul.mubr.bf16.gmra.mrb[28].mxu1 %v14339_v40  ;;  %v14213_v40 = vcombine.low %v8318_v32, %v8322_v50  ;;  %v8446_v32 = vld [vmem:[%s22583_s3 + $0x558] sm:$0xff] }
 0xa9e   : > { %11281 = vmatprep.mubr.bf16.mxu1 %v14348_v59  ;;  %v14222_v59 = vcombine.high %v8326_v29, %v8330_v28  ;;  %v8450_v50 = vld [vmem:[%s22583_s3 + $0x578] sm:$0xff] }
 0xaa5   : > { %11282 = vmatmul.mubr.bf16.gmra.mrb[32].mxu1 %v14347_v14  ;;  %v14221_v14 = vcombine.low %v8326_v29, %v8330_v28  ;;  %v8454_v29 = vld [vmem:[%s22583_s3 + $0x598] sm:$0xff] }
 0xaa6   : > { %11291 = vmatprep.mubr.bf16.mxu1 %v14356_v24  ;;  %v14230_v24 = vcombine.high %v8334_v33, %v8338_v63  ;;  %v8458_v28 = vld [vmem:[%s22583_s3 + $0x5b8] sm:$0xff] }
 0xaad   : > { %11292 = vmatmul.mubr.bf16.gmra.mrb[36].mxu1 %v14355_v47  ;;  %v14229_v47 = vcombine.low %v8334_v33, %v8338_v63  ;;  %v8462_v33 = vld [vmem:[%s22583_s3 + $0x5d8] sm:$0xff] }
 0xaae   : > { %11301 = vmatprep.mubr.bf16.mxu1 %v14364_v26  ;;  %v14238_v26 = vcombine.high %v8342_v44, %v8346_v4  ;;  %v8466_v63 = vld [vmem:[%s22583_s3 + $0x5f8] sm:$0xff] }
 0xab5   : > { %11302 = vmatmul.mubr.bf16.gmra.mrb[40].mxu1 %v14363_v25  ;;  %v14237_v25 = vcombine.low %v8342_v44, %v8346_v4  ;;  %v8470_v44 = vld [vmem:[%s22583_s3 + $0x618] sm:$0xff] }
 0xab6   : > { %11311 = vmatprep.mubr.bf16.mxu1 %v14372_v31  ;;  %v14246_v31 = vcombine.high %v8350_v45, %v8354_v42  ;;  %v8474_v4 = vld [vmem:[%s22583_s3 + $0x638] sm:$0xff] }
 0xabd   : > { %11312 = vmatmul.mubr.bf16.gmra.mrb[44].mxu1 %v14371_v46  ;;  %v14245_v46 = vcombine.low %v8350_v45, %v8354_v42  ;;  %v8478_v45 = vld [vmem:[%s22583_s3 + $0x658] sm:$0xff] }
 0xabe   : > { %11321 = vmatprep.mubr.bf16.mxu1 %v14380_v39  ;;  %v14254_v39 = vcombine.high %v8358_v0, %v8362_v53  ;;  %v8482_v42 = vld [vmem:[%s22583_s3 + $0x678] sm:$0xff] }
 0xac5   : > { %11322 = vmatmul.mubr.bf16.gmra.mrb[48].mxu1 %v14379_v62  ;;  %v14253_v62 = vcombine.low %v8358_v0, %v8362_v53  ;;  %v8486_v0 = vld [vmem:[%s22583_s3 + $0x698] sm:$0xff] }
 0xac6   : > { %11331 = vmatprep.mubr.bf16.mxu1 %v14388_v8  ;;  %v14262_v8 = vcombine.high %v8366_v16, %v8370_v54  ;;  %v8490_v53 = vld [vmem:[%s22583_s3 + $0x6b8] sm:$0xff] }
 0xacd   : > { %11332 = vmatmul.mubr.bf16.gmra.mrb[52].mxu1 %v14387_v55  ;;  %v14261_v55 = vcombine.low %v8366_v16, %v8370_v54  ;;  %v8494_v16 = vld [vmem:[%s22583_s3 + $0x6d8] sm:$0xff] }
 0xace   : > { %11341 = vmatprep.mubr.bf16.mxu1 %v14396_v43  ;;  %v14270_v43 = vcombine.high %v8374_v18, %v8378_v51  ;;  %v8498_v54 = vld [vmem:[%s22583_s3 + $0x6f8] sm:$0xff] }
 0xad5   : > { %11342 = vmatmul.mubr.bf16.gmra.mrb[56].mxu1 %v14395_v2  ;;  %v14269_v2 = vcombine.low %v8374_v18, %v8378_v51  ;;  %v8502_v18 = vld [vmem:[%s22583_s3 + $0x718] sm:$0xff] }
 0xad6   : > { %11351 = vmatprep.mubr.bf16.mxu1 %v14404_v5  ;;  %v14278_v5 = vcombine.high %v8382_v41, %v8386_v17  ;;  %v8506_v51 = vld [vmem:[%s22583_s3 + $0x738] sm:$0xff] }
 0xadd   : > { %11352 = vmatmul.mubr.bf16.gmra.mrb[60].mxu1 %v14403_v13  ;;  %v14277_v13 = vcombine.low %v8382_v41, %v8386_v17 }
 0xade   : > { %11361 = vmatprep.mubr.bf16.mxu1 %v14412_v6  ;;  %v14286_v6 = vcombine.high %v8390_v19, %v8394_v30 }
 0xae5   : > { %11362 = vmatmul.mubr.bf16.gmra.mrb[64].mxu1 %v14411_v7  ;;  %v14285_v7 = vcombine.low %v8390_v19, %v8394_v30  ;;  %v14398_v30 = vcombine.high %v8502_v18, %v8506_v51 }
 0xae6   : > { %11371 = vmatprep.mubr.bf16.mxu1 %v14420_v20  ;;  %v14294_v20 = vcombine.high %v8398_v11, %v8402_v35 }
 0xaed   : > { %11372 = vmatmul.mubr.bf16.gmra.mrb[68].mxu1 %v14419_v38  ;;  %v14293_v38 = vcombine.low %v8398_v11, %v8402_v35 }
 0xaee   : > { %11414 = vmatprep.mubr.bf16.mxu1 %v14174_v3  ;;  %v14302_v3 = vcombine.high %v8406_v57, %v8410_v23 }
 0xaf5   : > { %11415 = vmatmul.mubr.bf16.vlgmr.msra.gmra.mrb[200].mxu1 %v14173_v34  ;;  %v14301_v34 = vcombine.low %v8406_v57, %v8410_v23 }
 0xaf6   : > { %11424 = vmatprep.mubr.bf16.mxu1 %v14182_v60  ;;  %v14310_v60 = vcombine.high %v8414_v56, %v8418_v58 }
 0xafd   : > { %11425 = vmatmul.mubr.bf16.gmra.mrb[204].mxu1 %v14181_v22  ;;  %v14309_v22 = vcombine.low %v8414_v56, %v8418_v58  ;;  %v8510_v56 = vld [vmem:[%s22583_s3 + $0x758] sm:$0xff] }
 0xafe   : > { %11434 = vmatprep.mubr.bf16.mxu1 %v14190_v52  ;;  %v14318_v52 = vcombine.high %v8422_v12, %v8426_v37  ;;  %v8514_v58 = vld [vmem:[%s22583_s3 + $0x778] sm:$0xff] }
 0xb05   : > { %11435 = vmatmul.mubr.bf16.gmra.mrb[208].mxu1 %v14189_v61  ;;  %v14317_v61 = vcombine.low %v8422_v12, %v8426_v37 }
 0xb06   : > { %11444 = vmatprep.mubr.bf16.mxu1 %v14198_v10  ;;  %v14326_v10 = vcombine.high %v8430_v15, %v8434_v21 }
 0xb0d   : > { %11445 = vmatmul.mubr.bf16.gmra.mrb[212].mxu1 %v14197_v49  ;;  %v14325_v49 = vcombine.low %v8430_v15, %v8434_v21  ;;  %v14397_v21 = vcombine.low %v8502_v18, %v8506_v51 }
 0xb0e   : > { %11454 = vmatprep.mubr.bf16.mxu1 %v14206_v48  ;;  %v14334_v48 = vcombine.high %v8438_v1, %v8442_v36 }
 0xb15   : > { %11455 = vmatmul.mubr.bf16.gmra.mrb[216].mxu1 %v14205_v9  ;;  %v14333_v9 = vcombine.low %v8438_v1, %v8442_v36  ;;  %v14406_v36 = vcombine.high %v8510_v56, %v8514_v58 }
 0xb16   : > { %11464 = vmatprep.mubr.bf16.mxu1 %v14214_v27  ;;  %v14342_v27 = vcombine.high %v8446_v32, %v8450_v50 }
 0xb1d   : > { %11465 = vmatmul.mubr.bf16.gmra.mrb[220].mxu1 %v14213_v40  ;;  %v14341_v40 = vcombine.low %v8446_v32, %v8450_v50 }
 0xb1e   : > { %11474 = vmatprep.mubr.bf16.mxu1 %v14222_v59  ;;  %v14350_v59 = vcombine.high %v8454_v29, %v8458_v28 }
 0xb25   : > { %11475 = vmatmul.mubr.bf16.gmra.mrb[224].mxu1 %v14221_v14  ;;  %v14349_v14 = vcombine.low %v8454_v29, %v8458_v28 }
 0xb26   : > { %11484 = vmatprep.mubr.bf16.mxu1 %v14230_v24  ;;  %v14358_v24 = vcombine.high %v8462_v33, %v8466_v63 }
 0xb2d   : > { %11485 = vmatmul.mubr.bf16.gmra.mrb[228].mxu1 %v14229_v47  ;;  %v14357_v47 = vcombine.low %v8462_v33, %v8466_v63  ;;  %v8518_v33 = vld [vmem:[%s22583_s3 + $0x798] sm:$0xff] }
 0xb2e   : > { %11494 = vmatprep.mubr.bf16.mxu1 %v14238_v26  ;;  %v14366_v26 = vcombine.high %v8470_v44, %v8474_v4  ;;  %v8522_v63 = vld [vmem:[%s22583_s3 + $0x7b8] sm:$0xff] }
 0xb35   : > { %11495 = vmatmul.mubr.bf16.gmra.mrb[232].mxu1 %v14237_v25  ;;  %v14365_v25 = vcombine.low %v8470_v44, %v8474_v4 }
 0xb36   : > { %11504 = vmatprep.mubr.bf16.mxu1 %v14246_v31  ;;  %v14374_v31 = vcombine.high %v8478_v45, %v8482_v42 }
 0xb3d   : > { %11505 = vmatmul.mubr.bf16.gmra.mrb[236].mxu1 %v14245_v46  ;;  %v14373_v46 = vcombine.low %v8478_v45, %v8482_v42  ;;  %v14405_v42 = vcombine.low %v8510_v56, %v8514_v58 }
 0xb3e   : > { %11514 = vmatprep.mubr.bf16.mxu1 %v14254_v39  ;;  %v14382_v39 = vcombine.high %v8486_v0, %v8490_v53 }
 0xb45   : > { %11515 = vmatmul.mubr.bf16.gmra.mrb[240].mxu1 %v14253_v62  ;;  %v14381_v62 = vcombine.low %v8486_v0, %v8490_v53  ;;  %v14414_v53 = vcombine.high %v8518_v33, %v8522_v63 }
 0xb46   : > { %11524 = vmatprep.mubr.bf16.mxu1 %v14262_v8  ;;  %v14390_v8 = vcombine.high %v8494_v16, %v8498_v54 }
 0xb4d   : > { %11525 = vmatmul.mubr.bf16.gmra.mrb[244].mxu1 %v14261_v55 }
 0xb4e   : > { %11534 = vmatprep.mubr.bf16.mxu1 %v14270_v43  ;;  %v23309_v43 = vld [vmem:[#allocation165_spill] sm:$0xff] }
 0xb55   : > { %11535 = vmatmul.mubr.bf16.gmra.mrb[248].mxu1 %v14269_v2  ;;  %v14389_v2 = vcombine.low %v8494_v16, %v8498_v54 }
 0xb56   : > { %11544 = vmatprep.mubr.bf16.mxu1 %v14278_v5 }
 0xb5d   : > { %11545 = vmatmul.mubr.bf16.gmra.mrb[252].mxu1 %v14277_v13 }
 0xb5e   : > { %11554 = vmatprep.mubr.bf16.mxu1 %v14286_v6  ;;  %v23310_v6 = vld [vmem:[#allocation96_spill] sm:$0xff] }
 0xb65   : > { %11555 = vmatmul.mubr.bf16.gmra.mrb[0].mxu1 %v14285_v7 }
 0xb66   : > { %11564 = vmatprep.mubr.bf16.mxu1 %v14294_v20 }
 0xb6d   : > { %11565 = vmatmul.mubr.bf16.gmra.mrb[4].mxu1 %v14293_v38 }
 0xb6e   : > { %11574 = vmatprep.mubr.bf16.mxu1 %v14302_v3 }
 0xb75   : > { %11575 = vmatmul.mubr.bf16.gmra.mrb[8].mxu1 %v14301_v34 }
 0xb76   : > { %11584 = vmatprep.mubr.bf16.mxu1 %v14310_v60 }
 0xb7d   : > { %11585 = vmatmul.mubr.bf16.gmra.mrb[12].mxu1 %v14309_v22  ;;  %v23311_v22 = vld [vmem:[#allocation73_spill] sm:$0xff] }
 0xb7e   : > { %11594 = vmatprep.mubr.bf16.mxu1 %v14318_v52 }
 0xb85   : > { %11595 = vmatmul.mubr.bf16.gmra.mrb[16].mxu1 %v14317_v61 }
 0xb86   : > { %11604 = vmatprep.mubr.bf16.mxu1 %v14326_v10 }
 0xb8d   : > { %11605 = vmatmul.mubr.bf16.gmra.mrb[20].mxu1 %v14325_v49 }
 0xb8e   : > { %11614 = vmatprep.mubr.bf16.mxu1 %v14334_v48  ;;  %v23312_v48 = vld [vmem:[#allocation104_spill] sm:$0xff] }
 0xb95   : > { %11615 = vmatmul.mubr.bf16.gmra.mrb[24].mxu1 %v14333_v9 }
 0xb96   : > { %11624 = vmatprep.mubr.bf16.mxu1 %v14342_v27 }
 0xb9d   : > { %11625 = vmatmul.mubr.bf16.gmra.mrb[28].mxu1 %v14341_v40 }
 0xb9e   : > { %11634 = vmatprep.mubr.bf16.mxu1 %v14350_v59 }
 0xba5   : > { %11635 = vmatmul.mubr.bf16.gmra.mrb[32].mxu1 %v14349_v14 }
 0xba6   : > { %11644 = vmatprep.mubr.bf16.mxu1 %v14358_v24 }
 0xbad   : > { %11645 = vmatmul.mubr.bf16.gmra.mrb[36].mxu1 %v14357_v47  ;;  %v23313_v47 = vld [vmem:[#allocation77_spill] sm:$0xff] }
 0xbae   : > { %11654 = vmatprep.mubr.bf16.mxu1 %v14366_v26 }
 0xbb5   : > { %11655 = vmatmul.mubr.bf16.gmra.mrb[40].mxu1 %v14365_v25 }
 0xbb6   : > { %11664 = vmatprep.mubr.bf16.mxu1 %v14374_v31 }
 0xbbd   : > { %11665 = vmatmul.mubr.bf16.gmra.mrb[44].mxu1 %v14373_v46 }
 0xbbe   : > { %11674 = vmatprep.mubr.bf16.mxu1 %v14382_v39  ;;  %v23314_v39 = vld [vmem:[#allocation110_spill] sm:$0xff] }
 0xbc5   : > { %11675 = vmatmul.mubr.bf16.gmra.mrb[48].mxu1 %v14381_v62 }
 0xbc6   : > { %11684 = vmatprep.mubr.bf16.mxu1 %v14390_v8 }
 0xbc8   : > { %v11416_v55 = vpop.f32.mrb[200].mxu1 }
 0xbc9   : > { %v14966_v41 = vadd.f32 %v11416_v55, %v23309_v43  ;;  %v11418_v17 = vpop.f32.mrb[201].mxu1 }
 0xbca   : > { %v14967_v5 = vadd.f32 %v11418_v17, %v23309_v43  ;;  %v11420_v19 = vpop.f32.mrb[202].mxu1  ;;  %v8530_v17 = vld [vmem:[%s22583_s3 + $0x7f8] sm:$0xff] }
 0xbcb   : > { %v11735_v13 = vmul.f32 0.01, %v14966_v41  ;;  %v14968_v11 = vadd.f32 %v11420_v19, %v23310_v6  ;;  %v11422_v35 = vpop.f32.mrb[203].mxu1 }
 0xbcc   : > { %v11736_v7 = vmul.f32 0.01, %v14967_v5  ;;  %v14969_v20 = vadd.f32 %v11422_v35, %v23310_v6  ;;  %v14413_v35 = vcombine.low %v8518_v33, %v8522_v63 }
 0xbcd   : > { %v11737_v57 = vmul.f32 0.01, %v14968_v11  ;;  %11685 = vmatmul.mubr.bf16.gmra.mrb[52].mxu1 %v14389_v2  ;;  %v11863_v38 = vmax.f32 %v14966_v41, %v11735_v13  ;;  %v8526_v41 = vld [vmem:[%s22583_s3 + $0x7d8] sm:$0xff] }
 0xbce   : > { %v11738_v23 = vmul.f32 0.01, %v14969_v20  ;;  %11694 = vmatprep.mubr.bf16.mxu1 %v14398_v30  ;;  %v11864_v34 = vmax.f32 %v14967_v5, %v11736_v7  ;;  %v23315_v13 = vld [vmem:[#allocation81_spill] sm:$0xff] }
 0xbcf   : > { %v11865_v3 = vmax.f32 %v14968_v11, %v11737_v57 }
 0xbd0   : > { %v11866_v60 = vmax.f32 %v14969_v20, %v11738_v23  ;;  %v11426_v12 = vpop.f32.mrb[204].mxu1  ;;  %v14422_v23 = vcombine.high %v8526_v41, %v8530_v17 }
 0xbd1   : > { %v12055_v37 = vpack.c.bf16 %v11865_v3, %v11863_v38  ;;  %v14970_v52 = vadd.f32 %v11426_v12, %v23311_v22  ;;  %v11428_v15 = vpop.f32.mrb[205].mxu1  ;;  %v23316_v3 = vld [vmem:[#allocation114_spill] sm:$0xff] }
 0xbd2   : > { %v14971_v61 = vadd.f32 %v11428_v15, %v23311_v22  ;;  %v11430_v10 = vpop.f32.mrb[206].mxu1  ;;  %v12056_v1 = vpack.c.bf16 %v11866_v60, %v11864_v34 }
 0xbd3   : > { %v11739_v49 = vmul.f32 0.01, %v14970_v52  ;;  %v14972_v32 = vadd.f32 %v11430_v10, %v23312_v48  ;;  %v11432_v50 = vpop.f32.mrb[207].mxu1 }
 0xbd4   : > { %v11740_v9 = vmul.f32 0.01, %v14971_v61  ;;  %v14973_v27 = vadd.f32 %v11432_v50, %v23312_v48  ;;  %12631 = vmatprep.subr.bf16.mxu1 %v12056_v1  ;;  %v23317_v1 = vld [vmem:[#allocation85_spill] sm:$0xff]  ;;  %v14421_v48 = vcombine.low %v8526_v41, %v8530_v17 }
 0xbd5   : > { %v11741_v29 = vmul.f32 0.01, %v14972_v32  ;;  %11695 = vmatmul.mubr.bf16.gmra.mrb[56].mxu1 %v14397_v21  ;;  %v11867_v40 = vmax.f32 %v14970_v52, %v11739_v49 }
 0xbd6   : > { %v11742_v28 = vmul.f32 0.01, %v14973_v27  ;;  %12632 = vmatpush1.bf16.msra.mxu1 %v12055_v37  ;;  %11704 = vmatprep.mubr.bf16.mxu1 %v14406_v36  ;;  %v11868_v14 = vmax.f32 %v14971_v61, %v11740_v9 }
 0xbd7   : > { %v11869_v59 = vmax.f32 %v14972_v32, %v11741_v29 }
 0xbd8   : > { %v11870_v24 = vmax.f32 %v14973_v27, %v11742_v28  ;;  %v11436_v44 = vpop.f32.mrb[208].mxu1  ;;  %v17029_v27 = vld [vmem:[%s22585_s5 + $0x4] ss:$16 sps:$4 sm:$0xff]  }
 0xbd9   : > { %v12057_v4 = vpack.c.bf16 %v11869_v59, %v11867_v40  ;;  %v14974_v26 = vadd.f32 %v11436_v44, %v23313_v47  ;;  %v11438_v45 = vpop.f32.mrb[209].mxu1  ;;  %v23318_v28 = vld [vmem:[#allocation55_spill] sm:$0xff] }
 0xbda   : > { %v14975_v25 = vadd.f32 %v11438_v45, %v23313_v47  ;;  %v11440_v31 = vpop.f32.mrb[210].mxu1  ;;  %v12058_v0 = vpack.c.bf16 %v11870_v24, %v11868_v14 }
 0xbdb   : > { %v11743_v46 = vmul.f32 0.01, %v14974_v26  ;;  %v14976_v16 = vadd.f32 %v11440_v31, %v23314_v39  ;;  %v11442_v54 = vpop.f32.mrb[211].mxu1 }
 0xbdc   : > { %v11744_v62 = vmul.f32 0.01, %v14975_v25  ;;  %v14977_v8 = vadd.f32 %v11442_v54, %v23314_v39  ;;  %12633 = vmatprep.subr.bf16.mxu1 %v12058_v0  ;;  %v23320_v54 = vld [vmem:[#allocation124_spill] sm:$0xff] }
 0xbdd   : > { %v11745_v18 = vmul.f32 0.01, %v14976_v16  ;;  %11705 = vmatmul.mubr.bf16.gmra.mrb[60].mxu1 %v14405_v42  ;;  %v11871_v55 = vmax.f32 %v14974_v26, %v11743_v46 }
 0xbde   : > { %v11746_v51 = vmul.f32 0.01, %v14977_v8  ;;  %12634 = vmatpush1.bf16.msra.mxu1 %v12057_v4  ;;  %11714 = vmatprep.mubr.bf16.mxu1 %v14414_v53  ;;  %v11872_v2 = vmax.f32 %v14975_v25, %v11744_v62  ;;  %v23319_v25 = vld [vmem:[#allocation93_spill] sm:$0xff] }
 0xbdf   : > { %v11873_v43 = vmax.f32 %v14976_v16, %v11745_v18 }
 0xbe0   : > { %v11874_v5 = vmax.f32 %v14977_v8, %v11746_v51  ;;  %v11446_v19 = vpop.f32.mrb[212].mxu1 }
 0xbe1   : > { %v12059_v30 = vpack.c.bf16 %v11873_v43, %v11871_v55  ;;  %v14978_v6 = vadd.f32 %v11446_v19, %v23315_v13  ;;  %v11448_v11 = vpop.f32.mrb[213].mxu1 }
 0xbe2   : > { %v14979_v7 = vadd.f32 %v11448_v11, %v23315_v13  ;;  %v11450_v20 = vpop.f32.mrb[214].mxu1  ;;  %v12060_v57 = vpack.c.bf16 %v11874_v5, %v11872_v2  ;;  %v23321_v13 = vld [vmem:[#allocation100_spill] sm:$0xff] }
 0xbe3   : > { %v11747_v38 = vmul.f32 0.01, %v14978_v6  ;;  %v14980_v56 = vadd.f32 %v11450_v20, %v23316_v3  ;;  %v11452_v58 = vpop.f32.mrb[215].mxu1 }
 0xbe4   : > { %v11748_v34 = vmul.f32 0.01, %v14979_v7  ;;  %v14981_v60 = vadd.f32 %v11452_v58, %v23316_v3  ;;  %12635 = vmatprep.subr.bf16.mxu1 %v12060_v57 }
 0xbe5   : > { %v11749_v12 = vmul.f32 0.01, %v14980_v56  ;;  %11715 = vmatmul.mubr.bf16.gmra.mrb[64].mxu1 %v14413_v35  ;;  %v11875_v22 = vmax.f32 %v14978_v6, %v11747_v38 }
 0xbe6   : > { %v11750_v37 = vmul.f32 0.01, %v14981_v60  ;;  %12636 = vmatpush1.bf16.msra.mxu1 %v12059_v30  ;;  %11724 = vmatprep.mubr.bf16.mxu1 %v14422_v23  ;;  %v11876_v15 = vmax.f32 %v14979_v7, %v11748_v34  ;;  %v23322_v23 = vld [vmem:[#allocation130_spill] sm:$0xff] }
 0xbe7   : > { %v11877_v52 = vmax.f32 %v14980_v56, %v11749_v12 }
 0xbe8   : > { %v11878_v21 = vmax.f32 %v14981_v60, %v11750_v37  ;;  %v11456_v61 = vpop.f32.mrb[216].mxu1 }
 0xbe9   : > { %v12061_v10 = vpack.c.bf16 %v11877_v52, %v11875_v22  ;;  %v14982_v36 = vadd.f32 %v11456_v61, %v23317_v1  ;;  %v11458_v49 = vpop.f32.mrb[217].mxu1  ;;  %v23323_v61 = vld [vmem:[#allocation51_spill] sm:$0xff] }
 0xbea   : > { %v14983_v32 = vadd.f32 %v11458_v49, %v23317_v1  ;;  %v11460_v50 = vpop.f32.mrb[218].mxu1  ;;  %v12062_v9 = vpack.c.bf16 %v11878_v21, %v11876_v15 }
 0xbeb   : > { %v11751_v29 = vmul.f32 0.01, %v14982_v36  ;;  %v14984_v40 = vadd.f32 %v11460_v50, %v23318_v28  ;;  %v11462_v59 = vpop.f32.mrb[219].mxu1  ;;  %v23324_v50 = vld [vmem:[#allocation134_spill] sm:$0xff] }
 0xbec   : > { %v11752_v33 = vmul.f32 0.01, %v14983_v32  ;;  %v14985_v63 = vadd.f32 %v11462_v59, %v23318_v28  ;;  %12637 = vmatprep.subr.bf16.mxu1 %v12062_v9 }
 0xbed   : > { %v11753_v14 = vmul.f32 0.01, %v14984_v40  ;;  %11725 = vmatmul.mubr.bf16.gmra.mrb[68].mxu1 %v14421_v48  ;;  %v11879_v44 = vmax.f32 %v14982_v36, %v11751_v29 }
 0xbee   : > { %v11754_v24 = vmul.f32 0.01, %v14985_v63  ;;  %12638 = vmatpush1.bf16.msra.mxu1 %v12061_v10  ;;  %12663 = vmatprep.mubr.bf16.mxu1 %v17029_v27  ;;  %v11880_v47 = vmax.f32 %v14983_v32, %v11752_v33 }
 0xbef   : > { %v11881_v4 = vmax.f32 %v14984_v40, %v11753_v14 }
 0xbf0   : > { %v11882_v26 = vmax.f32 %v14985_v63, %v11754_v24  ;;  %v11466_v45 = vpop.f32.mrb[220].mxu1 }
 0xbf1   : > { %v12063_v42 = vpack.c.bf16 %v11881_v4, %v11879_v44  ;;  %v14986_v31 = vadd.f32 %v11466_v45, %v23319_v25  ;;  %v11468_v0 = vpop.f32.mrb[221].mxu1 }
 0xbf2   : > { %v14987_v53 = vadd.f32 %v11468_v0, %v23319_v25  ;;  %v11470_v46 = vpop.f32.mrb[222].mxu1  ;;  %v12064_v39 = vpack.c.bf16 %v11882_v26, %v11880_v47  ;;  %v23325_v47 = vld [vmem:[#allocation40_spill] sm:$0xff] }
 0xbf3   : > { %v11755_v16 = vmul.f32 0.01, %v14986_v31  ;;  %v14988_v62 = vadd.f32 %v11470_v46, %v23320_v54  ;;  %v11472_v8 = vpop.f32.mrb[223].mxu1 }
 0xbf4   : > { %v11756_v18 = vmul.f32 0.01, %v14987_v53  ;;  %v14989_v51 = vadd.f32 %v11472_v8, %v23320_v54  ;;  %12639 = vmatprep.subr.bf16.mxu1 %v12064_v39 }
 0xbf5   : > { %v11757_v55 = vmul.f32 0.01, %v14988_v62  ;;  %12640 = vmatpush1.bf16.msra.mxu1 %v12063_v42  ;;  %v11883_v41 = vmax.f32 %v14986_v31, %v11755_v16 }
 0xbf6   : > { %v11758_v43 = vmul.f32 0.01, %v14989_v51  ;;  %v11884_v2 = vmax.f32 %v14987_v53, %v11756_v18  ;;  %v23326_v53 = vld [vmem:[#allocation46_spill] sm:$0xff] }
 0xbf7   : > { %v11885_v17 = vmax.f32 %v14988_v62, %v11757_v55 }
 0xbf8   : > { %v11886_v5 = vmax.f32 %v14989_v51, %v11758_v43  ;;  %v11476_v19 = vpop.f32.mrb[224].mxu1 }
 0xbf9   : > { %v12065_v30 = vpack.c.bf16 %v11885_v17, %v11883_v41  ;;  %v14990_v6 = vadd.f32 %v11476_v19, %v23321_v13  ;;  %v11478_v11 = vpop.f32.mrb[225].mxu1 }
 0xbfa   : > { %v14991_v35 = vadd.f32 %v11478_v11, %v23321_v13  ;;  %v11480_v7 = vpop.f32.mrb[226].mxu1  ;;  %v12066_v20 = vpack.c.bf16 %v11886_v5, %v11884_v2  ;;  %v23327_v2 = vld [vmem:[#allocation116_spill] sm:$0xff] }
 0xbfb   : > { %v11759_v57 = vmul.f32 0.01, %v14990_v6  ;;  %v14992_v38 = vadd.f32 %v11480_v7, %v23322_v23  ;;  %v11482_v3 = vpop.f32.mrb[227].mxu1 }
 0xbfc   : > { %v11760_v56 = vmul.f32 0.01, %v14991_v35  ;;  %v14993_v58 = vadd.f32 %v11482_v3, %v23322_v23  ;;  %12641 = vmatprep.subr.bf16.mxu1 %v12066_v20 }
 0xbfd   : > { %v11761_v34 = vmul.f32 0.01, %v14992_v38  ;;  %12642 = vmatpush1.bf16.msra.mxu1 %v12065_v30  ;;  %v11887_v12 = vmax.f32 %v14990_v6, %v11759_v57 }
 0xbfe   : > { %v11762_v60 = vmul.f32 0.01, %v14993_v58  ;;  %v11888_v22 = vmax.f32 %v14991_v35, %v11760_v56  ;;  %v23328_v35 = vld [vmem:[#allocation48_spill] sm:$0xff] }
 0xbff   : > { %v11889_v37 = vmax.f32 %v14992_v38, %v11761_v34 }
 0xc00   : > { %v11890_v52 = vmax.f32 %v14993_v58, %v11762_v60  ;;  %v11486_v15 = vpop.f32.mrb[228].mxu1 }
 0xc01   : > { %v12067_v21 = vpack.c.bf16 %v11889_v37, %v11887_v12  ;;  %v14994_v10 = vadd.f32 %v11486_v15, %v23323_v61  ;;  %v11488_v1 = vpop.f32.mrb[229].mxu1 }
 0xc02   : > { %v14995_v36 = vadd.f32 %v11488_v1, %v23323_v61  ;;  %v11490_v49 = vpop.f32.mrb[230].mxu1  ;;  %v12068_v48 = vpack.c.bf16 %v11890_v52, %v11888_v22  ;;  %v23329_v22 = vld [vmem:[#allocation120_spill] sm:$0xff] }
 0xc03   : > { %v11763_v32 = vmul.f32 0.01, %v14994_v10  ;;  %v14996_v9 = vadd.f32 %v11490_v49, %v23324_v50  ;;  %v11492_v27 = vpop.f32.mrb[231].mxu1 }
 0xc04   : > { %v11764_v29 = vmul.f32 0.01, %v14995_v36  ;;  %v14997_v28 = vadd.f32 %v11492_v27, %v23324_v50  ;;  %12643 = vmatprep.subr.bf16.mxu1 %v12068_v48 }
 0xc05   : > { %v11765_v40 = vmul.f32 0.01, %v14996_v9  ;;  %12644 = vmatpush1.bf16.msra.mxu1 %v12067_v21  ;;  %v11891_v33 = vmax.f32 %v14994_v10, %v11763_v32 }
 0xc06   : > { %v11766_v59 = vmul.f32 0.01, %v14997_v28  ;;  %v11892_v14 = vmax.f32 %v14995_v36, %v11764_v29  ;;  %v23330_v36 = vld [vmem:[#allocation186_spill] sm:$0xff] }
 0xc07   : > { %v11893_v63 = vmax.f32 %v14996_v9, %v11765_v40 }
 0xc08   : > { %v11894_v24 = vmax.f32 %v14997_v28, %v11766_v59  ;;  %v11496_v44 = vpop.f32.mrb[232].mxu1 }
 0xc09   : > { %v12069_v4 = vpack.c.bf16 %v11893_v63, %v11891_v33  ;;  %v14998_v26 = vadd.f32 %v11496_v44, %v23325_v47  ;;  %v11498_v45 = vpop.f32.mrb[233].mxu1 }
 0xc0a   : > { %v14999_v42 = vadd.f32 %v11498_v45, %v23325_v47  ;;  %v11500_v25 = vpop.f32.mrb[234].mxu1  ;;  %v12070_v31 = vpack.c.bf16 %v11894_v24, %v11892_v14  ;;  %v23331_v14 = vld [vmem:[#allocation57_spill] sm:$0xff] }
 0xc0b   : > { %v11767_v0 = vmul.f32 0.01, %v14998_v26  ;;  %v15000_v46 = vadd.f32 %v11500_v25, %v23326_v53  ;;  %v11502_v39 = vpop.f32.mrb[235].mxu1 }
 0xc0c   : > { %v11768_v16 = vmul.f32 0.01, %v14999_v42  ;;  %v15001_v54 = vadd.f32 %v11502_v39, %v23326_v53  ;;  %12645 = vmatprep.subr.bf16.mxu1 %v12070_v31 }
 0xc0d   : > { %v11769_v62 = vmul.f32 0.01, %v15000_v46  ;;  %12646 = vmatpush1.bf16.msra.mxu1 %v12069_v4  ;;  %v11895_v18 = vmax.f32 %v14998_v26, %v11767_v0 }
 0xc0e   : > { %v11770_v8 = vmul.f32 0.01, %v15001_v54  ;;  %v11896_v55 = vmax.f32 %v14999_v42, %v11768_v16  ;;  %v23332_v42 = vld [vmem:[#allocation187_spill] sm:$0xff] }
 0xc0f   : > { %v11897_v51 = vmax.f32 %v15000_v46, %v11769_v62 }
 0xc10   : > { %v11898_v43 = vmax.f32 %v15001_v54, %v11770_v8  ;;  %v11506_v41 = vpop.f32.mrb[236].mxu1 }
 0xc11   : > { %v12071_v17 = vpack.c.bf16 %v11897_v51, %v11895_v18  ;;  %v15002_v5 = vadd.f32 %v11506_v41, %v23327_v2  ;;  %v11508_v19 = vpop.f32.mrb[237].mxu1 }
 0xc12   : > { %v15003_v30 = vadd.f32 %v11508_v19, %v23327_v2  ;;  %v11510_v13 = vpop.f32.mrb[238].mxu1  ;;  %v12072_v6 = vpack.c.bf16 %v11898_v43, %v11896_v55  ;;  %v23333_v55 = vld [vmem:[#allocation44_spill] sm:$0xff] }
 0xc13   : > { %v11771_v11 = vmul.f32 0.01, %v15002_v5  ;;  %v15004_v7 = vadd.f32 %v11510_v13, %v23328_v35  ;;  %v11512_v20 = vpop.f32.mrb[239].mxu1 }
 0xc14   : > { %v11772_v57 = vmul.f32 0.01, %v15003_v30  ;;  %v15005_v23 = vadd.f32 %v11512_v20, %v23328_v35  ;;  %12647 = vmatprep.subr.bf16.mxu1 %v12072_v6 }
 0xc15   : > { %v11773_v38 = vmul.f32 0.01, %v15004_v7  ;;  %12648 = vmatpush1.bf16.msra.mxu1 %v12071_v17  ;;  %v11899_v56 = vmax.f32 %v15002_v5, %v11771_v11 }
 0xc16   : > { %v11774_v3 = vmul.f32 0.01, %v15005_v23  ;;  %v11900_v34 = vmax.f32 %v15003_v30, %v11772_v57  ;;  %v23334_v30 = vld [vmem:[#allocation52_spill] sm:$0xff] }
 0xc17   : > { %v11901_v58 = vmax.f32 %v15004_v7, %v11773_v38 }
 0xc18   : > { %v11902_v60 = vmax.f32 %v15005_v23, %v11774_v3  ;;  %v11516_v12 = vpop.f32.mrb[240].mxu1 }
 0xc19   : > { %v12073_v37 = vpack.c.bf16 %v11901_v58, %v11899_v56  ;;  %v15006_v52 = vadd.f32 %v11516_v12, %v23329_v22  ;;  %v11518_v15 = vpop.f32.mrb[241].mxu1 }
 0xc1a   : > { %v15007_v21 = vadd.f32 %v11518_v15, %v23329_v22  ;;  %v11520_v61 = vpop.f32.mrb[242].mxu1  ;;  %v12074_v10 = vpack.c.bf16 %v11902_v60, %v11900_v34  ;;  %v23335_v34 = vld [vmem:[#allocation136_spill] sm:$0xff] }
 0xc1b   : > { %v11775_v1 = vmul.f32 0.01, %v15006_v52  ;;  %v15008_v49 = vadd.f32 %v11520_v61, %v23330_v36  ;;  %v11522_v48 = vpop.f32.mrb[243].mxu1 }
 0xc1c   : > { %v11776_v32 = vmul.f32 0.01, %v15007_v21  ;;  %v15009_v50 = vadd.f32 %v11522_v48, %v23330_v36  ;;  %12649 = vmatprep.subr.bf16.mxu1 %v12074_v10 }
 0xc1d   : > { %v11777_v9 = vmul.f32 0.01, %v15008_v49  ;;  %12650 = vmatpush1.bf16.msra.mxu1 %v12073_v37  ;;  %v11903_v29 = vmax.f32 %v15006_v52, %v11775_v1 }
 0xc1e   : > { %v11778_v27 = vmul.f32 0.01, %v15009_v50  ;;  %v11904_v40 = vmax.f32 %v15007_v21, %v11776_v32  ;;  %v23336_v21 = vld [vmem:[#allocation54_spill] sm:$0xff] }
 0xc1f   : > { %v11905_v28 = vmax.f32 %v15008_v49, %v11777_v9 }
 0xc20   : > { %v11906_v59 = vmax.f32 %v15009_v50, %v11778_v27  ;;  %v11526_v33 = vpop.f32.mrb[244].mxu1 }
 0xc21   : > { %v12075_v63 = vpack.c.bf16 %v11905_v28, %v11903_v29  ;;  %v15010_v24 = vadd.f32 %v11526_v33, %v23331_v14  ;;  %v11528_v44 = vpop.f32.mrb[245].mxu1 }
 0xc22   : > { %v15011_v4 = vadd.f32 %v11528_v44, %v23331_v14  ;;  %v11530_v47 = vpop.f32.mrb[246].mxu1  ;;  %v12076_v26 = vpack.c.bf16 %v11906_v59, %v11904_v40  ;;  %v23337_v40 = vld [vmem:[#allocation183_spill] sm:$0xff] }
 0xc23   : > { %v11779_v45 = vmul.f32 0.01, %v15010_v24  ;;  %v15012_v25 = vadd.f32 %v11530_v47, %v23332_v42  ;;  %v11532_v31 = vpop.f32.mrb[247].mxu1 }
 0xc24   : > { %v11780_v0 = vmul.f32 0.01, %v15011_v4  ;;  %v15013_v53 = vadd.f32 %v11532_v31, %v23332_v42  ;;  %12651 = vmatprep.subr.bf16.mxu1 %v12076_v26 }
 0xc25   : > { %v11781_v46 = vmul.f32 0.01, %v15012_v25  ;;  %12652 = vmatpush1.bf16.msra.mxu1 %v12075_v63  ;;  %v11907_v16 = vmax.f32 %v15010_v24, %v11779_v45 }
 0xc26   : > { %v11782_v39 = vmul.f32 0.01, %v15013_v53  ;;  %v11908_v62 = vmax.f32 %v15011_v4, %v11780_v0  ;;  %v23338_v4 = vld [vmem:[#allocation190_spill] sm:$0xff] }
 0xc27   : > { %v11909_v54 = vmax.f32 %v15012_v25, %v11781_v46 }
 0xc28   : > { %v11910_v8 = vmax.f32 %v15013_v53, %v11782_v39  ;;  %v11536_v18 = vpop.f32.mrb[248].mxu1 }
 0xc29   : > { %v12077_v51 = vpack.c.bf16 %v11909_v54, %v11907_v16  ;;  %v15014_v43 = vadd.f32 %v11536_v18, %v23333_v55  ;;  %v11538_v41 = vpop.f32.mrb[249].mxu1 }
 0xc2a   : > { %v15015_v17 = vadd.f32 %v11538_v41, %v23333_v55  ;;  %v11540_v2 = vpop.f32.mrb[250].mxu1  ;;  %v12078_v5 = vpack.c.bf16 %v11910_v8, %v11908_v62  ;;  %v23339_v62 = vld [vmem:[#allocation184_spill] sm:$0xff] }
 0xc2b   : > { %v11783_v19 = vmul.f32 0.01, %v15014_v43  ;;  %v15016_v13 = vadd.f32 %v11540_v2, %v23334_v30  ;;  %v11542_v6 = vpop.f32.mrb[251].mxu1 }
 0xc2c   : > { %v11784_v11 = vmul.f32 0.01, %v15015_v17  ;;  %v15017_v35 = vadd.f32 %v11542_v6, %v23334_v30  ;;  %12653 = vmatprep.subr.bf16.mxu1 %v12078_v5 }
 0xc2d   : > { %v11785_v7 = vmul.f32 0.01, %v15016_v13  ;;  %12654 = vmatpush1.bf16.msra.mxu1 %v12077_v51  ;;  %v11911_v57 = vmax.f32 %v15014_v43, %v11783_v19  ;;  %v8881_v51 = vpop.permute.xlu1 %8880 }
 0xc2e   : > { %v11786_v20 = vmul.f32 0.01, %v15017_v35  ;;  %v11912_v38 = vmax.f32 %v15015_v17, %v11784_v11 }
 0xc2f   : > { %v11913_v23 = vmax.f32 %v15016_v13, %v11785_v7  ;;  %v8886_v7 = vpop.permute.xlu0 %8885 }
 0xc30   : > { %v11914_v3 = vmax.f32 %v15017_v35, %v11786_v20  ;;  %v11546_v56 = vpop.f32.mrb[252].mxu1 }
 0xc31   : > { %v12079_v58 = vpack.c.bf16 %v11913_v23, %v11911_v57  ;;  %v15018_v60 = vadd.f32 %v11546_v56, %v23335_v34  ;;  %v11548_v12 = vpop.f32.mrb[253].mxu1 }
 0xc32   : > { %v15019_v37 = vadd.f32 %v11548_v12, %v23335_v34  ;;  %v11550_v22 = vpop.f32.mrb[254].mxu1  ;;  %v12080_v52 = vpack.c.bf16 %v11914_v3, %v11912_v38 }
 0xc33   : > { %v11787_v15 = vmul.f32 0.01, %v15018_v60  ;;  %v15020_v61 = vadd.f32 %v11550_v22, %v23336_v21  ;;  %v11552_v10 = vpop.f32.mrb[255].mxu1 }
 0xc34   : > { %v11788_v1 = vmul.f32 0.01, %v15019_v37  ;;  %v15021_v36 = vadd.f32 %v11552_v10, %v23336_v21  ;;  %12655 = vmatprep.subr.bf16.mxu1 %v12080_v52 }
 0xc35   : > { %v11789_v49 = vmul.f32 0.01, %v15020_v61  ;;  %12656 = vmatpush1.bf16.msra.mxu1 %v12079_v58  ;;  %v11915_v32 = vmax.f32 %v15018_v60, %v11787_v15  ;;  %v8891_v58 = vpop.permute.xlu1 %8890 }
 0xc36   : > { %v11790_v48 = vmul.f32 0.01, %v15021_v36  ;;  %v11916_v9 = vmax.f32 %v15019_v37, %v11788_v1  ;;  %v17032_v1 = vld [vmem:[%s22585_s5 + $0x24] ss:$16 sps:$4 sm:$0xff]  }
 0xc37   : > { %v11917_v50 = vmax.f32 %v15020_v61, %v11789_v49  ;;  %v17027_v61 = vld [vmem:[%s22585_s5] ss:$16 sps:$4 sm:$0xff]  }
 0xc38   : > { %v11918_v27 = vmax.f32 %v15021_v36, %v11790_v48  ;;  %v11556_v29 = vpop.f32.mrb[0].mxu1 }
 0xc39   : > { %v12081_v28 = vpack.c.bf16 %v11917_v50, %v11915_v32  ;;  %v15022_v59 = vadd.f32 %v11556_v29, %v23337_v40  ;;  %v11558_v33 = vpop.f32.mrb[1].mxu1  ;;  %v8896_v32 = vpop.permute.xlu0 %8895 }
 0xc3a   : > { %v15023_v63 = vadd.f32 %v11558_v33, %v23337_v40  ;;  %v11560_v14 = vpop.f32.mrb[2].mxu1  ;;  %v12082_v24 = vpack.c.bf16 %v11918_v27, %v11916_v9 }
 0xc3b   : > { %v11791_v44 = vmul.f32 0.01, %v15022_v59  ;;  %v15024_v47 = vadd.f32 %v11560_v14, %v23338_v4  ;;  %v11562_v26 = vpop.f32.mrb[3].mxu1 }
 0xc3c   : > { %v11792_v45 = vmul.f32 0.01, %v15023_v63  ;;  %v15025_v42 = vadd.f32 %v11562_v26, %v23338_v4  ;;  %12657 = vmatprep.subr.bf16.mxu1 %v12082_v24 }
 0xc3d   : > { %v11793_v25 = vmul.f32 0.01, %v15024_v47  ;;  %12658 = vmatpush1.bf16.msra.mxu1 %v12081_v28  ;;  %v11919_v0 = vmax.f32 %v15022_v59, %v11791_v44  ;;  %v8901_v59 = vpop.permute.xlu1 %8900 }
 0xc3e   : > { %v11794_v31 = vmul.f32 0.01, %v15025_v42  ;;  %v11920_v46 = vmax.f32 %v15023_v63, %v11792_v45  ;;  %v17030_v45 = vld [vmem:[%s22585_s5 + $0x20] ss:$16 sps:$4 sm:$0xff]  }
 0xc3f   : > { %v11921_v53 = vmax.f32 %v15024_v47, %v11793_v25  ;;  %v17035_v25 = vld [vmem:[%s22585_s5 + $0x44] ss:$16 sps:$4 sm:$0xff]  }
 0xc40   : > { %v11922_v39 = vmax.f32 %v15025_v42, %v11794_v31  ;;  %v11566_v16 = vpop.f32.mrb[4].mxu1 }
 0xc41   : > { %v12083_v54 = vpack.c.bf16 %v11921_v53, %v11919_v0  ;;  %v15026_v8 = vadd.f32 %v11566_v16, %v23339_v62  ;;  %v11568_v18 = vpop.f32.mrb[5].mxu1 }
 0xc42   : > { %v15027_v55 = vadd.f32 %v11568_v18, %v23339_v62  ;;  %v11570_v43 = vpop.f32.mrb[6].mxu1  ;;  %v12084_v41 = vpack.c.bf16 %v11922_v39, %v11920_v46  ;;  %v8906_v46 = vpop.permute.xlu0 %8905 }
 0xc43   : > { %v11795_v17 = vmul.f32 0.01, %v15026_v8  ;;  %v15028_v2 = vadd.f32 %v11570_v43, %v8881_v51  ;;  %v11572_v5 = vpop.f32.mrb[7].mxu1 }
 0xc44   : > { %v11796_v19 = vmul.f32 0.01, %v15027_v55  ;;  %v15029_v30 = vadd.f32 %v11572_v5, %v8881_v51  ;;  %12659 = vmatprep.subr.bf16.mxu1 %v12084_v41  ;;  %v8911_v51 = vpop.permute.xlu1 %8910 }
 0xc45   : > { %v11797_v13 = vmul.f32 0.01, %v15028_v2  ;;  %12660 = vmatpush1.bf16.msra.mxu1 %v12083_v54  ;;  %v11923_v11 = vmax.f32 %v15026_v8, %v11795_v17 }
 0xc46   : > { %v11798_v6 = vmul.f32 0.01, %v15029_v30  ;;  %v11924_v20 = vmax.f32 %v15027_v55, %v11796_v19 }
 0xc47   : > { %v11925_v35 = vmax.f32 %v15028_v2, %v11797_v13  ;;  %v17033_v13 = vld [vmem:[%s22585_s5 + $0x40] ss:$16 sps:$4 sm:$0xff]  }
 0xc48   : > { %v11926_v57 = vmax.f32 %v15029_v30, %v11798_v6  ;;  %v11576_v23 = vpop.f32.mrb[8].mxu1 }
 0xc49   : > { %v12085_v38 = vpack.c.bf16 %v11925_v35, %v11923_v11  ;;  %v15030_v3 = vadd.f32 %v11576_v23, %v8886_v7  ;;  %v11578_v56 = vpop.f32.mrb[9].mxu1  ;;  %v17038_v11 = vld [vmem:[%s22585_s5 + $0x64] ss:$16 sps:$4 sm:$0xff]  }
 0xc4a   : > { %v15031_v34 = vadd.f32 %v11578_v56, %v8886_v7  ;;  %v11580_v60 = vpop.f32.mrb[10].mxu1  ;;  %v12086_v12 = vpack.c.bf16 %v11926_v57, %v11924_v20  ;;  %v8916_v57 = vpop.permute.xlu0 %8915 }
 0xc4b   : > { %v11799_v37 = vmul.f32 0.01, %v15030_v3  ;;  %v15032_v22 = vadd.f32 %v11580_v60, %v8891_v58  ;;  %v11582_v52 = vpop.f32.mrb[11].mxu1  ;;  %v8921_v60 = vpop.permute.xlu1 %8920 }
 0xc4c   : > { %v11800_v15 = vmul.f32 0.01, %v15031_v34  ;;  %v15033_v21 = vadd.f32 %v11582_v52, %v8891_v58  ;;  %12661 = vmatprep.subr.bf16.mxu1 %v12086_v12 }
 0xc4d   : > { %v11801_v10 = vmul.f32 0.01, %v15032_v22  ;;  %12662 = vmatpush1.bf16.msra.mxu1 %v12085_v38  ;;  %v11927_v49 = vmax.f32 %v15030_v3, %v11799_v37 }
 0xc4e   : > { %v11802_v36 = vmul.f32 0.01, %v15033_v21  ;;  %v11928_v50 = vmax.f32 %v15031_v34, %v11800_v15 }
 0xc4f   : > { %v11929_v48 = vmax.f32 %v15032_v22, %v11801_v10 }
 0xc50   : > { %v11930_v9 = vmax.f32 %v15033_v21, %v11802_v36  ;;  %v11586_v27 = vpop.f32.mrb[12].mxu1  ;;  %12664 = vmatmul.mubr.bf16.vlgmr.msra.gmra.mrb[72].mxu1 %v17027_v61 }
 0xc51   : > { %v12087_v29 = vpack.c.bf16 %v11929_v48, %v11927_v49  ;;  %v15034_v28 = vadd.f32 %v11586_v27, %v8896_v32  ;;  %v11588_v40 = vpop.f32.mrb[13].mxu1  ;;  %12673 = vmatprep.mubr.bf16.mxu1 %v17032_v1  ;;  %v17036_v1 = vld [vmem:[%s22585_s5 + $0x60] ss:$16 sps:$4 sm:$0xff]   ;;  %v17041_v49 = vld [vmem:[%s22585_s5 + $0x84] ss:$16 sps:$4 sm:$0xff]  }
 0xc52   : > { %v15035_v33 = vadd.f32 %v11588_v40, %v8896_v32  ;;  %v11590_v63 = vpop.f32.mrb[14].mxu1  ;;  %v12088_v14 = vpack.c.bf16 %v11930_v9, %v11928_v50  ;;  %v8926_v9 = vpop.permute.xlu0 %8925 }
 0xc53   : > { %v11803_v24 = vmul.f32 0.01, %v15034_v28  ;;  %v15036_v44 = vadd.f32 %v11590_v63, %v8901_v59  ;;  %v11592_v4 = vpop.f32.mrb[15].mxu1  ;;  %v8931_v63 = vpop.permute.xlu1 %8930 }
 0xc54   : > { %v11804_v47 = vmul.f32 0.01, %v15035_v33  ;;  %v15037_v26 = vadd.f32 %v11592_v4, %v8901_v59  ;;  %12824 = vmatprep.subr.bf16.mxu1 %v12088_v14 }
 0xc55   : > { %v11805_v42 = vmul.f32 0.01, %v15036_v44  ;;  %12825 = vmatpush1.bf16.msra.mxu1 %v12087_v29  ;;  %v11931_v0 = vmax.f32 %v15034_v28, %v11803_v24 }
 0xc56   : > { %v11806_v31 = vmul.f32 0.01, %v15037_v26  ;;  %v11932_v39 = vmax.f32 %v15035_v33, %v11804_v47 }
 0xc57   : > { %v11933_v53 = vmax.f32 %v15036_v44, %v11805_v42 }
 0xc58   : > { %v11934_v16 = vmax.f32 %v15037_v26, %v11806_v31  ;;  %v11596_v54 = vpop.f32.mrb[16].mxu1  ;;  %12674 = vmatmul.mubr.bf16.gmra.mrb[76].mxu1 %v17030_v45 }
 0xc59   : > { %v12089_v62 = vpack.c.bf16 %v11933_v53, %v11931_v0  ;;  %v15038_v8 = vadd.f32 %v11596_v54, %v8906_v46  ;;  %v11598_v18 = vpop.f32.mrb[17].mxu1  ;;  %12683 = vmatprep.mubr.bf16.mxu1 %v17035_v25  ;;  %v17039_v25 = vld [vmem:[%s22585_s5 + $0x80] ss:$16 sps:$4 sm:$0xff]   ;;  %v17044_v0 = vld [vmem:[%s22585_s5 + $0xa4] ss:$16 sps:$4 sm:$0xff]  }
 0xc5a   : > { %v15039_v55 = vadd.f32 %v11598_v18, %v8906_v46  ;;  %v11600_v43 = vpop.f32.mrb[18].mxu1  ;;  %v12090_v41 = vpack.c.bf16 %v11934_v16, %v11932_v39  ;;  %v8936_v16 = vpop.permute.xlu0 %8935 }
 0xc5b   : > { %v11807_v17 = vmul.f32 0.01, %v15038_v8  ;;  %v15040_v2 = vadd.f32 %v11600_v43, %v8911_v51  ;;  %v11602_v5 = vpop.f32.mrb[19].mxu1  ;;  %v8941_v43 = vpop.permute.xlu1 %8940 }
 0xc5c   : > { %v11808_v19 = vmul.f32 0.01, %v15039_v55  ;;  %v15041_v30 = vadd.f32 %v11602_v5, %v8911_v51  ;;  %12826 = vmatprep.subr.bf16.mxu1 %v12090_v41 }
 0xc5d   : > { %v11809_v6 = vmul.f32 0.01, %v15040_v2  ;;  %12827 = vmatpush1.bf16.msra.mxu1 %v12089_v62  ;;  %v11935_v7 = vmax.f32 %v15038_v8, %v11807_v17 }
 0xc5e   : > { %v11810_v35 = vmul.f32 0.01, %v15041_v30  ;;  %v11936_v23 = vmax.f32 %v15039_v55, %v11808_v19 }
 0xc5f   : > { %v11937_v20 = vmax.f32 %v15040_v2, %v11809_v6 }
 0xc60   : > { %v11938_v38 = vmax.f32 %v15041_v30, %v11810_v35  ;;  %v11606_v3 = vpop.f32.mrb[20].mxu1  ;;  %12684 = vmatmul.mubr.bf16.gmra.mrb[80].mxu1 %v17033_v13 }
 0xc61   : > { %v12091_v56 = vpack.c.bf16 %v11937_v20, %v11935_v7  ;;  %v15042_v58 = vadd.f32 %v11606_v3, %v8916_v57  ;;  %v11608_v34 = vpop.f32.mrb[21].mxu1  ;;  %12693 = vmatprep.mubr.bf16.mxu1 %v17038_v11  ;;  %v17042_v11 = vld [vmem:[%s22585_s5 + $0xa0] ss:$16 sps:$4 sm:$0xff]   ;;  %v17047_v7 = vld [vmem:[%s22585_s5 + $0xc4] ss:$16 sps:$4 sm:$0xff]  }
 0xc62   : > { %v15043_v12 = vadd.f32 %v11608_v34, %v8916_v57  ;;  %v11610_v37 = vpop.f32.mrb[22].mxu1  ;;  %v12092_v22 = vpack.c.bf16 %v11938_v38, %v11936_v23  ;;  %v8946_v38 = vpop.permute.xlu0 %8945 }
 0xc63   : > { %v11811_v52 = vmul.f32 0.01, %v15042_v58  ;;  %v15044_v15 = vadd.f32 %v11610_v37, %v8921_v60  ;;  %v11612_v21 = vpop.f32.mrb[23].mxu1  ;;  %v8951_v37 = vpop.permute.xlu1 %8950 }
 0xc64   : > { %v11812_v61 = vmul.f32 0.01, %v15043_v12  ;;  %v15045_v10 = vadd.f32 %v11612_v21, %v8921_v60  ;;  %12828 = vmatprep.subr.bf16.mxu1 %v12092_v22 }
 0xc65   : > { %v11813_v36 = vmul.f32 0.01, %v15044_v15  ;;  %12829 = vmatpush1.bf16.msra.mxu1 %v12091_v56  ;;  %v11939_v32 = vmax.f32 %v15042_v58, %v11811_v52 }
 0xc66   : > { %v11814_v48 = vmul.f32 0.01, %v15045_v10  ;;  %v11940_v27 = vmax.f32 %v15043_v12, %v11812_v61 }
 0xc67   : > { %v11941_v50 = vmax.f32 %v15044_v15, %v11813_v36 }
 0xc68   : > { %v11942_v29 = vmax.f32 %v15045_v10, %v11814_v48  ;;  %v11616_v28 = vpop.f32.mrb[24].mxu1  ;;  %12694 = vmatmul.mubr.bf16.gmra.mrb[84].mxu1 %v17036_v1 }
 0xc69   : > { %v12093_v40 = vpack.c.bf16 %v11941_v50, %v11939_v32  ;;  %v15046_v59 = vadd.f32 %v11616_v28, %v8926_v9  ;;  %v11618_v33 = vpop.f32.mrb[25].mxu1  ;;  %12703 = vmatprep.mubr.bf16.mxu1 %v17041_v49  ;;  %v17045_v49 = vld [vmem:[%s22585_s5 + $0xc0] ss:$16 sps:$4 sm:$0xff]   ;;  %v17050_v32 = vld [vmem:[%s22585_s5 + $0xe4] ss:$16 sps:$4 sm:$0xff]  }
 0xc6a   : > { %v15047_v14 = vadd.f32 %v11618_v33, %v8926_v9  ;;  %v11620_v24 = vpop.f32.mrb[26].mxu1  ;;  %v12094_v44 = vpack.c.bf16 %v11942_v29, %v11940_v27  ;;  %v8956_v29 = vpop.permute.xlu0 %8955 }
 0xc6b   : > { %v11815_v4 = vmul.f32 0.01, %v15046_v59  ;;  %v15048_v47 = vadd.f32 %v11620_v24, %v8931_v63  ;;  %v11622_v26 = vpop.f32.mrb[27].mxu1  ;;  %v8961_v24 = vpop.permute.xlu1 %8960 }
 0xc6c   : > { %v11816_v45 = vmul.f32 0.01, %v15047_v14  ;;  %v15049_v42 = vadd.f32 %v11622_v26, %v8931_v63  ;;  %12830 = vmatprep.subr.bf16.mxu1 %v12094_v44 }
 0xc6d   : > { %v11817_v31 = vmul.f32 0.01, %v15048_v47  ;;  %12831 = vmatpush1.bf16.msra.mxu1 %v12093_v40  ;;  %v11943_v46 = vmax.f32 %v15046_v59, %v11815_v4 }
 0xc6e   : > { %v11818_v53 = vmul.f32 0.01, %v15049_v42  ;;  %v11944_v54 = vmax.f32 %v15047_v14, %v11816_v45 }
 0xc6f   : > { %v11945_v39 = vmax.f32 %v15048_v47, %v11817_v31 }
 0xc70   : > { %v11946_v62 = vmax.f32 %v15049_v42, %v11818_v53  ;;  %v11626_v8 = vpop.f32.mrb[28].mxu1  ;;  %12704 = vmatmul.mubr.bf16.gmra.mrb[88].mxu1 %v17039_v25 }
 0xc71   : > { %v12095_v18 = vpack.c.bf16 %v11945_v39, %v11943_v46  ;;  %v15050_v51 = vadd.f32 %v11626_v8, %v8936_v16  ;;  %v11628_v55 = vpop.f32.mrb[29].mxu1  ;;  %12713 = vmatprep.mubr.bf16.mxu1 %v17044_v0  ;;  %v17048_v0 = vld [vmem:[%s22585_s5 + $0xe0] ss:$16 sps:$4 sm:$0xff]   ;;  %v17053_v46 = vld [vmem:[%s22585_s5 + $0x104] ss:$16 sps:$4 sm:$0xff]  }
 0xc72   : > { %v15051_v41 = vadd.f32 %v11628_v55, %v8936_v16  ;;  %v11630_v17 = vpop.f32.mrb[30].mxu1  ;;  %v12096_v2 = vpack.c.bf16 %v11946_v62, %v11944_v54  ;;  %v8966_v62 = vpop.permute.xlu0 %8965 }
 0xc73   : > { %v11819_v5 = vmul.f32 0.01, %v15050_v51  ;;  %v15052_v19 = vadd.f32 %v11630_v17, %v8941_v43  ;;  %v11632_v30 = vpop.f32.mrb[31].mxu1  ;;  %v8971_v17 = vpop.permute.xlu1 %8970 }
 0xc74   : > { %v11820_v13 = vmul.f32 0.01, %v15051_v41  ;;  %v15053_v6 = vadd.f32 %v11632_v30, %v8941_v43  ;;  %12832 = vmatprep.subr.bf16.mxu1 %v12096_v2 }
 0xc75   : > { %v11821_v35 = vmul.f32 0.01, %v15052_v19  ;;  %12833 = vmatpush1.bf16.msra.mxu1 %v12095_v18  ;;  %v11947_v57 = vmax.f32 %v15050_v51, %v11819_v5 }
 0xc76   : > { %v11822_v20 = vmul.f32 0.01, %v15053_v6  ;;  %v11948_v3 = vmax.f32 %v15051_v41, %v11820_v13 }
 0xc77   : > { %v11949_v23 = vmax.f32 %v15052_v19, %v11821_v35 }
 0xc78   : > { %v11950_v56 = vmax.f32 %v15053_v6, %v11822_v20  ;;  %v11636_v58 = vpop.f32.mrb[32].mxu1  ;;  %12714 = vmatmul.mubr.bf16.gmra.mrb[92].mxu1 %v17042_v11 }
 0xc79   : > { %v12097_v34 = vpack.c.bf16 %v11949_v23, %v11947_v57  ;;  %v15054_v60 = vadd.f32 %v11636_v58, %v8946_v38  ;;  %v11638_v12 = vpop.f32.mrb[33].mxu1  ;;  %12723 = vmatprep.mubr.bf16.mxu1 %v17047_v7  ;;  %v17051_v7 = vld [vmem:[%s22585_s5 + $0x100] ss:$16 sps:$4 sm:$0xff]   ;;  %v17056_v57 = vld [vmem:[%s22585_s5 + $0x124] ss:$16 sps:$4 sm:$0xff]  }
 0xc7a   : > { %v15055_v22 = vadd.f32 %v11638_v12, %v8946_v38  ;;  %v11640_v52 = vpop.f32.mrb[34].mxu1  ;;  %v12098_v15 = vpack.c.bf16 %v11950_v56, %v11948_v3  ;;  %v8976_v56 = vpop.permute.xlu0 %8975 }
 0xc7b   : > { %v11823_v21 = vmul.f32 0.01, %v15054_v60  ;;  %v15056_v61 = vadd.f32 %v11640_v52, %v8951_v37  ;;  %v11642_v10 = vpop.f32.mrb[35].mxu1  ;;  %v8981_v52 = vpop.permute.xlu1 %8980 }
 0xc7c   : > { %v11824_v1 = vmul.f32 0.01, %v15055_v22  ;;  %v15057_v36 = vadd.f32 %v11642_v10, %v8951_v37  ;;  %12834 = vmatprep.subr.bf16.mxu1 %v12098_v15 }
 0xc7d   : > { %v11825_v48 = vmul.f32 0.01, %v15056_v61  ;;  %12835 = vmatpush1.bf16.msra.mxu1 %v12097_v34  ;;  %v11951_v9 = vmax.f32 %v15054_v60, %v11823_v21 }
 0xc7e   : > { %v11826_v50 = vmul.f32 0.01, %v15057_v36  ;;  %v11952_v28 = vmax.f32 %v15055_v22, %v11824_v1 }
 0xc7f   : > { %v11953_v27 = vmax.f32 %v15056_v61, %v11825_v48 }
 0xc80   : > { %v11954_v40 = vmax.f32 %v15057_v36, %v11826_v50  ;;  %v11646_v59 = vpop.f32.mrb[36].mxu1  ;;  %12724 = vmatmul.mubr.bf16.gmra.mrb[96].mxu1 %v17045_v49 }
 0xc81   : > { %v12099_v33 = vpack.c.bf16 %v11953_v27, %v11951_v9  ;;  %v15058_v63 = vadd.f32 %v11646_v59, %v8956_v29  ;;  %v11648_v14 = vpop.f32.mrb[37].mxu1  ;;  %12733 = vmatprep.mubr.bf16.mxu1 %v17050_v32  ;;  %v17054_v32 = vld [vmem:[%s22585_s5 + $0x120] ss:$16 sps:$4 sm:$0xff]   ;;  %v17059_v9 = vld [vmem:[%s22585_s5 + $0x144] ss:$16 sps:$4 sm:$0xff]  }
 0xc82   : > { %v15059_v44 = vadd.f32 %v11648_v14, %v8956_v29  ;;  %v11650_v4 = vpop.f32.mrb[38].mxu1  ;;  %v12100_v47 = vpack.c.bf16 %v11954_v40, %v11952_v28  ;;  %v8986_v40 = vpop.permute.xlu0 %8985 }
 0xc83   : > { %v11827_v26 = vmul.f32 0.01, %v15058_v63  ;;  %v15060_v45 = vadd.f32 %v11650_v4, %v8961_v24  ;;  %v11652_v42 = vpop.f32.mrb[39].mxu1  ;;  %v8991_v4 = vpop.permute.xlu1 %8990 }
 0xc84   : > { %v11828_v25 = vmul.f32 0.01, %v15059_v44  ;;  %v15061_v31 = vadd.f32 %v11652_v42, %v8961_v24  ;;  %12836 = vmatprep.subr.bf16.mxu1 %v12100_v47 }
 0xc85   : > { %v11829_v53 = vmul.f32 0.01, %v15060_v45  ;;  %12837 = vmatpush1.bf16.msra.mxu1 %v12099_v33  ;;  %v11955_v16 = vmax.f32 %v15058_v63, %v11827_v26 }
 0xc86   : > { %v11830_v39 = vmul.f32 0.01, %v15061_v31  ;;  %v11956_v8 = vmax.f32 %v15059_v44, %v11828_v25 }
 0xc87   : > { %v11957_v54 = vmax.f32 %v15060_v45, %v11829_v53 }
 0xc88   : > { %v11958_v18 = vmax.f32 %v15061_v31, %v11830_v39  ;;  %v11656_v51 = vpop.f32.mrb[40].mxu1  ;;  %12734 = vmatmul.mubr.bf16.gmra.mrb[100].mxu1 %v17048_v0 }
 0xc89   : > { %v12101_v55 = vpack.c.bf16 %v11957_v54, %v11955_v16  ;;  %v15062_v43 = vadd.f32 %v11656_v51, %v8966_v62  ;;  %v11658_v41 = vpop.f32.mrb[41].mxu1  ;;  %12743 = vmatprep.mubr.bf16.mxu1 %v17053_v46  ;;  %v17057_v46 = vld [vmem:[%s22585_s5 + $0x140] ss:$16 sps:$4 sm:$0xff]   ;;  %v17062_v16 = vld [vmem:[%s22585_s5 + $0x164] ss:$16 sps:$4 sm:$0xff]  }
 0xc8a   : > { %v15063_v2 = vadd.f32 %v11658_v41, %v8966_v62  ;;  %v11660_v5 = vpop.f32.mrb[42].mxu1  ;;  %v12102_v19 = vpack.c.bf16 %v11958_v18, %v11956_v8  ;;  %v8996_v18 = vpop.permute.xlu0 %8995 }
 0xc8b   : > { %v11831_v30 = vmul.f32 0.01, %v15062_v43  ;;  %v15064_v13 = vadd.f32 %v11660_v5, %v8971_v17  ;;  %v11662_v6 = vpop.f32.mrb[43].mxu1  ;;  %v9001_v5 = vpop.permute.xlu1 %9000 }
 0xc8c   : > { %v11832_v11 = vmul.f32 0.01, %v15063_v2  ;;  %v15065_v35 = vadd.f32 %v11662_v6, %v8971_v17  ;;  %12838 = vmatprep.subr.bf16.mxu1 %v12102_v19 }
 0xc8d   : > { %v11833_v20 = vmul.f32 0.01, %v15064_v13  ;;  %12839 = vmatpush1.bf16.msra.mxu1 %v12101_v55  ;;  %v11959_v38 = vmax.f32 %v15062_v43, %v11831_v30 }
 0xc8e   : > { %v11834_v23 = vmul.f32 0.01, %v15065_v35  ;;  %v11960_v58 = vmax.f32 %v15063_v2, %v11832_v11 }
 0xc8f   : > { %v11961_v3 = vmax.f32 %v15064_v13, %v11833_v20 }
 0xc90   : > { %v11962_v34 = vmax.f32 %v15065_v35, %v11834_v23  ;;  %v11666_v60 = vpop.f32.mrb[44].mxu1  ;;  %12744 = vmatmul.mubr.bf16.gmra.mrb[104].mxu1 %v17051_v7 }
 0xc91   : > { %v12103_v12 = vpack.c.bf16 %v11961_v3, %v11959_v38  ;;  %v15066_v37 = vadd.f32 %v11666_v60, %v8976_v56  ;;  %v11668_v22 = vpop.f32.mrb[45].mxu1  ;;  %12753 = vmatprep.mubr.bf16.mxu1 %v17056_v57  ;;  %v17060_v57 = vld [vmem:[%s22585_s5 + $0x160] ss:$16 sps:$4 sm:$0xff]   ;;  %v17065_v38 = vld [vmem:[%s22585_s5 + $0x184] ss:$16 sps:$4 sm:$0xff]  }
 0xc92   : > { %v15067_v15 = vadd.f32 %v11668_v22, %v8976_v56  ;;  %v11670_v21 = vpop.f32.mrb[46].mxu1  ;;  %v12104_v61 = vpack.c.bf16 %v11962_v34, %v11960_v58  ;;  %v9006_v34 = vpop.permute.xlu0 %9005 }
 0xc93   : > { %v11835_v10 = vmul.f32 0.01, %v15066_v37  ;;  %v15068_v1 = vadd.f32 %v11670_v21, %v8981_v52  ;;  %v11672_v36 = vpop.f32.mrb[47].mxu1  ;;  %v9011_v21 = vpop.permute.xlu1 %9010 }
 0xc94   : > { %v11836_v49 = vmul.f32 0.01, %v15067_v15  ;;  %v15069_v48 = vadd.f32 %v11672_v36, %v8981_v52  ;;  %12840 = vmatprep.subr.bf16.mxu1 %v12104_v61 }
 0xc95   : > { %v11837_v50 = vmul.f32 0.01, %v15068_v1  ;;  %12841 = vmatpush1.bf16.msra.mxu1 %v12103_v12  ;;  %v11963_v29 = vmax.f32 %v15066_v37, %v11835_v10 }
 0xc96   : > { %v11838_v27 = vmul.f32 0.01, %v15069_v48  ;;  %v11964_v59 = vmax.f32 %v15067_v15, %v11836_v49 }
 0xc97   : > { %v11965_v28 = vmax.f32 %v15068_v1, %v11837_v50 }
 0xc98   : > { %v11966_v33 = vmax.f32 %v15069_v48, %v11838_v27  ;;  %v11676_v63 = vpop.f32.mrb[48].mxu1  ;;  %12754 = vmatmul.mubr.bf16.gmra.mrb[108].mxu1 %v17054_v32 }
 0xc99   : > { %v12105_v14 = vpack.c.bf16 %v11965_v28, %v11963_v29  ;;  %v15070_v24 = vadd.f32 %v11676_v63, %v8986_v40  ;;  %v11678_v44 = vpop.f32.mrb[49].mxu1  ;;  %12763 = vmatprep.mubr.bf16.mxu1 %v17059_v9  ;;  %v17063_v9 = vld [vmem:[%s22585_s5 + $0x180] ss:$16 sps:$4 sm:$0xff]   ;;  %v17068_v29 = vld [vmem:[%s22585_s5 + $0x1a4] ss:$16 sps:$4 sm:$0xff]  }
 0xc9a   : > { %v15071_v47 = vadd.f32 %v11678_v44, %v8986_v40  ;;  %v11680_v26 = vpop.f32.mrb[50].mxu1  ;;  %v12106_v45 = vpack.c.bf16 %v11966_v33, %v11964_v59  ;;  %v9016_v33 = vpop.permute.xlu0 %9015 }
 0xc9b   : > { %v11839_v42 = vmul.f32 0.01, %v15070_v24  ;;  %v15072_v25 = vadd.f32 %v11680_v26, %v8991_v4  ;;  %v11682_v31 = vpop.f32.mrb[51].mxu1  ;;  %v9021_v26 = vpop.permute.xlu1 %9020 }
 0xc9c   : > { %v11840_v0 = vmul.f32 0.01, %v15071_v47  ;;  %v15073_v53 = vadd.f32 %v11682_v31, %v8991_v4  ;;  %12842 = vmatprep.subr.bf16.mxu1 %v12106_v45 }
 0xc9d   : > { %v11841_v39 = vmul.f32 0.01, %v15072_v25  ;;  %12843 = vmatpush1.bf16.msra.mxu1 %v12105_v14  ;;  %v11967_v62 = vmax.f32 %v15070_v24, %v11839_v42 }
 0xc9e   : > { %v11842_v54 = vmul.f32 0.01, %v15073_v53  ;;  %v11968_v51 = vmax.f32 %v15071_v47, %v11840_v0 }
 0xc9f   : > { %v11969_v8 = vmax.f32 %v15072_v25, %v11841_v39 }
 0xca0   : > { %v11970_v55 = vmax.f32 %v15073_v53, %v11842_v54  ;;  %v11686_v43 = vpop.f32.mrb[52].mxu1  ;;  %12764 = vmatmul.mubr.bf16.gmra.mrb[112].mxu1 %v17057_v46 }
 0xca1   : > { %v12107_v41 = vpack.c.bf16 %v11969_v8, %v11967_v62  ;;  %v15074_v17 = vadd.f32 %v11686_v43, %v8996_v18  ;;  %v11688_v2 = vpop.f32.mrb[53].mxu1  ;;  %12773 = vmatprep.mubr.bf16.mxu1 %v17062_v16  ;;  %v17066_v16 = vld [vmem:[%s22585_s5 + $0x1a0] ss:$16 sps:$4 sm:$0xff]   ;;  %v17071_v62 = vld [vmem:[%s22585_s5 + $0x1c4] ss:$16 sps:$4 sm:$0xff]  }
 0xca2   : > { %v15075_v19 = vadd.f32 %v11688_v2, %v8996_v18  ;;  %v11690_v30 = vpop.f32.mrb[54].mxu1  ;;  %v12108_v13 = vpack.c.bf16 %v11970_v55, %v11968_v51  ;;  %v9026_v55 = vpop.permute.xlu0 %9025 }
 0xca3   : > { %v11843_v6 = vmul.f32 0.01, %v15074_v17  ;;  %v15076_v11 = vadd.f32 %v11690_v30, %v9001_v5  ;;  %v11692_v35 = vpop.f32.mrb[55].mxu1  ;;  %v9031_v30 = vpop.permute.xlu1 %9030 }
 0xca4   : > { %v11844_v7 = vmul.f32 0.01, %v15075_v19  ;;  %v15077_v20 = vadd.f32 %v11692_v35, %v9001_v5  ;;  %12844 = vmatprep.subr.bf16.mxu1 %v12108_v13 }
 0xca5   : > { %v11845_v23 = vmul.f32 0.01, %v15076_v11  ;;  %12845 = vmatpush1.bf16.msra.mxu1 %v12107_v41  ;;  %v11971_v56 = vmax.f32 %v15074_v17, %v11843_v6 }
 0xca6   : > { %v11846_v3 = vmul.f32 0.01, %v15077_v20  ;;  %v11972_v60 = vmax.f32 %v15075_v19, %v11844_v7 }
 0xca7   : > { %v11973_v58 = vmax.f32 %v15076_v11, %v11845_v23 }
 0xca8   : > { %v11974_v12 = vmax.f32 %v15077_v20, %v11846_v3  ;;  %v11696_v37 = vpop.f32.mrb[56].mxu1  ;;  %12774 = vmatmul.mubr.bf16.gmra.mrb[116].mxu1 %v17060_v57 }
 0xca9   : > { %v12109_v22 = vpack.c.bf16 %v11973_v58, %v11971_v56  ;;  %v15078_v52 = vadd.f32 %v11696_v37, %v9006_v34  ;;  %v11698_v15 = vpop.f32.mrb[57].mxu1  ;;  %12783 = vmatprep.mubr.bf16.mxu1 %v17065_v38  ;;  %v17069_v38 = vld [vmem:[%s22585_s5 + $0x1c0] ss:$16 sps:$4 sm:$0xff]   ;;  %v17074_v56 = vld [vmem:[%s22585_s5 + $0x1e4] ss:$16 sps:$4 sm:$0xff]  }
 0xcaa   : > { %v15079_v61 = vadd.f32 %v11698_v15, %v9006_v34  ;;  %v11700_v10 = vpop.f32.mrb[58].mxu1  ;;  %v12110_v1 = vpack.c.bf16 %v11974_v12, %v11972_v60  ;;  %v9036_v12 = vpop.permute.xlu0 %9035 }
 0xcab   : > { %v11847_v36 = vmul.f32 0.01, %v15078_v52  ;;  %v15080_v49 = vadd.f32 %v11700_v10, %v9011_v21  ;;  %v11702_v48 = vpop.f32.mrb[59].mxu1  ;;  %v9041_v10 = vpop.permute.xlu1 %9040 }
 0xcac   : > { %v11848_v32 = vmul.f32 0.01, %v15079_v61  ;;  %v15081_v50 = vadd.f32 %v11702_v48, %v9011_v21  ;;  %12846 = vmatprep.subr.bf16.mxu1 %v12110_v1 }
 0xcad   : > { %v11849_v27 = vmul.f32 0.01, %v15080_v49  ;;  %12847 = vmatpush1.bf16.msra.mxu1 %v12109_v22  ;;  %v11975_v40 = vmax.f32 %v15078_v52, %v11847_v36 }
 0xcae   : > { %v11850_v28 = vmul.f32 0.01, %v15081_v50  ;;  %v11976_v63 = vmax.f32 %v15079_v61, %v11848_v32 }
 0xcaf   : > { %v11977_v59 = vmax.f32 %v15080_v49, %v11849_v27 }
 0xcb0   : > { %v11978_v14 = vmax.f32 %v15081_v50, %v11850_v28  ;;  %v11706_v24 = vpop.f32.mrb[60].mxu1  ;;  %12784 = vmatmul.mubr.bf16.gmra.mrb[120].mxu1 %v17063_v9 }
 0xcb1   : > { %v12111_v44 = vpack.c.bf16 %v11977_v59, %v11975_v40  ;;  %v15082_v4 = vadd.f32 %v11706_v24, %v9016_v33  ;;  %v11708_v47 = vpop.f32.mrb[61].mxu1  ;;  %12793 = vmatprep.mubr.bf16.mxu1 %v17068_v29  ;;  %v17072_v29 = vld [vmem:[%s22585_s5 + $0x1e0] ss:$16 sps:$4 sm:$0xff]   ;;  %v17077_v40 = vld [vmem:[%s22585_s5 + $0xc] ss:$16 sps:$4 sm:$0xff]  }
 0xcb2   : > { %v15083_v45 = vadd.f32 %v11708_v47, %v9016_v33  ;;  %v11710_v42 = vpop.f32.mrb[62].mxu1  ;;  %v12112_v25 = vpack.c.bf16 %v11978_v14, %v11976_v63  ;;  %v17075_v47 = vld [vmem:[%s22585_s5 + $0x8] ss:$16 sps:$4 sm:$0xff]  }
 0xcb3   : > { %v11851_v31 = vmul.f32 0.01, %v15082_v4  ;;  %v15084_v0 = vadd.f32 %v11710_v42, %v9021_v26  ;;  %v11712_v53 = vpop.f32.mrb[63].mxu1  ;;  %v17083_v42 = vld [vmem:[%s22585_s5 + $0x4c] ss:$16 sps:$4 sm:$0xff]  }
 0xcb4   : > { %v11852_v46 = vmul.f32 0.01, %v15083_v45  ;;  %v15085_v39 = vadd.f32 %v11712_v53, %v9021_v26  ;;  %12848 = vmatprep.subr.bf16.mxu1 %v12112_v25  ;;  %v17080_v26 = vld [vmem:[%s22585_s5 + $0x2c] ss:$16 sps:$4 sm:$0xff]   ;;  %v17081_v25 = vld [vmem:[%s22585_s5 + $0x48] ss:$16 sps:$4 sm:$0xff]  }
 0xcb5   : > { %v11853_v54 = vmul.f32 0.01, %v15084_v0  ;;  %12849 = vmatpush1.bf16.msra.mxu1 %v12111_v44  ;;  %v11979_v18 = vmax.f32 %v15082_v4, %v11851_v31  ;;  %v17086_v31 = vld [vmem:[%s22585_s5 + $0x6c] ss:$16 sps:$4 sm:$0xff]  }
 0xcb6   : > { %v11854_v8 = vmul.f32 0.01, %v15085_v39  ;;  %v11980_v43 = vmax.f32 %v15083_v45, %v11852_v46  ;;  %v17078_v45 = vld [vmem:[%s22585_s5 + $0x28] ss:$16 sps:$4 sm:$0xff]   ;;  %v17089_v53 = vld [vmem:[%s22585_s5 + $0x8c] ss:$16 sps:$4 sm:$0xff]  }
 0xcb7   : > { %v11981_v51 = vmax.f32 %v15084_v0, %v11853_v54  ;;  %v17084_v0 = vld [vmem:[%s22585_s5 + $0x68] ss:$16 sps:$4 sm:$0xff]   ;;  %v17095_v54 = vld [vmem:[%s22585_s5 + $0xcc] ss:$16 sps:$4 sm:$0xff]  }
 0xcb8   : > { %v11982_v41 = vmax.f32 %v15085_v39, %v11854_v8  ;;  %v11716_v17 = vpop.f32.mrb[64].mxu1  ;;  %12794 = vmatmul.mubr.bf16.gmra.mrb[124].mxu1 %v17066_v16  ;;  %v17087_v46 = vld [vmem:[%s22585_s5 + $0x88] ss:$16 sps:$4 sm:$0xff]   ;;  %v17092_v39 = vld [vmem:[%s22585_s5 + $0xac] ss:$16 sps:$4 sm:$0xff]  }
 0xcb9   : > { %v12113_v2 = vpack.c.bf16 %v11981_v51, %v11979_v18  ;;  %v15086_v5 = vadd.f32 %v11716_v17, %v9026_v55  ;;  %v11718_v19 = vpop.f32.mrb[65].mxu1  ;;  %12803 = vmatprep.mubr.bf16.mxu1 %v17071_v62  ;;  %v17090_v16 = vld [vmem:[%s22585_s5 + $0xa8] ss:$16 sps:$4 sm:$0xff]   ;;  %v17098_v8 = vld [vmem:[%s22585_s5 + $0xec] ss:$16 sps:$4 sm:$0xff]  }
 0xcba   : > { %v15087_v13 = vadd.f32 %v11718_v19, %v9026_v55  ;;  %v11720_v6 = vpop.f32.mrb[66].mxu1  ;;  %v12114_v11 = vpack.c.bf16 %v11982_v41, %v11980_v43  ;;  %v17093_v62 = vld [vmem:[%s22585_s5 + $0xc8] ss:$16 sps:$4 sm:$0xff]   ;;  %v17101_v51 = vld [vmem:[%s22585_s5 + $0x10c] ss:$16 sps:$4 sm:$0xff]  }
 0xcbb   : > { %v11855_v35 = vmul.f32 0.01, %v15086_v5  ;;  %v15088_v7 = vadd.f32 %v11720_v6, %v9031_v30  ;;  %v11722_v20 = vpop.f32.mrb[67].mxu1  ;;  %v17096_v18 = vld [vmem:[%s22585_s5 + $0xe8] ss:$16 sps:$4 sm:$0xff]  }
 0xcbc   : > { %v11856_v57 = vmul.f32 0.01, %v15087_v13  ;;  %v15089_v23 = vadd.f32 %v11722_v20, %v9031_v30  ;;  %12850 = vmatprep.subr.bf16.mxu1 %v12114_v11  ;;  %v17099_v55 = vld [vmem:[%s22585_s5 + $0x108] ss:$16 sps:$4 sm:$0xff]   ;;  %v17104_v43 = vld [vmem:[%s22585_s5 + $0x12c] ss:$16 sps:$4 sm:$0xff]  }
 0xcbd   : > { %v11857_v3 = vmul.f32 0.01, %v15088_v7  ;;  %12851 = vmatpush1.bf16.msra.mxu1 %v12113_v2  ;;  %v11983_v34 = vmax.f32 %v15086_v5, %v11855_v35  ;;  %v17102_v41 = vld [vmem:[%s22585_s5 + $0x128] ss:$16 sps:$4 sm:$0xff]   ;;  %v17107_v17 = vld [vmem:[%s22585_s5 + $0x14c] ss:$16 sps:$4 sm:$0xff]  }
 0xcbe   : > { %v11858_v58 = vmul.f32 0.01, %v15089_v23  ;;  %v11984_v37 = vmax.f32 %v15087_v13, %v11856_v57  ;;  %v17105_v2 = vld [vmem:[%s22585_s5 + $0x148] ss:$16 sps:$4 sm:$0xff]   ;;  %v17110_v5 = vld [vmem:[%s22585_s5 + $0x16c] ss:$16 sps:$4 sm:$0xff]  }
 0xcbf   : > { %v11985_v60 = vmax.f32 %v15088_v7, %v11857_v3  ;;  %v17108_v19 = vld [vmem:[%s22585_s5 + $0x168] ss:$16 sps:$4 sm:$0xff]   ;;  %v17113_v30 = vld [vmem:[%s22585_s5 + $0x18c] ss:$16 sps:$4 sm:$0xff]  }
 0xcc0   : > { %v11986_v22 = vmax.f32 %v15089_v23, %v11858_v58  ;;  %v11726_v52 = vpop.f32.mrb[68].mxu1  ;;  %12804 = vmatmul.mubr.bf16.gmra.mrb[128].mxu1 %v17069_v38  ;;  %v17111_v13 = vld [vmem:[%s22585_s5 + $0x188] ss:$16 sps:$4 sm:$0xff]   ;;  %v17116_v6 = vld [vmem:[%s22585_s5 + $0x1ac] ss:$16 sps:$4 sm:$0xff]   ;;  %v12154_v23 = vpop.permute.xlu0 %12153 }
 0xcc1   : > { %v12115_v15 = vpack.c.bf16 %v11985_v60, %v11983_v34  ;;  %v15090_v21 = vadd.f32 %v11726_v52, %v9036_v12  ;;  %v11728_v61 = vpop.f32.mrb[69].mxu1  ;;  %12813 = vmatprep.mubr.bf16.mxu1 %v17074_v56  ;;  %v17114_v11 = vld [vmem:[%s22585_s5 + $0x1a8] ss:$16 sps:$4 sm:$0xff]   ;;  %v17119_v35 = vld [vmem:[%s22585_s5 + $0x1cc] ss:$16 sps:$4 sm:$0xff]   ;;  %v12159_v38 = vpop.permute.xlu1 %12158 }
 0xcc2   : > { %v15091_v1 = vadd.f32 %v11728_v61, %v9036_v12  ;;  %v11730_v36 = vpop.f32.mrb[70].mxu1  ;;  %v12116_v49 = vpack.c.bf16 %v11986_v22, %v11984_v37  ;;  %v17117_v7 = vld [vmem:[%s22585_s5 + $0x1c8] ss:$16 sps:$4 sm:$0xff]   ;;  %v17122_v20 = vld [vmem:[%s22585_s5 + $0x1ec] ss:$16 sps:$4 sm:$0xff]  }
 0xcc3   : > { %v11859_v48 = vmul.f32 0.01, %v15090_v21  ;;  %v15092_v32 = vadd.f32 %v11730_v36, %v9041_v10  ;;  %v11732_v50 = vpop.f32.mrb[71].mxu1  ;;  %v17120_v57 = vld [vmem:[%s22585_s5 + $0x1e8] ss:$16 sps:$4 sm:$0xff]  }
 0xcc4   : > { %v11860_v9 = vmul.f32 0.01, %v15091_v1  ;;  %v15093_v27 = vadd.f32 %v11732_v50, %v9041_v10  ;;  %12852 = vmatprep.subr.bf16.mxu1 %v12116_v49  ;;  %v12164_v3 = vpop.permute.xlu0 %12163 }
 0xcc5   : > { %v11861_v28 = vmul.f32 0.01, %v15092_v32  ;;  %12853 = vmatpush1.bf16.msra.mxu1 %v12115_v15  ;;  %v11987_v33 = vmax.f32 %v15090_v21, %v11859_v48  ;;  %v12169_v56 = vpop.permute.xlu1 %12168 }
 0xcc6   : > { %v11862_v59 = vmul.f32 0.01, %v15093_v27  ;;  %v11988_v14 = vmax.f32 %v15091_v1, %v11860_v9 }
 0xcc7   : > { %v11989_v63 = vmax.f32 %v15092_v32, %v11861_v28 }
 0xcc8   : > { %v11990_v24 = vmax.f32 %v15093_v27, %v11862_v59  ;;  %12814 = vmatmul.mubr.bf16.gmra.mrb[132].mxu1 %v17072_v29  ;;  %v22398_v58 = vpop.permute.xlu0 %12173 }
 0xcc9   : > { %v12117_v44 = vpack.c.bf16 %v11989_v63, %v11987_v33  ;;  %12856 = vmatprep.mubr.bf16.mxu1 %v17077_v40  ;;  %v22400_v34 = vpop.permute.xlu1 %12178 }
 0xcca   : > { %v12118_v4 = vpack.c.bf16 %v11990_v24, %v11988_v14 }
 0xccc   : > { %12854 = vmatprep.subr.bf16.mxu1 %v12118_v4  ;;  %v22402_v60 = vpop.permute.xlu0 %12183 }
 0xccd   : > { %12855 = vmatpush1.bf16.msra.mxu1 %v12117_v44  ;;  %v22404_v12 = vpop.permute.xlu1 %12188 }
 0xcd0   : > { %12857 = vmatmul.mubr.bf16.vlgmr.msra.gmra.mrb[72].mxu1 %v17075_v47  ;;  %v22406_v37 = vpop.permute.xlu0 %12193 }
 0xcd1   : > { %12866 = vmatprep.mubr.bf16.mxu1 %v17080_v26  ;;  %v22408_v22 = vpop.permute.xlu1 %12198 }
 0xcd4   : > { %v22410_v52 = vpop.permute.xlu0 %12203 }
 0xcd5   : > { %v22412_v15 = vpop.permute.xlu1 %12208 }
 0xcd8   : > { %12867 = vmatmul.mubr.bf16.gmra.mrb[76].mxu1 %v17078_v45  ;;  %v22414_v21 = vpop.permute.xlu0 %12213 }
 0xcd9   : > { %12876 = vmatprep.mubr.bf16.mxu1 %v17083_v42  ;;  %v22416_v61 = vpop.permute.xlu1 %12218 }
 0xcdc   : > { %v22418_v10 = vpop.permute.xlu0 %12223 }
 0xcdd   : > { %v22420_v1 = vpop.permute.xlu1 %12228 }
 0xce0   : > { %12877 = vmatmul.mubr.bf16.gmra.mrb[80].mxu1 %v17081_v25  ;;  %v22422_v36 = vpop.permute.xlu0 %12233 }
 0xce1   : > { %12886 = vmatprep.mubr.bf16.mxu1 %v17086_v31  ;;  %v22424_v49 = vpop.permute.xlu1 %12238 }
 0xce4   : > { %v22426_v48 = vpop.permute.xlu0 %12243 }
 0xce5   : > { %v22428_v32 = vpop.permute.xlu1 %12248 }
 0xce8   : > { %12887 = vmatmul.mubr.bf16.gmra.mrb[84].mxu1 %v17084_v0  ;;  %v22430_v50 = vpop.permute.xlu0 %12253 }
 0xce9   : > { %12896 = vmatprep.mubr.bf16.mxu1 %v17089_v53  ;;  %v13180_v9 = vpop.permute.xlu1 %13179 }
 0xcec   : > { %v13185_v24 = vpop.permute.xlu0 %13184 }
 0xced   : > { %v13190_v45 = vpop.permute.xlu1 %13189 }
 0xcf0   : > { %12897 = vmatmul.mubr.bf16.gmra.mrb[88].mxu1 %v17087_v46 }
 0xcf1   : > { %12906 = vmatprep.mubr.bf16.mxu1 %v17092_v39 }
 0xcf8   : > { %12907 = vmatmul.mubr.bf16.gmra.mrb[92].mxu1 %v17090_v16 }
 0xcf9   : > { %12916 = vmatprep.mubr.bf16.mxu1 %v17095_v54 }
 0xd00   : > { %12917 = vmatmul.mubr.bf16.gmra.mrb[96].mxu1 %v17093_v62  ;;  %v13195_v62 = vpop.permute.xlu0 %13194 }
 0xd01   : > { %12926 = vmatprep.mubr.bf16.mxu1 %v17098_v8 }
 0xd08   : > { %12927 = vmatmul.mubr.bf16.gmra.mrb[100].mxu1 %v17096_v18 }
 0xd09   : > { %12936 = vmatprep.mubr.bf16.mxu1 %v17101_v51 }
 0xd10   : > { %12937 = vmatmul.mubr.bf16.gmra.mrb[104].mxu1 %v17099_v55 }
 0xd11   : > { %12946 = vmatprep.mubr.bf16.mxu1 %v17104_v43 }
 0xd18   : > { %12947 = vmatmul.mubr.bf16.gmra.mrb[108].mxu1 %v17102_v41 }
 0xd19   : > { %12956 = vmatprep.mubr.bf16.mxu1 %v17107_v17 }
 0xd20   : > { %12957 = vmatmul.mubr.bf16.gmra.mrb[112].mxu1 %v17105_v2 }
 0xd21   : > { %12966 = vmatprep.mubr.bf16.mxu1 %v17110_v5  ;;  %v13200_v5 = vpop.permute.xlu1 %13199 }
 0xd28   : > { %12967 = vmatmul.mubr.bf16.gmra.mrb[116].mxu1 %v17108_v19 }
 0xd29   : > { %12976 = vmatprep.mubr.bf16.mxu1 %v17113_v30 }
 0xd30   : > { %12977 = vmatmul.mubr.bf16.gmra.mrb[120].mxu1 %v17111_v13 }
 0xd31   : > { %12986 = vmatprep.mubr.bf16.mxu1 %v17116_v6 }
 0xd38   : > { %12987 = vmatmul.mubr.bf16.gmra.mrb[124].mxu1 %v17114_v11 }
 0xd39   : > { %12996 = vmatprep.mubr.bf16.mxu1 %v17119_v35 }
 0xd40   : > { %12997 = vmatmul.mubr.bf16.gmra.mrb[128].mxu1 %v17117_v7 }
 0xd41   : > { %13006 = vmatprep.mubr.bf16.mxu1 %v17122_v20 }
 0xd48   : > { %13007 = vmatmul.mubr.bf16.gmra.mrb[132].mxu1 %v17120_v57 }
 0xda3   : > { %v12858_v27 = vpop.f32.mrb[72].mxu1 }
 0xda4   : > { %v15094_v29 = vadd.f32 %v12858_v27, %v12154_v23  ;;  %v12860_v28 = vpop.f32.mrb[73].mxu1 }
 0xda5   : > { %v15095_v40 = vadd.f32 %v12860_v28, %v12154_v23  ;;  %v12862_v59 = vpop.f32.mrb[74].mxu1  ;;  %v13205_v23 = vpop.permute.xlu0 %13204 }
 0xda6   : > { %v13017_v33 = vmul.f32 0.01, %v15094_v29  ;;  %v15096_v63 = vadd.f32 %v12862_v59, %v12159_v38  ;;  %v12864_v14 = vpop.f32.mrb[75].mxu1  ;;  %v13210_v59 = vpop.permute.xlu1 %13209 }
 0xda7   : > { %v13018_v44 = vmul.f32 0.01, %v15095_v40  ;;  %v15097_v4 = vadd.f32 %v12864_v14, %v12159_v38 }
 0xda8   : > { %v13081_v47 = vmax.f32 %v15094_v29, %v13017_v33  ;;  %v13019_v26 = vmul.f32 0.01, %v15096_v63 }
 0xda9   : > { %v13082_v42 = vmax.f32 %v15095_v40, %v13018_v44  ;;  %v13020_v25 = vmul.f32 0.01, %v15097_v4 }
 0xdaa   : > { %v13083_v31 = vmax.f32 %v15096_v63, %v13019_v26  ;;  %v13337_v46 = vmul.f32 %v13180_v9, %v13081_v47 }
 0xdab   : > { %v13084_v0 = vmax.f32 %v15097_v4, %v13020_v25  ;;  %v12868_v53 = vpop.f32.mrb[76].mxu1  ;;  %v13338_v8 = vmul.f32 %v13180_v9, %v13082_v42 }
 0xdac   : > { %v13339_v39 = vmul.f32 %v13185_v24, %v13083_v31  ;;  %v15098_v16 = vadd.f32 %v12868_v53, %v12164_v3  ;;  %v12870_v54 = vpop.f32.mrb[77].mxu1 }
 0xdad   : > { %v13340_v18 = vmul.f32 %v13185_v24, %v13084_v0  ;;  %v15099_v51 = vadd.f32 %v12870_v54, %v12164_v3  ;;  %v12872_v55 = vpop.f32.mrb[78].mxu1  ;;  %v13215_v0 = vpop.permute.xlu0 %13214 }
 0xdae   : > { %v13401_v43 = vadd.f32 %v13339_v39, %v13337_v46  ;;  %v13021_v41 = vmul.f32 0.01, %v15098_v16  ;;  %v15100_v17 = vadd.f32 %v12872_v55, %v12169_v56  ;;  %v12874_v2 = vpop.f32.mrb[79].mxu1  ;;  %v13220_v54 = vpop.permute.xlu1 %13219 }
 0xdaf   : > { %v13438_v19 = vadd.f32 %v13340_v18, %v13338_v8  ;;  %v13022_v30 = vmul.f32 0.01, %v15099_v51  ;;  %v15101_v13 = vadd.f32 %v12874_v2, %v12169_v56 }
 0xdb0   : > { %v13085_v6 = vmax.f32 %v15098_v16, %v13021_v41  ;;  %v13023_v11 = vmul.f32 0.01, %v15100_v17 }
 0xdb1   : > { %v13086_v35 = vmax.f32 %v15099_v51, %v13022_v30  ;;  %v13024_v7 = vmul.f32 0.01, %v15101_v13 }
 0xdb2   : > { %v13341_v20 = vmul.f32 %v13190_v45, %v13085_v6  ;;  %v13087_v57 = vmax.f32 %v15100_v17, %v13023_v11  ;;  %v13225_v11 = vpop.permute.xlu0 %13224 }
 0xdb3   : > { %v13342_v38 = vmul.f32 %v13190_v45, %v13086_v35  ;;  %v13088_v9 = vmax.f32 %v15101_v13, %v13024_v7  ;;  %v12878_v27 = vpop.f32.mrb[80].mxu1 }
 0xdb4   : > { %v13402_v3 = vadd.f32 %v13401_v43, %v13341_v20  ;;  %v13343_v29 = vmul.f32 %v13195_v62, %v13087_v57  ;;  %v15102_v28 = vadd.f32 %v12878_v27, %v22398_v58  ;;  %v12880_v40 = vpop.f32.mrb[81].mxu1 }
 0xdb5   : > { %v13439_v33 = vadd.f32 %v13438_v19, %v13342_v38  ;;  %v13344_v63 = vmul.f32 %v13195_v62, %v13088_v9  ;;  %v15103_v56 = vadd.f32 %v12880_v40, %v22398_v58  ;;  %v12882_v14 = vpop.f32.mrb[82].mxu1  ;;  %v13230_v38 = vpop.permute.xlu1 %13229 }
 0xdb6   : > { %v13403_v24 = vadd.f32 %v13402_v3, %v13343_v29  ;;  %v13025_v44 = vmul.f32 0.01, %v15102_v28  ;;  %v15104_v4 = vadd.f32 %v12882_v14, %v22400_v34  ;;  %v12884_v47 = vpop.f32.mrb[83].mxu1  ;;  %v13235_v14 = vpop.permute.xlu0 %13234 }
 0xdb7   : > { %v13440_v26 = vadd.f32 %v13439_v33, %v13344_v63  ;;  %v13026_v45 = vmul.f32 0.01, %v15103_v56  ;;  %v15105_v42 = vadd.f32 %v12884_v47, %v22400_v34 }
 0xdb8   : > { %v13089_v25 = vmax.f32 %v15102_v28, %v13025_v44  ;;  %v13027_v31 = vmul.f32 0.01, %v15104_v4 }
 0xdb9   : > { %v13090_v53 = vmax.f32 %v15103_v56, %v13026_v45  ;;  %v13028_v46 = vmul.f32 0.01, %v15105_v42 }
 0xdba   : > { %v13345_v39 = vmul.f32 %v13200_v5, %v13089_v25  ;;  %v13091_v16 = vmax.f32 %v15104_v4, %v13027_v31  ;;  %v22443_v25 = vpop.permute.xlu1 %13239 }
 0xdbb   : > { %v13346_v62 = vmul.f32 %v13200_v5, %v13090_v53  ;;  %v13092_v58 = vmax.f32 %v15105_v42, %v13028_v46  ;;  %v12888_v8 = vpop.f32.mrb[84].mxu1 }
 0xdbc   : > { %v13404_v18 = vadd.f32 %v13403_v24, %v13345_v39  ;;  %v13347_v51 = vmul.f32 %v13205_v23, %v13091_v16  ;;  %v15106_v55 = vadd.f32 %v12888_v8, %v22402_v60  ;;  %v12890_v43 = vpop.f32.mrb[85].mxu1  ;;  %v22446_v8 = vpop.permute.xlu0 %13244 }
 0xdbd   : > { %v13441_v41 = vadd.f32 %v13440_v26, %v13346_v62  ;;  %v13348_v17 = vmul.f32 %v13205_v23, %v13092_v58  ;;  %v15107_v34 = vadd.f32 %v12890_v43, %v22402_v60  ;;  %v12892_v2 = vpop.f32.mrb[86].mxu1 }
 0xdbe   : > { %v13405_v19 = vadd.f32 %v13404_v18, %v13347_v51  ;;  %v13029_v30 = vmul.f32 0.01, %v15106_v55  ;;  %v15108_v13 = vadd.f32 %v12892_v2, %v22404_v12  ;;  %v12894_v6 = vpop.f32.mrb[87].mxu1 }
 0xdbf   : > { %v13442_v35 = vadd.f32 %v13441_v41, %v13348_v17  ;;  %v13030_v5 = vmul.f32 0.01, %v15107_v34  ;;  %v15109_v7 = vadd.f32 %v12894_v6, %v22404_v12 }
 0xdc0   : > { %v13093_v20 = vmax.f32 %v15106_v55, %v13029_v30  ;;  %v13031_v57 = vmul.f32 0.01, %v15108_v13 }
 0xdc1   : > { %v13094_v9 = vmax.f32 %v15107_v34, %v13030_v5  ;;  %v13032_v27 = vmul.f32 0.01, %v15109_v7  ;;  %v22449_v34 = vpop.permute.xlu1 %13249 }
 0xdc2   : > { %v13349_v3 = vmul.f32 %v13210_v59, %v13093_v20  ;;  %v13095_v23 = vmax.f32 %v15108_v13, %v13031_v57 }
 0xdc3   : > { %v13350_v29 = vmul.f32 %v13210_v59, %v13094_v9  ;;  %v13096_v60 = vmax.f32 %v15109_v7, %v13032_v27  ;;  %v12898_v28 = vpop.f32.mrb[88].mxu1  ;;  %v22454_v27 = vpop.permute.xlu0 %13254 }
 0xdc4   : > { %v13406_v40 = vadd.f32 %v13405_v19, %v13349_v3  ;;  %v13351_v33 = vmul.f32 %v13215_v0, %v13095_v23  ;;  %v15110_v63 = vadd.f32 %v12898_v28, %v22406_v37  ;;  %v12900_v56 = vpop.f32.mrb[89].mxu1 }
 0xdc5   : > { %v13443_v24 = vadd.f32 %v13442_v35, %v13350_v29  ;;  %v13352_v44 = vmul.f32 %v13215_v0, %v13096_v60  ;;  %v15111_v12 = vadd.f32 %v12900_v56, %v22406_v37  ;;  %v12902_v4 = vpop.f32.mrb[90].mxu1  ;;  %v22456_v60 = vpop.permute.xlu1 %13259 }
 0xdc6   : > { %v13407_v47 = vadd.f32 %v13406_v40, %v13351_v33  ;;  %v13033_v26 = vmul.f32 0.01, %v15110_v63  ;;  %v15112_v45 = vadd.f32 %v12902_v4, %v22408_v22  ;;  %v12904_v42 = vpop.f32.mrb[91].mxu1 }
 0xdc7   : > { %v13444_v59 = vadd.f32 %v13443_v24, %v13352_v44  ;;  %v13034_v31 = vmul.f32 0.01, %v15111_v12  ;;  %v15113_v53 = vadd.f32 %v12904_v42, %v22408_v22 }
 0xdc8   : > { %v13097_v46 = vmax.f32 %v15110_v63, %v13033_v26  ;;  %v13035_v39 = vmul.f32 0.01, %v15112_v45 }
 0xdc9   : > { %v13098_v16 = vmax.f32 %v15111_v12, %v13034_v31  ;;  %v13036_v62 = vmul.f32 0.01, %v15113_v53 }
 0xdca   : > { %v13353_v58 = vmul.f32 %v13220_v54, %v13097_v46  ;;  %v13099_v0 = vmax.f32 %v15112_v45, %v13035_v39 }
 0xdcb   : > { %v13354_v37 = vmul.f32 %v13220_v54, %v13098_v16  ;;  %v13100_v18 = vmax.f32 %v15113_v53, %v13036_v62  ;;  %v12908_v51 = vpop.f32.mrb[92].mxu1  ;;  %v22464_v16 = vpop.permute.xlu1 %12258 }
 0xdcc   : > { %v13408_v55 = vadd.f32 %v13407_v47, %v13353_v58  ;;  %v13355_v43 = vmul.f32 %v13225_v11, %v13099_v0  ;;  %v15114_v41 = vadd.f32 %v12908_v51, %v22410_v52  ;;  %v12910_v17 = vpop.f32.mrb[93].mxu1 }
 0xdcd   : > { %v13445_v2 = vadd.f32 %v13444_v59, %v13354_v37  ;;  %v13356_v22 = vmul.f32 %v13225_v11, %v13100_v18  ;;  %v15115_v19 = vadd.f32 %v12910_v17, %v22410_v52  ;;  %v12912_v30 = vpop.f32.mrb[94].mxu1  ;;  %v22461_v59 = vpop.permute.xlu0 %13264 }
 0xdce   : > { %v13409_v13 = vadd.f32 %v13408_v55, %v13355_v43  ;;  %v13037_v6 = vmul.f32 0.01, %v15114_v41  ;;  %v15116_v35 = vadd.f32 %v12912_v30, %v22412_v15  ;;  %v12914_v5 = vpop.f32.mrb[95].mxu1 }
 0xdcf   : > { %v13446_v54 = vadd.f32 %v13445_v2, %v13356_v22  ;;  %v13038_v7 = vmul.f32 0.01, %v15115_v19  ;;  %v15117_v20 = vadd.f32 %v12914_v5, %v22412_v15 }
 0xdd0   : > { %v13101_v57 = vmax.f32 %v15114_v41, %v13037_v6  ;;  %v13039_v9 = vmul.f32 0.01, %v15116_v35 }
 0xdd1   : > { %v13102_v3 = vmax.f32 %v15115_v19, %v13038_v7  ;;  %v13040_v23 = vmul.f32 0.01, %v15117_v20 }
 0xdd2   : > { %v13357_v29 = vmul.f32 %v13230_v38, %v13101_v57  ;;  %v13103_v11 = vmax.f32 %v15116_v35, %v13039_v9  ;;  %v22475_v35 = vpop.permute.xlu1 %12263 }
 0xdd3   : > { %v13358_v52 = vmul.f32 %v13230_v38, %v13102_v3  ;;  %v13104_v28 = vmax.f32 %v15117_v20, %v13040_v23  ;;  %v12918_v40 = vpop.f32.mrb[96].mxu1 }
 0xdd4   : > { %v13410_v33 = vadd.f32 %v13409_v13, %v13357_v29  ;;  %v13359_v63 = vmul.f32 %v13235_v14, %v13103_v11  ;;  %v15118_v56 = vadd.f32 %v12918_v40, %v22414_v21  ;;  %v12920_v24 = vpop.f32.mrb[97].mxu1 }
 0xdd5   : > { %v13447_v44 = vadd.f32 %v13446_v54, %v13358_v52  ;;  %v13360_v15 = vmul.f32 %v13235_v14, %v13104_v28  ;;  %v15119_v12 = vadd.f32 %v12920_v24, %v22414_v21  ;;  %v12922_v4 = vpop.f32.mrb[98].mxu1 }
 0xdd6   : > { %v13411_v47 = vadd.f32 %v13410_v33, %v13359_v63  ;;  %v13041_v26 = vmul.f32 0.01, %v15118_v56  ;;  %v15120_v45 = vadd.f32 %v12922_v4, %v22416_v61  ;;  %v12924_v42 = vpop.f32.mrb[99].mxu1 }
 0xdd7   : > { %v13448_v38 = vadd.f32 %v13447_v44, %v13360_v15  ;;  %v13042_v31 = vmul.f32 0.01, %v15119_v12  ;;  %v15121_v53 = vadd.f32 %v12924_v42, %v22416_v61  ;;  %v22470_v61 = vpop.permute.xlu0 %13269 }
 0xdd8   : > { %v13105_v46 = vmax.f32 %v15118_v56, %v13041_v26  ;;  %v13043_v39 = vmul.f32 0.01, %v15120_v45 }
 0xdd9   : > { %v13106_v62 = vmax.f32 %v15119_v12, %v13042_v31  ;;  %v13044_v14 = vmul.f32 0.01, %v15121_v53 }
 0xdda   : > { %v13361_v21 = vmul.f32 %v22443_v25, %v13105_v46  ;;  %v13107_v58 = vmax.f32 %v15120_v45, %v13043_v39 }
 0xddb   : > { %v13362_v0 = vmul.f32 %v22443_v25, %v13106_v62  ;;  %v13108_v37 = vmax.f32 %v15121_v53, %v13044_v14  ;;  %v12928_v18 = vpop.f32.mrb[100].mxu1 }
 0xddc   : > { %v13412_v51 = vadd.f32 %v13411_v47, %v13361_v21  ;;  %v13363_v55 = vmul.f32 %v22446_v8, %v13107_v58  ;;  %v15122_v43 = vadd.f32 %v12928_v18, %v22418_v10  ;;  %v12930_v41 = vpop.f32.mrb[101].mxu1 }
 0xddd   : > { %v13449_v17 = vadd.f32 %v13448_v38, %v13362_v0  ;;  %v13364_v2 = vmul.f32 %v22446_v8, %v13108_v37  ;;  %v15123_v22 = vadd.f32 %v12930_v41, %v22418_v10  ;;  %v12932_v19 = vpop.f32.mrb[102].mxu1  ;;  %v22479_v10 = vpop.permute.xlu0 %13274 }
 0xdde   : > { %v13413_v30 = vadd.f32 %v13412_v51, %v13363_v55  ;;  %v13045_v13 = vmul.f32 0.01, %v15122_v43  ;;  %v15124_v25 = vadd.f32 %v12932_v19, %v22420_v1  ;;  %v12934_v6 = vpop.f32.mrb[103].mxu1 }
 0xddf   : > { %v13450_v5 = vadd.f32 %v13449_v17, %v13364_v2  ;;  %v13046_v54 = vmul.f32 0.01, %v15123_v22  ;;  %v15125_v7 = vadd.f32 %v12934_v6, %v22420_v1  ;;  %v22484_v1 = vpop.permute.xlu1 %12268 }
 0xde0   : > { %v13109_v20 = vmax.f32 %v15122_v43, %v13045_v13  ;;  %v13047_v57 = vmul.f32 0.01, %v15124_v25 }
 0xde1   : > { %v13110_v9 = vmax.f32 %v15123_v22, %v13046_v54  ;;  %v13048_v3 = vmul.f32 0.01, %v15125_v7  ;;  %v13280_v53 = vpop.permute.xlu0 %13279 }
 0xde2   : > { %v13365_v8 = vmul.f32 %v22449_v34, %v13109_v20  ;;  %v13111_v23 = vmax.f32 %v15124_v25, %v13047_v57 }
 0xde3   : > { %v13366_v29 = vmul.f32 %v22449_v34, %v13110_v9  ;;  %v13112_v11 = vmax.f32 %v15125_v7, %v13048_v3  ;;  %v12938_v52 = vpop.f32.mrb[104].mxu1  ;;  %v22491_v14 = vpop.permute.xlu1 %12273 }
 0xde4   : > { %v13414_v28 = vadd.f32 %v13413_v30, %v13365_v8  ;;  %v13367_v40 = vmul.f32 %v22454_v27, %v13111_v23  ;;  %v15126_v33 = vadd.f32 %v12938_v52, %v22422_v36  ;;  %v12940_v63 = vpop.f32.mrb[105].mxu1 }
 0xde5   : > { %v13451_v56 = vadd.f32 %v13450_v5, %v13366_v29  ;;  %v13368_v24 = vmul.f32 %v22454_v27, %v13112_v11  ;;  %v15127_v44 = vadd.f32 %v12940_v63, %v22422_v36  ;;  %v12942_v15 = vpop.f32.mrb[106].mxu1 }
 0xde6   : > { %v13415_v12 = vadd.f32 %v13414_v28, %v13367_v40  ;;  %v13049_v4 = vmul.f32 0.01, %v15126_v33  ;;  %v15128_v34 = vadd.f32 %v12942_v15, %v22424_v49  ;;  %v12944_v47 = vpop.f32.mrb[107].mxu1 }
 0xde7   : > { %v13452_v26 = vadd.f32 %v13451_v56, %v13368_v24  ;;  %v13050_v45 = vmul.f32 0.01, %v15127_v44  ;;  %v15129_v42 = vadd.f32 %v12944_v47, %v22424_v49  ;;  %v22500_v54 = vpop.permute.xlu1 %12278 }
 0xde8   : > { %v13113_v38 = vmax.f32 %v15126_v33, %v13049_v4  ;;  %v13051_v31 = vmul.f32 0.01, %v15128_v34 }
 0xde9   : > { %v13114_v46 = vmax.f32 %v15127_v44, %v13050_v45  ;;  %v13052_v39 = vmul.f32 0.01, %v15129_v42 }
 0xdea   : > { %v13369_v62 = vmul.f32 %v22456_v60, %v13113_v38  ;;  %v13115_v27 = vmax.f32 %v15128_v34, %v13051_v31 }
 0xdeb   : > { %v13370_v36 = vmul.f32 %v22456_v60, %v13114_v46  ;;  %v13116_v21 = vmax.f32 %v15129_v42, %v13052_v39  ;;  %v12948_v58 = vpop.f32.mrb[108].mxu1  ;;  %v13285_v60 = vpop.permute.xlu0 %13284 }
 0xdec   : > { %v13416_v0 = vadd.f32 %v13415_v12, %v13369_v62  ;;  %v13371_v37 = vmul.f32 %v22461_v59, %v13115_v27  ;;  %v15130_v18 = vadd.f32 %v12948_v58, %v22426_v48  ;;  %v12950_v49 = vpop.f32.mrb[109].mxu1  ;;  %v22509_v44 = vpop.permute.xlu1 %12283 }
 0xded   : > { %v13453_v51 = vadd.f32 %v13452_v26, %v13370_v36  ;;  %v13372_v55 = vmul.f32 %v22461_v59, %v13116_v21  ;;  %v15131_v43 = vadd.f32 %v12950_v49, %v22426_v48  ;;  %v12952_v41 = vpop.f32.mrb[110].mxu1 }
 0xdee   : > { %v13417_v17 = vadd.f32 %v13416_v0, %v13371_v37  ;;  %v13053_v2 = vmul.f32 0.01, %v15130_v18  ;;  %v15132_v22 = vadd.f32 %v12952_v41, %v22428_v32  ;;  %v12954_v19 = vpop.f32.mrb[111].mxu1 }
 0xdef   : > { %v13454_v30 = vadd.f32 %v13453_v51, %v13372_v55  ;;  %v13054_v13 = vmul.f32 0.01, %v15131_v43  ;;  %v15133_v25 = vadd.f32 %v12954_v19, %v22428_v32  ;;  %v13290_v32 = vpop.permute.xlu0 %13289 }
 0xdf0   : > { %v13117_v6 = vmax.f32 %v15130_v18, %v13053_v2  ;;  %v13055_v5 = vmul.f32 0.01, %v15132_v22  ;;  %v22513_v21 = vpop.permute.xlu1 %12288 }
 0xdf1   : > { %v13118_v7 = vmax.f32 %v15131_v43, %v13054_v13  ;;  %v13056_v20 = vmul.f32 0.01, %v15133_v25 }
 0xdf2   : > { %v13373_v59 = vmul.f32 %v22470_v61, %v13117_v6  ;;  %v13119_v48 = vmax.f32 %v15132_v22, %v13055_v5 }
 0xdf3   : > { %v13374_v57 = vmul.f32 %v22470_v61, %v13118_v7  ;;  %v13120_v9 = vmax.f32 %v15133_v25, %v13056_v20  ;;  %v12958_v3 = vpop.f32.mrb[112].mxu1  ;;  %v13295_v38 = vpop.permute.xlu0 %13294 }
 0xdf4   : > { %v13418_v8 = vadd.f32 %v13417_v17, %v13373_v59  ;;  %v13375_v23 = vmul.f32 %v22479_v10, %v13119_v48  ;;  %v15134_v29 = vadd.f32 %v12958_v3, %v22430_v50  ;;  %v12960_v11 = vpop.f32.mrb[113].mxu1 }
 0xdf5   : > { %v13455_v52 = vadd.f32 %v13454_v30, %v13374_v57  ;;  %v13376_v28 = vmul.f32 %v22479_v10, %v13120_v9  ;;  %v15135_v40 = vadd.f32 %v12960_v11, %v22430_v50  ;;  %v12962_v33 = vpop.f32.mrb[114].mxu1 }
 0xdf6   : > { %v13419_v63 = vadd.f32 %v13418_v8, %v13375_v23  ;;  %v13057_v56 = vmul.f32 0.01, %v15134_v29  ;;  %v15136_v24 = vadd.f32 %v12962_v33, %v22464_v16  ;;  %v12964_v61 = vpop.f32.mrb[115].mxu1 }
 0xdf7   : > { %v13456_v15 = vadd.f32 %v13455_v52, %v13376_v28  ;;  %v13058_v12 = vmul.f32 0.01, %v15135_v40  ;;  %v15137_v4 = vadd.f32 %v12964_v61, %v22464_v16  ;;  %v13300_v22 = vpop.permute.xlu0 %13299 }
 0xdf8   : > { %v13121_v34 = vmax.f32 %v15134_v29, %v13057_v56  ;;  %v13059_v47 = vmul.f32 0.01, %v15136_v24 }
 0xdf9   : > { %v13122_v26 = vmax.f32 %v15135_v40, %v13058_v12  ;;  %v13060_v45 = vmul.f32 0.01, %v15137_v4 }
 0xdfa   : > { %v13377_v42 = vmul.f32 %v13280_v53, %v13121_v34  ;;  %v13123_v10 = vmax.f32 %v15136_v24, %v13059_v47 }
 0xdfb   : > { %v13378_v50 = vmul.f32 %v13280_v53, %v13122_v26  ;;  %v13124_v31 = vmax.f32 %v15137_v4, %v13060_v45  ;;  %v12968_v46 = vpop.f32.mrb[116].mxu1  ;;  %v13305_v52 = vpop.permute.xlu0 %13304 }
 0xdfc   : > { %v13420_v39 = vadd.f32 %v13419_v63, %v13377_v42  ;;  %v13379_v62 = vmul.f32 %v13285_v60, %v13123_v10  ;;  %v15138_v27 = vadd.f32 %v12968_v46, %v22475_v35  ;;  %v12970_v36 = vpop.f32.mrb[117].mxu1 }
 0xdfd   : > { %v13457_v58 = vadd.f32 %v13456_v15, %v13378_v50  ;;  %v13380_v0 = vmul.f32 %v13285_v60, %v13124_v31  ;;  %v15139_v16 = vadd.f32 %v12970_v36, %v22475_v35  ;;  %v12972_v37 = vpop.f32.mrb[118].mxu1  ;;  %v22518_v60 = vpop.permute.xlu1 %12293 }
 0xdfe   : > { %v13421_v18 = vadd.f32 %v13420_v39, %v13379_v62  ;;  %v13061_v49 = vmul.f32 0.01, %v15138_v27  ;;  %v15140_v51 = vadd.f32 %v12972_v37, %v22484_v1  ;;  %v12974_v55 = vpop.f32.mrb[119].mxu1 }
 0xdff   : > { %v13458_v53 = vadd.f32 %v13457_v58, %v13380_v0  ;;  %v13062_v43 = vmul.f32 0.01, %v15139_v16  ;;  %v15141_v41 = vadd.f32 %v12974_v55, %v22484_v1  ;;  %v13310_v10 = vpop.permute.xlu0 %13309 }
 0xe00   : > { %v13125_v17 = vmax.f32 %v15138_v27, %v13061_v49  ;;  %v13063_v2 = vmul.f32 0.01, %v15140_v51 }
 0xe01   : > { %v13126_v19 = vmax.f32 %v15139_v16, %v13062_v43  ;;  %v13064_v30 = vmul.f32 0.01, %v15141_v41  ;;  %v12299_v56 = vpop.permute.xlu1 %12298 }
 0xe02   : > { %v13381_v13 = vmul.f32 %v13290_v32, %v13125_v17  ;;  %v13127_v25 = vmax.f32 %v15140_v51, %v13063_v2 }
 0xe03   : > { %v13382_v35 = vmul.f32 %v13290_v32, %v13126_v19  ;;  %v13128_v6 = vmax.f32 %v15141_v41, %v13064_v30  ;;  %v12978_v5 = vpop.f32.mrb[120].mxu1  ;;  %v13315_v43 = vpop.permute.xlu0 %13314 }
 0xe04   : > { %v13422_v7 = vadd.f32 %v13421_v18, %v13381_v13  ;;  %v13383_v20 = vmul.f32 %v13295_v38, %v13127_v25  ;;  %v15142_v59 = vadd.f32 %v12978_v5, %v22491_v14  ;;  %v12980_v48 = vpop.f32.mrb[121].mxu1 }
 0xe05   : > { %v13459_v57 = vadd.f32 %v13458_v53, %v13382_v35  ;;  %v13384_v9 = vmul.f32 %v13295_v38, %v13128_v6  ;;  %v15143_v1 = vadd.f32 %v12980_v48, %v22491_v14  ;;  %v12982_v3 = vpop.f32.mrb[122].mxu1  ;;  %v12304_v36 = vpop.permute.xlu1 %12303 }
 0xe06   : > { %v13423_v8 = vadd.f32 %v13422_v7, %v13383_v20  ;;  %v13065_v23 = vmul.f32 0.01, %v15142_v59  ;;  %v15144_v29 = vadd.f32 %v12982_v3, %v22500_v54  ;;  %v12984_v11 = vpop.f32.mrb[123].mxu1 }
 0xe07   : > { %v13460_v28 = vadd.f32 %v13459_v57, %v13384_v9  ;;  %v13066_v32 = vmul.f32 0.01, %v15143_v1  ;;  %v15145_v40 = vadd.f32 %v12984_v11, %v22500_v54 }
 0xe08   : > { %v13129_v33 = vmax.f32 %v15142_v59, %v13065_v23  ;;  %v13067_v63 = vmul.f32 0.01, %v15144_v29 }
 0xe09   : > { %v13130_v24 = vmax.f32 %v15143_v1, %v13066_v32  ;;  %v13068_v61 = vmul.f32 0.01, %v15145_v40  ;;  %v12309_v13 = vpop.permute.xlu1 %12308 }
 0xe0a   : > { %v13385_v15 = vmul.f32 %v13300_v22, %v13129_v33  ;;  %v13131_v12 = vmax.f32 %v15144_v29, %v13067_v63 }
 0xe0b   : > { %v13386_v4 = vmul.f32 %v13300_v22, %v13130_v24  ;;  %v13132_v14 = vmax.f32 %v15145_v40, %v13068_v61  ;;  %v12988_v34 = vpop.f32.mrb[124].mxu1 }
 0xe0c   : > { %v13424_v47 = vadd.f32 %v13423_v8, %v13385_v15  ;;  %v13387_v26 = vmul.f32 %v13305_v52, %v13131_v12  ;;  %v15146_v45 = vadd.f32 %v12988_v34, %v22509_v44  ;;  %v12990_v42 = vpop.f32.mrb[125].mxu1  ;;  %v13320_v8 = vpop.permute.xlu0 %13319 }
 0xe0d   : > { %v13461_v38 = vadd.f32 %v13460_v28, %v13386_v4  ;;  %v13388_v50 = vmul.f32 %v13305_v52, %v13132_v14  ;;  %v15147_v54 = vadd.f32 %v12990_v42, %v22509_v44  ;;  %v12992_v31 = vpop.f32.mrb[126].mxu1  ;;  %v13325_v28 = vpop.permute.xlu1 %13324 }
 0xe0e   : > { %v13425_v46 = vadd.f32 %v13424_v47, %v13387_v26  ;;  %v13069_v39 = vmul.f32 0.01, %v15146_v45  ;;  %v15148_v62 = vadd.f32 %v12992_v31, %v22513_v21  ;;  %v12994_v27 = vpop.f32.mrb[127].mxu1 }
 0xe0f   : > { %v13462_v58 = vadd.f32 %v13461_v38, %v13388_v50  ;;  %v13070_v0 = vmul.f32 0.01, %v15147_v54  ;;  %v15149_v16 = vadd.f32 %v12994_v27, %v22513_v21 }
 0xe10   : > { %v13133_v37 = vmax.f32 %v15146_v45, %v13069_v39  ;;  %v13071_v18 = vmul.f32 0.01, %v15148_v62 }
 0xe11   : > { %v13134_v49 = vmax.f32 %v15147_v54, %v13070_v0  ;;  %v13072_v51 = vmul.f32 0.01, %v15149_v16  ;;  %v13330_v54 = vpop.permute.xlu0 %13329  ;;  %v13335_v27 = vpop.permute.xlu1 %13334 }
 0xe12   : > { %v13389_v55 = vmul.f32 %v13310_v10, %v13133_v37  ;;  %v13135_v53 = vmax.f32 %v15148_v62, %v13071_v18 }
 0xe13   : > { %v13390_v41 = vmul.f32 %v13310_v10, %v13134_v49  ;;  %v13136_v44 = vmax.f32 %v15149_v16, %v13072_v51  ;;  %v12998_v17 = vpop.f32.mrb[128].mxu1  ;;  %v13481_v49 = vlaneseq }
 0xe14   : > { %v13426_v2 = vadd.f32 %v13425_v46, %v13389_v55  ;;  %v13391_v22 = vmul.f32 %v13315_v43, %v13135_v53  ;;  %v15150_v19 = vadd.f32 %v12998_v17, %v22518_v60  ;;  %v13000_v30 = vpop.f32.mrb[129].mxu1 }
 0xe15   : > { %v13463_v25 = vadd.f32 %v13462_v58, %v13390_v41  ;;  %v13392_v35 = vmul.f32 %v13315_v43, %v13136_v44  ;;  %v15151_v21 = vadd.f32 %v13000_v30, %v22518_v60  ;;  %v13002_v6 = vpop.f32.mrb[130].mxu1  ;;  %v13482_v41 = vshrl.u32 %v13481_v49, 7 }
 0xe16   : > { %v13427_v5 = vadd.f32 %v13426_v2, %v13391_v22  ;;  %v13073_v7 = vmul.f32 0.01, %v15150_v19  ;;  %v15152_v20 = vadd.f32 %v13002_v6, %v12299_v56  ;;  %v13004_v59 = vpop.f32.mrb[131].mxu1  ;;  %vm13517_vm0 = vcmp.lt.s32.totalorder %v13481_v49, 256 }
 0xe17   : > { %v13464_v48 = vadd.f32 %v13463_v25, %v13392_v35  ;;  %v13074_v57 = vmul.f32 0.01, %v15151_v21  ;;  %v15153_v9 = vadd.f32 %v13004_v59, %v12299_v56 }
 0xe18   : > { %v13137_v1 = vmax.f32 %v15150_v19, %v13073_v7  ;;  %v13075_v3 = vmul.f32 0.01, %v15152_v20  ;;  %v13483_v19 = vsub.s32 0, %v13482_v41 }
 0xe19   : > { %v13138_v23 = vmax.f32 %v15151_v21, %v13074_v57  ;;  %v13076_v29 = vmul.f32 0.01, %v15153_v9 }
 0xe1a   : > { %v13393_v11 = vmul.f32 %v13320_v8, %v13137_v1  ;;  %v13139_v52 = vmax.f32 %v15152_v20, %v13075_v3 }
 0xe1b   : > { %v13394_v32 = vmul.f32 %v13320_v8, %v13138_v23  ;;  %v13140_v40 = vmax.f32 %v15153_v9, %v13076_v29  ;;  %v13008_v33 = vpop.f32.mrb[132].mxu1 }
 0xe1c   : > { %v13428_v60 = vadd.f32 %v13427_v5, %v13393_v11  ;;  %v13395_v63 = vmul.f32 %v13325_v28, %v13139_v52  ;;  %v15154_v24 = vadd.f32 %v13008_v33, %v12304_v36  ;;  %v13010_v61 = vpop.f32.mrb[133].mxu1  ;;  %v17196_v11 = vmov 1966171168  }
 0xe1d   : > { %v13465_v15 = vadd.f32 %v13464_v48, %v13394_v32  ;;  %v13396_v12 = vmul.f32 %v13325_v28, %v13140_v40  ;;  %v15155_v4 = vadd.f32 %v13010_v61, %v12304_v36  ;;  %v13012_v14 = vpop.f32.mrb[134].mxu1  ;;  %v13501_v52 = vunpack.c.l.s4 %v17196_v11 }
 0xe1e   : > { %v13429_v56 = vadd.f32 %v13428_v60, %v13395_v63  ;;  %v13077_v34 = vmul.f32 0.01, %v15154_v24  ;;  %v15156_v47 = vadd.f32 %v13012_v14, %v12309_v13  ;;  %v13014_v26 = vpop.f32.mrb[135].mxu1 }
 0xe1f   : > { %v13466_v45 = vadd.f32 %v13465_v15, %v13396_v12  ;;  %v13078_v42 = vmul.f32 0.01, %v15155_v4  ;;  %v15157_v10 = vadd.f32 %v13014_v26, %v12309_v13  ;;  %v13479_v13 = vpop.permute.xlu0 %13478  ;;  %v13502_v28 = vunpack.c.0.s8 %v13501_v52 }
 0xe20   : > { %v13141_v38 = vmax.f32 %v15154_v24, %v13077_v34  ;;  %v13079_v50 = vmul.f32 0.01, %v15156_v47  ;;  %v13484_v6 = vrot.slane %v13479_v13, %v13483_v19 }
 0xe21   : > { %v13142_v31 = vmax.f32 %v15155_v4, %v13078_v42  ;;  %v13080_v46 = vmul.f32 0.01, %v15157_v10  ;;  %v13505_v40 = vsub.s32 %v13502_v28, %v13482_v41 }
 0xe22   : > { %v13397_v39 = vmul.f32 %v13330_v54, %v13141_v38  ;;  %v13143_v62 = vmax.f32 %v15156_v47, %v13079_v50 }
 0xe23   : > { %v13398_v58 = vmul.f32 %v13330_v54, %v13142_v31  ;;  %v13144_v0 = vmax.f32 %v15157_v10, %v13080_v46 }
 0xe24   : > { %v13430_v16 = vadd.f32 %v13429_v56, %v13397_v39  ;;  %v13399_v36 = vmul.f32 %v13335_v27, %v13143_v62 }
 0xe25   : > { %v13467_v37 = vadd.f32 %v13466_v45, %v13398_v58  ;;  %v13400_v18 = vmul.f32 %v13335_v27, %v13144_v0 }
 0xe26   : > { %v13431_v51 = vadd.f32 %v13430_v16, %v13399_v36 }
 0xe27   : > { %v13468_v55 = vadd.f32 %v13467_v37, %v13400_v18 }
 0xe28   : > { %v13432_v53 = vrot.slane %v13431_v51, 4 }
 0xe29   : > { %v13469_v43 = vrot.slane %v13468_v55, 4 }
 0xe2a   : > { %v13433_v44 = vadd.f32 %v13432_v53, %v13431_v51 }
 0xe2b   : > { %v13470_v17 = vadd.f32 %v13469_v43, %v13468_v55 }
 0xe2c   : > { %v13434_v2 = vrot.slane %v13433_v44, 2 }
 0xe2d   : > { %v13471_v22 = vrot.slane %v13470_v17, 2 }
 0xe2e   : > { %v13435_v30 = vadd.f32 %v13434_v2, %v13433_v44 }
 0xe2f   : > { %v13472_v25 = vadd.f32 %v13471_v22, %v13470_v17 }
 0xe30   : > { %v13436_v35 = vrot.slane %v13435_v30, 1 }
 0xe31   : > { %v13473_v21 = vrot.slane %v13472_v25, 1 }
 0xe32   : > { %v13437_v5 = vadd.f32 %v13436_v35, %v13435_v30 }
 0xe33   : > { %v13474_v7 = vadd.f32 %v13473_v21, %v13472_v25 }
 0xe34   : > { %v13485_v20 = vadd.f32 %v13484_v6, %v13437_v5 }
 0xe35   : > { %v13486_v59 = vadd.f32 %v13484_v6, %v13474_v7 }
 0xe36   : > { %v13487_v48 = vsub.f32 0.0, %v13485_v20 }
 0xe37   : > { %v13488_v57 = vsub.f32 0.0, %v13486_v59 }
 0xe38   : > { %v13489_v9 = vmul.f32 1.442695, %v13487_v48 }
 0xe39   : > { %v13491_v1 = vmul.f32 1.442695, %v13488_v57 }
 0xe3a   : > { %17123 = vpow2.f32 %v13489_v9 }
 0xe3b   : > { %17125 = vpow2.f32 %v13491_v1 }
 0xe44   : > { %v17124_v3 = vpop.eup %17123 }
 0xe45   : > { %v17126_v8 = vpop.eup %17125  ;;  %v13493_v23 = vadd.f32 1.0, %v17124_v3 }
 0xe46   : > { %v13494_v29 = vadd.f32 1.0, %v17126_v8 }
 0xe47   : > { %17127 = vrcp.f32 %v13493_v23 }
 0xe48   : > { %17129 = vrcp.f32 %v13494_v29 }
 0xe51   : > { %v17128_v32 = vpop.eup %17127 }
 0xe52   : > { %v17130_v33 = vpop.eup %17129 }
 0xe53   : > { %v13499_v60 = vcombine.low %v17128_v32, %v17130_v33 }
 0xe55   : > { %v13506_v63 = vrot.slane %v13499_v60, %v13505_v40 }
 0xe57   : > { %v13513_v24 = vrot.slane %v13506_v63, %v13505_v40 }
 0xe59   : > { %13519 = vst.msk [vmem:[%s811_s28] sm:$0x3] %vm13517_vm0, %v13513_v24 }
 0xe5a   : > { %17144 = shalt.err (!%p17141_p5)
}
 0xe5b   : > { %s17145_s29 = scalar_lea.hbm %s22536_s17, 32  ;;  %s17149_s27 = scalar_lea.hbm %s22589_s9, 64 }
 0xe5c   : > { %p17146_p7 = scmp.ne.s32.totalorder %s22536_s17, %s17145_s29  ;;  %p17150_p12 = scmp.lt.u32.totalorder %s22536_s17, %s22589_s9 }
 0xe5d   : > { %p17151_p13 = scmp.lt.u32.totalorder %s17149_s27, %s17145_s29  ;;  %p17153_p1 = scmp.lt.u32.totalorder %s17145_s29, %s22536_s17 }
 0xe5e   : > { %p17147_p10 = pnand %p17146_p7, %p17289_p6 }
 0xe5f   : > { %p17152_p0 = por %p17151_p13, %p17150_p12 }
 0xe60   : > { %p17148_p11 = pneg %p17147_p10 }
 0xe61   : > { %p17154_p2 = por %p17153_p1, %p17152_p0 }
 0xe63   : > { %p17155_p3 = pnand %p17154_p2, %p17148_p11 }
 0xe65   : > { %17158 = shalt.err (!%p17155_p3)
}
 0xe66   : > { %16176 = dma.vmem_to_hbm [thread:$0]  (%p17289_p6), %s22538_s30, 32, %s22536_s17, %s13521_s18  }
 0xe67 PF: > { %s13547_s15 = sand.u32 1, %s17181_s11   ;;  %p16179_p4 = pnand %p13602_p9, %p17293_p8 }
 0xe68   : > { %s13548_s22 = scalar_lea.sflag [#allocation5], %s13547_s15 }
 0xe69   : > { %17176 = dma.done.wait (!%p16179_p4), %s13548_s22, 32  }
 0xe6a   : > { %17178 = vsyncadd (!%p16179_p4), %s13548_s22, 4294967264  ;;  %p21_p5 = scmp.ge.s32.totalorder %s17274_s16, 4   ;;  %s23340_s11 = smov %s17185_s12 }
 0xe6b   : > { %s23341_s12 = smov %s17189_s13  ;;  %s23342_s13 = smov %s17287_s19 }
 0xe6c   : > { %s23343_s14 = smov %s17274_s16  ;;  %23 = sbr.rel (!%p21_p5) target bundleno = 6 (0x6), region = 134 }
 0xe73   :  { %13553 = vsyncpa [#allocation5], 1 }
 0xe74   :  { %13555 = vsyncpa [#allocation5 + $0x1], 1 }

</bundles_post_ra>
